<compile_context>
chip_gen: v7x
topology: tpu7x:2x2x1
jax: 0.10.0
libtpu: 0.0.40
codegen_flags: <defaults>
</compile_context>

<pallas_src>
import functools
from dataclasses import dataclass

import jax
import jax.numpy as jnp
from jax import lax
from jax.experimental import pallas as pl
from jax.experimental.pallas import tpu as pltpu

MAX_SPIKE_TIME = 1e5


@dataclass
class ModelInfo:
    layer_shape: list
    weight_lr: float
    l2_lr: float
    scale: float
    in_channels: int | None = None
    flatten_size: int | None = None


# ---------------------------------------------------------------------------
# Kernel 1: one temporal-coding SNN layer, TB samples per grid step
# ---------------------------------------------------------------------------
def _snn_layer_kernel(u_ref, m_ref, zs_ref, zn_ref, o_ref):
    """u_ref : (N, N)           upper-triangular ones (inclusive prefix-sum operator), resident
       m_ref : (TB*2*n_out, N)  per-sample [ws ; ws*z] rows in sorted-input order (bf16)
       zs_ref: (TB, 1, N)       sorted input spike z-values (f32)
       zn_ref: (TB, 1, N)       next sorted z (MAX_SPIKE_TIME at the end)      (f32)
       o_ref : (TB, n_out, 1)   output spike z-values (f32)
    """
    tb, n_out = o_ref.shape[0], o_ref.shape[1]
    U = u_ref[...]
    # One fused MXU matmul gives both cumulative sums (cum_ws, cum_wi) for all TB samples.
    cum = jnp.dot(m_ref[...], U, preferred_element_type=jnp.float32)  # (TB*2*n_out, N) f32

    for t in range(tb):                                   # static unroll, static slices
        base = 2 * n_out * t
        cum_ws = cum[base:base + n_out, :]                # (n_out, N)
        cum_wi = cum[base + n_out:base + 2 * n_out, :]    # (n_out, N)
        zs = zs_ref[t]                                    # (1, N) broadcasts over rows
        zn = zn_ref[t]

        # clamp the denominator BEFORE masking; the cum_ws < 1 select overwrites those rows
        denom = jnp.maximum(cum_ws - 1.0, 1e-10)
        out = cum_wi * pl.reciprocal(denom, approx=True)
        bad = (cum_ws < 1.0) | (out < zs) | (out > zn)
        out = jnp.where(bad, MAX_SPIKE_TIME, out)
        o_ref[t] = jnp.min(out, axis=-1, keepdims=True)   # causal-set min -> (n_out, 1)


def snn_layer(z_in, W, *, tb=4, mxu_dtype=jnp.bfloat16):
    """Temporal-coding SNN layer: z_in (B, n_in) -> (B, n_out). W is (n_in+1, n_out)."""
    B0, n_in = z_in.shape
    N, n_out = W.shape
    assert N == n_in + 1, "weight must include the bias-input row"

    # pad the batch to a multiple of tb (padded rows are discarded below)
    Bp = ((B0 + tb - 1) // tb) * tb
    if Bp != B0:
        z_in = jnp.concatenate([z_in, jnp.ones((Bp - B0, n_in), z_in.dtype)], axis=0)
    B = Bp

    # bias spike at t=0 (z = exp(0) = 1); sort inputs by spike time (ascending z)
    z = jnp.concatenate([z_in, jnp.ones((B, 1), jnp.float32)], axis=1)           # (B, N)
    idx = jnp.argsort(z, axis=1)
    zs = jnp.take_along_axis(z, idx, axis=1)                                      # (B, N)
    zn = jnp.concatenate([zs[:, 1:], jnp.full((B, 1), MAX_SPIKE_TIME, jnp.float32)], axis=1)

    # wrapper-side weight gather (replaces the old one-hot P @ W matmul); lane-dense
    # layout: rows = output neurons, lanes = sorted-input index.
    ws_t = jnp.transpose(jnp.take(W, idx, axis=0), (0, 2, 1))                     # (B, n_out, N)
    wi_t = ws_t * zs[:, None, :]
    m2 = jnp.concatenate([ws_t, wi_t], axis=1).astype(mxu_dtype)                  # (B, 2*n_out, N)
    m2 = m2.reshape(B * 2 * n_out, N)                                             # sample-major rows

    u = jnp.triu(jnp.ones((N, N), mxu_dtype))            # inclusive prefix-sum operator
    zs3 = zs[:, None, :]
    zn3 = zn[:, None, :]

    rows = tb * 2 * n_out                                 # divisible by 8 for tb=4
    out = pl.pallas_call(
        _snn_layer_kernel,
        grid=(B // tb,),
        in_specs=[
            pl.BlockSpec((N, N), lambda b: (0, 0)),       # resident across grid steps
            pl.BlockSpec((rows, N), lambda b: (b, 0)),
            pl.BlockSpec((tb, 1, N), lambda b: (b, 0, 0)),
            pl.BlockSpec((tb, 1, N), lambda b: (b, 0, 0)),
        ],
        out_specs=pl.BlockSpec((tb, n_out, 1), lambda b: (b, 0, 0)),
        out_shape=jax.ShapeDtypeStruct((B, n_out, 1), jnp.float32),
        compiler_params=pltpu.CompilerParams(
            dimension_semantics=("parallel",)),           # v7x: shard batch over both TCs
    )(u, m2, zs3, zn3)
    return out[:B0, :, 0]


# ---------------------------------------------------------------------------
# Kernel 2: softmax(-z) cross-entropy loss (min-shifted for stability) + accuracy
# ---------------------------------------------------------------------------
def _loss_acc_kernel(x_ref, oh_ref, loss_ref, acc_ref):
    x = x_ref[...]                                        # (B, C) output spike z-values
    oh = oh_ref[...]                                      # (B, C) one-hot labels
    B, C = x.shape

    m = jnp.min(x, axis=1, keepdims=True)                 # stabilizing shift
    z_lab = jnp.sum(x * oh, axis=1, keepdims=True)
    z1 = jnp.exp(-(z_lab - m))
    z2 = jnp.sum(jnp.exp(-(x - m)), axis=1, keepdims=True)
    ratio = jnp.clip(z1 / z2, 1e-10, 1.0)
    per_loss = -jnp.log(ratio)                            # (B, 1)
    loss_ref[...] = jnp.sum(per_loss, axis=0, keepdims=True) / B       # (1, 1)

    col = lax.broadcasted_iota(jnp.int32, (B, C), 1).astype(jnp.float32)
    pred = jnp.min(jnp.where(x == m, col, float(C)), axis=1, keepdims=True)
    lab = jnp.sum(oh * col, axis=1, keepdims=True)
    hit = (pred == lab).astype(jnp.float32)
    acc_ref[...] = jnp.sum(hit, axis=0, keepdims=True) / B             # (1, 1)


# ---------------------------------------------------------------------------
# Full forward pass
# ---------------------------------------------------------------------------
def simple_cnn_forward(minfo, weights, image, label):
    B = image.shape[0]
    # input coding exp(scale*(1 - pixel)) + flatten: tiny elementwise work -> plain XLA
    x_out = jnp.exp(minfo.scale * (1.0 - image.reshape(B, -1).astype(jnp.float32)))

    for W in weights:
        x_out = snn_layer(x_out, W)

    num_classes = minfo.layer_shape[-1]
    onehot = jax.nn.one_hot(label, num_classes, dtype=jnp.float32)
    loss, correct = pl.pallas_call(
        _loss_acc_kernel,
        out_shape=(jax.ShapeDtypeStruct((1, 1), jnp.float32),
                   jax.ShapeDtypeStruct((1, 1), jnp.float32)),
    )(x_out, onehot)

    # regularizers: tiny reductions -> plain XLA (fused for free, no kernel launches)
    wsc = sum(jnp.mean(jax.nn.relu(1.0 - jnp.sum(W, axis=0))) for W in weights)
    l2c = sum(jnp.mean(jnp.square(W)) for W in weights)

    cost = loss[0, 0] + minfo.weight_lr * wsc + minfo.l2_lr * l2c
    return cost, correct[0, 0]


if __name__ == "__main__":
    # 'Flatten'-first configuration (no conv layers); the module's forward hard-codes a
    # view to (B, 1, 28, 28), so the input is 28x28 with a small batch.
    B, C, H, Wd = 8, 1, 28, 28
    flat = C * H * Wd
    minfo = ModelInfo(layer_shape=["Flatten", 32, 10], weight_lr=1.0, l2_lr=0.001,
                      scale=1.0, in_channels=C, flatten_size=flat)

    key = jax.random.PRNGKey(0)
    k_img, k_lab, k_w = jax.random.split(key, 3)
    image = jax.random.uniform(k_img, (B, C, H, Wd), jnp.float32)       # NCHW in [0, 1)
    label = jax.random.randint(k_lab, (B,), 0, minfo.layer_shape[-1])

    # per-layer weights with an extra bias-input row: (f_in + 1, f_out)
    mlp = [flat] + [s for s in minfo.layer_shape if isinstance(s, int)]
    weights = []
    for li, (fi, fo) in enumerate(zip(mlp[:-1], mlp[1:])):
        kk = jax.random.fold_in(k_w, li)
        weights.append(jax.random.uniform(kk, (fi + 1, fo), jnp.float32,
                                          minval=0.0, maxval=8.0 / (fi + 1)))
    weights = tuple(weights)

    fwd = jax.jit(functools.partial(simple_cnn_forward, minfo))
    cost, correct = fwd(weights, image, label)
    jax.block_until_ready((cost, correct))
    print("KERNEL_OK")
</pallas_src>

<mosaic_0001>
module attributes {stable_mosaic.version = 11 : i64} {
  func.func private @main(%arg0: i32) attributes {dimension_semantics = [#tpu.dimension_semantics<core_parallel>], iteration_bounds = array<i64: 2>, tpu.core_type = #tpu.core_type<sc_scalar_subcore>, window_params = []} {
    return
  }
}

module attributes {stable_mosaic.version = 11 : i64} {
  func.func private @main(%arg0: i32) attributes {dimension_semantics = [#tpu.dimension_semantics<core_parallel>], iteration_bounds = array<i64: 2>, tpu.core_type = #tpu.core_type<sc_scalar_subcore>, window_params = []} {
    return
  }
}

module attributes {stable_mosaic.version = 11 : i64} {
  func.func @_snn_layer_kernel(%arg0: i32, %arg1: memref<785x785xbf16, #tpu.memory_space<vmem>>, %arg2: memref<256x785xbf16, #tpu.memory_space<vmem>>, %arg3: memref<4x1x785xf32, #tpu.memory_space<vmem>>, %arg4: memref<4x1x785xf32, #tpu.memory_space<vmem>>, %arg5: memref<4x32x1xf32, #tpu.memory_space<vmem>>) attributes {dimension_semantics = [#tpu.dimension_semantics<parallel>], iteration_bounds = array<i64: 2>, scalar_prefetch = 0 : i64, scratch_operands = 0 : i64, tpu.core_type = #tpu.core_type<tc>, window_params = [{pipeline_mode = #tpu.pipeline_mode<synchronous>, transform_indices = @transform_0, window_bounds = array<i64: 785, 785>}, {transform_indices = @transform_1, window_bounds = array<i64: 256, 785>}, {transform_indices = @transform_2, window_bounds = array<i64: 4, 1, 785>}, {transform_indices = @transform_3, window_bounds = array<i64: 4, 1, 785>}, {transform_indices = @transform_4, window_bounds = array<i64: 4, 32, 1>}]} {
    %c0 = arith.constant 0 : index
    %c0_0 = arith.constant 0 : index
    %0 = vector.load %arg1[%c0, %c0_0] : memref<785x785xbf16, #tpu.memory_space<vmem>>, vector<785x785xbf16>
    %c0_1 = arith.constant 0 : index
    %c0_2 = arith.constant 0 : index
    %1 = vector.load %arg2[%c0_1, %c0_2] : memref<256x785xbf16, #tpu.memory_space<vmem>>, vector<256x785xbf16>
    %cst = arith.constant dense<0.000000e+00> : vector<256x785xf32>
    %2 = tpu.matmul %1, %0, %cst {dimension_numbers = #tpu.dot_dimension_numbers<[1], [0], [0], [1], [0, 0, 1, 1], [], []>} : vector<256x785xbf16>, vector<785x785xbf16>, vector<256x785xf32> -> vector<256x785xf32>
    %3 = vector.extract_strided_slice %2 {offsets = [0, 0], sizes = [32, 785], strides = [1, 1]} : vector<256x785xf32> to vector<32x785xf32>
    %4 = vector.extract_strided_slice %2 {offsets = [32, 0], sizes = [32, 785], strides = [1, 1]} : vector<256x785xf32> to vector<32x785xf32>
    %c0_3 = arith.constant 0 : index
    %c0_4 = arith.constant 0 : index
    %c0_5 = arith.constant 0 : index
    %5 = vector.load %arg3[%c0_3, %c0_4, %c0_5] : memref<4x1x785xf32, #tpu.memory_space<vmem>>, vector<1x1x785xf32>
    %6 = vector.shape_cast %5 : vector<1x1x785xf32> to vector<1x785xf32>
    %c0_6 = arith.constant 0 : index
    %c0_7 = arith.constant 0 : index
    %c0_8 = arith.constant 0 : index
    %7 = vector.load %arg4[%c0_6, %c0_7, %c0_8] : memref<4x1x785xf32, #tpu.memory_space<vmem>>, vector<1x1x785xf32>
    %8 = vector.shape_cast %7 : vector<1x1x785xf32> to vector<1x785xf32>
    %cst_9 = arith.constant 1.000000e+00 : f32
    %9 = vector.broadcast %cst_9 : f32 to vector<32x785xf32>
    %10 = arith.subf %3, %9 : vector<32x785xf32>
    %cst_10 = arith.constant 1.000000e-10 : f32
    %11 = vector.broadcast %cst_10 : f32 to vector<32x785xf32>
    %12 = arith.maximumf %10, %11 : vector<32x785xf32>
    %13 = tpu.reciprocal %12 {approx = true} : vector<32x785xf32> -> vector<32x785xf32>
    %14 = arith.mulf %4, %13 : vector<32x785xf32>
    %cst_11 = arith.constant 1.000000e+00 : f32
    %15 = vector.broadcast %cst_11 : f32 to vector<32x785xf32>
    %16 = arith.cmpf olt, %3, %15 : vector<32x785xf32>
    %17 = vector.broadcast %6 : vector<1x785xf32> to vector<32x785xf32>
    %18 = arith.cmpf olt, %14, %17 : vector<32x785xf32>
    %19 = arith.ori %16, %18 : vector<32x785xi1>
    %20 = vector.broadcast %8 : vector<1x785xf32> to vector<32x785xf32>
    %21 = arith.cmpf ogt, %14, %20 : vector<32x785xf32>
    %22 = arith.ori %19, %21 : vector<32x785xi1>
    %cst_12 = arith.constant 1.000000e+05 : f32
    %23 = vector.broadcast %cst_12 : f32 to vector<32x785xf32>
    %24 = arith.select %22, %23, %14 : vector<32x785xi1>, vector<32x785xf32>
    %cst_13 = arith.constant dense<0x7F800000> : vector<32xf32>
    %25 = vector.multi_reduction <minimumf>, %24, %cst_13 [1] : vector<32x785xf32> to vector<32xf32>
    %26 = vector.shape_cast %25 : vector<32xf32> to vector<32x1xf32>
    %c0_14 = arith.constant 0 : index
    %c0_15 = arith.constant 0 : index
    %c0_16 = arith.constant 0 : index
    %27 = vector.load %arg5[%c0_14, %c0_15, %c0_16] : memref<4x32x1xf32, #tpu.memory_space<vmem>>, vector<1x32x1xf32>
    %28 = vector.shape_cast %27 : vector<1x32x1xf32> to vector<32x1xf32>
    %29 = vector.shape_cast %26 : vector<32x1xf32> to vector<1x32x1xf32>
    tpu.vector_store %arg5[%c0_14, %c0_15, %c0_16], %29 {strides = array<i32>} : memref<4x32x1xf32, #tpu.memory_space<vmem>>, vector<1x32x1xf32>,
    %30 = vector.extract_strided_slice %2 {offsets = [64, 0], sizes = [32, 785], strides = [1, 1]} : vector<256x785xf32> to vector<32x785xf32>
    %31 = vector.extract_strided_slice %2 {offsets = [96, 0], sizes = [32, 785], strides = [1, 1]} : vector<256x785xf32> to vector<32x785xf32>
    %c1 = arith.constant 1 : index
    %c0_17 = arith.constant 0 : index
    %c0_18 = arith.constant 0 : index
    %32 = vector.load %arg3[%c1, %c0_17, %c0_18] : memref<4x1x785xf32, #tpu.memory_space<vmem>>, vector<1x1x785xf32>
    %33 = vector.shape_cast %32 : vector<1x1x785xf32> to vector<1x785xf32>
    %c1_19 = arith.constant 1 : index
    %c0_20 = arith.constant 0 : index
    %c0_21 = arith.constant 0 : index
    %34 = vector.load %arg4[%c1_19, %c0_20, %c0_21] : memref<4x1x785xf32, #tpu.memory_space<vmem>>, vector<1x1x785xf32>
    %35 = vector.shape_cast %34 : vector<1x1x785xf32> to vector<1x785xf32>
    %cst_22 = arith.constant 1.000000e+00 : f32
    %36 = vector.broadcast %cst_22 : f32 to vector<32x785xf32>
    %37 = arith.subf %30, %36 : vector<32x785xf32>
    %cst_23 = arith.constant 1.000000e-10 : f32
    %38 = vector.broadcast %cst_23 : f32 to vector<32x785xf32>
    %39 = arith.maximumf %37, %38 : vector<32x785xf32>
    %40 = tpu.reciprocal %39 {approx = true} : vector<32x785xf32> -> vector<32x785xf32>
    %41 = arith.mulf %31, %40 : vector<32x785xf32>
    %cst_24 = arith.constant 1.000000e+00 : f32
    %42 = vector.broadcast %cst_24 : f32 to vector<32x785xf32>
    %43 = arith.cmpf olt, %30, %42 : vector<32x785xf32>
    %44 = vector.broadcast %33 : vector<1x785xf32> to vector<32x785xf32>
    %45 = arith.cmpf olt, %41, %44 : vector<32x785xf32>
    %46 = arith.ori %43, %45 : vector<32x785xi1>
    %47 = vector.broadcast %35 : vector<1x785xf32> to vector<32x785xf32>
    %48 = arith.cmpf ogt, %41, %47 : vector<32x785xf32>
    %49 = arith.ori %46, %48 : vector<32x785xi1>
    %cst_25 = arith.constant 1.000000e+05 : f32
    %50 = vector.broadcast %cst_25 : f32 to vector<32x785xf32>
    %51 = arith.select %49, %50, %41 : vector<32x785xi1>, vector<32x785xf32>
    %cst_26 = arith.constant dense<0x7F800000> : vector<32xf32>
    %52 = vector.multi_reduction <minimumf>, %51, %cst_26 [1] : vector<32x785xf32> to vector<32xf32>
    %53 = vector.shape_cast %52 : vector<32xf32> to vector<32x1xf32>
    %c1_27 = arith.constant 1 : index
    %c0_28 = arith.constant 0 : index
    %c0_29 = arith.constant 0 : index
    %54 = vector.load %arg5[%c1_27, %c0_28, %c0_29] : memref<4x32x1xf32, #tpu.memory_space<vmem>>, vector<1x32x1xf32>
    %55 = vector.shape_cast %54 : vector<1x32x1xf32> to vector<32x1xf32>
    %56 = vector.shape_cast %53 : vector<32x1xf32> to vector<1x32x1xf32>
    tpu.vector_store %arg5[%c1_27, %c0_28, %c0_29], %56 {strides = array<i32>} : memref<4x32x1xf32, #tpu.memory_space<vmem>>, vector<1x32x1xf32>,
    %57 = vector.extract_strided_slice %2 {offsets = [128, 0], sizes = [32, 785], strides = [1, 1]} : vector<256x785xf32> to vector<32x785xf32>
    %58 = vector.extract_strided_slice %2 {offsets = [160, 0], sizes = [32, 785], strides = [1, 1]} : vector<256x785xf32> to vector<32x785xf32>
    %c2 = arith.constant 2 : index
    %c0_30 = arith.constant 0 : index
    %c0_31 = arith.constant 0 : index
    %59 = vector.load %arg3[%c2, %c0_30, %c0_31] : memref<4x1x785xf32, #tpu.memory_space<vmem>>, vector<1x1x785xf32>
    %60 = vector.shape_cast %59 : vector<1x1x785xf32> to vector<1x785xf32>
    %c2_32 = arith.constant 2 : index
    %c0_33 = arith.constant 0 : index
    %c0_34 = arith.constant 0 : index
    %61 = vector.load %arg4[%c2_32, %c0_33, %c0_34] : memref<4x1x785xf32, #tpu.memory_space<vmem>>, vector<1x1x785xf32>
    %62 = vector.shape_cast %61 : vector<1x1x785xf32> to vector<1x785xf32>
    %cst_35 = arith.constant 1.000000e+00 : f32
    %63 = vector.broadcast %cst_35 : f32 to vector<32x785xf32>
    %64 = arith.subf %57, %63 : vector<32x785xf32>
    %cst_36 = arith.constant 1.000000e-10 : f32
    %65 = vector.broadcast %cst_36 : f32 to vector<32x785xf32>
    %66 = arith.maximumf %64, %65 : vector<32x785xf32>
    %67 = tpu.reciprocal %66 {approx = true} : vector<32x785xf32> -> vector<32x785xf32>
    %68 = arith.mulf %58, %67 : vector<32x785xf32>
    %cst_37 = arith.constant 1.000000e+00 : f32
    %69 = vector.broadcast %cst_37 : f32 to vector<32x785xf32>
    %70 = arith.cmpf olt, %57, %69 : vector<32x785xf32>
    %71 = vector.broadcast %60 : vector<1x785xf32> to vector<32x785xf32>
    %72 = arith.cmpf olt, %68, %71 : vector<32x785xf32>
    %73 = arith.ori %70, %72 : vector<32x785xi1>
    %74 = vector.broadcast %62 : vector<1x785xf32> to vector<32x785xf32>
    %75 = arith.cmpf ogt, %68, %74 : vector<32x785xf32>
    %76 = arith.ori %73, %75 : vector<32x785xi1>
    %cst_38 = arith.constant 1.000000e+05 : f32
    %77 = vector.broadcast %cst_38 : f32 to vector<32x785xf32>
    %78 = arith.select %76, %77, %68 : vector<32x785xi1>, vector<32x785xf32>
    %cst_39 = arith.constant dense<0x7F800000> : vector<32xf32>
    %79 = vector.multi_reduction <minimumf>, %78, %cst_39 [1] : vector<32x785xf32> to vector<32xf32>
    %80 = vector.shape_cast %79 : vector<32xf32> to vector<32x1xf32>
    %c2_40 = arith.constant 2 : index
    %c0_41 = arith.constant 0 : index
    %c0_42 = arith.constant 0 : index
    %81 = vector.load %arg5[%c2_40, %c0_41, %c0_42] : memref<4x32x1xf32, #tpu.memory_space<vmem>>, vector<1x32x1xf32>
    %82 = vector.shape_cast %81 : vector<1x32x1xf32> to vector<32x1xf32>
    %83 = vector.shape_cast %80 : vector<32x1xf32> to vector<1x32x1xf32>
    tpu.vector_store %arg5[%c2_40, %c0_41, %c0_42], %83 {strides = array<i32>} : memref<4x32x1xf32, #tpu.memory_space<vmem>>, vector<1x32x1xf32>,
    %84 = vector.extract_strided_slice %2 {offsets = [192, 0], sizes = [32, 785], strides = [1, 1]} : vector<256x785xf32> to vector<32x785xf32>
    %85 = vector.extract_strided_slice %2 {offsets = [224, 0], sizes = [32, 785], strides = [1, 1]} : vector<256x785xf32> to vector<32x785xf32>
    %c3 = arith.constant 3 : index
    %c0_43 = arith.constant 0 : index
    %c0_44 = arith.constant 0 : index
    %86 = vector.load %arg3[%c3, %c0_43, %c0_44] : memref<4x1x785xf32, #tpu.memory_space<vmem>>, vector<1x1x785xf32>
    %87 = vector.shape_cast %86 : vector<1x1x785xf32> to vector<1x785xf32>
    %c3_45 = arith.constant 3 : index
    %c0_46 = arith.constant 0 : index
    %c0_47 = arith.constant 0 : index
    %88 = vector.load %arg4[%c3_45, %c0_46, %c0_47] : memref<4x1x785xf32, #tpu.memory_space<vmem>>, vector<1x1x785xf32>
    %89 = vector.shape_cast %88 : vector<1x1x785xf32> to vector<1x785xf32>
    %cst_48 = arith.constant 1.000000e+00 : f32
    %90 = vector.broadcast %cst_48 : f32 to vector<32x785xf32>
    %91 = arith.subf %84, %90 : vector<32x785xf32>
    %cst_49 = arith.constant 1.000000e-10 : f32
    %92 = vector.broadcast %cst_49 : f32 to vector<32x785xf32>
    %93 = arith.maximumf %91, %92 : vector<32x785xf32>
    %94 = tpu.reciprocal %93 {approx = true} : vector<32x785xf32> -> vector<32x785xf32>
    %95 = arith.mulf %85, %94 : vector<32x785xf32>
    %cst_50 = arith.constant 1.000000e+00 : f32
    %96 = vector.broadcast %cst_50 : f32 to vector<32x785xf32>
    %97 = arith.cmpf olt, %84, %96 : vector<32x785xf32>
    %98 = vector.broadcast %87 : vector<1x785xf32> to vector<32x785xf32>
    %99 = arith.cmpf olt, %95, %98 : vector<32x785xf32>
    %100 = arith.ori %97, %99 : vector<32x785xi1>
    %101 = vector.broadcast %89 : vector<1x785xf32> to vector<32x785xf32>
    %102 = arith.cmpf ogt, %95, %101 : vector<32x785xf32>
    %103 = arith.ori %100, %102 : vector<32x785xi1>
    %cst_51 = arith.constant 1.000000e+05 : f32
    %104 = vector.broadcast %cst_51 : f32 to vector<32x785xf32>
    %105 = arith.select %103, %104, %95 : vector<32x785xi1>, vector<32x785xf32>
    %cst_52 = arith.constant dense<0x7F800000> : vector<32xf32>
    %106 = vector.multi_reduction <minimumf>, %105, %cst_52 [1] : vector<32x785xf32> to vector<32xf32>
    %107 = vector.shape_cast %106 : vector<32xf32> to vector<32x1xf32>
    %c3_53 = arith.constant 3 : index
    %c0_54 = arith.constant 0 : index
    %c0_55 = arith.constant 0 : index
    %108 = vector.load %arg5[%c3_53, %c0_54, %c0_55] : memref<4x32x1xf32, #tpu.memory_space<vmem>>, vector<1x32x1xf32>
    %109 = vector.shape_cast %108 : vector<1x32x1xf32> to vector<32x1xf32>
    %110 = vector.shape_cast %107 : vector<32x1xf32> to vector<1x32x1xf32>
    tpu.vector_store %arg5[%c3_53, %c0_54, %c0_55], %110 {strides = array<i32>} : memref<4x32x1xf32, #tpu.memory_space<vmem>>, vector<1x32x1xf32>,
    return
  }
  func.func @transform_0(%arg0: i32) -> (i32, i32) {
    %c0_i32 = arith.constant 0 : i32
    %c0_i32_0 = arith.constant 0 : i32
    %c0_i32_1 = arith.constant 0 : i32
    return %c0_i32, %c0_i32_0 : i32, i32
  }
  func.func @transform_1(%arg0: i32) -> (i32, i32) {
    %c0_i32 = arith.constant 0 : i32
    %c0_i32_0 = arith.constant 0 : i32
    return %arg0, %c0_i32 : i32, i32
  }
  func.func @transform_2(%arg0: i32) -> (i32, i32, i32) {
    %c0_i32 = arith.constant 0 : i32
    %c0_i32_0 = arith.constant 0 : i32
    %c0_i32_1 = arith.constant 0 : i32
    return %arg0, %c0_i32, %c0_i32_0 : i32, i32, i32
  }
  func.func @transform_3(%arg0: i32) -> (i32, i32, i32) {
    %c0_i32 = arith.constant 0 : i32
    %c0_i32_0 = arith.constant 0 : i32
    %c0_i32_1 = arith.constant 0 : i32
    return %arg0, %c0_i32, %c0_i32_0 : i32, i32, i32
  }
  func.func @transform_4(%arg0: i32) -> (i32, i32, i32) {
    %c0_i32 = arith.constant 0 : i32
    %c0_i32_0 = arith.constant 0 : i32
    %c0_i32_1 = arith.constant 0 : i32
    return %arg0, %c0_i32, %c0_i32_0 : i32, i32, i32
  }
}

module attributes {stable_mosaic.version = 11 : i64} {
  func.func @_snn_layer_kernel(%arg0: i32, %arg1: memref<33x33xbf16, #tpu.memory_space<vmem>>, %arg2: memref<80x33xbf16, #tpu.memory_space<vmem>>, %arg3: memref<4x1x33xf32, #tpu.memory_space<vmem>>, %arg4: memref<4x1x33xf32, #tpu.memory_space<vmem>>, %arg5: memref<4x10x1xf32, #tpu.memory_space<vmem>>) attributes {dimension_semantics = [#tpu.dimension_semantics<parallel>], iteration_bounds = array<i64: 2>, scalar_prefetch = 0 : i64, scratch_operands = 0 : i64, tpu.core_type = #tpu.core_type<tc>, window_params = [{pipeline_mode = #tpu.pipeline_mode<synchronous>, transform_indices = @transform_0, window_bounds = array<i64: 33, 33>}, {transform_indices = @transform_1, window_bounds = array<i64: 80, 33>}, {transform_indices = @transform_2, window_bounds = array<i64: 4, 1, 33>}, {transform_indices = @transform_3, window_bounds = array<i64: 4, 1, 33>}, {transform_indices = @transform_4, window_bounds = array<i64: 4, 10, 1>}]} {
    %c0 = arith.constant 0 : index
    %c0_0 = arith.constant 0 : index
    %0 = vector.load %arg1[%c0, %c0_0] : memref<33x33xbf16, #tpu.memory_space<vmem>>, vector<33x33xbf16>
    %c0_1 = arith.constant 0 : index
    %c0_2 = arith.constant 0 : index
    %1 = vector.load %arg2[%c0_1, %c0_2] : memref<80x33xbf16, #tpu.memory_space<vmem>>, vector<80x33xbf16>
    %cst = arith.constant dense<0.000000e+00> : vector<80x33xf32>
    %2 = tpu.matmul %1, %0, %cst {dimension_numbers = #tpu.dot_dimension_numbers<[1], [0], [0], [1], [0, 0, 1, 1], [], []>} : vector<80x33xbf16>, vector<33x33xbf16>, vector<80x33xf32> -> vector<80x33xf32>
    %3 = vector.extract_strided_slice %2 {offsets = [0, 0], sizes = [10, 33], strides = [1, 1]} : vector<80x33xf32> to vector<10x33xf32>
    %4 = vector.extract_strided_slice %2 {offsets = [10, 0], sizes = [10, 33], strides = [1, 1]} : vector<80x33xf32> to vector<10x33xf32>
    %c0_3 = arith.constant 0 : index
    %c0_4 = arith.constant 0 : index
    %c0_5 = arith.constant 0 : index
    %5 = vector.load %arg3[%c0_3, %c0_4, %c0_5] : memref<4x1x33xf32, #tpu.memory_space<vmem>>, vector<1x1x33xf32>
    %6 = vector.shape_cast %5 : vector<1x1x33xf32> to vector<1x33xf32>
    %c0_6 = arith.constant 0 : index
    %c0_7 = arith.constant 0 : index
    %c0_8 = arith.constant 0 : index
    %7 = vector.load %arg4[%c0_6, %c0_7, %c0_8] : memref<4x1x33xf32, #tpu.memory_space<vmem>>, vector<1x1x33xf32>
    %8 = vector.shape_cast %7 : vector<1x1x33xf32> to vector<1x33xf32>
    %cst_9 = arith.constant 1.000000e+00 : f32
    %9 = vector.broadcast %cst_9 : f32 to vector<10x33xf32>
    %10 = arith.subf %3, %9 : vector<10x33xf32>
    %cst_10 = arith.constant 1.000000e-10 : f32
    %11 = vector.broadcast %cst_10 : f32 to vector<10x33xf32>
    %12 = arith.maximumf %10, %11 : vector<10x33xf32>
    %13 = tpu.reciprocal %12 {approx = true} : vector<10x33xf32> -> vector<10x33xf32>
    %14 = arith.mulf %4, %13 : vector<10x33xf32>
    %cst_11 = arith.constant 1.000000e+00 : f32
    %15 = vector.broadcast %cst_11 : f32 to vector<10x33xf32>
    %16 = arith.cmpf olt, %3, %15 : vector<10x33xf32>
    %17 = vector.broadcast %6 : vector<1x33xf32> to vector<10x33xf32>
    %18 = arith.cmpf olt, %14, %17 : vector<10x33xf32>
    %19 = arith.ori %16, %18 : vector<10x33xi1>
    %20 = vector.broadcast %8 : vector<1x33xf32> to vector<10x33xf32>
    %21 = arith.cmpf ogt, %14, %20 : vector<10x33xf32>
    %22 = arith.ori %19, %21 : vector<10x33xi1>
    %cst_12 = arith.constant 1.000000e+05 : f32
    %23 = vector.broadcast %cst_12 : f32 to vector<10x33xf32>
    %24 = arith.select %22, %23, %14 : vector<10x33xi1>, vector<10x33xf32>
    %cst_13 = arith.constant dense<0x7F800000> : vector<10xf32>
    %25 = vector.multi_reduction <minimumf>, %24, %cst_13 [1] : vector<10x33xf32> to vector<10xf32>
    %26 = vector.shape_cast %25 : vector<10xf32> to vector<10x1xf32>
    %c0_14 = arith.constant 0 : index
    %c0_15 = arith.constant 0 : index
    %c0_16 = arith.constant 0 : index
    %27 = vector.load %arg5[%c0_14, %c0_15, %c0_16] : memref<4x10x1xf32, #tpu.memory_space<vmem>>, vector<1x10x1xf32>
    %28 = vector.shape_cast %27 : vector<1x10x1xf32> to vector<10x1xf32>
    %29 = vector.shape_cast %26 : vector<10x1xf32> to vector<1x10x1xf32>
    tpu.vector_store %arg5[%c0_14, %c0_15, %c0_16], %29 {strides = array<i32>} : memref<4x10x1xf32, #tpu.memory_space<vmem>>, vector<1x10x1xf32>,
    %30 = vector.extract_strided_slice %2 {offsets = [20, 0], sizes = [10, 33], strides = [1, 1]} : vector<80x33xf32> to vector<10x33xf32>
    %31 = vector.extract_strided_slice %2 {offsets = [30, 0], sizes = [10, 33], strides = [1, 1]} : vector<80x33xf32> to vector<10x33xf32>
    %c1 = arith.constant 1 : index
    %c0_17 = arith.constant 0 : index
    %c0_18 = arith.constant 0 : index
    %32 = vector.load %arg3[%c1, %c0_17, %c0_18] : memref<4x1x33xf32, #tpu.memory_space<vmem>>, vector<1x1x33xf32>
    %33 = vector.shape_cast %32 : vector<1x1x33xf32> to vector<1x33xf32>
    %c1_19 = arith.constant 1 : index
    %c0_20 = arith.constant 0 : index
    %c0_21 = arith.constant 0 : index
    %34 = vector.load %arg4[%c1_19, %c0_20, %c0_21] : memref<4x1x33xf32, #tpu.memory_space<vmem>>, vector<1x1x33xf32>
    %35 = vector.shape_cast %34 : vector<1x1x33xf32> to vector<1x33xf32>
    %cst_22 = arith.constant 1.000000e+00 : f32
    %36 = vector.broadcast %cst_22 : f32 to vector<10x33xf32>
    %37 = arith.subf %30, %36 : vector<10x33xf32>
    %cst_23 = arith.constant 1.000000e-10 : f32
    %38 = vector.broadcast %cst_23 : f32 to vector<10x33xf32>
    %39 = arith.maximumf %37, %38 : vector<10x33xf32>
    %40 = tpu.reciprocal %39 {approx = true} : vector<10x33xf32> -> vector<10x33xf32>
    %41 = arith.mulf %31, %40 : vector<10x33xf32>
    %cst_24 = arith.constant 1.000000e+00 : f32
    %42 = vector.broadcast %cst_24 : f32 to vector<10x33xf32>
    %43 = arith.cmpf olt, %30, %42 : vector<10x33xf32>
    %44 = vector.broadcast %33 : vector<1x33xf32> to vector<10x33xf32>
    %45 = arith.cmpf olt, %41, %44 : vector<10x33xf32>
    %46 = arith.ori %43, %45 : vector<10x33xi1>
    %47 = vector.broadcast %35 : vector<1x33xf32> to vector<10x33xf32>
    %48 = arith.cmpf ogt, %41, %47 : vector<10x33xf32>
    %49 = arith.ori %46, %48 : vector<10x33xi1>
    %cst_25 = arith.constant 1.000000e+05 : f32
    %50 = vector.broadcast %cst_25 : f32 to vector<10x33xf32>
    %51 = arith.select %49, %50, %41 : vector<10x33xi1>, vector<10x33xf32>
    %cst_26 = arith.constant dense<0x7F800000> : vector<10xf32>
    %52 = vector.multi_reduction <minimumf>, %51, %cst_26 [1] : vector<10x33xf32> to vector<10xf32>
    %53 = vector.shape_cast %52 : vector<10xf32> to vector<10x1xf32>
    %c1_27 = arith.constant 1 : index
    %c0_28 = arith.constant 0 : index
    %c0_29 = arith.constant 0 : index
    %54 = vector.load %arg5[%c1_27, %c0_28, %c0_29] : memref<4x10x1xf32, #tpu.memory_space<vmem>>, vector<1x10x1xf32>
    %55 = vector.shape_cast %54 : vector<1x10x1xf32> to vector<10x1xf32>
    %56 = vector.shape_cast %53 : vector<10x1xf32> to vector<1x10x1xf32>
    tpu.vector_store %arg5[%c1_27, %c0_28, %c0_29], %56 {strides = array<i32>} : memref<4x10x1xf32, #tpu.memory_space<vmem>>, vector<1x10x1xf32>,
    %57 = vector.extract_strided_slice %2 {offsets = [40, 0], sizes = [10, 33], strides = [1, 1]} : vector<80x33xf32> to vector<10x33xf32>
    %58 = vector.extract_strided_slice %2 {offsets = [50, 0], sizes = [10, 33], strides = [1, 1]} : vector<80x33xf32> to vector<10x33xf32>
    %c2 = arith.constant 2 : index
    %c0_30 = arith.constant 0 : index
    %c0_31 = arith.constant 0 : index
    %59 = vector.load %arg3[%c2, %c0_30, %c0_31] : memref<4x1x33xf32, #tpu.memory_space<vmem>>, vector<1x1x33xf32>
    %60 = vector.shape_cast %59 : vector<1x1x33xf32> to vector<1x33xf32>
    %c2_32 = arith.constant 2 : index
    %c0_33 = arith.constant 0 : index
    %c0_34 = arith.constant 0 : index
    %61 = vector.load %arg4[%c2_32, %c0_33, %c0_34] : memref<4x1x33xf32, #tpu.memory_space<vmem>>, vector<1x1x33xf32>
    %62 = vector.shape_cast %61 : vector<1x1x33xf32> to vector<1x33xf32>
    %cst_35 = arith.constant 1.000000e+00 : f32
    %63 = vector.broadcast %cst_35 : f32 to vector<10x33xf32>
    %64 = arith.subf %57, %63 : vector<10x33xf32>
    %cst_36 = arith.constant 1.000000e-10 : f32
    %65 = vector.broadcast %cst_36 : f32 to vector<10x33xf32>
    %66 = arith.maximumf %64, %65 : vector<10x33xf32>
    %67 = tpu.reciprocal %66 {approx = true} : vector<10x33xf32> -> vector<10x33xf32>
    %68 = arith.mulf %58, %67 : vector<10x33xf32>
    %cst_37 = arith.constant 1.000000e+00 : f32
    %69 = vector.broadcast %cst_37 : f32 to vector<10x33xf32>
    %70 = arith.cmpf olt, %57, %69 : vector<10x33xf32>
    %71 = vector.broadcast %60 : vector<1x33xf32> to vector<10x33xf32>
    %72 = arith.cmpf olt, %68, %71 : vector<10x33xf32>
    %73 = arith.ori %70, %72 : vector<10x33xi1>
    %74 = vector.broadcast %62 : vector<1x33xf32> to vector<10x33xf32>
    %75 = arith.cmpf ogt, %68, %74 : vector<10x33xf32>
    %76 = arith.ori %73, %75 : vector<10x33xi1>
    %cst_38 = arith.constant 1.000000e+05 : f32
    %77 = vector.broadcast %cst_38 : f32 to vector<10x33xf32>
    %78 = arith.select %76, %77, %68 : vector<10x33xi1>, vector<10x33xf32>
    %cst_39 = arith.constant dense<0x7F800000> : vector<10xf32>
    %79 = vector.multi_reduction <minimumf>, %78, %cst_39 [1] : vector<10x33xf32> to vector<10xf32>
    %80 = vector.shape_cast %79 : vector<10xf32> to vector<10x1xf32>
    %c2_40 = arith.constant 2 : index
    %c0_41 = arith.constant 0 : index
    %c0_42 = arith.constant 0 : index
    %81 = vector.load %arg5[%c2_40, %c0_41, %c0_42] : memref<4x10x1xf32, #tpu.memory_space<vmem>>, vector<1x10x1xf32>
    %82 = vector.shape_cast %81 : vector<1x10x1xf32> to vector<10x1xf32>
    %83 = vector.shape_cast %80 : vector<10x1xf32> to vector<1x10x1xf32>
    tpu.vector_store %arg5[%c2_40, %c0_41, %c0_42], %83 {strides = array<i32>} : memref<4x10x1xf32, #tpu.memory_space<vmem>>, vector<1x10x1xf32>,
    %84 = vector.extract_strided_slice %2 {offsets = [60, 0], sizes = [10, 33], strides = [1, 1]} : vector<80x33xf32> to vector<10x33xf32>
    %85 = vector.extract_strided_slice %2 {offsets = [70, 0], sizes = [10, 33], strides = [1, 1]} : vector<80x33xf32> to vector<10x33xf32>
    %c3 = arith.constant 3 : index
    %c0_43 = arith.constant 0 : index
    %c0_44 = arith.constant 0 : index
    %86 = vector.load %arg3[%c3, %c0_43, %c0_44] : memref<4x1x33xf32, #tpu.memory_space<vmem>>, vector<1x1x33xf32>
    %87 = vector.shape_cast %86 : vector<1x1x33xf32> to vector<1x33xf32>
    %c3_45 = arith.constant 3 : index
    %c0_46 = arith.constant 0 : index
    %c0_47 = arith.constant 0 : index
    %88 = vector.load %arg4[%c3_45, %c0_46, %c0_47] : memref<4x1x33xf32, #tpu.memory_space<vmem>>, vector<1x1x33xf32>
    %89 = vector.shape_cast %88 : vector<1x1x33xf32> to vector<1x33xf32>
    %cst_48 = arith.constant 1.000000e+00 : f32
    %90 = vector.broadcast %cst_48 : f32 to vector<10x33xf32>
    %91 = arith.subf %84, %90 : vector<10x33xf32>
    %cst_49 = arith.constant 1.000000e-10 : f32
    %92 = vector.broadcast %cst_49 : f32 to vector<10x33xf32>
    %93 = arith.maximumf %91, %92 : vector<10x33xf32>
    %94 = tpu.reciprocal %93 {approx = true} : vector<10x33xf32> -> vector<10x33xf32>
    %95 = arith.mulf %85, %94 : vector<10x33xf32>
    %cst_50 = arith.constant 1.000000e+00 : f32
    %96 = vector.broadcast %cst_50 : f32 to vector<10x33xf32>
    %97 = arith.cmpf olt, %84, %96 : vector<10x33xf32>
    %98 = vector.broadcast %87 : vector<1x33xf32> to vector<10x33xf32>
    %99 = arith.cmpf olt, %95, %98 : vector<10x33xf32>
    %100 = arith.ori %97, %99 : vector<10x33xi1>
    %101 = vector.broadcast %89 : vector<1x33xf32> to vector<10x33xf32>
    %102 = arith.cmpf ogt, %95, %101 : vector<10x33xf32>
    %103 = arith.ori %100, %102 : vector<10x33xi1>
    %cst_51 = arith.constant 1.000000e+05 : f32
    %104 = vector.broadcast %cst_51 : f32 to vector<10x33xf32>
    %105 = arith.select %103, %104, %95 : vector<10x33xi1>, vector<10x33xf32>
    %cst_52 = arith.constant dense<0x7F800000> : vector<10xf32>
    %106 = vector.multi_reduction <minimumf>, %105, %cst_52 [1] : vector<10x33xf32> to vector<10xf32>
    %107 = vector.shape_cast %106 : vector<10xf32> to vector<10x1xf32>
    %c3_53 = arith.constant 3 : index
    %c0_54 = arith.constant 0 : index
    %c0_55 = arith.constant 0 : index
    %108 = vector.load %arg5[%c3_53, %c0_54, %c0_55] : memref<4x10x1xf32, #tpu.memory_space<vmem>>, vector<1x10x1xf32>
    %109 = vector.shape_cast %108 : vector<1x10x1xf32> to vector<10x1xf32>
    %110 = vector.shape_cast %107 : vector<10x1xf32> to vector<1x10x1xf32>
    tpu.vector_store %arg5[%c3_53, %c0_54, %c0_55], %110 {strides = array<i32>} : memref<4x10x1xf32, #tpu.memory_space<vmem>>, vector<1x10x1xf32>,
    return
  }
  func.func @transform_0(%arg0: i32) -> (i32, i32) {
    %c0_i32 = arith.constant 0 : i32
    %c0_i32_0 = arith.constant 0 : i32
    %c0_i32_1 = arith.constant 0 : i32
    return %c0_i32, %c0_i32_0 : i32, i32
  }
  func.func @transform_1(%arg0: i32) -> (i32, i32) {
    %c0_i32 = arith.constant 0 : i32
    %c0_i32_0 = arith.constant 0 : i32
    return %arg0, %c0_i32 : i32, i32
  }
  func.func @transform_2(%arg0: i32) -> (i32, i32, i32) {
    %c0_i32 = arith.constant 0 : i32
    %c0_i32_0 = arith.constant 0 : i32
    %c0_i32_1 = arith.constant 0 : i32
    return %arg0, %c0_i32, %c0_i32_0 : i32, i32, i32
  }
  func.func @transform_3(%arg0: i32) -> (i32, i32, i32) {
    %c0_i32 = arith.constant 0 : i32
    %c0_i32_0 = arith.constant 0 : i32
    %c0_i32_1 = arith.constant 0 : i32
    return %arg0, %c0_i32, %c0_i32_0 : i32, i32, i32
  }
  func.func @transform_4(%arg0: i32) -> (i32, i32, i32) {
    %c0_i32 = arith.constant 0 : i32
    %c0_i32_0 = arith.constant 0 : i32
    %c0_i32_1 = arith.constant 0 : i32
    return %arg0, %c0_i32, %c0_i32_0 : i32, i32, i32
  }
}

module attributes {stable_mosaic.version = 11 : i64} {
  func.func @_loss_acc_kernel(%arg0: memref<8x10xf32, #tpu.memory_space<vmem>>, %arg1: memref<8x10xf32, #tpu.memory_space<vmem>>, %arg2: memref<1x1xf32, #tpu.memory_space<vmem>>, %arg3: memref<1x1xf32, #tpu.memory_space<vmem>>) attributes {dimension_semantics = [], scalar_prefetch = 0 : i64, scratch_operands = 0 : i64, tpu.core_type = #tpu.core_type<tc>} {
    %c0 = arith.constant 0 : index
    %c0_0 = arith.constant 0 : index
    %0 = vector.load %arg0[%c0, %c0_0] : memref<8x10xf32, #tpu.memory_space<vmem>>, vector<8x10xf32>
    %c0_1 = arith.constant 0 : index
    %c0_2 = arith.constant 0 : index
    %1 = vector.load %arg1[%c0_1, %c0_2] : memref<8x10xf32, #tpu.memory_space<vmem>>, vector<8x10xf32>
    %cst = arith.constant dense<0x7F800000> : vector<8xf32>
    %2 = vector.multi_reduction <minimumf>, %0, %cst [1] : vector<8x10xf32> to vector<8xf32>
    %3 = vector.shape_cast %2 : vector<8xf32> to vector<8x1xf32>
    %4 = arith.mulf %0, %1 : vector<8x10xf32>
    %cst_3 = arith.constant dense<0.000000e+00> : vector<8xf32>
    %5 = vector.multi_reduction <add>, %4, %cst_3 [1] : vector<8x10xf32> to vector<8xf32>
    %6 = vector.shape_cast %5 : vector<8xf32> to vector<8x1xf32>
    %7 = arith.subf %6, %3 : vector<8x1xf32>
    %cst_4 = arith.constant 0.000000e+00 : f32
    %8 = vector.broadcast %cst_4 : f32 to vector<8x1xf32>
    %9 = arith.subf %8, %7 : vector<8x1xf32>
    %10 = math.exp %9 : vector<8x1xf32>
    %11 = vector.broadcast %3 : vector<8x1xf32> to vector<8x10xf32>
    %12 = arith.subf %0, %11 : vector<8x10xf32>
    %cst_5 = arith.constant 0.000000e+00 : f32
    %13 = vector.broadcast %cst_5 : f32 to vector<8x10xf32>
    %14 = arith.subf %13, %12 : vector<8x10xf32>
    %15 = math.exp %14 : vector<8x10xf32>
    %cst_6 = arith.constant dense<0.000000e+00> : vector<8xf32>
    %16 = vector.multi_reduction <add>, %15, %cst_6 [1] : vector<8x10xf32> to vector<8xf32>
    %17 = vector.shape_cast %16 : vector<8xf32> to vector<8x1xf32>
    %18 = arith.divf %10, %17 : vector<8x1xf32>
    %cst_7 = arith.constant 1.000000e-10 : f32
    %cst_8 = arith.constant 1.000000e+00 : f32
    %19 = vector.broadcast %cst_7 : f32 to vector<8x1xf32>
    %20 = arith.maximumf %19, %18 : vector<8x1xf32>
    %21 = vector.broadcast %cst_8 : f32 to vector<8x1xf32>
    %22 = arith.minimumf %21, %20 : vector<8x1xf32>
    %23 = math.log %22 : vector<8x1xf32>
    %cst_9 = arith.constant 0.000000e+00 : f32
    %24 = vector.broadcast %cst_9 : f32 to vector<8x1xf32>
    %25 = arith.subf %24, %23 : vector<8x1xf32>
    %cst_10 = arith.constant dense<0.000000e+00> : vector<1xf32>
    %26 = vector.multi_reduction <add>, %25, %cst_10 [0] : vector<8x1xf32> to vector<1xf32>
    %27 = vector.shape_cast %26 : vector<1xf32> to vector<1x1xf32>
    %cst_11 = arith.constant 8.000000e+00 : f32
    %28 = vector.broadcast %cst_11 : f32 to vector<1x1xf32>
    %29 = arith.divf %27, %28 : vector<1x1xf32>
    %c0_12 = arith.constant 0 : index
    %c0_13 = arith.constant 0 : index
    %30 = vector.load %arg2[%c0_12, %c0_13] : memref<1x1xf32, #tpu.memory_space<vmem>>, vector<1x1xf32>
    tpu.vector_store %arg2[%c0_12, %c0_13], %29 {strides = array<i32>} : memref<1x1xf32, #tpu.memory_space<vmem>>, vector<1x1xf32>,
    %31 = tpu.iota {dimensions = array<i32: 1>} : vector<8x10xi32>
    %32 = arith.sitofp %31 : vector<8x10xi32> to vector<8x10xf32>
    %33 = vector.broadcast %3 : vector<8x1xf32> to vector<8x10xf32>
    %34 = arith.cmpf oeq, %0, %33 : vector<8x10xf32>
    %cst_14 = arith.constant 1.000000e+01 : f32
    %35 = vector.broadcast %cst_14 : f32 to vector<8x10xf32>
    %36 = arith.select %34, %32, %35 : vector<8x10xi1>, vector<8x10xf32>
    %cst_15 = arith.constant dense<0x7F800000> : vector<8xf32>
    %37 = vector.multi_reduction <minimumf>, %36, %cst_15 [1] : vector<8x10xf32> to vector<8xf32>
    %38 = vector.shape_cast %37 : vector<8xf32> to vector<8x1xf32>
    %39 = arith.mulf %1, %32 : vector<8x10xf32>
    %cst_16 = arith.constant dense<0.000000e+00> : vector<8xf32>
    %40 = vector.multi_reduction <add>, %39, %cst_16 [1] : vector<8x10xf32> to vector<8xf32>
    %41 = vector.shape_cast %40 : vector<8xf32> to vector<8x1xf32>
    %42 = arith.cmpf oeq, %38, %41 : vector<8x1xf32>
    %43 = arith.extui %42 : vector<8x1xi1> to vector<8x1xi32>
    %44 = arith.sitofp %43 : vector<8x1xi32> to vector<8x1xf32>
    %cst_17 = arith.constant dense<0.000000e+00> : vector<1xf32>
    %45 = vector.multi_reduction <add>, %44, %cst_17 [0] : vector<8x1xf32> to vector<1xf32>
    %46 = vector.shape_cast %45 : vector<1xf32> to vector<1x1xf32>
    %cst_18 = arith.constant 8.000000e+00 : f32
    %47 = vector.broadcast %cst_18 : f32 to vector<1x1xf32>
    %48 = arith.divf %46, %47 : vector<1x1xf32>
    %c0_19 = arith.constant 0 : index
    %c0_20 = arith.constant 0 : index
    %49 = vector.load %arg3[%c0_19, %c0_20] : memref<1x1xf32, #tpu.memory_space<vmem>>, vector<1x1xf32>
    tpu.vector_store %arg3[%c0_19, %c0_20], %48 {strides = array<i32>} : memref<1x1xf32, #tpu.memory_space<vmem>>, vector<1x1xf32>,
    return
  }
}

</mosaic_0001>

<bundles_post_ra>
// kernel: simple_cnn_forward.3
= control target key start
LH: loop header
LB: loop body
LE: loop exit
PB: predicated region body
PF: predicated region fallthrough
CT: control target
= control target key end

     0   :  { %s10529_s15 = smov 0   ;;  %s15093_s0 = inlined_call_operand.vmem [shape: bf16[785,785], index: 0, kind: input, shape index: {}]   ;;  %s15094_s1 = inlined_call_operand.vmem [shape: bf16[512,785], index: 1, kind: input, shape index: {}]   ;;  %s15095_s2 = inlined_call_operand.vmem [shape: f32[8,1,785], index: 2, kind: input, shape index: {}]   ;;  %s15096_s3 = inlined_call_operand.vmem [shape: f32[8,1,785], index: 3, kind: input, shape index: {}]   ;;  %s15097_s4 = inlined_call_operand.vmem [shape: f32[8,32,1], index: 4, kind: output, shape index: {}]  }
   0x1 LB: > { %s7818_s16 = sadd.s32 4294967295, %s10501_s15   ;;  %p7822_p0 = scmp.ge.s32.totalorder %s10501_s15, 1  ;;  %s10501_s15 = sphi %s10529_s15, %s14_s15  }
   0x2   : > { %p186_p1 = scmp.lt.s32.totalorder %s10501_s15, 3 }
   0x4   : > { %p187_p2 = pnand %p7822_p0, %p186_p1 }
   0x6   : > { %190 = sbr.rel (%p187_p2) target bundleno = 1445 (0x5a5), region = 36 }
   0xd   : > { %v9470_v0 = vld [vmem:[%s15093_s0 + $0x4] ss:$28 sps:$4 sm:$0xff]   ;;  %vm3166_vm0 = vcmask 1040384   ;;  %v15098_v2 = vmov 0   ;;  %s7823_s21 = sshll.u32 %s7818_s16, 5  ;;  %vm15118_vm1 = vcmask 138240  }
   0xe   : > { %v9472_v1 = vld [vmem:[%s15093_s0 + $0xa84] ss:$28 sps:$4 sm:$0xff]   ;;  %3881 = vmatprep.mubr.bf16.mxu1 %v15098_v2  ;;  %3190 = vmatprep.subr.bf16.mxu0 %v9470_v0  ;;  %p225_p3 = scmp.lt.s32.totalorder %s7823_s21, 63  ;;  %v9476_v5 = vld [vmem:[%s15093_s0 + $0x3c] ss:$28 sps:$4 sm:$0xff]   ;;  %v10559_v7 = vsel %vm3166_vm0, 65535, %v15098_v2 }
   0xf   : > { %v9474_v3 = vld [vmem:[%s15093_s0] ss:$28 sps:$4 sm:$0xff]   ;;  %8879 = vmatprep.subr.bf16.mxu1 %v9472_v1  ;;  %15134 = vst [vmem:[#allocation2_spill] sm:$0xff] %v10559_v7  ;;  %v9479_v9 = vld [vmem:[%s15093_s0 + $0x38] ss:$28 sps:$4 sm:$0xff]   ;;  %s7825_s17 = sshll.u32 %s7818_s16, 2 }
  0x10   : > { %v9475_v4 = vld [vmem:[%s15093_s0 + $0xa80] ss:$28 sps:$4 sm:$0xff]   ;;  %3191 = vmatpush1.bf16.msra.mxu0 %v9474_v3  ;;  %s15488_s21 = smov (!%p225_p3, %s7823_s21), 63  ;;  %v9481_v11 = vld [vmem:[%s15093_s0 + $0x74] ss:$28 sps:$4 sm:$0xff]   ;;  %p232_p4 = scmp.lt.s32.totalorder %s7825_s17, 7 }
  0x11   : > { %v643_v6 = vld [vmem:[%s15093_s0 + $0xab8] sm:$0x11]  ;;  %8881 = vmatpush1.bf16.msra.mxu1 %v9475_v4  ;;  %3192 = vmatprep.subr.bf16.mxu0 %v9476_v5  ;;  %s9459_s8 = smul.u32 28, %s15488_s21  ;;  %v9486_v14 = vld [vmem:[%s15093_s0 + $0xc] ss:$28 sps:$4 sm:$0xff]  }
  0x12   : > { %v8286_v8 = vcombine.high %v643_v6, %v643_v6  ;;  %v8285_v10 = vcombine.low %v643_v6, %v643_v6  ;;  %v9484_v15 = vld [vmem:[%s15093_s0 + $0x8] ss:$28 sps:$4 sm:$0xff]   ;;  %v9487_v16 = vld [vmem:[%s15093_s0 + $0x70] ss:$28 sps:$4 sm:$0xff]   ;;  %v9490_v21 = vld [vmem:[%s15093_s0 + $0x40] ss:$28 sps:$4 sm:$0xff]  }
  0x13   : > { %s10586_s19 = scalar_lea.vmem %s15094_s1, %s9459_s8  ;;  %v9488_v17 = vld [vmem:[%s15093_s0 + $0xac] ss:$28 sps:$4 sm:$0xff]   ;;  %v9492_v19 = vld [vmem:[%s15093_s0 + $0x44] ss:$28 sps:$4 sm:$0xff]   ;;  %v9499_v23 = vld [vmem:[%s15093_s0 + $0x7c] ss:$28 sps:$4 sm:$0xff]  }
  0x14   : > { %v10568_v12 = vand.u32 %v8286_v8, %v10559_v7  ;;  %v10571_v13 = vand.u32 %v8285_v10, %v10559_v7  ;;  %3193 = vmatpush1.bf16.msra.mxu0 %v9479_v9  ;;  %v9483_v18 = vld [vmem:[%s10586_s19 + $0x1d8] ss:$28 sps:$4 sm:$0xff]   ;;  %v9493_v20 = vld [vmem:[%s15093_s0 + $0xa8] ss:$28 sps:$4 sm:$0xff]   ;;  %v9496_v24 = vld [vmem:[%s10586_s19 + $0x210] ss:$28 sps:$4 sm:$0xff]  }
  0x15   : > { %3194 = vmatprep.subr.bf16.mxu0 %v9481_v11  ;;  %v9494_v22 = vld [vmem:[%s15093_s0 + $0xe4] ss:$28 sps:$4 sm:$0xff]   ;;  %v9497_v25 = vld [vmem:[%s15093_s0 + $0x78] ss:$28 sps:$4 sm:$0xff]   ;;  %v9503_v29 = vld [vmem:[%s15093_s0 + $0xb0] ss:$28 sps:$4 sm:$0xff]  }
  0x16   : > { %8880 = vmatprep.subr.bf16.mxu1 %v10568_v12  ;;  %v9500_v26 = vld [vmem:[%s15093_s0 + $0xe0] ss:$28 sps:$4 sm:$0xff]   ;;  %v9505_v28 = vld [vmem:[%s15093_s0 + $0xb4] ss:$28 sps:$4 sm:$0xff]   ;;  %v9509_v32 = vld [vmem:[%s10586_s19 + $0x248] ss:$28 sps:$4 sm:$0xff]  }
  0x17   : > { %8882 = vmatpush1.bf16.msra.mxu1 %v10571_v13  ;;  %v9501_v27 = vld [vmem:[%s15093_s0 + $0x11c] ss:$28 sps:$4 sm:$0xff]   ;;  %v9507_v31 = vld [vmem:[%s15093_s0 + $0x154] ss:$28 sps:$4 sm:$0xff]   ;;  %v9512_v33 = vld [vmem:[%s15093_s0 + $0xec] ss:$28 sps:$4 sm:$0xff]  }
  0x18   : > { %3962 = vmatprep.subr.bf16.mxu1 %v9486_v14  ;;  %3195 = vmatpush1.bf16.msra.mxu0 %v9487_v16  ;;  %v9506_v30 = vld [vmem:[%s15093_s0 + $0x118] ss:$28 sps:$4 sm:$0xff]   ;;  %v9510_v34 = vld [vmem:[%s15093_s0 + $0xe8] ss:$28 sps:$4 sm:$0xff]   ;;  %v9513_v35 = vld [vmem:[%s15093_s0 + $0x150] ss:$28 sps:$4 sm:$0xff]  }
  0x19   : > { %3196 = vmatprep.subr.bf16.mxu0 %v9488_v17  ;;  %v9514_v36 = vld [vmem:[%s15093_s0 + $0x18c] ss:$28 sps:$4 sm:$0xff]   ;;  %v9518_v37 = vld [vmem:[%s15093_s0 + $0x124] ss:$28 sps:$4 sm:$0xff]   ;;  %v9525_v41 = vld [vmem:[%s15093_s0 + $0x15c] ss:$28 sps:$4 sm:$0xff]  }
  0x1a   : > { %8300 = vmatmul.mubr.msk.bf16.vlgmr.msra.gmra.mrb[0].mxu1 %vm15118_vm1, %v9483_v18  ;;  %v9519_v38 = vld [vmem:[%s15093_s0 + $0x188] ss:$28 sps:$4 sm:$0xff]   ;;  %v9516_v39 = vld [vmem:[%s15093_s0 + $0x120] ss:$28 sps:$4 sm:$0xff]   ;;  %v9523_v43 = vld [vmem:[%s15093_s0 + $0x158] ss:$28 sps:$4 sm:$0xff]  }
  0x1b   : > { %3963 = vmatpush1.bf16.msra.mxu1 %v9484_v15  ;;  %3891 = vmatprep.mubr.bf16.mxu1 %v15098_v2  ;;  %v9520_v40 = vld [vmem:[%s15093_s0 + $0x1c4] ss:$28 sps:$4 sm:$0xff]   ;;  %v9527_v45 = vld [vmem:[%s15093_s0 + $0x1fc] ss:$28 sps:$4 sm:$0xff]   ;;  %v9531_v46 = vld [vmem:[%s15093_s0 + $0x194] ss:$28 sps:$4 sm:$0xff]  }
  0x1c   : > { %3964 = vmatprep.subr.bf16.mxu1 %v9492_v19  ;;  %3197 = vmatpush1.bf16.msra.mxu0 %v9493_v20  ;;  %v9522_v42 = vld [vmem:[%s10586_s19 + $0x280] ss:$28 sps:$4 sm:$0xff]   ;;  %v9529_v47 = vld [vmem:[%s15093_s0 + $0x190] ss:$28 sps:$4 sm:$0xff]   ;;  %v9532_v48 = vld [vmem:[%s15093_s0 + $0x1f8] ss:$28 sps:$4 sm:$0xff]  }
  0x1d   : > { %3198 = vmatprep.subr.bf16.mxu0 %v9494_v22  ;;  %v9526_v44 = vld [vmem:[%s15093_s0 + $0x1c0] ss:$28 sps:$4 sm:$0xff]   ;;  %v9533_v49 = vld [vmem:[%s15093_s0 + $0x234] ss:$28 sps:$4 sm:$0xff]   ;;  %v9538_v50 = vld [vmem:[%s15093_s0 + $0x1cc] ss:$28 sps:$4 sm:$0xff]  }
  0x1e   : > { %v9535_v51 = vld [vmem:[%s10586_s19 + $0x2b8] ss:$28 sps:$4 sm:$0xff]   ;;  %v9539_v52 = vld [vmem:[%s15093_s0 + $0x230] ss:$28 sps:$4 sm:$0xff]   ;;  %v9536_v53 = vld [vmem:[%s15093_s0 + $0x1c8] ss:$28 sps:$4 sm:$0xff]  }
  0x1f   : > { %3965 = vmatpush1.bf16.msra.mxu1 %v9490_v21  ;;  %v9540_v54 = vld [vmem:[%s15093_s0 + $0x26c] ss:$28 sps:$4 sm:$0xff]   ;;  %v9544_v55 = vld [vmem:[%s15093_s0 + $0x204] ss:$28 sps:$4 sm:$0xff]   ;;  %v9551_v59 = vld [vmem:[%s15093_s0 + $0x23c] ss:$28 sps:$4 sm:$0xff]  }
  0x20   : > { %3966 = vmatprep.subr.bf16.mxu1 %v9499_v23  ;;  %3199 = vmatpush1.bf16.msra.mxu0 %v9500_v26  ;;  %v9545_v56 = vld [vmem:[%s15093_s0 + $0x268] ss:$28 sps:$4 sm:$0xff]   ;;  %v9542_v57 = vld [vmem:[%s15093_s0 + $0x200] ss:$28 sps:$4 sm:$0xff]   ;;  %v9548_v60 = vld [vmem:[%s10586_s19 + $0x2f0] ss:$28 sps:$4 sm:$0xff]  }
  0x21   : > { %3200 = vmatprep.subr.bf16.mxu0 %v9501_v27  ;;  %v9546_v58 = vld [vmem:[%s15093_s0 + $0x2a4] ss:$28 sps:$4 sm:$0xff]   ;;  %v9549_v61 = vld [vmem:[%s15093_s0 + $0x238] ss:$28 sps:$4 sm:$0xff]   ;;  %v9555_v4 = vld [vmem:[%s15093_s0 + $0x270] ss:$28 sps:$4 sm:$0xff]  }
  0x22   : > { %8301 = vmatmul.mubr.msk.bf16.gmra.mrb[4].mxu1 %vm15118_vm1, %v9496_v24  ;;  %v9552_v62 = vld [vmem:[%s15093_s0 + $0x2a0] ss:$28 sps:$4 sm:$0xff]   ;;  %v9557_v1 = vld [vmem:[%s15093_s0 + $0x274] ss:$28 sps:$4 sm:$0xff]   ;;  %v9564_v6 = vld [vmem:[%s15093_s0 + $0x2ac] ss:$28 sps:$4 sm:$0xff]  }
  0x23   : > { %3967 = vmatpush1.bf16.msra.mxu1 %v9497_v25  ;;  %3901 = vmatprep.mubr.bf16.mxu1 %v15098_v2  ;;  %v9553_v63 = vld [vmem:[%s15093_s0 + $0x2dc] ss:$28 sps:$4 sm:$0xff]   ;;  %v9572_v0 = vld [vmem:[%s10586_s19 + $0x4] ss:$28 sps:$4 sm:$0xff]   ;;  %v9559_v5 = vld [vmem:[%s15093_s0 + $0x314] ss:$28 sps:$4 sm:$0xff]  }
  0x24   : > { %3968 = vmatprep.subr.bf16.mxu1 %v9505_v28  ;;  %3201 = vmatpush1.bf16.msra.mxu0 %v9506_v30  ;;  %v9558_v3 = vld [vmem:[%s15093_s0 + $0x2d8] ss:$28 sps:$4 sm:$0xff]   ;;  %v9561_v8 = vld [vmem:[%s10586_s19 + $0x328] ss:$28 sps:$4 sm:$0xff]   ;;  %v9565_v9 = vld [vmem:[%s15093_s0 + $0x310] ss:$28 sps:$4 sm:$0xff]  }
  0x25   : > { %3202 = vmatprep.subr.bf16.mxu0 %v9507_v31  ;;  %3222 = vmatprep.mubr.bf16.mxu0 %v9572_v0  ;;  %v9562_v10 = vld [vmem:[%s15093_s0 + $0x2a8] ss:$28 sps:$4 sm:$0xff]   ;;  %v9568_v16 = vld [vmem:[%s15093_s0 + $0x2e0] ss:$28 sps:$4 sm:$0xff]   ;;  %v9576_v22 = vld [vmem:[%s15093_s0 + $0x318] ss:$28 sps:$4 sm:$0xff]  }
  0x26   : > { %v9566_v11 = vld [vmem:[%s15093_s0 + $0x34c] ss:$28 sps:$4 sm:$0xff]   ;;  %v9570_v14 = vld [vmem:[%s15093_s0 + $0x2e4] ss:$28 sps:$4 sm:$0xff]   ;;  %v9578_v19 = vld [vmem:[%s15093_s0 + $0x31c] ss:$28 sps:$4 sm:$0xff]  }
  0x27   : > { %3969 = vmatpush1.bf16.msra.mxu1 %v9503_v29  ;;  %v9571_v15 = vld [vmem:[%s15093_s0 + $0x348] ss:$28 sps:$4 sm:$0xff]   ;;  %v9574_v18 = vld [vmem:[%s10586_s19] ss:$28 sps:$4 sm:$0xff]   ;;  %v9581_v23 = vld [vmem:[%s15093_s0 + $0x354] ss:$28 sps:$4 sm:$0xff]  }
  0x28   : > { %3970 = vmatprep.subr.bf16.mxu1 %v9512_v33  ;;  %3203 = vmatpush1.bf16.msra.mxu0 %v9513_v35  ;;  %v9596_v17 = vld [vmem:[%s15093_s0 + $0x384] ss:$28 sps:$4 sm:$0xff]   ;;  %v9582_v21 = vld [vmem:[%s10586_s19 + $0x3c] ss:$28 sps:$4 sm:$0xff]   ;;  %v9579_v26 = vld [vmem:[%s15093_s0 + $0x350] ss:$28 sps:$4 sm:$0xff]  }
  0x29   : > { %3204 = vmatprep.subr.bf16.mxu0 %v9514_v36  ;;  %v9575_v20 = vld [vmem:[%s10586_s19 + $0x360] ss:$28 sps:$4 sm:$0xff]   ;;  %v9584_v27 = vld [vmem:[%s10586_s19 + $0x38] ss:$28 sps:$4 sm:$0xff]   ;;  %v9587_v28 = vld [vmem:[%s15093_s0 + $0x38c] ss:$28 sps:$4 sm:$0xff]  }
  0x2a   : > { %8302 = vmatmul.mubr.msk.bf16.gmra.mrb[8].mxu1 %vm15118_vm1, %v9509_v32  ;;  %v9594_v24 = vld [vmem:[%s15093_s0 + $0x380] ss:$28 sps:$4 sm:$0xff]   ;;  %v9603_v29 = vld [vmem:[%s15093_s0 + $0x3b8] ss:$28 sps:$4 sm:$0xff]   ;;  %v9585_v32 = vld [vmem:[%s15093_s0 + $0x388] ss:$28 sps:$4 sm:$0xff]  }
  0x2b   : > { %3971 = vmatpush1.bf16.msra.mxu1 %v9510_v34  ;;  %3911 = vmatprep.mubr.bf16.mxu1 %v15098_v2  ;;  %v9605_v25 = vld [vmem:[%s15093_s0 + $0x3bc] ss:$28 sps:$4 sm:$0xff]   ;;  %v9614_v30 = vld [vmem:[%s15093_s0 + $0x3f4] ss:$28 sps:$4 sm:$0xff]   ;;  %v9593_v33 = vld [vmem:[%s15093_s0 + $0x3c4] ss:$28 sps:$4 sm:$0xff]  }
  0x2c   : > { %3972 = vmatprep.subr.bf16.mxu1 %v9518_v37  ;;  %3205 = vmatpush1.bf16.msra.mxu0 %v9519_v38  ;;  %v9588_v31 = vld [vmem:[%s10586_s19 + $0x74] ss:$28 sps:$4 sm:$0xff]   ;;  %v9623_v35 = vld [vmem:[%s15093_s0 + $0x42c] ss:$28 sps:$4 sm:$0xff]   ;;  %v9591_v37 = vld [vmem:[%s15093_s0 + $0x3c0] ss:$28 sps:$4 sm:$0xff]  }
  0x2d   : > { %3206 = vmatprep.subr.bf16.mxu0 %v9520_v40  ;;  %v9612_v34 = vld [vmem:[%s15093_s0 + $0x3f0] ss:$28 sps:$4 sm:$0xff]   ;;  %v9602_v38 = vld [vmem:[%s15093_s0 + $0x3fc] ss:$28 sps:$4 sm:$0xff]   ;;  %v9632_v40 = vld [vmem:[%s15093_s0 + $0x464] ss:$28 sps:$4 sm:$0xff]  }
  0x2e   : > { %v9590_v36 = vld [vmem:[%s10586_s19 + $0x70] ss:$28 sps:$4 sm:$0xff]   ;;  %s15490_s17 = smov (!%p232_p4, %s7825_s17), 7 }
  0x2f   : > { %3973 = vmatpush1.bf16.msra.mxu1 %v9516_v39  ;;  %v9621_v39 = vld [vmem:[%s15093_s0 + $0x428] ss:$28 sps:$4 sm:$0xff]   ;;  %s9460_s30 = smul.u32 7, %s15490_s17 }
  0x30   : > { %3974 = vmatprep.subr.bf16.mxu1 %v9525_v41  ;;  %3207 = vmatpush1.bf16.msra.mxu0 %v9526_v44  ;;  %v9597_v41 = vld [vmem:[%s10586_s19 + $0xac] ss:$28 sps:$4 sm:$0xff]   ;;  %v9630_v44 = vld [vmem:[%s15093_s0 + $0x460] ss:$28 sps:$4 sm:$0xff]  }
  0x31   : > { %3208 = vmatprep.subr.bf16.mxu0 %v9527_v45  ;;  %v9641_v45 = vld [vmem:[%s15093_s0 + $0x49c] ss:$28 sps:$4 sm:$0xff]   ;;  %s11828_s11 = scalar_lea.vmem %s15095_s2, %s9460_s30  ;;  %s11837_s14 = scalar_lea.vmem %s15096_s3, %s9460_s30 }
  0x32   : > { %8303 = vmatmul.mubr.msk.bf16.gmra.mrb[12].mxu1 %vm15118_vm1, %v9522_v42  ;;  %v9600_v42 = vld [vmem:[%s15093_s0 + $0x3f8] ss:$28 sps:$4 sm:$0xff]  }
  0x33   : > { %3975 = vmatpush1.bf16.msra.mxu1 %v9523_v43  ;;  %3921 = vmatprep.mubr.bf16.mxu1 %v15098_v2  ;;  %v9611_v43 = vld [vmem:[%s15093_s0 + $0x434] ss:$28 sps:$4 sm:$0xff]  }
  0x34   : > { %3976 = vmatprep.subr.bf16.mxu1 %v9531_v46  ;;  %3209 = vmatpush1.bf16.msra.mxu0 %v9532_v48  ;;  %v9599_v46 = vld [vmem:[%s10586_s19 + $0xa8] ss:$28 sps:$4 sm:$0xff]  }
  0x35   : > { %3210 = vmatprep.subr.bf16.mxu0 %v9533_v49  ;;  %v9620_v48 = vld [vmem:[%s15093_s0 + $0x46c] ss:$28 sps:$4 sm:$0xff]   ;;  %v9639_v49 = vld [vmem:[%s15093_s0 + $0x498] ss:$28 sps:$4 sm:$0xff]  }
  0x37   : > { %3977 = vmatpush1.bf16.msra.mxu1 %v9529_v47  ;;  %v9609_v47 = vld [vmem:[%s15093_s0 + $0x430] ss:$28 sps:$4 sm:$0xff]  }
  0x38   : > { %3978 = vmatprep.subr.bf16.mxu1 %v9538_v50  ;;  %3211 = vmatpush1.bf16.msra.mxu0 %v9539_v52  ;;  %v9650_v50 = vld [vmem:[%s15093_s0 + $0x4d4] ss:$28 sps:$4 sm:$0xff]   ;;  %v9618_v52 = vld [vmem:[%s15093_s0 + $0x468] ss:$28 sps:$4 sm:$0xff]  }
  0x39   : > { %3212 = vmatprep.subr.bf16.mxu0 %v9540_v54  ;;  %v9648_v54 = vld [vmem:[%s15093_s0 + $0x4d0] ss:$28 sps:$4 sm:$0xff]  }
  0x3a   : > { %8304 = vmatmul.mubr.msk.bf16.gmra.mrb[16].mxu1 %vm15118_vm1, %v9535_v51  ;;  %v9606_v51 = vld [vmem:[%s10586_s19 + $0xe4] ss:$28 sps:$4 sm:$0xff]  }
  0x3b   : > { %3979 = vmatpush1.bf16.msra.mxu1 %v9536_v53  ;;  %3931 = vmatprep.mubr.bf16.mxu1 %v15098_v2  ;;  %v9629_v53 = vld [vmem:[%s15093_s0 + $0x4a4] ss:$28 sps:$4 sm:$0xff]  }
  0x3c   : > { %3980 = vmatprep.subr.bf16.mxu1 %v9544_v55  ;;  %3213 = vmatpush1.bf16.msra.mxu0 %v9545_v56  ;;  %v9659_v55 = vld [vmem:[%s15093_s0 + $0x50c] ss:$28 sps:$4 sm:$0xff]   ;;  %v9608_v56 = vld [vmem:[%s10586_s19 + $0xe0] ss:$28 sps:$4 sm:$0xff]  }
  0x3d   : > { %3214 = vmatprep.subr.bf16.mxu0 %v9546_v58  ;;  %v9638_v58 = vld [vmem:[%s15093_s0 + $0x4dc] ss:$28 sps:$4 sm:$0xff]  }
  0x3f   : > { %3981 = vmatpush1.bf16.msra.mxu1 %v9542_v57  ;;  %v9627_v57 = vld [vmem:[%s15093_s0 + $0x4a0] ss:$28 sps:$4 sm:$0xff]  }
  0x40   : > { %3982 = vmatprep.subr.bf16.mxu1 %v9551_v59  ;;  %3215 = vmatpush1.bf16.msra.mxu0 %v9552_v62  ;;  %v9657_v59 = vld [vmem:[%s15093_s0 + $0x508] ss:$28 sps:$4 sm:$0xff]   ;;  %v9636_v62 = vld [vmem:[%s15093_s0 + $0x4d8] ss:$28 sps:$4 sm:$0xff]  }
  0x41   : > { %3216 = vmatprep.subr.bf16.mxu0 %v9553_v63  ;;  %v9647_v63 = vld [vmem:[%s15093_s0 + $0x514] ss:$28 sps:$4 sm:$0xff]  }
  0x42   : > { %8305 = vmatmul.mubr.msk.bf16.gmra.mrb[20].mxu1 %vm15118_vm1, %v9548_v60  ;;  %v9668_v60 = vld [vmem:[%s15093_s0 + $0x544] ss:$28 sps:$4 sm:$0xff]  }
  0x43   : > { %3983 = vmatpush1.bf16.msra.mxu1 %v9549_v61  ;;  %3941 = vmatprep.mubr.bf16.mxu1 %v15098_v2  ;;  %v9615_v61 = vld [vmem:[%s10586_s19 + $0x11c] ss:$28 sps:$4 sm:$0xff]  }
  0x44   : > { %3984 = vmatprep.subr.bf16.mxu1 %v9557_v1  ;;  %3217 = vmatpush1.bf16.msra.mxu0 %v9558_v3  ;;  %v9677_v1 = vld [vmem:[%s15093_s0 + $0x57c] ss:$28 sps:$4 sm:$0xff]  }
  0x45   : > { %3218 = vmatprep.subr.bf16.mxu0 %v9559_v5  ;;  %v9617_v3 = vld [vmem:[%s10586_s19 + $0x118] ss:$28 sps:$4 sm:$0xff]   ;;  %v9656_v5 = vld [vmem:[%s15093_s0 + $0x54c] ss:$28 sps:$4 sm:$0xff]  }
  0x47   : > { %3985 = vmatpush1.bf16.msra.mxu1 %v9555_v4  ;;  %v9645_v4 = vld [vmem:[%s15093_s0 + $0x510] ss:$28 sps:$4 sm:$0xff]  }
  0x48   : > { %3986 = vmatprep.subr.bf16.mxu1 %v9564_v6  ;;  %3219 = vmatpush1.bf16.msra.mxu0 %v9565_v9  ;;  %v9675_v6 = vld [vmem:[%s15093_s0 + $0x578] ss:$28 sps:$4 sm:$0xff]  }
  0x49   : > { %3220 = vmatprep.subr.bf16.mxu0 %v9566_v11  ;;  %v9624_v9 = vld [vmem:[%s10586_s19 + $0x154] ss:$28 sps:$4 sm:$0xff]   ;;  %v9665_v11 = vld [vmem:[%s15093_s0 + $0x584] ss:$28 sps:$4 sm:$0xff]  }
  0x4a   : > { %8306 = vmatmul.mubr.msk.bf16.gmra.mrb[24].mxu1 %vm15118_vm1, %v9561_v8  ;;  %v9686_v8 = vld [vmem:[%s15093_s0 + $0x5b4] ss:$28 sps:$4 sm:$0xff]  }
  0x4b   : > { %3987 = vmatpush1.bf16.msra.mxu1 %v9562_v10  ;;  %3951 = vmatprep.mubr.bf16.mxu1 %v15098_v2  ;;  %v9654_v10 = vld [vmem:[%s15093_s0 + $0x548] ss:$28 sps:$4 sm:$0xff]  }
  0x4c   : > { %3988 = vmatprep.subr.bf16.mxu1 %v9570_v14  ;;  %3221 = vmatpush1.bf16.msra.mxu0 %v9571_v15  ;;  %v9684_v14 = vld [vmem:[%s15093_s0 + $0x5b0] ss:$28 sps:$4 sm:$0xff]  }
  0x4d   : > { %3383 = vmatprep.subr.bf16.mxu0 %v9596_v17  ;;  %v9695_v15 = vld [vmem:[%s15093_s0 + $0x5ec] ss:$28 sps:$4 sm:$0xff]   ;;  %v9663_v17 = vld [vmem:[%s15093_s0 + $0x580] ss:$28 sps:$4 sm:$0xff]  }
  0x4f   : > { %3989 = vmatpush1.bf16.msra.mxu1 %v9568_v16  ;;  %3223 = vmatmul.mubr.bf16.vlgmr.msra.gmra.mrb[0].mxu0 %v9574_v18  ;;  %v9626_v16 = vld [vmem:[%s10586_s19 + $0x150] ss:$28 sps:$4 sm:$0xff]  }
  0x50   : > { %3990 = vmatprep.subr.bf16.mxu1 %v9578_v19  ;;  %3232 = vmatprep.mubr.bf16.mxu0 %v9582_v21  ;;  %v9693_v19 = vld [vmem:[%s15093_s0 + $0x5e8] ss:$28 sps:$4 sm:$0xff]  }
  0x51   : > { %3384 = vmatpush1.bf16.msra.mxu0 %v9594_v24  ;;  %v9699_v24 = vld [vmem:[%s15093_s0 + $0x620] ss:$28 sps:$4 sm:$0xff]  }
  0x52   : > { %8307 = vmatmul.mubr.msk.bf16.gmra.mrb[28].mxu1 %vm15118_vm1, %v9575_v20  ;;  %3385 = vmatprep.subr.bf16.mxu0 %v9605_v25  ;;  %v9701_v20 = vld [vmem:[%s15093_s0 + $0x624] ss:$28 sps:$4 sm:$0xff]   ;;  %v9707_v25 = vld [vmem:[%s15093_s0 + $0x65c] ss:$28 sps:$4 sm:$0xff]  }
  0x53   : > { %3991 = vmatpush1.bf16.msra.mxu1 %v9576_v22  ;;  %3994 = vmatprep.mubr.bf16.mxu1 %v9572_v0  ;;  %v9666_v0 = vld [vmem:[%s15093_s0 + $0x540] ss:$28 sps:$4 sm:$0xff]   ;;  %v9672_v22 = vld [vmem:[%s15093_s0 + $0x5b8] ss:$28 sps:$4 sm:$0xff]  }
  0x54   : > { %3992 = vmatprep.subr.bf16.mxu1 %v9581_v23  ;;  %v9683_v23 = vld [vmem:[%s15093_s0 + $0x5f4] ss:$28 sps:$4 sm:$0xff]  }
  0x55   : > { %3386 = vmatpush1.bf16.msra.mxu0 %v9603_v29  ;;  %v9705_v29 = vld [vmem:[%s15093_s0 + $0x658] ss:$28 sps:$4 sm:$0xff]  }
  0x56   : > { %3387 = vmatprep.subr.bf16.mxu0 %v9614_v30  ;;  %v9713_v30 = vld [vmem:[%s15093_s0 + $0x694] ss:$28 sps:$4 sm:$0xff]  }
  0x57   : > { %3993 = vmatpush1.bf16.msra.mxu1 %v9579_v26  ;;  %3233 = vmatmul.mubr.bf16.gmra.mrb[4].mxu0 %v9584_v27  ;;  %v9635_v26 = vld [vmem:[%s10586_s19 + $0x188] ss:$28 sps:$4 sm:$0xff]  }
  0x58   : > { %4155 = vmatprep.subr.bf16.mxu1 %v9587_v28  ;;  %3242 = vmatprep.mubr.bf16.mxu0 %v9588_v31  ;;  %v9692_v28 = vld [vmem:[%s15093_s0 + $0x62c] ss:$28 sps:$4 sm:$0xff]  }
  0x59   : > { %3388 = vmatpush1.bf16.msra.mxu0 %v9612_v34  ;;  %v9711_v34 = vld [vmem:[%s15093_s0 + $0x690] ss:$28 sps:$4 sm:$0xff]  }
  0x5a   : > { %3995 = vmatmul.mubr.bf16.vlgmr.msra.gmra.mrb[32].mxu1 %v9574_v18  ;;  %3389 = vmatprep.subr.bf16.mxu0 %v9623_v35  ;;  %v9674_v18 = vld [vmem:[%s15093_s0 + $0x5bc] ss:$28 sps:$4 sm:$0xff]   ;;  %v9719_v35 = vld [vmem:[%s15093_s0 + $0x6cc] ss:$28 sps:$4 sm:$0xff]  }
  0x5b   : > { %4156 = vmatpush1.bf16.msra.mxu1 %v9585_v32  ;;  %4004 = vmatprep.mubr.bf16.mxu1 %v9582_v21  ;;  %v9633_v21 = vld [vmem:[%s10586_s19 + $0x18c] ss:$28 sps:$4 sm:$0xff]  }
  0x5c   : > { %4157 = vmatprep.subr.bf16.mxu1 %v9593_v33  ;;  %v9690_v32 = vld [vmem:[%s15093_s0 + $0x628] ss:$28 sps:$4 sm:$0xff]  }
  0x5d   : > { %3390 = vmatpush1.bf16.msra.mxu0 %v9621_v39  ;;  %v9704_v33 = vld [vmem:[%s15093_s0 + $0x664] ss:$28 sps:$4 sm:$0xff]  }
  0x5e   : > { %3391 = vmatprep.subr.bf16.mxu0 %v9632_v40  ;;  %v9717_v39 = vld [vmem:[%s15093_s0 + $0x6c8] ss:$28 sps:$4 sm:$0xff]  }
  0x5f   : > { %4158 = vmatpush1.bf16.msra.mxu1 %v9591_v37  ;;  %3243 = vmatmul.mubr.bf16.gmra.mrb[8].mxu0 %v9590_v36  ;;  %v9702_v37 = vld [vmem:[%s15093_s0 + $0x660] ss:$28 sps:$4 sm:$0xff]  }
  0x60   : > { %4159 = vmatprep.subr.bf16.mxu1 %v9602_v38  ;;  %3252 = vmatprep.mubr.bf16.mxu0 %v9597_v41  ;;  %v9716_v38 = vld [vmem:[%s15093_s0 + $0x69c] ss:$28 sps:$4 sm:$0xff]   ;;  %v9740_v40 = vld [vmem:[%s15093_s0 + $0x704] ss:$28 sps:$4 sm:$0xff]  }
  0x61   : > { %3392 = vmatpush1.bf16.msra.mxu0 %v9630_v44  ;;  %v9723_v44 = vld [vmem:[%s15093_s0 + $0x6d0] ss:$28 sps:$4 sm:$0xff]  }
  0x62   : > { %4005 = vmatmul.mubr.bf16.gmra.mrb[36].mxu1 %v9584_v27  ;;  %3393 = vmatprep.subr.bf16.mxu0 %v9641_v45  ;;  %v9681_v27 = vld [vmem:[%s15093_s0 + $0x5f0] ss:$28 sps:$4 sm:$0xff]  }
  0x63   : > { %4014 = vmatprep.mubr.bf16.mxu1 %v9588_v31  ;;  %4160 = vmatpush1.bf16.msra.mxu1 %v9600_v42  ;;  %v9642_v31 = vld [vmem:[%s10586_s19 + $0x1c4] ss:$28 sps:$4 sm:$0xff]   ;;  %v9714_v42 = vld [vmem:[%s15093_s0 + $0x698] ss:$28 sps:$4 sm:$0xff]   ;;  %v9731_v45 = vld [vmem:[%s15093_s0 + $0x70c] ss:$28 sps:$4 sm:$0xff]  }
  0x64   : > { %4161 = vmatprep.subr.bf16.mxu1 %v9611_v43  ;;  %v9725_v43 = vld [vmem:[%s15093_s0 + $0x6d4] ss:$28 sps:$4 sm:$0xff]  }
  0x65   : > { %3394 = vmatpush1.bf16.msra.mxu0 %v9639_v49  ;;  %v9669_v49 = vld [vmem:[%s10586_s19 + $0x26c] ss:$28 sps:$4 sm:$0xff]  }
  0x66   : > { %3395 = vmatprep.subr.bf16.mxu0 %v9650_v50  ;;  %v9671_v50 = vld [vmem:[%s10586_s19 + $0x268] ss:$28 sps:$4 sm:$0xff]  }
  0x67   : > { %4162 = vmatpush1.bf16.msra.mxu1 %v9609_v47  ;;  %3253 = vmatmul.mubr.bf16.gmra.mrb[12].mxu0 %v9599_v46  ;;  %v9660_v47 = vld [vmem:[%s10586_s19 + $0x234] ss:$28 sps:$4 sm:$0xff]  }
  0x68   : > { %4163 = vmatprep.subr.bf16.mxu1 %v9620_v48  ;;  %3262 = vmatprep.mubr.bf16.mxu0 %v9606_v51  ;;  %v9662_v48 = vld [vmem:[%s10586_s19 + $0x230] ss:$28 sps:$4 sm:$0xff]  }
  0x69   : > { %3396 = vmatpush1.bf16.msra.mxu0 %v9648_v54  ;;  %v9689_v54 = vld [vmem:[%s10586_s19 + $0x2d8] ss:$28 sps:$4 sm:$0xff]  }
  0x6a   : > { %4015 = vmatmul.mubr.bf16.gmra.mrb[40].mxu1 %v9590_v36  ;;  %3397 = vmatprep.subr.bf16.mxu0 %v9659_v55  ;;  %v9644_v36 = vld [vmem:[%s10586_s19 + $0x1c0] ss:$28 sps:$4 sm:$0xff]   ;;  %v9696_v55 = vld [vmem:[%s10586_s19 + $0x314] ss:$28 sps:$4 sm:$0xff]  }
  0x6b   : > { %4024 = vmatprep.mubr.bf16.mxu1 %v9597_v41  ;;  %4164 = vmatpush1.bf16.msra.mxu1 %v9618_v52  ;;  %v9651_v41 = vld [vmem:[%s10586_s19 + $0x1fc] ss:$28 sps:$4 sm:$0xff]  }
  0x6c   : > { %4165 = vmatprep.subr.bf16.mxu1 %v9629_v53  ;;  %v9680_v52 = vld [vmem:[%s10586_s19 + $0x2a0] ss:$28 sps:$4 sm:$0xff]  }
  0x6d   : > { %3398 = vmatpush1.bf16.msra.mxu0 %v9657_v59  ;;  %v9687_v53 = vld [vmem:[%s10586_s19 + $0x2dc] ss:$28 sps:$4 sm:$0xff]   ;;  %v9722_v59 = vld [vmem:[%s10586_s19 + $0xc] ss:$28 sps:$4 sm:$0xff]  }
  0x6e   : > { %3399 = vmatprep.subr.bf16.mxu0 %v9668_v60  ;;  %v9720_v60 = vld [vmem:[%s10586_s19 + $0x8] ss:$28 sps:$4 sm:$0xff]  }
  0x6f   : > { %4166 = vmatpush1.bf16.msra.mxu1 %v9627_v57  ;;  %3263 = vmatmul.mubr.bf16.gmra.mrb[16].mxu0 %v9608_v56  ;;  %v9708_v57 = vld [vmem:[%s10586_s19 + $0x34c] ss:$28 sps:$4 sm:$0xff]  }
  0x70   : > { %4167 = vmatprep.subr.bf16.mxu1 %v9638_v58  ;;  %3272 = vmatprep.mubr.bf16.mxu0 %v9615_v61  ;;  %v9710_v58 = vld [vmem:[%s10586_s19 + $0x348] ss:$28 sps:$4 sm:$0xff]  }
  0x71   : > { %3400 = vmatpush1.bf16.msra.mxu0 %v9666_v0  ;;  %v9747_v0 = vld [vmem:[%s15093_s0 + $0x738] ss:$28 sps:$4 sm:$0xff]  }
  0x72   : > { %4025 = vmatmul.mubr.bf16.gmra.mrb[44].mxu1 %v9599_v46  ;;  %3401 = vmatprep.subr.bf16.mxu0 %v9677_v1  ;;  %v9653_v46 = vld [vmem:[%s10586_s19 + $0x1f8] ss:$28 sps:$4 sm:$0xff]   ;;  %v9728_v1 = vld [vmem:[%s10586_s19 + $0x40] ss:$28 sps:$4 sm:$0xff]  }
  0x73   : > { %4034 = vmatprep.mubr.bf16.mxu1 %v9606_v51  ;;  %4168 = vmatpush1.bf16.msra.mxu1 %v9636_v62  ;;  %v9678_v51 = vld [vmem:[%s10586_s19 + $0x2a4] ss:$28 sps:$4 sm:$0xff]  }
  0x74   : > { %4169 = vmatprep.subr.bf16.mxu1 %v9647_v63  ;;  %v9738_v62 = vld [vmem:[%s15093_s0 + $0x700] ss:$28 sps:$4 sm:$0xff]  }
  0x75   : > { %3402 = vmatpush1.bf16.msra.mxu0 %v9675_v6  ;;  %v9749_v63 = vld [vmem:[%s15093_s0 + $0x73c] ss:$28 sps:$4 sm:$0xff]   ;;  %v9737_v6 = vld [vmem:[%s15093_s0 + $0x744] ss:$28 sps:$4 sm:$0xff]  }
  0x76   : > { %3403 = vmatprep.subr.bf16.mxu0 %v9686_v8  ;;  %v9756_v8 = vld [vmem:[%s15093_s0 + $0x770] ss:$28 sps:$4 sm:$0xff]  }
  0x77   : > { %4170 = vmatpush1.bf16.msra.mxu1 %v9645_v4  ;;  %3273 = vmatmul.mubr.bf16.gmra.mrb[20].mxu0 %v9617_v3  ;;  %v9732_v4 = vld [vmem:[%s10586_s19 + $0x7c] ss:$28 sps:$4 sm:$0xff]  }
  0x78   : > { %4171 = vmatprep.subr.bf16.mxu1 %v9656_v5  ;;  %3282 = vmatprep.mubr.bf16.mxu0 %v9624_v9  ;;  %v9729_v5 = vld [vmem:[%s15093_s0 + $0x708] ss:$28 sps:$4 sm:$0xff]  }
  0x79   : > { %3404 = vmatpush1.bf16.msra.mxu0 %v9684_v14  ;;  %v9734_v14 = vld [vmem:[%s10586_s19 + $0x78] ss:$28 sps:$4 sm:$0xff]  }
  0x7a   : > { %4035 = vmatmul.mubr.bf16.gmra.mrb[48].mxu1 %v9608_v56  ;;  %3405 = vmatprep.subr.bf16.mxu0 %v9695_v15  ;;  %v9698_v56 = vld [vmem:[%s10586_s19 + $0x310] ss:$28 sps:$4 sm:$0xff]   ;;  %v9765_v15 = vld [vmem:[%s15093_s0 + $0x7a8] ss:$28 sps:$4 sm:$0xff]  }
  0x7b   : > { %4044 = vmatprep.mubr.bf16.mxu1 %v9615_v61  ;;  %4172 = vmatpush1.bf16.msra.mxu1 %v9654_v10  ;;  %v9726_v61 = vld [vmem:[%s10586_s19 + $0x44] ss:$28 sps:$4 sm:$0xff]  }
  0x7c   : > { %4173 = vmatprep.subr.bf16.mxu1 %v9665_v11  ;;  %v9735_v10 = vld [vmem:[%s15093_s0 + $0x740] ss:$28 sps:$4 sm:$0xff]  }
  0x7d   : > { %3406 = vmatpush1.bf16.msra.mxu0 %v9693_v19  ;;  %v9746_v11 = vld [vmem:[%s15093_s0 + $0x77c] ss:$28 sps:$4 sm:$0xff]   ;;  %v9755_v19 = vld [vmem:[%s15093_s0 + $0x7b4] ss:$28 sps:$4 sm:$0xff]  }
  0x7e   : > { %3407 = vmatprep.subr.bf16.mxu0 %v9701_v20  ;;  %v9774_v20 = vld [vmem:[%s15093_s0 + $0x7e0] ss:$28 sps:$4 sm:$0xff]  }
  0x7f   : > { %4174 = vmatpush1.bf16.msra.mxu1 %v9663_v17  ;;  %3283 = vmatmul.mubr.bf16.gmra.mrb[24].mxu0 %v9626_v16  ;;  %v9741_v17 = vld [vmem:[%s10586_s19 + $0xb4] ss:$28 sps:$4 sm:$0xff]  }
  0x80   : > { %4175 = vmatprep.subr.bf16.mxu1 %v9674_v18  ;;  %3292 = vmatprep.mubr.bf16.mxu0 %v9633_v21  ;;  %v9744_v18 = vld [vmem:[%s15093_s0 + $0x778] ss:$28 sps:$4 sm:$0xff]  }
  0x81   : > { %3408 = vmatpush1.bf16.msra.mxu0 %v9699_v24  ;;  %v9783_v24 = vld [vmem:[%s15093_s0 + $0x818] ss:$28 sps:$4 sm:$0xff]  }
  0x82   : > { %4045 = vmatmul.mubr.bf16.gmra.mrb[52].mxu1 %v9617_v3  ;;  %3409 = vmatprep.subr.bf16.mxu0 %v9707_v25  ;;  %v9758_v3 = vld [vmem:[%s15093_s0 + $0x774] ss:$28 sps:$4 sm:$0xff]  }
  0x83   : > { %4054 = vmatprep.mubr.bf16.mxu1 %v9624_v9  ;;  %4176 = vmatpush1.bf16.msra.mxu1 %v9672_v22  ;;  %v9767_v9 = vld [vmem:[%s15093_s0 + $0x7ac] ss:$28 sps:$4 sm:$0xff]  }
  0x84   : > { %4177 = vmatprep.subr.bf16.mxu1 %v9683_v23  ;;  %v9753_v22 = vld [vmem:[%s15093_s0 + $0x7b0] ss:$28 sps:$4 sm:$0xff]  }
  0x85   : > { %3410 = vmatpush1.bf16.msra.mxu0 %v9705_v29  ;;  %v9764_v23 = vld [vmem:[%s15093_s0 + $0x7ec] ss:$28 sps:$4 sm:$0xff]   ;;  %v9773_v29 = vld [vmem:[%s15093_s0 + $0x824] ss:$28 sps:$4 sm:$0xff]  }
  0x86   : > { %3411 = vmatprep.subr.bf16.mxu0 %v9713_v30  ;;  %v9743_v25 = vld [vmem:[%s10586_s19 + $0xb0] ss:$28 sps:$4 sm:$0xff]  }
  0x87   : > { %4178 = vmatpush1.bf16.msra.mxu1 %v9681_v27  ;;  %3293 = vmatmul.mubr.bf16.gmra.mrb[28].mxu0 %v9635_v26  ;;  %v9750_v27 = vld [vmem:[%s10586_s19 + $0xec] ss:$28 sps:$4 sm:$0xff]  }
  0x88   : > { %4179 = vmatprep.subr.bf16.mxu1 %v9692_v28  ;;  %3302 = vmatprep.mubr.bf16.mxu0 %v9642_v31  ;;  %v9762_v28 = vld [vmem:[%s15093_s0 + $0x7e8] ss:$28 sps:$4 sm:$0xff]   ;;  %v9792_v30 = vld [vmem:[%s15093_s0 + $0x850] ss:$28 sps:$4 sm:$0xff]  }
  0x89   : > { %3412 = vmatpush1.bf16.msra.mxu0 %v9711_v34  ;;  %v9801_v34 = vld [vmem:[%s15093_s0 + $0x888] ss:$28 sps:$4 sm:$0xff]  }
  0x8a   : > { %4055 = vmatmul.mubr.bf16.gmra.mrb[56].mxu1 %v9626_v16  ;;  %3413 = vmatprep.subr.bf16.mxu0 %v9719_v35  ;;  %v9776_v16 = vld [vmem:[%s15093_s0 + $0x7e4] ss:$28 sps:$4 sm:$0xff]  }
  0x8b   : > { %4064 = vmatprep.mubr.bf16.mxu1 %v9633_v21  ;;  %4180 = vmatpush1.bf16.msra.mxu1 %v9690_v32  ;;  %v9785_v21 = vld [vmem:[%s15093_s0 + $0x81c] ss:$28 sps:$4 sm:$0xff]   ;;  %v9752_v35 = vld [vmem:[%s10586_s19 + $0xe8] ss:$28 sps:$4 sm:$0xff]  }
  0x8c   : > { %4181 = vmatprep.subr.bf16.mxu1 %v9704_v33  ;;  %v9771_v32 = vld [vmem:[%s15093_s0 + $0x820] ss:$28 sps:$4 sm:$0xff]  }
  0x8d   : > { %3414 = vmatpush1.bf16.msra.mxu0 %v9717_v39  ;;  %v9782_v33 = vld [vmem:[%s15093_s0 + $0x85c] ss:$28 sps:$4 sm:$0xff]  }
  0x8e   : > { %3576 = vmatprep.subr.bf16.mxu0 %v9740_v40  ;;  %v9780_v39 = vld [vmem:[%s15093_s0 + $0x858] ss:$28 sps:$4 sm:$0xff]  }
  0x8f   : > { %4182 = vmatpush1.bf16.msra.mxu1 %v9702_v37  ;;  %3303 = vmatmul.mubr.bf16.gmra.mrb[32].mxu0 %v9644_v36  ;;  %v9759_v37 = vld [vmem:[%s10586_s19 + $0x124] ss:$28 sps:$4 sm:$0xff]  }
  0x90   : > { %4183 = vmatprep.subr.bf16.mxu1 %v9716_v38  ;;  %3312 = vmatprep.mubr.bf16.mxu0 %v9651_v41 }
  0x92   : > { %4065 = vmatmul.mubr.bf16.gmra.mrb[60].mxu1 %v9635_v26  ;;  %v9794_v26 = vld [vmem:[%s15093_s0 + $0x854] ss:$28 sps:$4 sm:$0xff]  }
  0x93   : > { %4074 = vmatprep.mubr.bf16.mxu1 %v9642_v31  ;;  %4184 = vmatpush1.bf16.msra.mxu1 %v9714_v42  ;;  %v9803_v31 = vld [vmem:[%s15093_s0 + $0x88c] ss:$28 sps:$4 sm:$0xff]   ;;  %v9810_v42 = vld [vmem:[%s15093_s0 + $0x8c0] ss:$28 sps:$4 sm:$0xff]  }
  0x94   : > { %4185 = vmatprep.subr.bf16.mxu1 %v9725_v43 }
  0x97   : > { %4186 = vmatpush1.bf16.msra.mxu1 %v9723_v44  ;;  %3313 = vmatmul.mubr.bf16.gmra.mrb[36].mxu0 %v9653_v46  ;;  %v9821_v44 = vld [vmem:[%s15093_s0 + $0x8fc] ss:$28 sps:$4 sm:$0xff]  }
  0x98   : > { %4348 = vmatprep.subr.bf16.mxu1 %v9731_v45  ;;  %3322 = vmatprep.mubr.bf16.mxu0 %v9660_v47 }
  0x9a   : > { %4075 = vmatmul.mubr.bf16.gmra.mrb[64].mxu1 %v9644_v36  ;;  %v9812_v36 = vld [vmem:[%s15093_s0 + $0x8c4] ss:$28 sps:$4 sm:$0xff]  }
  0x9b   : > { %4084 = vmatprep.mubr.bf16.mxu1 %v9651_v41  ;;  %v9791_v41 = vld [vmem:[%s15093_s0 + $0x894] ss:$28 sps:$4 sm:$0xff]  }
  0x9f   : > { %3323 = vmatmul.mubr.bf16.gmra.mrb[40].mxu0 %v9662_v48 }
  0xa0   : > { %3332 = vmatprep.mubr.bf16.mxu0 %v9669_v49 }
  0xa2   : > { %4085 = vmatmul.mubr.bf16.gmra.mrb[68].mxu1 %v9653_v46  ;;  %v9789_v46 = vld [vmem:[%s15093_s0 + $0x890] ss:$28 sps:$4 sm:$0xff]  }
  0xa3   : > { %4094 = vmatprep.mubr.bf16.mxu1 %v9660_v47  ;;  %v9800_v47 = vld [vmem:[%s15093_s0 + $0x8cc] ss:$28 sps:$4 sm:$0xff]  }
  0xa7   : > { %3333 = vmatmul.mubr.bf16.gmra.mrb[44].mxu0 %v9671_v50 }
  0xa8   : > { %3342 = vmatprep.mubr.bf16.mxu0 %v9678_v51 }
  0xaa   : > { %4095 = vmatmul.mubr.bf16.gmra.mrb[72].mxu1 %v9662_v48  ;;  %v9819_v48 = vld [vmem:[%s15093_s0 + $0x8f8] ss:$28 sps:$4 sm:$0xff]  }
  0xab   : > { %4104 = vmatprep.mubr.bf16.mxu1 %v9669_v49  ;;  %v9761_v49 = vld [vmem:[%s10586_s19 + $0x120] ss:$28 sps:$4 sm:$0xff]  }
  0xaf   : > { %3343 = vmatmul.mubr.bf16.gmra.mrb[48].mxu0 %v9680_v52 }
  0xb0   : > { %3352 = vmatprep.mubr.bf16.mxu0 %v9687_v53 }
  0xb2   : > { %4105 = vmatmul.mubr.bf16.gmra.mrb[76].mxu1 %v9671_v50  ;;  %v9830_v50 = vld [vmem:[%s15093_s0 + $0x934] ss:$28 sps:$4 sm:$0xff]  }
  0xb3   : > { %4114 = vmatprep.mubr.bf16.mxu1 %v9678_v51  ;;  %v9768_v51 = vld [vmem:[%s10586_s19 + $0x15c] ss:$28 sps:$4 sm:$0xff]  }
  0xb7   : > { %3353 = vmatmul.mubr.bf16.gmra.mrb[52].mxu0 %v9689_v54 }
  0xb8   : > { %3362 = vmatprep.mubr.bf16.mxu0 %v9696_v55 }
  0xba   : > { %4115 = vmatmul.mubr.bf16.gmra.mrb[80].mxu1 %v9680_v52 }
  0xbb   : > { %4124 = vmatprep.mubr.bf16.mxu1 %v9687_v53  ;;  %v9798_v53 = vld [vmem:[%s15093_s0 + $0x8c8] ss:$28 sps:$4 sm:$0xff]  }
  0xbf   : > { %3363 = vmatmul.mubr.bf16.gmra.mrb[56].mxu0 %v9698_v56 }
  0xc0   : > { %3372 = vmatprep.mubr.bf16.mxu0 %v9708_v57 }
  0xc2   : > { %4125 = vmatmul.mubr.bf16.gmra.mrb[84].mxu1 %v9689_v54 }
  0xc3   : > { %4134 = vmatprep.mubr.bf16.mxu1 %v9696_v55  ;;  %v9809_v55 = vld [vmem:[%s15093_s0 + $0x904] ss:$28 sps:$4 sm:$0xff]  }
  0xc7   : > { %3373 = vmatmul.mubr.bf16.gmra.mrb[60].mxu0 %v9710_v58 }
  0xc8   : > { %3415 = vmatprep.mubr.bf16.mxu0 %v9722_v59 }
  0xca   : > { %4135 = vmatmul.mubr.bf16.gmra.mrb[88].mxu1 %v9698_v56  ;;  %v9828_v56 = vld [vmem:[%s15093_s0 + $0x930] ss:$28 sps:$4 sm:$0xff]  }
  0xcb   : > { %4144 = vmatprep.mubr.bf16.mxu1 %v9708_v57 }
  0xcf   : > { %3416 = vmatmul.mubr.bf16.vlgmr.msra.gmra.mrb[0].mxu0 %v9720_v60 }
  0xd0   : > { %3425 = vmatprep.mubr.bf16.mxu0 %v9726_v61  ;;  %3577 = vmatpush1.bf16.msra.mxu0 %v9738_v62  ;;  %v9837_v62 = vld [vmem:[%s15093_s0 + $0x968] ss:$28 sps:$4 sm:$0xff]  }
  0xd1   : > { %3578 = vmatprep.subr.bf16.mxu0 %v9749_v63  ;;  %v9770_v63 = vld [vmem:[%s10586_s19 + $0x158] ss:$28 sps:$4 sm:$0xff]  }
  0xd2   : > { %4145 = vmatmul.mubr.bf16.gmra.mrb[92].mxu1 %v9710_v58  ;;  %v9839_v58 = vld [vmem:[%s15093_s0 + $0x96c] ss:$28 sps:$4 sm:$0xff]  }
  0xd3   : > { %4187 = vmatprep.mubr.bf16.mxu1 %v9722_v59 }
  0xd4   : > { %3579 = vmatpush1.bf16.msra.mxu0 %v9747_v0  ;;  %v9845_v0 = vld [vmem:[%s15093_s0 + $0x9a4] ss:$28 sps:$4 sm:$0xff]  }
  0xd5   : > { %3580 = vmatprep.subr.bf16.mxu0 %v9758_v3 }
  0xd7   : > { %3426 = vmatmul.mubr.bf16.gmra.mrb[4].mxu0 %v9728_v1 }
  0xd8   : > { %3435 = vmatprep.mubr.bf16.mxu0 %v9732_v4  ;;  %3581 = vmatpush1.bf16.msra.mxu0 %v9756_v8  ;;  %v9843_v8 = vld [vmem:[%s15093_s0 + $0x9a0] ss:$28 sps:$4 sm:$0xff]  }
  0xd9   : > { %3582 = vmatprep.subr.bf16.mxu0 %v9767_v9 }
  0xda   : > { %4188 = vmatmul.mubr.bf16.vlgmr.msra.gmra.mrb[32].mxu1 %v9720_v60  ;;  %v9807_v60 = vld [vmem:[%s15093_s0 + $0x900] ss:$28 sps:$4 sm:$0xff]  }
  0xdb   : > { %4349 = vmatpush1.bf16.msra.mxu1 %v9729_v5  ;;  %4197 = vmatprep.mubr.bf16.mxu1 %v9726_v61  ;;  %v9818_v61 = vld [vmem:[%s15093_s0 + $0x93c] ss:$28 sps:$4 sm:$0xff]  }
  0xdc   : > { %4350 = vmatprep.subr.bf16.mxu1 %v9737_v6  ;;  %3583 = vmatpush1.bf16.msra.mxu0 %v9765_v15  ;;  %v9827_v6 = vld [vmem:[%s15093_s0 + $0x974] ss:$28 sps:$4 sm:$0xff]   ;;  %v9836_v15 = vld [vmem:[%s15093_s0 + $0x9ac] ss:$28 sps:$4 sm:$0xff]  }
  0xdd   : > { %3584 = vmatprep.subr.bf16.mxu0 %v9776_v16  ;;  %v9849_v16 = vld [vmem:[%s15093_s0 + $0x9d8] ss:$28 sps:$4 sm:$0xff]  }
  0xdf   : > { %4351 = vmatpush1.bf16.msra.mxu1 %v9735_v10  ;;  %3436 = vmatmul.mubr.bf16.gmra.mrb[8].mxu0 %v9734_v14  ;;  %v9851_v10 = vld [vmem:[%s15093_s0 + $0x9dc] ss:$28 sps:$4 sm:$0xff]  }
  0xe0   : > { %4352 = vmatprep.subr.bf16.mxu1 %v9746_v11  ;;  %3445 = vmatprep.mubr.bf16.mxu0 %v9741_v17 }
  0xe1   : > { %3585 = vmatpush1.bf16.msra.mxu0 %v9774_v20 }
  0xe2   : > { %4198 = vmatmul.mubr.bf16.gmra.mrb[36].mxu1 %v9728_v1  ;;  %3586 = vmatprep.subr.bf16.mxu0 %v9785_v21  ;;  %v9777_v1 = vld [vmem:[%s10586_s19 + $0x194] ss:$28 sps:$4 sm:$0xff]   ;;  %v9834_v21 = vld [vmem:[%s15093_s0 + $0x9a8] ss:$28 sps:$4 sm:$0xff]  }
  0xe3   : > { %4207 = vmatprep.mubr.bf16.mxu1 %v9732_v4  ;;  %4353 = vmatpush1.bf16.msra.mxu1 %v9744_v18  ;;  %v9816_v4 = vld [vmem:[%s15093_s0 + $0x938] ss:$28 sps:$4 sm:$0xff]  }
  0xe4   : > { %4354 = vmatprep.subr.bf16.mxu1 %v9755_v19  ;;  %v9857_v18 = vld [vmem:[%s15093_s0 + $0xa14] ss:$28 sps:$4 sm:$0xff]   ;;  %v9786_v19 = vld [vmem:[%s10586_s19 + $0x1cc] ss:$28 sps:$4 sm:$0xff]  }
  0xe5   : > { %3587 = vmatpush1.bf16.msra.mxu0 %v9783_v24  ;;  %v9855_v24 = vld [vmem:[%s15093_s0 + $0xa10] ss:$28 sps:$4 sm:$0xff]  }
  0xe6   : > { %3588 = vmatprep.subr.bf16.mxu0 %v9794_v26  ;;  %v9863_v26 = vld [vmem:[%s15093_s0 + $0xa4c] ss:$28 sps:$4 sm:$0xff]  }
  0xe7   : > { %4355 = vmatpush1.bf16.msra.mxu1 %v9753_v22  ;;  %3446 = vmatmul.mubr.bf16.gmra.mrb[12].mxu0 %v9743_v25 }
  0xe8   : > { %4356 = vmatprep.subr.bf16.mxu1 %v9764_v23  ;;  %3455 = vmatprep.mubr.bf16.mxu0 %v9750_v27  ;;  %v9848_v23 = vld [vmem:[%s15093_s0 + $0x9e4] ss:$28 sps:$4 sm:$0xff]  }
  0xe9   : > { %3589 = vmatpush1.bf16.msra.mxu0 %v9792_v30  ;;  %v9788_v30 = vld [vmem:[%s10586_s19 + $0x1c8] ss:$28 sps:$4 sm:$0xff]  }
  0xea   : > { %4208 = vmatmul.mubr.bf16.gmra.mrb[40].mxu1 %v9734_v14  ;;  %3590 = vmatprep.subr.bf16.mxu0 %v9803_v31  ;;  %v9825_v14 = vld [vmem:[%s15093_s0 + $0x970] ss:$28 sps:$4 sm:$0xff]   ;;  %v9861_v31 = vld [vmem:[%s15093_s0 + $0xa48] ss:$28 sps:$4 sm:$0xff]  }
  0xeb   : > { %4217 = vmatprep.mubr.bf16.mxu1 %v9741_v17  ;;  %4357 = vmatpush1.bf16.msra.mxu1 %v9762_v28  ;;  %v9779_v17 = vld [vmem:[%s10586_s19 + $0x190] ss:$28 sps:$4 sm:$0xff]   ;;  %v9846_v28 = vld [vmem:[%s15093_s0 + $0x9e0] ss:$28 sps:$4 sm:$0xff]  }
  0xec   : > { %4358 = vmatprep.subr.bf16.mxu1 %v9773_v29  ;;  %v9860_v29 = vld [vmem:[%s15093_s0 + $0xa1c] ss:$28 sps:$4 sm:$0xff]  }
  0xed   : > { %v11105_v38 = vpop.f32.mrb[0].mxu1  ;;  %3591 = vmatpush1.bf16.msra.mxu0 %v9801_v34  ;;  %v9858_v34 = vld [vmem:[%s15093_s0 + $0xa18] ss:$28 sps:$4 sm:$0xff]  }
  0xee   : > { %v11110_v40 = vpop.f32.mrb[1].mxu1  ;;  %3592 = vmatprep.subr.bf16.mxu0 %v9812_v36  ;;  %v9869_v36 = vld [vmem:[%s15093_s0 + $0xa54] ss:$28 sps:$4 sm:$0xff]  }
  0xef   : > { %v11118_v43 = vpop.f32.mrb[2].mxu1  ;;  %4359 = vmatpush1.bf16.msra.mxu1 %v9771_v32  ;;  %3456 = vmatmul.mubr.bf16.gmra.mrb[16].mxu0 %v9752_v35  ;;  %v9795_v32 = vld [vmem:[%s10586_s19 + $0x204] ss:$28 sps:$4 sm:$0xff]  }
  0xf0   : > { %v11123_v45 = vpop.f32.mrb[3].mxu1  ;;  %4360 = vmatprep.subr.bf16.mxu1 %v9782_v33  ;;  %3465 = vmatprep.mubr.bf16.mxu0 %v9759_v37 }
  0xf1   : > { %3593 = vmatpush1.bf16.msra.mxu0 %v9810_v42  ;;  %v9867_v42 = vld [vmem:[%s15093_s0 + $0xa50] ss:$28 sps:$4 sm:$0xff]  }
  0xf2   : > { %4218 = vmatmul.mubr.bf16.gmra.mrb[44].mxu1 %v9743_v25  ;;  %3594 = vmatprep.subr.bf16.mxu0 %v9821_v44  ;;  %v9797_v44 = vld [vmem:[%s10586_s19 + $0x200] ss:$28 sps:$4 sm:$0xff]  }
  0xf3   : > { %4227 = vmatprep.mubr.bf16.mxu1 %v9750_v27  ;;  %4361 = vmatpush1.bf16.msra.mxu1 %v9780_v39 }
  0xf4   : > { %4362 = vmatprep.subr.bf16.mxu1 %v9791_v41  ;;  %v10351_v41 = vld [vmem:[%s15093_s0 + $0xa84] ss:$28 sps:$4 sm:$0xff]  }
  0xf5   : > { %v11139_v52 = vpop.f32.mrb[4].mxu1  ;;  %3595 = vmatpush1.bf16.msra.mxu0 %v9819_v48 }
  0xf6   : > { %v11144_v54 = vpop.f32.mrb[5].mxu1  ;;  %3596 = vmatprep.subr.bf16.mxu0 %v9830_v50 }
  0xf7   : > { %v11152_v57 = vpop.f32.mrb[6].mxu1  ;;  %4363 = vmatpush1.bf16.msra.mxu1 %v9789_v46  ;;  %3466 = vmatmul.mubr.bf16.gmra.mrb[20].mxu0 %v9761_v49  ;;  %v9875_v46 = vld [vmem:[%s15093_s0 + $0xa8c] ss:$28 sps:$4 sm:$0xff]  }
  0xf8   : > { %v11157_v59 = vpop.f32.mrb[7].mxu1  ;;  %4364 = vmatprep.subr.bf16.mxu1 %v9800_v47  ;;  %3475 = vmatprep.mubr.bf16.mxu0 %v9768_v51  ;;  %v9804_v47 = vld [vmem:[%s10586_s19 + $0x23c] ss:$28 sps:$4 sm:$0xff]  }
  0xf9   : > { %3597 = vmatpush1.bf16.msra.mxu0 %v9828_v56 }
  0xfa   : > { %4228 = vmatmul.mubr.bf16.gmra.mrb[48].mxu1 %v9752_v35  ;;  %3598 = vmatprep.subr.bf16.mxu0 %v9839_v58  ;;  %v9813_v58 = vld [vmem:[%s10586_s19 + $0x274] ss:$28 sps:$4 sm:$0xff]  }
  0xfb   : > { %4237 = vmatprep.mubr.bf16.mxu1 %v9759_v37  ;;  %4365 = vmatpush1.bf16.msra.mxu1 %v9798_v53  ;;  %v9806_v53 = vld [vmem:[%s10586_s19 + $0x238] ss:$28 sps:$4 sm:$0xff]  }
  0xfc   : > { %4366 = vmatprep.subr.bf16.mxu1 %v9809_v55 }
  0xfd   : > { %v11173_v3 = vpop.f32.mrb[8].mxu1  ;;  %3599 = vmatpush1.bf16.msra.mxu0 %v9837_v62 }
  0xfe   : > { %v11178_v5 = vpop.f32.mrb[9].mxu1  ;;  %3600 = vmatprep.subr.bf16.mxu0 %v9845_v0 }
  0xff   : > { %v11186_v9 = vpop.f32.mrb[10].mxu1  ;;  %4367 = vmatpush1.bf16.msra.mxu1 %v9807_v60  ;;  %3476 = vmatmul.mubr.bf16.gmra.mrb[24].mxu0 %v9770_v63 }
 0x100   : > { %v11191_v11 = vpop.f32.mrb[11].mxu1  ;;  %4368 = vmatprep.subr.bf16.mxu1 %v9818_v61  ;;  %3485 = vmatprep.mubr.bf16.mxu0 %v9777_v1 }
 0x101   : > { %3601 = vmatpush1.bf16.msra.mxu0 %v9843_v8  ;;  %v9824_v8 = vld [vmem:[%s10586_s19 + $0x2a8] ss:$28 sps:$4 sm:$0xff]  }
 0x102   : > { %4238 = vmatmul.mubr.bf16.gmra.mrb[52].mxu1 %v9761_v49  ;;  %3602 = vmatprep.subr.bf16.mxu0 %v9851_v10  ;;  %v9831_v10 = vld [vmem:[%s10586_s19 + $0x2e4] ss:$28 sps:$4 sm:$0xff]  }
 0x103   : > { %4247 = vmatprep.mubr.bf16.mxu1 %v9768_v51  ;;  %4369 = vmatpush1.bf16.msra.mxu1 %v9816_v4 }
 0x104   : > { %4370 = vmatprep.subr.bf16.mxu1 %v9827_v6 }
 0x105   : > { %v11207_v20 = vpop.f32.mrb[12].mxu1  ;;  %3603 = vmatpush1.bf16.msra.mxu0 %v9849_v16  ;;  %v9842_v16 = vld [vmem:[%s10586_s19 + $0x318] ss:$28 sps:$4 sm:$0xff]  }
 0x106   : > { %v11212_v22 = vpop.f32.mrb[13].mxu1  ;;  %3604 = vmatprep.subr.bf16.mxu0 %v9857_v18  ;;  %v9854_v18 = vld [vmem:[%s10586_s19 + $0x350] ss:$28 sps:$4 sm:$0xff]  }
 0x107   : > { %v11220_v25 = vpop.f32.mrb[14].mxu1  ;;  %4371 = vmatpush1.bf16.msra.mxu1 %v9825_v14  ;;  %3486 = vmatmul.mubr.bf16.gmra.mrb[28].mxu0 %v9779_v17  ;;  %v9833_v14 = vld [vmem:[%s10586_s19 + $0x2e0] ss:$28 sps:$4 sm:$0xff]  }
 0x108   : > { %v11225_v27 = vpop.f32.mrb[15].mxu1  ;;  %4372 = vmatprep.subr.bf16.mxu1 %v9836_v15  ;;  %3495 = vmatprep.mubr.bf16.mxu0 %v9786_v19  ;;  %v9840_v15 = vld [vmem:[%s10586_s19 + $0x31c] ss:$28 sps:$4 sm:$0xff]  }
 0x109   : > { %3605 = vmatpush1.bf16.msra.mxu0 %v9855_v24  ;;  %v644_v24 = vld [vmem:[%s15093_s0 + $0xac0] sm:$0x11] }
 0x10a   : > { %4248 = vmatmul.mubr.bf16.gmra.mrb[56].mxu1 %v9770_v63  ;;  %3606 = vmatprep.subr.bf16.mxu0 %v9863_v26  ;;  %v9815_v63 = vld [vmem:[%s10586_s19 + $0x270] ss:$28 sps:$4 sm:$0xff]   ;;  %v10352_v26 = vld [vmem:[%s15093_s0 + $0xa80] ss:$28 sps:$4 sm:$0xff]  }
 0x10b   : > { %4257 = vmatprep.mubr.bf16.mxu1 %v9777_v1  ;;  %4373 = vmatpush1.bf16.msra.mxu1 %v9834_v21  ;;  %v9822_v1 = vld [vmem:[%s10586_s19 + $0x2ac] ss:$28 sps:$4 sm:$0xff]  }
 0x10c   : > { %4374 = vmatprep.subr.bf16.mxu1 %v9848_v23  ;;  %v9864_v21 = vld [vmem:[%s10586_s19 + $0x10] ss:$28 sps:$4 sm:$0xff]  }
 0x10d   : > { %v11238_v33 = vpop.f32.mrb[16].mxu1  ;;  %3607 = vmatpush1.bf16.msra.mxu0 %v9861_v31  ;;  %v9870_v23 = vld [vmem:[%s10586_s19 + $0x4c] ss:$28 sps:$4 sm:$0xff]   ;;  %v9876_v31 = vld [vmem:[%s10586_s19 + $0x84] ss:$28 sps:$4 sm:$0xff]  }
 0x10e   : > { %v11243_v35 = vpop.f32.mrb[17].mxu1  ;;  %3769 = vmatprep.subr.bf16.mxu0 %v10351_v41  ;;  %v9931_v41 = vld [vmem:[%s15093_s0 + $0x1d8] ss:$28 sps:$4 sm:$0xff]  }
 0x10f   : > { %v11248_v37 = vpop.f32.mrb[18].mxu1  ;;  %4375 = vmatpush1.bf16.msra.mxu1 %v9846_v28  ;;  %3496 = vmatmul.mubr.bf16.gmra.mrb[32].mxu0 %v9788_v30  ;;  %v8288_v28 = vcombine.high %v644_v24, %v644_v24 }
 0x110   : > { %v11250_v39 = vpop.f32.mrb[19].mxu1  ;;  %4376 = vmatprep.subr.bf16.mxu1 %v9860_v29  ;;  %3505 = vmatprep.mubr.bf16.mxu0 %v9795_v32  ;;  %v9923_v29 = vld [vmem:[%s15093_s0 + $0x14] ss:$28 sps:$4 sm:$0xff]  }
 0x112   : > { %4258 = vmatmul.mubr.bf16.gmra.mrb[60].mxu1 %v9779_v17  ;;  %v9852_v17 = vld [vmem:[%s10586_s19 + $0x354] ss:$28 sps:$4 sm:$0xff]  }
 0x113   : > { %4267 = vmatprep.mubr.bf16.mxu1 %v9786_v19  ;;  %4377 = vmatpush1.bf16.msra.mxu1 %v9858_v34  ;;  %v9866_v19 = vld [vmem:[%s10586_s19 + $0x14] ss:$28 sps:$4 sm:$0xff]   ;;  %v8287_v34 = vcombine.low %v644_v24, %v644_v24 }
 0x114   : > { %4378 = vmatprep.subr.bf16.mxu1 %v9869_v36  ;;  %v3179_v36 = vand.u32 %v8288_v28, %v10559_v7  ;;  %v9908_v24 = vld [vmem:[%s10586_s19 + $0x2b4] ss:$28 sps:$4 sm:$0xff]   ;;  %v9911_v28 = vld [vmem:[%s10586_s19 + $0x2ec] ss:$28 sps:$4 sm:$0xff]  }
 0x115   : > { %v11263_v48 = vpop.f32.mrb[20].mxu1 }
 0x116   : > { %v11265_v49 = vpop.f32.mrb[21].mxu1 }
 0x117   : > { %v11267_v50 = vpop.f32.mrb[22].mxu1  ;;  %4379 = vmatpush1.bf16.msra.mxu1 %v9867_v42  ;;  %3506 = vmatmul.mubr.bf16.gmra.mrb[36].mxu0 %v9797_v44  ;;  %v9879_v42 = vld [vmem:[%s10586_s19 + $0xbc] ss:$28 sps:$4 sm:$0xff]  }
 0x118   : > { %v11269_v51 = vpop.f32.mrb[23].mxu1  ;;  %4541 = vmatprep.subr.bf16.mxu1 %v9875_v46  ;;  %3515 = vmatprep.mubr.bf16.mxu0 %v9804_v47  ;;  %v9882_v46 = vld [vmem:[%s10586_s19 + $0xf4] ss:$28 sps:$4 sm:$0xff]  }
 0x11a   : > { %4268 = vmatmul.mubr.bf16.gmra.mrb[64].mxu1 %v9788_v30  ;;  %v9872_v30 = vld [vmem:[%s10586_s19 + $0x48] ss:$28 sps:$4 sm:$0xff]  }
 0x11b   : > { %4277 = vmatprep.mubr.bf16.mxu1 %v9795_v32  ;;  %v9873_v32 = vld [vmem:[%s15093_s0 + $0xa88] ss:$28 sps:$4 sm:$0xff]  }
 0x11d   : > { %v11272_v55 = vpop.f32.mrb[24].mxu1 }
 0x11e   : > { %v11274_v56 = vpop.f32.mrb[25].mxu1 }
 0x11f   : > { %v11277_v60 = vpop.f32.mrb[26].mxu1  ;;  %3516 = vmatmul.mubr.bf16.gmra.mrb[40].mxu0 %v9806_v53 }
 0x120   : > { %v11279_v61 = vpop.f32.mrb[27].mxu1  ;;  %3525 = vmatprep.mubr.bf16.mxu0 %v9813_v58 }
 0x122   : > { %4278 = vmatmul.mubr.bf16.gmra.mrb[68].mxu1 %v9797_v44  ;;  %v9881_v44 = vld [vmem:[%s10586_s19 + $0xb8] ss:$28 sps:$4 sm:$0xff]  }
 0x123   : > { %4287 = vmatprep.mubr.bf16.mxu1 %v9804_v47  ;;  %v9884_v47 = vld [vmem:[%s10586_s19 + $0xf0] ss:$28 sps:$4 sm:$0xff]  }
 0x125   : > { %v11281_v62 = vpop.f32.mrb[28].mxu1 }
 0x126   : > { %v11284_v0 = vpop.f32.mrb[29].mxu1 }
 0x127   : > { %v11287_v4 = vpop.f32.mrb[30].mxu1  ;;  %3526 = vmatmul.mubr.bf16.gmra.mrb[44].mxu0 %v9815_v63 }
 0x128   : > { %v11289_v6 = vpop.f32.mrb[31].mxu1  ;;  %3535 = vmatprep.mubr.bf16.mxu0 %v9822_v1 }
 0x12a   : > { %4288 = vmatmul.mubr.bf16.gmra.mrb[72].mxu1 %v9806_v53  ;;  %v9885_v53 = vld [vmem:[%s10586_s19 + $0x12c] ss:$28 sps:$4 sm:$0xff]  }
 0x12b   : > { %4297 = vmatprep.mubr.bf16.mxu1 %v9813_v58  ;;  %v9887_v58 = vld [vmem:[%s10586_s19 + $0x128] ss:$28 sps:$4 sm:$0xff]  }
 0x12f   : > { %3536 = vmatmul.mubr.bf16.gmra.mrb[48].mxu0 %v9824_v8 }
 0x130   : > { %3545 = vmatprep.mubr.bf16.mxu0 %v9831_v10 }
 0x132   : > { %4298 = vmatmul.mubr.bf16.gmra.mrb[76].mxu1 %v9815_v63  ;;  %v9888_v63 = vld [vmem:[%s10586_s19 + $0x164] ss:$28 sps:$4 sm:$0xff]  }
 0x133   : > { %4307 = vmatprep.mubr.bf16.mxu1 %v9822_v1  ;;  %v9890_v1 = vld [vmem:[%s10586_s19 + $0x160] ss:$28 sps:$4 sm:$0xff]  }
 0x137   : > { %3546 = vmatmul.mubr.bf16.gmra.mrb[52].mxu0 %v9833_v14 }
 0x138   : > { %3555 = vmatprep.mubr.bf16.mxu0 %v9840_v15 }
 0x13a   : > { %4308 = vmatmul.mubr.bf16.gmra.mrb[80].mxu1 %v9824_v8  ;;  %v9891_v8 = vld [vmem:[%s10586_s19 + $0x19c] ss:$28 sps:$4 sm:$0xff]  }
 0x13b   : > { %4317 = vmatprep.mubr.bf16.mxu1 %v9831_v10  ;;  %v9893_v10 = vld [vmem:[%s10586_s19 + $0x198] ss:$28 sps:$4 sm:$0xff]  }
 0x13f   : > { %3556 = vmatmul.mubr.bf16.gmra.mrb[56].mxu0 %v9842_v16 }
 0x140   : > { %3565 = vmatprep.mubr.bf16.mxu0 %v9852_v17 }
 0x142   : > { %4318 = vmatmul.mubr.bf16.gmra.mrb[84].mxu1 %v9833_v14  ;;  %v9894_v14 = vld [vmem:[%s10586_s19 + $0x1d4] ss:$28 sps:$4 sm:$0xff]  }
 0x143   : > { %4327 = vmatprep.mubr.bf16.mxu1 %v9840_v15  ;;  %v9896_v15 = vld [vmem:[%s10586_s19 + $0x1d0] ss:$28 sps:$4 sm:$0xff]  }
 0x147   : > { %3566 = vmatmul.mubr.bf16.gmra.mrb[60].mxu0 %v9854_v18 }
 0x148   : > { %3608 = vmatprep.mubr.bf16.mxu0 %v9866_v19 }
 0x14a   : > { %4328 = vmatmul.mubr.bf16.gmra.mrb[88].mxu1 %v9842_v16  ;;  %v9897_v16 = vld [vmem:[%s10586_s19 + $0x20c] ss:$28 sps:$4 sm:$0xff]  }
 0x14b   : > { %4337 = vmatprep.mubr.bf16.mxu1 %v9852_v17  ;;  %v9899_v17 = vld [vmem:[%s10586_s19 + $0x208] ss:$28 sps:$4 sm:$0xff]  }
 0x14f   : > { %3609 = vmatmul.mubr.bf16.vlgmr.msra.gmra.mrb[0].mxu0 %v9864_v21 }
 0x150   : > { %3618 = vmatprep.mubr.bf16.mxu0 %v9870_v23  ;;  %3770 = vmatpush1.bf16.msra.mxu0 %v10352_v26  ;;  %v9910_v26 = vld [vmem:[%s10586_s19 + $0x2b0] ss:$28 sps:$4 sm:$0xff]  }
 0x151   : > { %3771 = vmatprep.subr.bf16.mxu0 %v10568_v12  ;;  %v3176_v12 = vand.u32 %v8287_v34, %v10559_v7  ;;  %v9919_v34 = vld [vmem:[%s10586_s19 + $0x358] ss:$28 sps:$4 sm:$0xff]  }
 0x152   : > { %4338 = vmatmul.mubr.bf16.gmra.mrb[92].mxu1 %v9854_v18  ;;  %v9902_v18 = vld [vmem:[%s10586_s19 + $0x244] ss:$28 sps:$4 sm:$0xff]  }
 0x153   : > { %4380 = vmatprep.mubr.bf16.mxu1 %v9866_v19  ;;  %v9904_v19 = vld [vmem:[%s10586_s19 + $0x240] ss:$28 sps:$4 sm:$0xff]  }
 0x154   : > { %3772 = vmatpush1.bf16.msra.mxu0 %v10571_v13  ;;  %v9878_v13 = vld [vmem:[%s10586_s19 + $0x80] ss:$28 sps:$4 sm:$0xff]  }
 0x155   : > { %4734 = vmatprep.subr.bf16.mxu0 %v9923_v29  ;;  %v9913_v29 = vld [vmem:[%s10586_s19 + $0x2e8] ss:$28 sps:$4 sm:$0xff]  }
 0x157   : > { %3619 = vmatmul.mubr.bf16.gmra.mrb[4].mxu0 %v9872_v30 }
 0x158   : > { %3628 = vmatprep.mubr.bf16.mxu0 %v9876_v31 }
 0x15a   : > { %4381 = vmatmul.mubr.bf16.vlgmr.msra.gmra.mrb[32].mxu1 %v9864_v21  ;;  %v9905_v21 = vld [vmem:[%s10586_s19 + $0x27c] ss:$28 sps:$4 sm:$0xff]  }
 0x15b   : > { %4542 = vmatpush1.bf16.msra.mxu1 %v9873_v32  ;;  %4390 = vmatprep.mubr.bf16.mxu1 %v9870_v23  ;;  %v9907_v23 = vld [vmem:[%s10586_s19 + $0x278] ss:$28 sps:$4 sm:$0xff]  }
 0x15c   : > { %4543 = vmatprep.subr.bf16.mxu1 %v3179_v36  ;;  %v9917_v32 = vld [vmem:[%s10586_s19 + $0x35c] ss:$28 sps:$4 sm:$0xff]  }
 0x15d   : > { %v9920_v36 = vld [vmem:[%s10586_s19 + $0x18] ss:$28 sps:$4 sm:$0xff]  }
 0x15f   : > { %4544 = vmatpush1.bf16.msra.mxu1 %v3176_v12  ;;  %3629 = vmatmul.mubr.bf16.gmra.mrb[8].mxu0 %v9878_v13  ;;  %v9921_v12 = vld [vmem:[%s15093_s0 + $0x10] ss:$28 sps:$4 sm:$0xff]  }
 0x160   : > { %8489 = vmatprep.subr.bf16.mxu1 %v9931_v41  ;;  %3638 = vmatprep.mubr.bf16.mxu0 %v9879_v42  ;;  %v9926_v41 = vld [vmem:[%s15093_s0 + $0x4c] ss:$28 sps:$4 sm:$0xff]  }
 0x162   : > { %4391 = vmatmul.mubr.bf16.gmra.mrb[36].mxu1 %v9872_v30  ;;  %v9914_v30 = vld [vmem:[%s10586_s19 + $0x324] ss:$28 sps:$4 sm:$0xff]  }
 0x163   : > { %4400 = vmatprep.mubr.bf16.mxu1 %v9876_v31  ;;  %v9916_v31 = vld [vmem:[%s10586_s19 + $0x320] ss:$28 sps:$4 sm:$0xff]  }
 0x167   : > { %3639 = vmatmul.mubr.bf16.gmra.mrb[12].mxu0 %v9881_v44 }
 0x168   : > { %3648 = vmatprep.mubr.bf16.mxu0 %v9882_v46 }
 0x16a   : > { %4401 = vmatmul.mubr.bf16.gmra.mrb[40].mxu1 %v9878_v13  ;;  %v9924_v13 = vld [vmem:[%s15093_s0 + $0x48] ss:$28 sps:$4 sm:$0xff]  }
 0x16b   : > { %4410 = vmatprep.mubr.bf16.mxu1 %v9879_v42  ;;  %v9930_v42 = vld [vmem:[%s15093_s0 + $0x84] ss:$28 sps:$4 sm:$0xff]  }
 0x16f   : > { %3649 = vmatmul.mubr.bf16.gmra.mrb[16].mxu0 %v9884_v47 }
 0x170   : > { %3658 = vmatprep.mubr.bf16.mxu0 %v9885_v53 }
 0x172   : > { %4411 = vmatmul.mubr.bf16.gmra.mrb[44].mxu1 %v9881_v44  ;;  %v9927_v44 = vld [vmem:[%s10586_s19 + $0x50] ss:$28 sps:$4 sm:$0xff]  }
 0x173   : > { %4420 = vmatprep.mubr.bf16.mxu1 %v9882_v46  ;;  %v9928_v46 = vld [vmem:[%s15093_s0 + $0x80] ss:$28 sps:$4 sm:$0xff]  }
 0x177   : > { %3659 = vmatmul.mubr.bf16.gmra.mrb[20].mxu0 %v9887_v58 }
 0x178   : > { %3668 = vmatprep.mubr.bf16.mxu0 %v9888_v63 }
 0x17a   : > { %4421 = vmatmul.mubr.bf16.gmra.mrb[48].mxu1 %v9884_v47  ;;  %v9932_v47 = vld [vmem:[%s15093_s0 + $0x18] ss:$28 sps:$4 sm:$0xff]  }
 0x17b   : > { %4430 = vmatprep.mubr.bf16.mxu1 %v9885_v53  ;;  %v9935_v53 = vld [vmem:[%s15093_s0 + $0xbc] ss:$28 sps:$4 sm:$0xff]  }
 0x17f   : > { %3669 = vmatmul.mubr.bf16.gmra.mrb[24].mxu0 %v9890_v1 }
 0x180   : > { %3678 = vmatprep.mubr.bf16.mxu0 %v9891_v8 }
 0x182   : > { %4431 = vmatmul.mubr.bf16.gmra.mrb[52].mxu1 %v9887_v58  ;;  %v9947_v58 = vld [vmem:[%s15093_s0 + $0x210] ss:$28 sps:$4 sm:$0xff]  }
 0x183   : > { %4440 = vmatprep.mubr.bf16.mxu1 %v9888_v63  ;;  %v9933_v63 = vld [vmem:[%s15093_s0 + $0xb8] ss:$28 sps:$4 sm:$0xff]  }
 0x187   : > { %3679 = vmatmul.mubr.bf16.gmra.mrb[28].mxu0 %v9893_v10 }
 0x188   : > { %3688 = vmatprep.mubr.bf16.mxu0 %v9894_v14 }
 0x18a   : > { %4441 = vmatmul.mubr.bf16.gmra.mrb[56].mxu1 %v9890_v1  ;;  %v9939_v1 = vld [vmem:[%s15093_s0 + $0xf4] ss:$28 sps:$4 sm:$0xff]  }
 0x18b   : > { %4450 = vmatprep.mubr.bf16.mxu1 %v9891_v8  ;;  %v9948_v8 = vld [vmem:[%s15093_s0 + $0x50] ss:$28 sps:$4 sm:$0xff]  }
 0x18f   : > { %3689 = vmatmul.mubr.bf16.gmra.mrb[32].mxu0 %v9896_v15 }
 0x190   : > { %3698 = vmatprep.mubr.bf16.mxu0 %v9897_v16 }
 0x192   : > { %4451 = vmatmul.mubr.bf16.gmra.mrb[60].mxu1 %v9893_v10  ;;  %v9963_v10 = vld [vmem:[%s15093_s0 + $0x248] ss:$28 sps:$4 sm:$0xff]  }
 0x193   : > { %4460 = vmatprep.mubr.bf16.mxu1 %v9894_v14  ;;  %v9936_v14 = vld [vmem:[%s10586_s19 + $0x88] ss:$28 sps:$4 sm:$0xff]  }
 0x197   : > { %3699 = vmatmul.mubr.bf16.gmra.mrb[36].mxu0 %v9899_v17 }
 0x198   : > { %3708 = vmatprep.mubr.bf16.mxu0 %v9902_v18 }
 0x19a   : > { %4461 = vmatmul.mubr.bf16.gmra.mrb[64].mxu1 %v9896_v15  ;;  %v9937_v15 = vld [vmem:[%s15093_s0 + $0xf0] ss:$28 sps:$4 sm:$0xff]  }
 0x19b   : > { %4470 = vmatprep.mubr.bf16.mxu1 %v9897_v16  ;;  %v9942_v16 = vld [vmem:[%s15093_s0 + $0x12c] ss:$28 sps:$4 sm:$0xff]  }
 0x19f   : > { %3709 = vmatmul.mubr.bf16.gmra.mrb[40].mxu0 %v9904_v19 }
 0x1a0   : > { %3718 = vmatprep.mubr.bf16.mxu0 %v9905_v21 }
 0x1a2   : > { %4471 = vmatmul.mubr.bf16.gmra.mrb[68].mxu1 %v9899_v17  ;;  %v9964_v17 = vld [vmem:[%s15093_s0 + $0x88] ss:$28 sps:$4 sm:$0xff]  }
 0x1a3   : > { %4480 = vmatprep.mubr.bf16.mxu1 %v9902_v18  ;;  %v9979_v18 = vld [vmem:[%s15093_s0 + $0x280] ss:$28 sps:$4 sm:$0xff]  }
 0x1a7   : > { %3719 = vmatmul.mubr.bf16.gmra.mrb[44].mxu0 %v9907_v23 }
 0x1a8   : > { %3728 = vmatprep.mubr.bf16.mxu0 %v9908_v24 }
 0x1aa   : > { %4481 = vmatmul.mubr.bf16.gmra.mrb[72].mxu1 %v9904_v19  ;;  %v9940_v19 = vld [vmem:[%s15093_s0 + $0x128] ss:$28 sps:$4 sm:$0xff]  }
 0x1ab   : > { %4490 = vmatprep.mubr.bf16.mxu1 %v9905_v21  ;;  %v9946_v21 = vld [vmem:[%s15093_s0 + $0x164] ss:$28 sps:$4 sm:$0xff]  }
 0x1af   : > { %3729 = vmatmul.mubr.bf16.gmra.mrb[48].mxu0 %v9910_v26 }
 0x1b0   : > { %3738 = vmatprep.mubr.bf16.mxu0 %v9911_v28 }
 0x1b2   : > { %4491 = vmatmul.mubr.bf16.gmra.mrb[76].mxu1 %v9907_v23  ;;  %v9980_v23 = vld [vmem:[%s15093_s0 + $0xc0] ss:$28 sps:$4 sm:$0xff]  }
 0x1b3   : > { %4500 = vmatprep.mubr.bf16.mxu1 %v9908_v24  ;;  %v9943_v24 = vld [vmem:[%s10586_s19 + $0xc0] ss:$28 sps:$4 sm:$0xff]  }
 0x1b7   : > { %3739 = vmatmul.mubr.bf16.gmra.mrb[52].mxu0 %v9913_v29 }
 0x1b8   : > { %3748 = vmatprep.mubr.bf16.mxu0 %v9914_v30 }
 0x1ba   : > { %4501 = vmatmul.mubr.bf16.gmra.mrb[80].mxu1 %v9910_v26  ;;  %v9984_v26 = vld [vmem:[%s15093_s0 + $0x2b8] ss:$28 sps:$4 sm:$0xff]  }
 0x1bb   : > { %4510 = vmatprep.mubr.bf16.mxu1 %v9911_v28  ;;  %v9944_v28 = vld [vmem:[%s15093_s0 + $0x160] ss:$28 sps:$4 sm:$0xff]  }
 0x1bf   : > { %3749 = vmatmul.mubr.bf16.gmra.mrb[56].mxu0 %v9916_v31 }
 0x1c0   : > { %3758 = vmatprep.mubr.bf16.mxu0 %v9917_v32 }
 0x1c2   : > { %4511 = vmatmul.mubr.bf16.gmra.mrb[84].mxu1 %v9913_v29  ;;  %v9951_v29 = vld [vmem:[%s15093_s0 + $0x19c] ss:$28 sps:$4 sm:$0xff]  }
 0x1c3   : > { %4520 = vmatprep.mubr.bf16.mxu1 %v9914_v30  ;;  %v9985_v30 = vld [vmem:[%s15093_s0 + $0xf8] ss:$28 sps:$4 sm:$0xff]  }
 0x1c7   : > { %3759 = vmatmul.mubr.bf16.gmra.mrb[60].mxu0 %v9919_v34 }
 0x1c8   : > { %3801 = vmatprep.mubr.bf16.mxu0 %v15098_v2 }
 0x1ca   : > { %4521 = vmatmul.mubr.bf16.gmra.mrb[88].mxu1 %v9916_v31  ;;  %v9989_v31 = vld [vmem:[%s15093_s0 + $0x2f0] ss:$28 sps:$4 sm:$0xff]  }
 0x1cb   : > { %4530 = vmatprep.mubr.bf16.mxu1 %v9917_v32  ;;  %v9949_v32 = vld [vmem:[%s15093_s0 + $0x198] ss:$28 sps:$4 sm:$0xff]  }
 0x1cf   : > { %8292 = vmatmul.mubr.msk.bf16.vlgmr.msra.gmra.mrb[0].mxu0 %vm15118_vm1, %v9920_v36 }
 0x1d0   : > { %4735 = vmatpush1.bf16.msra.mxu0 %v9921_v12  ;;  %3811 = vmatprep.mubr.bf16.mxu0 %v15098_v2  ;;  %v9952_v12 = vld [vmem:[%s10586_s19 + $0xf8] ss:$28 sps:$4 sm:$0xff]  }
 0x1d1   : > { %4736 = vmatprep.subr.bf16.mxu0 %v9926_v41  ;;  %v9997_v41 = vld [vmem:[%s15093_s0 + $0x328] ss:$28 sps:$4 sm:$0xff]  }
 0x1d2   : > { %4531 = vmatmul.mubr.bf16.gmra.mrb[92].mxu1 %v9919_v34  ;;  %v9955_v34 = vld [vmem:[%s15093_s0 + $0x1d4] ss:$28 sps:$4 sm:$0xff]  }
 0x1d3   : > { %4573 = vmatprep.mubr.bf16.mxu1 %v15098_v2 }
 0x1d4   : > { %4737 = vmatpush1.bf16.msra.mxu0 %v9924_v13  ;;  %v9953_v13 = vld [vmem:[%s15093_s0 + $0x1d0] ss:$28 sps:$4 sm:$0xff]  }
 0x1d5   : > { %4738 = vmatprep.subr.bf16.mxu0 %v9930_v42  ;;  %v9958_v42 = vld [vmem:[%s15093_s0 + $0x20c] ss:$28 sps:$4 sm:$0xff]  }
 0x1d7   : > { %8293 = vmatmul.mubr.msk.bf16.gmra.mrb[4].mxu0 %vm15118_vm1, %v9927_v44 }
 0x1d8   : > { %4739 = vmatpush1.bf16.msra.mxu0 %v9928_v46  ;;  %3821 = vmatprep.mubr.bf16.mxu0 %v15098_v2  ;;  %v10005_v46 = vld [vmem:[%s15093_s0 + $0x360] ss:$28 sps:$4 sm:$0xff]  }
 0x1d9   : > { %4740 = vmatprep.subr.bf16.mxu0 %v9935_v53  ;;  %v9962_v53 = vld [vmem:[%s15093_s0 + $0x244] ss:$28 sps:$4 sm:$0xff]  }
 0x1da   : > { %8308 = vmatmul.mubr.msk.bf16.vlgmr.msra.gmra.mrb[32].mxu1 %vm15118_vm1, %v9920_v36  ;;  %v9990_v36 = vld [vmem:[%s15093_s0 + $0x130] ss:$28 sps:$4 sm:$0xff]  }
 0x1db   : > { %8490 = vmatpush3.bf16.msra.mxu1 %v9932_v47  ;;  %4583 = vmatprep.mubr.bf16.mxu1 %v15098_v2  ;;  %v9956_v47 = vld [vmem:[%s15093_s0 + $0x208] ss:$28 sps:$4 sm:$0xff]  }
 0x1dc   : > { %8491 = vmatprep.subr.bf16.mxu1 %v9947_v58  ;;  %4741 = vmatpush1.bf16.msra.mxu0 %v9933_v63  ;;  %v10006_v58 = vld [vmem:[%s15093_s0 + $0x1a0] ss:$28 sps:$4 sm:$0xff]   ;;  %v9959_v63 = vld [vmem:[%s10586_s19 + $0x130] ss:$28 sps:$4 sm:$0xff]  }
 0x1dd   : > { %4742 = vmatprep.subr.bf16.mxu0 %v9939_v1  ;;  %v10013_v1 = vld [vmem:[%s15093_s0 + $0x558] ss:$28 sps:$4 sm:$0xff]  }
 0x1df   : > { %8492 = vmatpush3.bf16.msra.mxu1 %v9948_v8  ;;  %8294 = vmatmul.mubr.msk.bf16.gmra.mrb[8].mxu0 %vm15118_vm1, %v9936_v14  ;;  %v9960_v8 = vld [vmem:[%s15093_s0 + $0x240] ss:$28 sps:$4 sm:$0xff]  }
 0x1e0   : > { %8493 = vmatprep.subr.bf16.mxu1 %v9963_v10  ;;  %4743 = vmatpush1.bf16.msra.mxu0 %v9937_v15  ;;  %v9967_v10 = vld [vmem:[%s15093_s0 + $0x27c] ss:$28 sps:$4 sm:$0xff]   ;;  %v9971_v15 = vld [vmem:[%s15093_s0 + $0x2b4] ss:$28 sps:$4 sm:$0xff]  }
 0x1e1   : > { %4744 = vmatprep.subr.bf16.mxu0 %v9942_v16  ;;  %3831 = vmatprep.mubr.bf16.mxu0 %v15098_v2  ;;  %v9968_v16 = vld [vmem:[%s10586_s19 + $0x168] ss:$28 sps:$4 sm:$0xff]  }
 0x1e2   : > { %8309 = vmatmul.mubr.msk.bf16.gmra.mrb[36].mxu1 %vm15118_vm1, %v9927_v44  ;;  %v9998_v44 = vld [vmem:[%s15093_s0 + $0x168] ss:$28 sps:$4 sm:$0xff]  }
 0x1e3   : > { %4593 = vmatprep.mubr.bf16.mxu1 %v15098_v2  ;;  %8494 = vmatpush3.bf16.msra.mxu1 %v9964_v17  ;;  %v9969_v17 = vld [vmem:[%s15093_s0 + $0x2b0] ss:$28 sps:$4 sm:$0xff]  }
 0x1e4   : > { %8495 = vmatprep.subr.bf16.mxu1 %v9979_v18  ;;  %4745 = vmatpush1.bf16.msra.mxu0 %v9940_v19  ;;  %v9974_v18 = vld [vmem:[%s15093_s0 + $0x2ec] ss:$28 sps:$4 sm:$0xff]  }
 0x1e5   : > { %4746 = vmatprep.subr.bf16.mxu0 %v9946_v21  ;;  %v9972_v19 = vld [vmem:[%s15093_s0 + $0x2e8] ss:$28 sps:$4 sm:$0xff]  }
 0x1e6   : > { %v9978_v21 = vld [vmem:[%s15093_s0 + $0x324] ss:$28 sps:$4 sm:$0xff]  }
 0x1e7   : > { %8496 = vmatpush3.bf16.msra.mxu1 %v9980_v23  ;;  %8295 = vmatmul.mubr.msk.bf16.gmra.mrb[12].mxu0 %vm15118_vm1, %v9943_v24  ;;  %v9975_v23 = vld [vmem:[%s10586_s19 + $0x1a0] ss:$28 sps:$4 sm:$0xff]  }
 0x1e8   : > { %8497 = vmatprep.subr.bf16.mxu1 %v9984_v26  ;;  %4747 = vmatpush1.bf16.msra.mxu0 %v9944_v28  ;;  %v9983_v26 = vld [vmem:[%s15093_s0 + $0x35c] ss:$28 sps:$4 sm:$0xff]  }
 0x1e9   : > { %4748 = vmatprep.subr.bf16.mxu0 %v9951_v29  ;;  %3841 = vmatprep.mubr.bf16.mxu0 %v15098_v2  ;;  %v9981_v28 = vld [vmem:[%s15093_s0 + $0x358] ss:$28 sps:$4 sm:$0xff]  }
 0x1ea   : > { %8310 = vmatmul.mubr.msk.bf16.gmra.mrb[40].mxu1 %vm15118_vm1, %v9936_v14  ;;  %v9965_v14 = vld [vmem:[%s15093_s0 + $0x278] ss:$28 sps:$4 sm:$0xff]  }
 0x1eb   : > { %4603 = vmatprep.mubr.bf16.mxu1 %v15098_v2  ;;  %8498 = vmatpush3.bf16.msra.mxu1 %v9985_v30  ;;  %v9988_v29 = vld [vmem:[%s15093_s0 + $0x394] ss:$28 sps:$4 sm:$0xff]   ;;  %v11533_v30 = vld [vmem:[%s10586_s19 + $0x4] ss:$28 sps:$4 sm:$0xff]  }
 0x1ec   : > { %8499 = vmatprep.subr.bf16.mxu1 %v9989_v31  ;;  %4749 = vmatpush1.bf16.msra.mxu0 %v9949_v32  ;;  %v9986_v31 = vld [vmem:[%s15093_s0 + $0x390] ss:$28 sps:$4 sm:$0xff]  }
 0x1ed   : > { %4750 = vmatprep.subr.bf16.mxu0 %v9955_v34  ;;  %v9993_v32 = vld [vmem:[%s15093_s0 + $0x3cc] ss:$28 sps:$4 sm:$0xff]   ;;  %v11543_v34 = vld [vmem:[%s10586_s19] ss:$28 sps:$4 sm:$0xff]  }
 0x1ef   : > { %8500 = vmatpush3.bf16.msra.mxu1 %v9990_v36  ;;  %8296 = vmatmul.mubr.msk.bf16.gmra.mrb[16].mxu0 %vm15118_vm1, %v9952_v12  ;;  %v11548_v36 = vld [vmem:[%s10586_s19 + $0x3c] ss:$28 sps:$4 sm:$0xff]  }
 0x1f0   : > { %8501 = vmatprep.subr.bf16.mxu1 %v9997_v41  ;;  %4751 = vmatpush1.bf16.msra.mxu0 %v9953_v13  ;;  %v9996_v41 = vld [vmem:[%s15093_s0 + $0x404] ss:$28 sps:$4 sm:$0xff]  }
 0x1f1   : > { %4752 = vmatprep.subr.bf16.mxu0 %v9958_v42  ;;  %3851 = vmatprep.mubr.bf16.mxu0 %v15098_v2  ;;  %v9994_v13 = vld [vmem:[%s15093_s0 + $0x400] ss:$28 sps:$4 sm:$0xff]  }
 0x1f2   : > { %8311 = vmatmul.mubr.msk.bf16.gmra.mrb[44].mxu1 %vm15118_vm1, %v9943_v24  ;;  %v9976_v24 = vld [vmem:[%s15093_s0 + $0x320] ss:$28 sps:$4 sm:$0xff]  }
 0x1f3   : > { %4613 = vmatprep.mubr.bf16.mxu1 %v15098_v2  ;;  %8502 = vmatpush3.bf16.msra.mxu1 %v9998_v44  ;;  %v10001_v42 = vld [vmem:[%s15093_s0 + $0x43c] ss:$28 sps:$4 sm:$0xff]  }
 0x1f4   : > { %8503 = vmatprep.subr.bf16.mxu1 %v10005_v46  ;;  %4753 = vmatpush1.bf16.msra.mxu0 %v9956_v47  ;;  %v11565_v44 = vld [vmem:[%s10586_s19 + $0x38] ss:$28 sps:$4 sm:$0xff]  }
 0x1f5   : > { %4754 = vmatprep.subr.bf16.mxu0 %v9962_v53  ;;  %v10357_v46 = vld [vmem:[%s10586_s19 + $0x1d8] ss:$28 sps:$4 sm:$0xff]  }
 0x1f6   : > { %v11571_v47 = vld [vmem:[%s10586_s19 + $0x74] ss:$28 sps:$4 sm:$0xff]  }
 0x1f7   : > { %8504 = vmatpush3.bf16.msra.mxu1 %v10006_v58  ;;  %8297 = vmatmul.mubr.msk.bf16.gmra.mrb[20].mxu0 %vm15118_vm1, %v9959_v63  ;;  %v9999_v53 = vld [vmem:[%s15093_s0 + $0x438] ss:$28 sps:$4 sm:$0xff]  }
 0x1f8   : > { %8601 = vmatprep.subr.bf16.mxu1 %v10013_v1  ;;  %4755 = vmatpush1.bf16.msra.mxu0 %v9960_v8  ;;  %v10004_v58 = vld [vmem:[%s15093_s0 + $0x474] ss:$28 sps:$4 sm:$0xff]   ;;  %v10009_v1 = vld [vmem:[%s15093_s0 + $0x4ac] ss:$28 sps:$4 sm:$0xff]  }
 0x1f9   : > { %4756 = vmatprep.subr.bf16.mxu0 %v9967_v10  ;;  %3861 = vmatprep.mubr.bf16.mxu0 %v15098_v2  ;;  %v11588_v8 = vld [vmem:[%s10586_s19 + $0x70] ss:$28 sps:$4 sm:$0xff]  }
 0x1fa   : > { %8312 = vmatmul.mubr.msk.bf16.gmra.mrb[48].mxu1 %vm15118_vm1, %v9952_v12  ;;  %v9991_v12 = vld [vmem:[%s15093_s0 + $0x3c8] ss:$28 sps:$4 sm:$0xff]   ;;  %v10360_v10 = vld [vmem:[%s10586_s19 + $0x210] ss:$28 sps:$4 sm:$0xff]  }
 0x1fb   : > { %4623 = vmatprep.mubr.bf16.mxu1 %v15098_v2 }
 0x1fc   : > { %4757 = vmatpush1.bf16.msra.mxu0 %v9965_v14  ;;  %v11594_v14 = vld [vmem:[%s10586_s19 + $0xac] ss:$28 sps:$4 sm:$0xff]  }
 0x1fd   : > { %4758 = vmatprep.subr.bf16.mxu0 %v9971_v15  ;;  %v10007_v15 = vld [vmem:[%s15093_s0 + $0x4a8] ss:$28 sps:$4 sm:$0xff]  }
 0x1ff   : > { %8298 = vmatmul.mubr.msk.bf16.gmra.mrb[24].mxu0 %vm15118_vm1, %v9968_v16 }
 0x200   : > { %4759 = vmatpush1.bf16.msra.mxu0 %v9969_v17  ;;  %3871 = vmatprep.mubr.bf16.mxu0 %v15098_v2  ;;  %v10010_v17 = vld [vmem:[%s15093_s0 + $0x4e0] ss:$28 sps:$4 sm:$0xff]  }
 0x201   : > { %4760 = vmatprep.subr.bf16.mxu0 %v9974_v18  ;;  %v10017_v18 = vld [vmem:[%s15093_s0 + $0x51c] ss:$28 sps:$4 sm:$0xff]  }
 0x202   : > { %8313 = vmatmul.mubr.msk.bf16.gmra.mrb[52].mxu1 %vm15118_vm1, %v9959_v63  ;;  %v10002_v63 = vld [vmem:[%s15093_s0 + $0x470] ss:$28 sps:$4 sm:$0xff]  }
 0x203   : > { %4633 = vmatprep.mubr.bf16.mxu1 %v15098_v2 }
 0x204   : > { %4761 = vmatpush1.bf16.msra.mxu0 %v9972_v19  ;;  %v11611_v19 = vld [vmem:[%s10586_s19 + $0xa8] ss:$28 sps:$4 sm:$0xff]  }
 0x205   : > { %4762 = vmatprep.subr.bf16.mxu0 %v9978_v21  ;;  %v10363_v21 = vld [vmem:[%s10586_s19 + $0x248] ss:$28 sps:$4 sm:$0xff]  }
 0x207   : > { %8299 = vmatmul.mubr.msk.bf16.gmra.mrb[28].mxu0 %vm15118_vm1, %v9975_v23 }
 0x208   : > { %4763 = vmatpush1.bf16.msra.mxu0 %v9976_v24  ;;  %4766 = vmatprep.mubr.bf16.mxu0 %v11533_v30  ;;  %v10015_v24 = vld [vmem:[%s15093_s0 + $0x518] ss:$28 sps:$4 sm:$0xff]  }
 0x209   : > { %4764 = vmatprep.subr.bf16.mxu0 %v9983_v26  ;;  %v10020_v26 = vld [vmem:[%s15093_s0 + $0x554] ss:$28 sps:$4 sm:$0xff]  }
 0x20a   : > { %8314 = vmatmul.mubr.msk.bf16.gmra.mrb[56].mxu1 %vm15118_vm1, %v9968_v16  ;;  %v10012_v16 = vld [vmem:[%s15093_s0 + $0x4e4] ss:$28 sps:$4 sm:$0xff]  }
 0x20b   : > { %4643 = vmatprep.mubr.bf16.mxu1 %v15098_v2 }
 0x20c   : > { %4765 = vmatpush1.bf16.msra.mxu0 %v9981_v28  ;;  %v10018_v28 = vld [vmem:[%s15093_s0 + $0x550] ss:$28 sps:$4 sm:$0xff]  }
 0x20d   : > { %4927 = vmatprep.subr.bf16.mxu0 %v9988_v29  ;;  %v10025_v29 = vld [vmem:[%s15093_s0 + $0x58c] ss:$28 sps:$4 sm:$0xff]  }
 0x20f   : > { %4767 = vmatmul.mubr.bf16.vlgmr.msra.gmra.mrb[64].mxu0 %v11543_v34 }
 0x210   : > { %4776 = vmatprep.mubr.bf16.mxu0 %v11548_v36  ;;  %4928 = vmatpush1.bf16.msra.mxu0 %v9986_v31  ;;  %v11634_v31 = vld [vmem:[%s10586_s19 + $0xe0] ss:$28 sps:$4 sm:$0xff]  }
 0x211   : > { %4929 = vmatprep.subr.bf16.mxu0 %v9993_v32  ;;  %v10366_v32 = vld [vmem:[%s10586_s19 + $0x280] ss:$28 sps:$4 sm:$0xff]  }
 0x212   : > { %8315 = vmatmul.mubr.msk.bf16.gmra.mrb[60].mxu1 %vm15118_vm1, %v9975_v23  ;;  %v11617_v23 = vld [vmem:[%s10586_s19 + $0xe4] ss:$28 sps:$4 sm:$0xff]  }
 0x213   : > { %4653 = vmatprep.mubr.bf16.mxu1 %v15098_v2 }
 0x214   : > { %4930 = vmatpush1.bf16.msra.mxu0 %v9991_v12  ;;  %v11640_v12 = vld [vmem:[%s10586_s19 + $0x11c] ss:$28 sps:$4 sm:$0xff]  }
 0x215   : > { %4931 = vmatprep.subr.bf16.mxu0 %v9996_v41  ;;  %v10023_v41 = vld [vmem:[%s15093_s0 + $0x588] ss:$28 sps:$4 sm:$0xff]  }
 0x217   : > { %4777 = vmatmul.mubr.bf16.gmra.mrb[68].mxu0 %v11565_v44 }
 0x218   : > { %4786 = vmatprep.mubr.bf16.mxu0 %v11571_v47  ;;  %4932 = vmatpush1.bf16.msra.mxu0 %v9994_v13  ;;  %v10028_v13 = vld [vmem:[%s15093_s0 + $0x5c4] ss:$28 sps:$4 sm:$0xff]  }
 0x219   : > { %4933 = vmatprep.subr.bf16.mxu0 %v10001_v42  ;;  %v10026_v42 = vld [vmem:[%s15093_s0 + $0x5c0] ss:$28 sps:$4 sm:$0xff]  }
 0x21a   : > { %8316 = vmatmul.mubr.msk.bf16.gmra.mrb[64].mxu1 %vm15118_vm1, %v10357_v46  ;;  %v10033_v46 = vld [vmem:[%s15093_s0 + $0x5fc] ss:$28 sps:$4 sm:$0xff]  }
 0x21b   : > { %4663 = vmatprep.mubr.bf16.mxu1 %v15098_v2 }
 0x21c   : > { %4934 = vmatpush1.bf16.msra.mxu0 %v9999_v53  ;;  %v11657_v53 = vld [vmem:[%s10586_s19 + $0x118] ss:$28 sps:$4 sm:$0xff]  }
 0x21d   : > { %4935 = vmatprep.subr.bf16.mxu0 %v10004_v58  ;;  %v10369_v58 = vld [vmem:[%s10586_s19 + $0x2b8] ss:$28 sps:$4 sm:$0xff]  }
 0x21f   : > { %4787 = vmatmul.mubr.bf16.gmra.mrb[72].mxu0 %v11588_v8 }
 0x220   : > { %4796 = vmatprep.mubr.bf16.mxu0 %v11594_v14  ;;  %4936 = vmatpush1.bf16.msra.mxu0 %v10002_v63  ;;  %v11663_v63 = vld [vmem:[%s10586_s19 + $0x154] ss:$28 sps:$4 sm:$0xff]  }
 0x221   : > { %4937 = vmatprep.subr.bf16.mxu0 %v10009_v1  ;;  %v10031_v1 = vld [vmem:[%s15093_s0 + $0x5f8] ss:$28 sps:$4 sm:$0xff]  }
 0x222   : > { %8317 = vmatmul.mubr.msk.bf16.gmra.mrb[68].mxu1 %vm15118_vm1, %v10360_v10  ;;  %v10036_v10 = vld [vmem:[%s15093_s0 + $0x634] ss:$28 sps:$4 sm:$0xff]  }
 0x223   : > { %4673 = vmatprep.mubr.bf16.mxu1 %v15098_v2 }
 0x224   : > { %4938 = vmatpush1.bf16.msra.mxu0 %v10007_v15  ;;  %v10034_v15 = vld [vmem:[%s15093_s0 + $0x630] ss:$28 sps:$4 sm:$0xff]  }
 0x225   : > { %4939 = vmatprep.subr.bf16.mxu0 %v10012_v16  ;;  %v10039_v16 = vld [vmem:[%s15093_s0 + $0x66c] ss:$28 sps:$4 sm:$0xff]  }
 0x227   : > { %4797 = vmatmul.mubr.bf16.gmra.mrb[76].mxu0 %v11611_v19 }
 0x228   : > { %4806 = vmatprep.mubr.bf16.mxu0 %v11617_v23  ;;  %4940 = vmatpush1.bf16.msra.mxu0 %v10010_v17  ;;  %v11680_v17 = vld [vmem:[%s10586_s19 + $0x150] ss:$28 sps:$4 sm:$0xff]  }
 0x229   : > { %4941 = vmatprep.subr.bf16.mxu0 %v10017_v18  ;;  %v10372_v18 = vld [vmem:[%s10586_s19 + $0x2f0] ss:$28 sps:$4 sm:$0xff]  }
 0x22a   : > { %8318 = vmatmul.mubr.msk.bf16.gmra.mrb[72].mxu1 %vm15118_vm1, %v10363_v21  ;;  %v11686_v21 = vld [vmem:[%s10586_s19 + $0x18c] ss:$28 sps:$4 sm:$0xff]  }
 0x22b   : > { %4683 = vmatprep.mubr.bf16.mxu1 %v15098_v2 }
 0x22c   : > { %4942 = vmatpush1.bf16.msra.mxu0 %v10015_v24  ;;  %v10037_v24 = vld [vmem:[%s15093_s0 + $0x668] ss:$28 sps:$4 sm:$0xff]  }
 0x22d   : > { %4943 = vmatprep.subr.bf16.mxu0 %v10020_v26  ;;  %v10042_v26 = vld [vmem:[%s15093_s0 + $0x6a4] ss:$28 sps:$4 sm:$0xff]  }
 0x22f   : > { %4807 = vmatmul.mubr.bf16.gmra.mrb[80].mxu0 %v11634_v31 }
 0x230   : > { %4816 = vmatprep.mubr.bf16.mxu0 %v11640_v12  ;;  %4944 = vmatpush1.bf16.msra.mxu0 %v10018_v28  ;;  %v10040_v28 = vld [vmem:[%s15093_s0 + $0x6a0] ss:$28 sps:$4 sm:$0xff]  }
 0x231   : > { %4945 = vmatprep.subr.bf16.mxu0 %v10025_v29  ;;  %v10047_v29 = vld [vmem:[%s15093_s0 + $0x6dc] ss:$28 sps:$4 sm:$0xff]  }
 0x232   : > { %8319 = vmatmul.mubr.msk.bf16.gmra.mrb[76].mxu1 %vm15118_vm1, %v10366_v32  ;;  %v11703_v32 = vld [vmem:[%s10586_s19 + $0x188] ss:$28 sps:$4 sm:$0xff]  }
 0x233   : > { %4693 = vmatprep.mubr.bf16.mxu1 %v15098_v2 }
 0x234   : > { %4946 = vmatpush1.bf16.msra.mxu0 %v10023_v41  ;;  %v10375_v41 = vld [vmem:[%s10586_s19 + $0x328] ss:$28 sps:$4 sm:$0xff]  }
 0x235   : > { %4947 = vmatprep.subr.bf16.mxu0 %v10028_v13  ;;  %v11709_v13 = vld [vmem:[%s10586_s19 + $0x1c4] ss:$28 sps:$4 sm:$0xff]  }
 0x237   : > { %4817 = vmatmul.mubr.bf16.gmra.mrb[84].mxu0 %v11657_v53 }
 0x238   : > { %4826 = vmatprep.mubr.bf16.mxu0 %v11663_v63  ;;  %4948 = vmatpush1.bf16.msra.mxu0 %v10026_v42  ;;  %v10045_v42 = vld [vmem:[%s15093_s0 + $0x6d8] ss:$28 sps:$4 sm:$0xff]  }
 0x239   : > { %4949 = vmatprep.subr.bf16.mxu0 %v10033_v46  ;;  %v10052_v46 = vld [vmem:[%s15093_s0 + $0x714] ss:$28 sps:$4 sm:$0xff]  }
 0x23a   : > { %8320 = vmatmul.mubr.msk.bf16.gmra.mrb[80].mxu1 %vm15118_vm1, %v10369_v58  ;;  %v11720_v58 = vld [vmem:[%s10586_s19 + $0x1c0] ss:$28 sps:$4 sm:$0xff]  }
 0x23b   : > { %4703 = vmatprep.mubr.bf16.mxu1 %v15098_v2 }
 0x23c   : > { %4950 = vmatpush1.bf16.msra.mxu0 %v10031_v1  ;;  %v10378_v1 = vld [vmem:[%s10586_s19 + $0x360] ss:$28 sps:$4 sm:$0xff]  }
 0x23d   : > { %4951 = vmatprep.subr.bf16.mxu0 %v10036_v10  ;;  %v11726_v10 = vld [vmem:[%s10586_s19 + $0x1fc] ss:$28 sps:$4 sm:$0xff]  }
 0x23f   : > { %4827 = vmatmul.mubr.bf16.gmra.mrb[88].mxu0 %v11680_v17 }
 0x240   : > { %4836 = vmatprep.mubr.bf16.mxu0 %v11686_v21  ;;  %4952 = vmatpush1.bf16.msra.mxu0 %v10034_v15  ;;  %v10014_v15 = vld [vmem:[%s15093_s0 + $0x398] ss:$28 sps:$4 sm:$0xff]  }
 0x241   : > { %4953 = vmatprep.subr.bf16.mxu0 %v10039_v16  ;;  %v10021_v16 = vld [vmem:[%s15093_s0 + $0x590] ss:$28 sps:$4 sm:$0xff]  }
 0x242   : > { %8321 = vmatmul.mubr.msk.bf16.gmra.mrb[84].mxu1 %vm15118_vm1, %v10372_v18  ;;  %v11737_v18 = vld [vmem:[%s10586_s19 + $0x1f8] ss:$28 sps:$4 sm:$0xff]  }
 0x243   : > { %4713 = vmatprep.mubr.bf16.mxu1 %v15098_v2  ;;  %15135 = vst [vmem:[#allocation3_spill] sm:$0xff] %v11737_v18 }
 0x244   : > { %4954 = vmatpush1.bf16.msra.mxu0 %v10037_v24  ;;  %v11742_v24 = vld [vmem:[%s10586_s19 + $0x234] ss:$28 sps:$4 sm:$0xff]  }
 0x245   : > { %4955 = vmatprep.subr.bf16.mxu0 %v10042_v26  ;;  %15136 = vst [vmem:[#allocation4_spill] sm:$0xff] %v11742_v24  ;;  %v10029_v26 = vld [vmem:[%s15093_s0 + $0x5c8] ss:$28 sps:$4 sm:$0xff]  }
 0x247   : > { %4837 = vmatmul.mubr.bf16.gmra.mrb[92].mxu0 %v11703_v32 }
 0x248   : > { %4846 = vmatprep.mubr.bf16.mxu0 %v11709_v13  ;;  %4956 = vmatpush1.bf16.msra.mxu0 %v10040_v28  ;;  %v11761_v28 = vld [vmem:[%s10586_s19 + $0x230] ss:$28 sps:$4 sm:$0xff]  }
 0x249   : > { %4957 = vmatprep.subr.bf16.mxu0 %v10047_v29  ;;  %15137 = vst [vmem:[#allocation5_spill] sm:$0xff] %v11761_v28  ;;  %v11766_v29 = vld [vmem:[%s10586_s19 + $0x26c] ss:$28 sps:$4 sm:$0xff]  }
 0x24a   : > { %8322 = vmatmul.mubr.msk.bf16.gmra.mrb[88].mxu1 %vm15118_vm1, %v10375_v41  ;;  %15138 = vst [vmem:[#allocation6_spill] sm:$0xff] %v11766_v29  ;;  %v10044_v41 = vld [vmem:[%s15093_s0 + $0x440] ss:$28 sps:$4 sm:$0xff]  }
 0x24b   : > { %4723 = vmatprep.mubr.bf16.mxu1 %v15098_v2 }
 0x24c   : > { %4958 = vmatpush1.bf16.msra.mxu0 %v10045_v42 }
 0x24d   : > { %5120 = vmatprep.subr.bf16.mxu0 %v10052_v46  ;;  %v10048_v46 = vld [vmem:[%s15093_s0 + $0x638] ss:$28 sps:$4 sm:$0xff]  }
 0x24f   : > { %4847 = vmatmul.mubr.bf16.gmra.mrb[96].mxu0 %v11720_v58 }
 0x250   : > { %4856 = vmatprep.mubr.bf16.mxu0 %v11726_v10 }
 0x252   : > { %8323 = vmatmul.mubr.msk.bf16.gmra.mrb[92].mxu1 %vm15118_vm1, %v10378_v1 }
 0x253   : > { %5538 = vmatprep.mubr.bf16.mxu1 %v11533_v30  ;;  %v10022_v30 = vld [vmem:[%s15093_s0 + $0x3d0] ss:$28 sps:$4 sm:$0xff]  }
 0x257   : > { %4857 = vmatmul.mubr.bf16.gmra.mrb[100].mxu0 %v11737_v18 }
 0x258   : > { %4866 = vmatprep.mubr.bf16.mxu0 %v11742_v24 }
 0x25a   : > { %5539 = vmatmul.mubr.bf16.vlgmr.msra.gmra.mrb[96].mxu1 %v11543_v34  ;;  %v10030_v34 = vld [vmem:[%s15093_s0 + $0x408] ss:$28 sps:$4 sm:$0xff]  }
 0x25b   : > { %8602 = vmatpush3.bf16.msra.mxu1 %v10014_v15  ;;  %5546 = vmatprep.mubr.bf16.mxu1 %v11548_v36  ;;  %v10043_v36 = vld [vmem:[%s15093_s0 + $0x600] ss:$28 sps:$4 sm:$0xff]  }
 0x25c   : > { %8603 = vmatprep.subr.bf16.mxu1 %v10021_v16 }
 0x25f   : > { %8604 = vmatpush3.bf16.msra.mxu1 %v10022_v30  ;;  %4867 = vmatmul.mubr.bf16.gmra.mrb[104].mxu0 %v11761_v28 }
 0x260   : > { %8605 = vmatprep.subr.bf16.mxu1 %v10029_v26  ;;  %4876 = vmatprep.mubr.bf16.mxu0 %v11766_v29 }
 0x262   : > { %5547 = vmatmul.mubr.bf16.gmra.mrb[100].mxu1 %v11565_v44  ;;  %v3690_v42 = vpop.f32.mrb[32].mxu0 }
 0x263   : > { %5554 = vmatprep.mubr.bf16.mxu1 %v11571_v47  ;;  %8606 = vmatpush3.bf16.msra.mxu1 %v10030_v34  ;;  %v11777_v44 = vadd.f32 %v11105_v38, %v3690_v42  ;;  %v3692_v1 = vpop.f32.mrb[33].mxu0  ;;  %v10049_v38 = vld [vmem:[%s15093_s0 + $0x478] ss:$28 sps:$4 sm:$0xff]  }
 0x264   : > { %8607 = vmatprep.subr.bf16.mxu1 %v10043_v36  ;;  %v11780_v15 = vadd.f32 %v11110_v40, %v3692_v1  ;;  %v3694_v47 = vpop.f32.mrb[34].mxu0  ;;  %v10053_v36 = vld [vmem:[%s15093_s0 + $0x670] ss:$28 sps:$4 sm:$0xff]   ;;  %v11800_v1 = vld [vmem:[%s10586_s19 + $0x268] ss:$28 sps:$4 sm:$0xff]  }
 0x265   : > { %v8420_v16 = vadd.f32 -1.0, %v11777_v44  ;;  %v11786_v30 = vadd.f32 %v11118_v43, %v3694_v47  ;;  %v3696_v26 = vpop.f32.mrb[35].mxu0  ;;  %15139 = vst [vmem:[#allocation7_spill] sm:$0xff] %v11800_v1  ;;  %vm7058_vm2 = vcmp.lt.f32.partialorder %v11777_v44, 1.0 }
 0x266   : > { %v8421_v34 = vadd.f32 -1.0, %v11780_v15  ;;  %v11793_v40 = vadd.f32 %v11123_v45, %v3696_v26  ;;  %v11806_v45 = vld [vmem:[%s10586_s19 + $0x2a4] ss:$28 sps:$4 sm:$0xff]   ;;  %vm7059_vm8 = vcmp.lt.f32.partialorder %v11780_v15, 1.0 }
 0x267   : > { %8608 = vmatpush3.bf16.msra.mxu1 %v10044_v41  ;;  %v6974_v43 = vmax.f32 %v8420_v16, 1e-10  ;;  %v8427_v42 = vadd.f32 -1.0, %v11786_v30  ;;  %4877 = vmatmul.mubr.bf16.gmra.mrb[108].mxu0 %v11800_v1  ;;  %v6293_v41 = vlaneseq  ;;  %15140 = vst [vmem:[#allocation8_spill] sm:$0xff] %v11806_v45  ;;  %v10054_v16 = vld [vmem:[%s15093_s0 + $0x4b0] ss:$28 sps:$4 sm:$0xff]  }
 0x268   : > { %8609 = vmatprep.subr.bf16.mxu1 %v10048_v46  ;;  %v6975_v47 = vmax.f32 %v8421_v34, 1e-10  ;;  %v8428_v2 = vadd.f32 -1.0, %v11793_v40  ;;  %4886 = vmatprep.mubr.bf16.mxu0 %v11806_v45  ;;  %v10077_v1 = vld [vmem:[%s15093_s0 + $0x8d8] ss:$28 sps:$4 sm:$0xff]   ;;  %vm7065_vm13 = vcmp.lt.f32.partialorder %v11786_v30, 1.0 }
 0x269   : > { %10127 = vrcp.f32 %v6974_v43  ;;  %v6981_v46 = vmax.f32 %v8427_v42, 1e-10  ;;  %v11820_v42 = vshrl.u32 %v6293_v41, 7 }
 0x26a   : > { %5555 = vmatmul.mubr.bf16.gmra.mrb[104].mxu1 %v11588_v8  ;;  %10129 = vrcp.f32 %v6975_v47  ;;  %v6982_v26 = vmax.f32 %v8428_v2, 1e-10  ;;  %v3700_v34 = vpop.f32.mrb[36].mxu0  ;;  %v10061_v8 = vld [vmem:[%s15093_s0 + $0x6a8] ss:$28 sps:$4 sm:$0xff]  }
 0x26b   : > { %5562 = vmatprep.mubr.bf16.mxu1 %v11594_v14  ;;  %8610 = vmatpush3.bf16.msra.mxu1 %v10049_v38  ;;  %10131 = vrcp.f32 %v6981_v46  ;;  %v11818_v7 = vadd.f32 %v11139_v52, %v3700_v34  ;;  %v3702_v43 = vpop.f32.mrb[37].mxu0  ;;  %15141 = vst [vmem:[#allocation9_spill] sm:$0xff] %v11820_v42  ;;  %v11851_v34 = vld [vmem:[%s10586_s19 + $0x2a0] ss:$28 sps:$4 sm:$0xff]  }
 0x26c   : > { %8611 = vmatprep.subr.bf16.mxu1 %v10053_v36  ;;  %10133 = vrcp.f32 %v6982_v26  ;;  %v11823_v14 = vadd.f32 %v11144_v54, %v3702_v43  ;;  %v3704_v38 = vpop.f32.mrb[38].mxu0  ;;  %v10062_v54 = vld [vmem:[%s15093_s0 + $0x4e8] ss:$28 sps:$4 sm:$0xff]   ;;  %15142 = vst [vmem:[#allocation10_spill] sm:$0xff] %v11851_v34  ;;  %v8418_v43 = vld [vmem:[%s11828_s11 + $0xe] sm:$0x7f] }
 0x26d   : > { %v8434_v2 = vadd.f32 -1.0, %v11818_v7  ;;  %v11832_v52 = vadd.f32 %v11152_v57, %v3704_v38  ;;  %v3706_v36 = vpop.f32.mrb[39].mxu0  ;;  %v10069_v57 = vld [vmem:[%s15093_s0 + $0x6e0] ss:$28 sps:$4 sm:$0xff]  }
 0x26e   : > { %v8435_v41 = vadd.f32 -1.0, %v11823_v14  ;;  %v11844_v47 = vadd.f32 %v11157_v59, %v3706_v36  ;;  %v11862_v36 = vsub.s32 1, %v11820_v42 }
 0x26f   : > { %8612 = vmatpush3.bf16.msra.mxu1 %v10054_v16  ;;  %v6988_v46 = vmax.f32 %v8434_v2, 1e-10  ;;  %v8441_v26 = vadd.f32 -1.0, %v11832_v52  ;;  %4887 = vmatmul.mubr.bf16.gmra.mrb[112].mxu0 %v11851_v34  ;;  %v11855_v16 = vsub.s32 0, %v11820_v42  ;;  %v11865_v2 = vld [vmem:[%s10586_s19 + $0x2dc] ss:$28 sps:$4 sm:$0xff]  }
 0x270   : > { %8613 = vmatprep.subr.bf16.mxu1 %v10061_v8  ;;  %v6989_v38 = vmax.f32 %v8435_v41, 1e-10  ;;  %v8442_v59 = vadd.f32 -1.0, %v11844_v47  ;;  %v8419_v8 = vld [vmem:[%s11837_s14 + $0xe] sm:$0x7f]  ;;  %15143 = vst [vmem:[#allocation11_spill] sm:$0xff] %v11865_v2  ;;  %4896 = vmatprep.mubr.bf16.mxu0 %v11865_v2 }
 0x271   : > { %10135 = vrcp.f32 %v6988_v46  ;;  %v6995_v45 = vmax.f32 %v8441_v26, 1e-10  ;;  %v10070_v41 = vld [vmem:[%s15093_s0 + $0x520] ss:$28 sps:$4 sm:$0xff]   ;;  %v11877_v26 = vrot.slane %v8418_v43, %v11855_v16 }
 0x272   : > { %5563 = vmatmul.mubr.bf16.gmra.mrb[108].mxu1 %v11611_v19  ;;  %10137 = vrcp.f32 %v6989_v38  ;;  %v6996_v34 = vmax.f32 %v8442_v59, 1e-10  ;;  %v3710_v19 = vpop.f32.mrb[40].mxu0  ;;  %v11887_v59 = vrot.slane %v8419_v8, %v11862_v36 }
 0x273   : > { %5570 = vmatprep.mubr.bf16.mxu1 %v11617_v23  ;;  %8614 = vmatpush3.bf16.msra.mxu1 %v10062_v54  ;;  %v10128_v42 = vpop.eup %10127  ;;  %10139 = vrcp.f32 %v6995_v45  ;;  %v8891_v46 = vadd.f32 %v11173_v3, %v3710_v19  ;;  %v11880_v23 = vrot.slane %v8419_v8, %v11855_v16  ;;  %v3712_v54 = vpop.f32.mrb[41].mxu0 }
 0x274   : > { %8615 = vmatprep.subr.bf16.mxu1 %v10069_v57  ;;  %v10130_v2 = vpop.eup %10129  ;;  %10141 = vrcp.f32 %v6996_v34  ;;  %v8892_v38 = vadd.f32 %v11178_v5, %v3712_v54  ;;  %v11884_v57 = vrot.slane %v8418_v43, %v11862_v36  ;;  %v3714_v45 = vpop.f32.mrb[42].mxu0  ;;  %v11895_v43 = vld [vmem:[%s10586_s19 + $0x2d8] ss:$28 sps:$4 sm:$0xff]  }
 0x275   : > { %v10132_v3 = vpop.eup %10131  ;;  %v7030_v19 = vmul.f32 %v10128_v42, %v8891_v46  ;;  %v8893_v29 = vadd.f32 %v11186_v9, %v3714_v45  ;;  %v3716_v28 = vpop.f32.mrb[43].mxu0 }
 0x276   : > { %v10134_v24 = vpop.eup %10133  ;;  %v7031_v18 = vmul.f32 %v10130_v2, %v8892_v38  ;;  %v8894_v34 = vadd.f32 %v11191_v11, %v3716_v28  ;;  %v11902_v11 = vld [vmem:[%s10586_s19 + $0x314] ss:$28 sps:$4 sm:$0xff]  }
 0x277   : > { %8616 = vmatpush3.bf16.msra.mxu1 %v10070_v41  ;;  %vm7122_vm3 = vcmp.lt.f32.partialorder %v7030_v19, %v11877_v26  ;;  %vm7214_vm4 = vcmp.gt.f32.partialorder %v7030_v19, %v11880_v23  ;;  %v7037_v5 = vmul.f32 %v10132_v3, %v8893_v29  ;;  %4897 = vmatmul.mubr.bf16.gmra.mrb[116].mxu0 %v11895_v43 }
 0x278   : > { %8713 = vmatprep.subr.bf16.mxu1 %v10077_v1  ;;  %vm7150_vm5 = vmor %vm7058_vm2, %vm7122_vm3  ;;  %vm7123_vm6 = vcmp.lt.f32.partialorder %v7031_v18, %v11884_v57  ;;  %vm7215_vm7 = vcmp.gt.f32.partialorder %v7031_v18, %v11887_v59  ;;  %v7038_v9 = vmul.f32 %v10134_v24, %v8894_v34  ;;  %4906 = vmatprep.mubr.bf16.mxu0 %v11902_v11  ;;  %vm7066_vm3 = vcmp.lt.f32.partialorder %v11793_v40, 1.0  ;;  %v11962_v34 = vld [vmem:[%s10586_s19 + $0x34c] ss:$28 sps:$4 sm:$0xff]  }
 0x279   : > { %vm11906_vm9 = vmor %vm7150_vm5, %vm7214_vm4  ;;  %vm7129_vm10 = vcmp.lt.f32.partialorder %v7037_v5, %v11877_v26  ;;  %vm7221_vm12 = vcmp.gt.f32.partialorder %v7037_v5, %v11880_v23 }
 0x27a   : > { %5571 = vmatmul.mubr.bf16.gmra.mrb[112].mxu1 %v11634_v31  ;;  %v7270_v29 = vsel %vm11906_vm9, 100000.0, %v7030_v19  ;;  %vm7151_vm11 = vmor %vm7059_vm8, %vm7123_vm6  ;;  %v3720_v31 = vpop.f32.mrb[44].mxu0  ;;  %vm7130_vm15 = vcmp.lt.f32.partialorder %v7038_v9, %v11884_v57  ;;  %vm7222_vm2 = vcmp.gt.f32.partialorder %v7038_v9, %v11887_v59  ;;  %vm7072_vm6 = vcmp.lt.f32.partialorder %v11818_v7, 1.0  ;;  %v11953_v19 = vld [vmem:[%s10586_s19 + $0x310] ss:$28 sps:$4 sm:$0xff]  }
 0x27b   : > { %5578 = vmatprep.mubr.bf16.mxu1 %v11640_v12  ;;  %v10136_v24 = vpop.eup %10135  ;;  %vm11918_vm14 = vmor %vm7151_vm11, %vm7215_vm7  ;;  %v8895_v12 = vadd.f32 %v11207_v20, %v3720_v31  ;;  %v3722_v15 = vpop.f32.mrb[45].mxu0 }
 0x27c   : > { %v10138_v1 = vpop.eup %10137  ;;  %v7271_v42 = vsel %vm11918_vm14, 100000.0, %v7031_v18  ;;  %vm7157_vm0 = vmor %vm7065_vm13, %vm7129_vm10  ;;  %v8896_v30 = vadd.f32 %v11212_v22, %v3722_v15  ;;  %v3724_v8 = vpop.f32.mrb[46].mxu0  ;;  %vm7073_vm13 = vcmp.lt.f32.partialorder %v11823_v14, 1.0  ;;  %v12009_v15 = vld [vmem:[%s10586_s19 + $0x348] ss:$28 sps:$4 sm:$0xff]  }
 0x27d   : > { %v10140_v2 = vpop.eup %10139  ;;  %vm11931_vm4 = vmor %vm7157_vm0, %vm7221_vm12  ;;  %v7044_v20 = vmul.f32 %v10136_v24, %v8895_v12  ;;  %v8897_v46 = vadd.f32 %v11220_v25, %v3724_v8  ;;  %v3726_v18 = vpop.f32.mrb[47].mxu0  ;;  %v11936_v54 = vmin.f32 %v7270_v29, %v7271_v42 }
 0x27e   : > { %v10142_v38 = vpop.eup %10141  ;;  %v7277_v22 = vsel %vm11931_vm4, 100000.0, %v7037_v5  ;;  %vm7158_vm5 = vmor %vm7066_vm3, %vm7130_vm15  ;;  %v7045_v40 = vmul.f32 %v10138_v1, %v8896_v30  ;;  %v8898_v45 = vadd.f32 %v11225_v27, %v3726_v18  ;;  %vm7079_vm3 = vcmp.lt.f32.partialorder %v11832_v52, 1.0 }
 0x27f   : > { %15150 = vst [vmem:[#allocation12_spill] sm:$0xff] %v11936_v54  ;;  %vm11946_vm7 = vmor %vm7158_vm5, %vm7222_vm2  ;;  %vm7136_vm8 = vcmp.lt.f32.partialorder %v7044_v20, %v11877_v26  ;;  %vm7228_vm9 = vcmp.gt.f32.partialorder %v7044_v20, %v11880_v23  ;;  %v7051_v3 = vmul.f32 %v10140_v2, %v8897_v46  ;;  %4907 = vmatmul.mubr.bf16.gmra.mrb[120].mxu0 %v11953_v19 }
 0x280   : > { %v7278_v27 = vsel %vm11946_vm7, 100000.0, %v7038_v9  ;;  %vm7164_vm10 = vmor %vm7072_vm6, %vm7136_vm8  ;;  %vm7137_vm11 = vcmp.lt.f32.partialorder %v7045_v40, %v11884_v57  ;;  %vm7229_vm12 = vcmp.gt.f32.partialorder %v7045_v40, %v11887_v59  ;;  %v7052_v7 = vmul.f32 %v10142_v38, %v8898_v45  ;;  %4916 = vmatprep.mubr.bf16.mxu0 %v11962_v34 }
 0x281   : > { %vm11966_vm14 = vmor %vm7164_vm10, %vm7228_vm9  ;;  %vm7143_vm15 = vcmp.lt.f32.partialorder %v7051_v3, %v11877_v26  ;;  %v11972_v9 = vmin.f32 %v7277_v22, %v7278_v27  ;;  %vm7235_vm2 = vcmp.gt.f32.partialorder %v7051_v3, %v11880_v23  ;;  %vm7080_vm8 = vcmp.lt.f32.partialorder %v11844_v47, 1.0  ;;  %v12043_v27 = vld [vmem:[%s10586_s19 + $0x8] ss:$28 sps:$4 sm:$0xff]  }
 0x282   : > { %5579 = vmatmul.mubr.bf16.gmra.mrb[116].mxu1 %v11657_v53  ;;  %v7284_v28 = vsel %vm11966_vm14, 100000.0, %v7044_v20  ;;  %vm7165_vm0 = vmor %vm7073_vm13, %vm7137_vm11  ;;  %v3730_v53 = vpop.f32.mrb[48].mxu0  ;;  %vm7144_vm5 = vcmp.lt.f32.partialorder %v7052_v7, %v11884_v57  ;;  %vm7236_vm7 = vcmp.gt.f32.partialorder %v7052_v7, %v11887_v59  ;;  %v12015_v57 = vld [vmem:[%s10586_s19 + $0xc] ss:$28 sps:$4 sm:$0xff]  }
 0x283   : > { %5586 = vmatprep.mubr.bf16.mxu1 %v11663_v63  ;;  %15155 = vst [vmem:[#allocation13_spill] sm:$0xff] %v11972_v9  ;;  %vm7257_vm4 = vmor %vm7165_vm0, %vm7229_vm12  ;;  %v11982_v14 = vadd.f32 %v11238_v33, %v3730_v53  ;;  %v3732_v63 = vpop.f32.mrb[49].mxu0 }
 0x284   : > { %v7285_v26 = vsel %vm7257_vm4, 100000.0, %v7045_v40  ;;  %vm7171_vm6 = vmor %vm7079_vm3, %vm7143_vm15  ;;  %v11986_v29 = vadd.f32 %v11243_v35, %v3732_v63  ;;  %v3734_v23 = vpop.f32.mrb[50].mxu0  ;;  %v10055_v63 = vld [vmem:[%s15093_s0 + $0x748] ss:$28 sps:$4 sm:$0xff]  }
 0x285   : > { %vm11989_vm9 = vmor %vm7171_vm6, %vm7235_vm2  ;;  %v8454_v31 = vadd.f32 -1.0, %v11982_v14  ;;  %v11995_v33 = vadd.f32 %v11248_v37, %v3734_v23  ;;  %v3736_v24 = vpop.f32.mrb[51].mxu0  ;;  %v11997_v44 = vmin.f32 %v7284_v28, %v7285_v26  ;;  %v8453_v28 = vld [vmem:[%s11837_s14 + $0x15] sm:$0x7f]  ;;  %vm7455_vm12 = vcmp.lt.f32.partialorder %v11982_v14, 1.0 }
 0x286   : > { %v7291_v35 = vsel %vm11989_vm9, 100000.0, %v7051_v3  ;;  %vm7172_vm10 = vmor %vm7080_vm8, %vm7144_vm5  ;;  %v8455_v47 = vadd.f32 -1.0, %v11986_v29  ;;  %v12005_v59 = vadd.f32 %v11250_v39, %v3736_v24  ;;  %vm7456_vm3 = vcmp.lt.f32.partialorder %v11986_v29, 1.0  ;;  %v10074_v14 = vld [vmem:[%s15093_s0 + $0x860] ss:$28 sps:$4 sm:$0xff]  }
 0x287   : > { %15158 = vst [vmem:[#allocation14_spill] sm:$0xff] %v11997_v44  ;;  %vm7264_vm11 = vmor %vm7172_vm10, %vm7236_vm7  ;;  %v7371_v12 = vmax.f32 %v8454_v31, 1e-10  ;;  %v8461_v37 = vadd.f32 -1.0, %v11995_v33  ;;  %4917 = vmatmul.mubr.bf16.gmra.mrb[124].mxu0 %v12009_v15  ;;  %vm7462_vm8 = vcmp.lt.f32.partialorder %v11995_v33, 1.0 }
 0x288   : > { %v7292_v1 = vsel %vm7264_vm11, 100000.0, %v7052_v7  ;;  %v7372_v42 = vmax.f32 %v8455_v47, 1e-10  ;;  %v8462_v30 = vadd.f32 -1.0, %v12005_v59  ;;  %4959 = vmatprep.mubr.bf16.mxu0 %v12015_v57 }
 0x289   : > { %10143 = vrcp.f32 %v7371_v12  ;;  %v7378_v39 = vmax.f32 %v8461_v37, 1e-10  ;;  %v12019_v8 = vmin.f32 %v7291_v35, %v7292_v1  ;;  %v12073_v1 = vrot.slane %v8453_v28, %v11862_v36 }
 0x28a   : > { %5587 = vmatmul.mubr.bf16.gmra.mrb[120].mxu1 %v11680_v17  ;;  %10145 = vrcp.f32 %v7372_v42  ;;  %v7379_v2 = vmax.f32 %v8462_v30, 1e-10  ;;  %v3740_v41 = vpop.f32.mrb[52].mxu0 }
 0x28b   : > { %5594 = vmatprep.mubr.bf16.mxu1 %v11686_v21  ;;  %15159 = vst [vmem:[#allocation15_spill] sm:$0xff] %v12019_v8  ;;  %10147 = vrcp.f32 %v7378_v39  ;;  %v12022_v20 = vadd.f32 %v11263_v48, %v3740_v41  ;;  %v3742_v17 = vpop.f32.mrb[53].mxu0  ;;  %v10050_v48 = vld [vmem:[%s15093_s0 + $0x710] ss:$28 sps:$4 sm:$0xff]   ;;  %v10058_v41 = vld [vmem:[%s15093_s0 + $0x780] ss:$28 sps:$4 sm:$0xff]  }
 0x28c   : > { %10149 = vrcp.f32 %v7379_v2  ;;  %v12025_v46 = vadd.f32 %v11265_v49, %v3742_v17  ;;  %v3744_v18 = vpop.f32.mrb[54].mxu0  ;;  %v10057_v49 = vld [vmem:[%s15093_s0 + $0x74c] ss:$28 sps:$4 sm:$0xff]  }
 0x28d   : > { %v8468_v21 = vadd.f32 -1.0, %v12022_v20  ;;  %v12029_v38 = vadd.f32 %v11267_v50, %v3744_v18  ;;  %v3746_v22 = vpop.f32.mrb[55].mxu0  ;;  %v8452_v50 = vld [vmem:[%s11828_s11 + $0x15] sm:$0x7f] }
 0x28e   : > { %v8469_v40 = vadd.f32 -1.0, %v12025_v46  ;;  %v12036_v45 = vadd.f32 %v11269_v51, %v3746_v22  ;;  %v12051_v51 = vld [vmem:[%s10586_s19 + $0x44] ss:$28 sps:$4 sm:$0xff]   ;;  %v12063_v24 = vrot.slane %v8452_v50, %v11855_v16  ;;  %v12070_v37 = vrot.slane %v8452_v50, %v11862_v36 }
 0x28f   : > { %v7385_v25 = vmax.f32 %v8468_v21, 1e-10  ;;  %v8475_v3 = vadd.f32 -1.0, %v12029_v38  ;;  %4960 = vmatmul.mubr.bf16.vlgmr.msra.gmra.mrb[64].mxu0 %v12043_v27  ;;  %v10065_v21 = vld [vmem:[%s15093_s0 + $0x7bc] ss:$28 sps:$4 sm:$0xff]  }
 0x290   : > { %v7386_v7 = vmax.f32 %v8469_v40, 1e-10  ;;  %v8476_v5 = vadd.f32 -1.0, %v12036_v45  ;;  %4969 = vmatprep.mubr.bf16.mxu0 %v12051_v51  ;;  %5121 = vmatpush1.bf16.msra.mxu0 %v10050_v48  ;;  %v10396_v22 = vld [vmem:[%s10586_s19 + $0x40] ss:$28 sps:$4 sm:$0xff]  }
 0x291   : > { %10151 = vrcp.f32 %v7385_v25  ;;  %v7392_v53 = vmax.f32 %v8475_v3, 1e-10  ;;  %5122 = vmatprep.subr.bf16.mxu0 %v10057_v49  ;;  %v10397_v48 = vld [vmem:[%s10586_s19 + $0x7c] ss:$28 sps:$4 sm:$0xff]   ;;  %v10068_v49 = vld [vmem:[%s15093_s0 + $0x7f4] ss:$28 sps:$4 sm:$0xff]  }
 0x292   : > { %5595 = vmatmul.mubr.bf16.gmra.mrb[124].mxu1 %v11703_v32  ;;  %10153 = vrcp.f32 %v7386_v7  ;;  %v7393_v26 = vmax.f32 %v8476_v5, 1e-10  ;;  %v3750_v23 = vpop.f32.mrb[56].mxu0  ;;  %v10060_v32 = vld [vmem:[%s15093_s0 + $0x784] ss:$28 sps:$4 sm:$0xff]  }
 0x293   : > { %5602 = vmatprep.mubr.bf16.mxu1 %v11709_v13  ;;  %v10144_v52 = vpop.eup %10143  ;;  %10155 = vrcp.f32 %v7392_v53  ;;  %v8907_v31 = vadd.f32 %v11272_v55, %v3750_v23  ;;  %v12066_v13 = vrot.slane %v8453_v28, %v11855_v16  ;;  %v3752_v35 = vpop.f32.mrb[57].mxu0  ;;  %v10063_v40 = vld [vmem:[%s15093_s0 + $0x7b8] ss:$28 sps:$4 sm:$0xff]  }
 0x294   : > { %v10146_v47 = vpop.eup %10145  ;;  %10157 = vrcp.f32 %v7393_v26  ;;  %v8908_v12 = vadd.f32 %v11274_v56, %v3752_v35  ;;  %v3754_v42 = vpop.f32.mrb[58].mxu0  ;;  %5123 = vmatpush1.bf16.msra.mxu0 %v10055_v63  ;;  %v10073_v35 = vld [vmem:[%s15093_s0 + $0x82c] ss:$28 sps:$4 sm:$0xff]  }
 0x295   : > { %v10148_v55 = vpop.eup %10147  ;;  %v7427_v30 = vmul.f32 %v10144_v52, %v8907_v31  ;;  %v8909_v39 = vadd.f32 %v11277_v60, %v3754_v42  ;;  %v3756_v2 = vpop.f32.mrb[59].mxu0  ;;  %5124 = vmatprep.subr.bf16.mxu0 %v10060_v32 }
 0x296   : > { %v10150_v17 = vpop.eup %10149  ;;  %v7428_v56 = vmul.f32 %v10146_v47, %v8908_v12  ;;  %v8910_v18 = vadd.f32 %v11279_v61, %v3756_v2  ;;  %v10398_v12 = vld [vmem:[%s10586_s19 + $0x78] ss:$28 sps:$4 sm:$0xff]  }
 0x297   : > { %vm7519_vm13 = vcmp.lt.f32.partialorder %v7427_v30, %v12063_v24  ;;  %vm7611_vm14 = vcmp.gt.f32.partialorder %v7427_v30, %v12066_v13  ;;  %v12086_v60 = vmul.f32 %v10148_v55, %v8909_v39  ;;  %4970 = vmatmul.mubr.bf16.gmra.mrb[68].mxu0 %v10396_v22  ;;  %v15169_v55 = vld [vmem:[#allocation3_spill] sm:$0xff]  ;;  %v15172_v2 = vld [vmem:[#allocation4_spill] sm:$0xff] }
 0x298   : > { %vm7547_vm15 = vmor %vm7455_vm12, %vm7519_vm13  ;;  %vm7520_vm0 = vcmp.lt.f32.partialorder %v7428_v56, %v12070_v37  ;;  %vm7612_vm2 = vcmp.gt.f32.partialorder %v7428_v56, %v12073_v1  ;;  %v12091_v61 = vmul.f32 %v10150_v17, %v8910_v18  ;;  %4979 = vmatprep.mubr.bf16.mxu0 %v10397_v48  ;;  %5125 = vmatpush1.bf16.msra.mxu0 %v10058_v41  ;;  %vm7463_vm13 = vcmp.lt.f32.partialorder %v12005_v59, 1.0  ;;  %v10071_v41 = vld [vmem:[%s15093_s0 + $0x828] ss:$28 sps:$4 sm:$0xff]  }
 0x299   : > { %vm12096_vm4 = vmor %vm7547_vm15, %vm7611_vm14  ;;  %vm7526_vm5 = vcmp.lt.f32.partialorder %v12086_v60, %v12063_v24  ;;  %vm7618_vm7 = vcmp.gt.f32.partialorder %v12086_v60, %v12066_v13  ;;  %5126 = vmatprep.subr.bf16.mxu0 %v10065_v21  ;;  %v10076_v18 = vld [vmem:[%s15093_s0 + $0x864] ss:$28 sps:$4 sm:$0xff]   ;;  %v10089_v21 = vld [vmem:[%s15093_s0 + $0x90c] ss:$28 sps:$4 sm:$0xff]  }
 0x29a   : > { %5603 = vmatmul.mubr.bf16.gmra.mrb[128].mxu1 %v11720_v58  ;;  %v7667_v58 = vsel %vm12096_vm4, 100000.0, %v7427_v30  ;;  %vm7548_vm6 = vmor %vm7456_vm3, %vm7520_vm0  ;;  %v3760_v29 = vpop.f32.mrb[60].mxu0  ;;  %vm7527_vm10 = vcmp.lt.f32.partialorder %v12091_v61, %v12070_v37  ;;  %vm7619_vm12 = vcmp.gt.f32.partialorder %v12091_v61, %v12073_v1  ;;  %vm7469_vm0 = vcmp.lt.f32.partialorder %v12022_v20, 1.0  ;;  %v10399_v30 = vld [vmem:[%s10586_s19 + $0xb4] ss:$28 sps:$4 sm:$0xff]  }
 0x29b   : > { %5610 = vmatprep.mubr.bf16.mxu1 %v11726_v10  ;;  %v10152_v25 = vpop.eup %10151  ;;  %vm12116_vm9 = vmor %vm7548_vm6, %vm7612_vm2  ;;  %v8911_v3 = vadd.f32 %v11281_v62, %v3760_v29  ;;  %v3762_v50 = vpop.f32.mrb[61].mxu0  ;;  %v10081_v10 = vld [vmem:[%s15093_s0 + $0x89c] ss:$28 sps:$4 sm:$0xff]   ;;  %v6151_v62 = vld [vmem:[%s11837_s14] sm:$0x7f] }
 0x29c   : > { %v10154_v7 = vpop.eup %10153  ;;  %v7668_v5 = vsel %vm12116_vm9, 100000.0, %v7428_v56  ;;  %vm7554_vm11 = vmor %vm7462_vm8, %vm7526_vm5  ;;  %v8912_v33 = vadd.f32 %v11284_v0, %v3762_v50  ;;  %v3764_v28 = vpop.f32.mrb[62].mxu0  ;;  %5127 = vmatpush1.bf16.msra.mxu0 %v10063_v40  ;;  %v10066_v0 = vld [vmem:[%s15093_s0 + $0x7f0] ss:$28 sps:$4 sm:$0xff]   ;;  %vm7470_vm8 = vcmp.lt.f32.partialorder %v12025_v46, 1.0 }
 0x29d   : > { %v10156_v53 = vpop.eup %10155  ;;  %vm12135_vm14 = vmor %vm7554_vm11, %vm7618_vm7  ;;  %v7441_v63 = vmul.f32 %v10152_v25, %v8911_v3  ;;  %v8913_v26 = vadd.f32 %v11287_v4, %v3764_v28  ;;  %v3766_v23 = vpop.f32.mrb[63].mxu0  ;;  %v12143_v32 = vmin.f32 %v7667_v58, %v7668_v5  ;;  %5128 = vmatprep.subr.bf16.mxu0 %v10068_v49  ;;  %v15181_v28 = vld [vmem:[#allocation5_spill] sm:$0xff] }
 0x29e   : > { %v10158_v59 = vpop.eup %10157  ;;  %v7674_v52 = vsel %vm12135_vm14, 100000.0, %v12086_v60  ;;  %vm7555_vm15 = vmor %vm7463_vm13, %vm7527_vm10  ;;  %v7442_v31 = vmul.f32 %v10154_v7, %v8912_v33  ;;  %v8914_v4 = vadd.f32 %v11289_v6, %v3766_v23  ;;  %vm7476_vm13 = vcmp.lt.f32.partialorder %v12029_v38, 1.0  ;;  %v6150_v7 = vld [vmem:[%s11828_s11] sm:$0x7f]  ;;  %v10079_v23 = vld [vmem:[%s15093_s0 + $0x898] ss:$28 sps:$4 sm:$0xff]  }
 0x29f   : > { %15166 = vst [vmem:[#allocation16_spill] sm:$0xff] %v12143_v32  ;;  %vm12159_vm2 = vmor %vm7555_vm15, %vm7619_vm12  ;;  %vm7533_vm3 = vcmp.lt.f32.partialorder %v7441_v63, %v12063_v24  ;;  %vm7625_vm4 = vcmp.gt.f32.partialorder %v7441_v63, %v12066_v13  ;;  %v12165_v6 = vmul.f32 %v10156_v53, %v8913_v26  ;;  %4980 = vmatmul.mubr.bf16.gmra.mrb[72].mxu0 %v10398_v12  ;;  %v10401_v53 = vld [vmem:[%s10586_s19 + $0xec] ss:$28 sps:$4 sm:$0xff]  }
 0x2a0   : > { %v7675_v42 = vsel %vm12159_vm2, 100000.0, %v12091_v61  ;;  %vm7561_vm5 = vmor %vm7469_vm0, %vm7533_vm3  ;;  %vm7534_vm6 = vcmp.lt.f32.partialorder %v7442_v31, %v12070_v37  ;;  %vm7626_vm7 = vcmp.gt.f32.partialorder %v7442_v31, %v12073_v1  ;;  %v7449_v20 = vmul.f32 %v10158_v59, %v8914_v4  ;;  %4989 = vmatprep.mubr.bf16.mxu0 %v10399_v30  ;;  %5129 = vmatpush1.bf16.msra.mxu0 %v10066_v0 }
 0x2a1   : > { %vm12176_vm9 = vmor %vm7561_vm5, %vm7625_vm4  ;;  %vm7540_vm10 = vcmp.lt.f32.partialorder %v12165_v6, %v12063_v24  ;;  %v12186_v17 = vmin.f32 %v7674_v52, %v7675_v42  ;;  %vm7632_vm12 = vcmp.gt.f32.partialorder %v12165_v6, %v12066_v13  ;;  %5130 = vmatprep.subr.bf16.mxu0 %v10073_v35  ;;  %vm7477_vm3 = vcmp.lt.f32.partialorder %v12036_v45, 1.0  ;;  %v10082_v42 = vld [vmem:[%s15093_s0 + $0x8d0] ss:$28 sps:$4 sm:$0xff]  }
 0x2a2   : > { %5611 = vmatmul.mubr.bf16.gmra.mrb[132].mxu1 %v15169_v55  ;;  %v7681_v56 = vsel %vm12176_vm9, 100000.0, %v7441_v63  ;;  %vm7562_vm11 = vmor %vm7470_vm8, %vm7534_vm6  ;;  %v12192_v46 = vpop.f32.mrb[0].mxu0  ;;  %vm7541_vm15 = vcmp.lt.f32.partialorder %v7449_v20, %v12070_v37  ;;  %vm7633_vm2 = vcmp.gt.f32.partialorder %v7449_v20, %v12073_v1  ;;  %v10400_v37 = vld [vmem:[%s10586_s19 + $0xb0] ss:$28 sps:$4 sm:$0xff]   ;;  %v15182_v1 = vld [vmem:[#allocation6_spill] sm:$0xff]  ;;  %v12267_v52 = vrot.slane %v6150_v7, %v11855_v16 }
 0x2a3   : > { %5618 = vmatprep.mubr.bf16.mxu1 %v15172_v2  ;;  %15173 = vst [vmem:[#allocation3_spill] sm:$0xff] %v12186_v17  ;;  %vm12200_vm14 = vmor %vm7562_vm11, %vm7626_vm7  ;;  %v8356_v60 = vadd.f32 -1.0, %v12192_v46  ;;  %v12206_v22 = vpop.f32.mrb[1].mxu0  ;;  %v15183_v63 = vld [vmem:[#allocation9_spill] sm:$0xff]  ;;  %v12293_v2 = vrot.slane %v6150_v7, %v11862_v36  ;;  %vm6264_vm7 = vcmp.lt.f32.partialorder %v12192_v46, 1.0 }
 0x2a4   : > { %v7682_v61 = vsel %vm12200_vm14, 100000.0, %v7442_v31  ;;  %vm7568_vm0 = vmor %vm7476_vm13, %vm7540_vm10  ;;  %v8357_v38 = vadd.f32 -1.0, %v12206_v22  ;;  %v12215_v48 = vpop.f32.mrb[2].mxu0  ;;  %5131 = vmatpush1.bf16.msra.mxu0 %v10071_v41  ;;  %v12257_v26 = vsub.s32 2, %v15183_v63  ;;  %v10084_v31 = vld [vmem:[%s15093_s0 + $0x8d4] ss:$28 sps:$4 sm:$0xff]   ;;  %v12296_v41 = vrot.slane %v6151_v62, %v11862_v36 }
 0x2a5   : > { %vm12224_vm4 = vmor %vm7568_vm0, %vm7632_vm12  ;;  %v6180_v24 = vmax.f32 %v8356_v60, 1e-10  ;;  %v8363_v58 = vadd.f32 -1.0, %v12215_v48  ;;  %v12229_v29 = vpop.f32.mrb[3].mxu0  ;;  %v12231_v49 = vmin.f32 %v7681_v56, %v7682_v61  ;;  %5132 = vmatprep.subr.bf16.mxu0 %v10076_v18  ;;  %v12281_v12 = vsub.s32 3, %v15183_v63 }
 0x2a6   : > { %v7688_v45 = vsel %vm12224_vm4, 100000.0, %v12165_v6  ;;  %vm7569_vm5 = vmor %vm7477_vm3, %vm7541_vm15  ;;  %v6181_v13 = vmax.f32 %v8357_v38, 1e-10  ;;  %v8364_v25 = vadd.f32 -1.0, %v12229_v29  ;;  %v12278_v6 = vrot.slane %v6151_v62, %v11855_v16  ;;  %v12299_v56 = vld [vmem:[%s11828_s11 + $0x7] sm:$0x7f] }
 0x2a7   : > { %15178 = vst [vmem:[#allocation4_spill] sm:$0xff] %v12231_v49  ;;  %vm12244_vm6 = vmor %vm7569_vm5, %vm7633_vm2  ;;  %10159 = vrcp.f32 %v6180_v24  ;;  %v6187_v50 = vmax.f32 %v8363_v58, 1e-10  ;;  %4990 = vmatmul.mubr.bf16.gmra.mrb[76].mxu0 %v10400_v37  ;;  %v12302_v18 = vld [vmem:[%s11837_s14 + $0x7] sm:$0x7f]  ;;  %v12312_v40 = vrot.slane %v6150_v7, %v12257_v26  ;;  %v12322_v37 = vrot.slane %v6150_v7, %v12281_v12 }
 0x2a8   : > { %v7689_v5 = vsel %vm12244_vm6, 100000.0, %v7449_v20  ;;  %10161 = vrcp.f32 %v6181_v13  ;;  %v6188_v33 = vmax.f32 %v8364_v25, 1e-10  ;;  %4999 = vmatprep.mubr.bf16.mxu0 %v10401_v53  ;;  %5133 = vmatpush1.bf16.msra.mxu0 %v10074_v14  ;;  %v12316_v13 = vrot.slane %v6151_v62, %v12257_v26  ;;  %v15185_v53 = vld [vmem:[#allocation7_spill] sm:$0xff]  ;;  %v10404_v63 = vld [vmem:[%s10586_s19 + $0x120] ss:$28 sps:$4 sm:$0xff]  }
 0x2a9   : > { %v12262_v0 = vmin.f32 %v7688_v45, %v7689_v5  ;;  %10163 = vrcp.f32 %v6187_v50  ;;  %5134 = vmatprep.subr.bf16.mxu0 %v10081_v10  ;;  %v10402_v50 = vld [vmem:[%s10586_s19 + $0xe8] ss:$28 sps:$4 sm:$0xff]   ;;  %v12336_v7 = vrot.slane %v12299_v56, %v11855_v16  ;;  %vm6265_vm13 = vcmp.lt.f32.partialorder %v12206_v22, 1.0 }
 0x2aa   : > { %5619 = vmatmul.mubr.bf16.gmra.mrb[136].mxu1 %v15181_v28  ;;  %v12264_v59 = vpop.f32.mrb[4].mxu0  ;;  %10165 = vrcp.f32 %v6188_v33  ;;  %vm6271_vm15 = vcmp.lt.f32.partialorder %v12215_v48, 1.0 }
 0x2ab   : > { %5626 = vmatprep.mubr.bf16.mxu1 %v15182_v1  ;;  %15184 = vst [vmem:[#allocation5_spill] sm:$0xff] %v12262_v0  ;;  %v8370_v4 = vadd.f32 -1.0, %v12264_v59  ;;  %v12275_v47 = vpop.f32.mrb[5].mxu0  ;;  %v10403_v1 = vld [vmem:[%s10586_s19 + $0x124] ss:$28 sps:$4 sm:$0xff]  }
 0x2ac   : > { %v8371_v55 = vadd.f32 -1.0, %v12275_v47  ;;  %v12290_v39 = vpop.f32.mrb[6].mxu0  ;;  %5135 = vmatpush1.bf16.msra.mxu0 %v10079_v23  ;;  %v12330_v23 = vrot.slane %v6151_v62, %v12281_v12  ;;  %v10087_v62 = vld [vmem:[%s15093_s0 + $0x908] ss:$28 sps:$4 sm:$0xff]  }
 0x2ad   : > { %v12273_v35 = vpop.f32.mrb[32].mxu1  ;;  %v6194_v60 = vmax.f32 %v8370_v4, 1e-10  ;;  %v8377_v38 = vadd.f32 -1.0, %v12290_v39  ;;  %5136 = vmatprep.subr.bf16.mxu0 %v10084_v31  ;;  %v12318_v3 = vpop.f32.mrb[7].mxu0  ;;  %v15189_v0 = vld [vmem:[#allocation10_spill] sm:$0xff] }
 0x2ae   : > { %v8358_v20 = vadd.f32 -1.0, %v12273_v35  ;;  %v12288_v30 = vpop.f32.mrb[33].mxu1  ;;  %v6195_v58 = vmax.f32 %v8371_v55, 1e-10  ;;  %v8378_v33 = vadd.f32 -1.0, %v12318_v3  ;;  %v12340_v55 = vrot.slane %v12302_v18, %v11855_v16 }
 0x2af   : > { %v8359_v61 = vadd.f32 -1.0, %v12288_v30  ;;  %v12309_v14 = vpop.f32.mrb[34].mxu1  ;;  %10167 = vrcp.f32 %v6194_v60  ;;  %v6201_v10 = vmax.f32 %v8377_v38, 1e-10  ;;  %5000 = vmatmul.mubr.bf16.gmra.mrb[80].mxu0 %v10402_v50  ;;  %v10092_v16 = vld [vmem:[%s15093_s0 + $0x944] ss:$28 sps:$4 sm:$0xff]  }
 0x2b0   : > { %v6182_v24 = vmax.f32 %v8358_v20, 1e-10  ;;  %v8365_v45 = vadd.f32 -1.0, %v12309_v14  ;;  %v12325_v28 = vpop.f32.mrb[35].mxu1  ;;  %5009 = vmatprep.mubr.bf16.mxu0 %v10403_v1  ;;  %v15186_v20 = vld [vmem:[#allocation8_spill] sm:$0xff]  ;;  %5137 = vmatpush1.bf16.msra.mxu0 %v10082_v42 }
 0x2b1   : > { %v6183_v25 = vmax.f32 %v8359_v61, 1e-10  ;;  %v10160_v31 = vpop.eup %10159  ;;  %v8366_v4 = vadd.f32 -1.0, %v12325_v28  ;;  %v6202_v61 = vmax.f32 %v8378_v33, 1e-10  ;;  %5138 = vmatprep.subr.bf16.mxu0 %v10089_v21  ;;  %v12362_v33 = vrot.slane %v12299_v56, %v12257_v26 }
 0x2b2   : > { %10169 = vrcp.f32 %v6182_v24  ;;  %v6189_v5 = vmax.f32 %v8365_v45, 1e-10  ;;  %5627 = vmatmul.mubr.bf16.gmra.mrb[140].mxu1 %v15185_v53  ;;  %v10162_v60 = vpop.eup %10161  ;;  %v3823_v38 = vpop.f32.mrb[8].mxu0  ;;  %v12347_v24 = vrot.slane %v12299_v56, %v11862_v36 }
 0x2b3   : > { %10171 = vrcp.f32 %v6195_v58  ;;  %5634 = vmatprep.mubr.bf16.mxu1 %v15186_v20  ;;  %v12351_v58 = vrot.slane %v12302_v18, %v11862_v36  ;;  %v6190_v42 = vmax.f32 %v8366_v4, 1e-10  ;;  %v12356_v45 = vmul.f32 %v10160_v31, %v3823_v38  ;;  %v3825_v50 = vpop.f32.mrb[9].mxu0  ;;  %v10164_v53 = vpop.eup %10163 }
 0x2b4   : > { %10173 = vrcp.f32 %v6183_v25  ;;  %v6237_v21 = vmul.f32 %v10162_v60, %v3825_v50  ;;  %v10166_v4 = vpop.eup %10165  ;;  %5139 = vmatpush1.bf16.msra.mxu0 %v10087_v62  ;;  %v10097_v62 = vld [vmem:[%s15093_s0 + $0x97c] ss:$28 sps:$4 sm:$0xff]  }
 0x2b5   : > { %10175 = vrcp.f32 %v6201_v10  ;;  %v12358_v25 = vpop.f32.mrb[36].mxu1  ;;  %v3827_v10 = vpop.f32.mrb[10].mxu0  ;;  %vm6328_vm8 = vcmp.lt.f32.partialorder %v12356_v45, %v12267_v52  ;;  %vm6420_vm9 = vcmp.gt.f32.partialorder %v12356_v45, %v12278_v6  ;;  %5140 = vmatprep.subr.bf16.mxu0 %v10092_v16 }
 0x2b6   : > { %10177 = vrcp.f32 %v6189_v5  ;;  %v8372_v36 = vadd.f32 -1.0, %v12358_v25  ;;  %v12366_v1 = vpop.f32.mrb[37].mxu1  ;;  %v3829_v38 = vpop.f32.mrb[11].mxu0  ;;  %v10090_v5 = vld [vmem:[%s15093_s0 + $0x940] ss:$28 sps:$4 sm:$0xff]   ;;  %vm6356_vm10 = vmor %vm6264_vm7, %vm6328_vm8  ;;  %vm6329_vm11 = vcmp.lt.f32.partialorder %v6237_v21, %v12293_v2  ;;  %vm6421_vm12 = vcmp.gt.f32.partialorder %v6237_v21, %v12296_v41 }
 0x2b7   : > { %10179 = vrcp.f32 %v6202_v61  ;;  %v8373_v31 = vadd.f32 -1.0, %v12366_v1  ;;  %v12373_v20 = vpop.f32.mrb[38].mxu1  ;;  %vm12391_vm14 = vmor %vm6356_vm10, %vm6420_vm9  ;;  %v12395_v50 = vmul.f32 %v10164_v53, %v3827_v10  ;;  %5010 = vmatmul.mubr.bf16.gmra.mrb[84].mxu0 %v10404_v63  ;;  %v6244_v16 = vmul.f32 %v10166_v4, %v3829_v38  ;;  %v15192_v10 = vld [vmem:[#allocation11_spill] sm:$0xff] }
 0x2b8   : > { %10181 = vrcp.f32 %v6190_v42  ;;  %v6196_v60 = vmax.f32 %v8372_v36, 1e-10  ;;  %v12382_v61 = vpop.f32.mrb[39].mxu1  ;;  %v8379_v36 = vadd.f32 -1.0, %v12373_v20  ;;  %v6476_v22 = vsel %vm12391_vm14, 100000.0, %v12356_v45  ;;  %vm6357_vm0 = vmor %vm6265_vm13, %vm6329_vm11  ;;  %5141 = vmatpush1.bf16.msra.mxu0 %v10090_v5 }
 0x2b9   : > { %v6197_v42 = vmax.f32 %v8373_v31, 1e-10  ;;  %v10405_v31 = vld [vmem:[%s10586_s19 + $0x15c] ss:$28 sps:$4 sm:$0xff]   ;;  %v10168_v53 = vpop.eup %10167  ;;  %vm12409_vm2 = vmor %vm6357_vm0, %vm6421_vm12  ;;  %vm6335_vm3 = vcmp.lt.f32.partialorder %v12395_v50, %v12267_v52  ;;  %vm6427_vm4 = vcmp.gt.f32.partialorder %v12395_v50, %v12278_v6  ;;  %vm6336_vm6 = vcmp.lt.f32.partialorder %v6244_v16, %v12293_v2  ;;  %5142 = vmatprep.subr.bf16.mxu0 %v10097_v62  ;;  %v10100_v5 = vld [vmem:[%s15093_s0 + $0x9b4] ss:$28 sps:$4 sm:$0xff]  }
 0x2ba   : > { %10183 = vrcp.f32 %v6196_v60  ;;  %5635 = vmatmul.mubr.bf16.gmra.mrb[144].mxu1 %v15189_v0  ;;  %5019 = vmatprep.mubr.bf16.mxu0 %v10405_v31  ;;  %v6203_v45 = vmax.f32 %v8379_v36, 1e-10  ;;  %v10095_v0 = vld [vmem:[%s15093_s0 + $0x978] ss:$28 sps:$4 sm:$0xff]   ;;  %v6477_v38 = vsel %vm12409_vm2, 100000.0, %v6237_v21  ;;  %vm6363_vm5 = vmor %vm6271_vm15, %vm6335_vm3  ;;  %vm6428_vm7 = vcmp.gt.f32.partialorder %v6244_v16, %v12296_v41  ;;  %v3833_v46 = vpop.f32.mrb[12].mxu0 }
 0x2bb   : > { %10185 = vrcp.f32 %v6197_v42  ;;  %5642 = vmatprep.mubr.bf16.mxu1 %v15192_v10  ;;  %v8380_v60 = vadd.f32 -1.0, %v12382_v61  ;;  %vm6272_vm8 = vcmp.lt.f32.partialorder %v12229_v29, 1.0  ;;  %v12432_v36 = vmin.f32 %v6476_v22, %v6477_v38  ;;  %vm12437_vm9 = vmor %vm6363_vm5, %vm6427_vm4  ;;  %v3835_v31 = vpop.f32.mrb[13].mxu0 }
 0x2bc   : > { %v10170_v4 = vpop.eup %10169  ;;  %10187 = vrcp.f32 %v6203_v45  ;;  %v12441_v21 = vmul.f32 %v10168_v53, %v3833_v46  ;;  %v6483_v10 = vsel %vm12437_vm9, 100000.0, %v12395_v50  ;;  %vm6364_vm10 = vmor %vm6272_vm8, %vm6336_vm6  ;;  %v3837_v17 = vpop.f32.mrb[14].mxu0  ;;  %vm6278_vm11 = vcmp.lt.f32.partialorder %v12264_v59, 1.0  ;;  %5143 = vmatpush1.bf16.msra.mxu0 %v10095_v0  ;;  %v10098_v59 = vld [vmem:[%s15093_s0 + $0x9b0] ss:$28 sps:$4 sm:$0xff]  }
 0x2bd   : > { %v10172_v42 = vpop.eup %10171  ;;  %v4595_v62 = vpop.f32.mrb[40].mxu1  ;;  %v6204_v29 = vmax.f32 %v8380_v60, 1e-10  ;;  %vm12455_vm12 = vmor %vm6364_vm10, %vm6428_vm7  ;;  %5144 = vmatprep.subr.bf16.mxu0 %v10100_v5  ;;  %v10103_v0 = vld [vmem:[%s15093_s0 + $0x9ec] ss:$28 sps:$4 sm:$0xff]   ;;  %vm6266_vm3 = vcmp.lt.f32.partialorder %v12273_v35, 1.0 }
 0x2be   : > { %v10174_v63 = vpop.eup %10173  ;;  %v12448_v22 = vmul.f32 %v10170_v4, %v4595_v62  ;;  %v12450_v38 = vmul.f32 %v10172_v42, %v3835_v31  ;;  %v4597_v49 = vpop.f32.mrb[41].mxu1  ;;  %vm6342_vm13 = vcmp.lt.f32.partialorder %v12441_v21, %v12267_v52  ;;  %vm6434_vm14 = vcmp.gt.f32.partialorder %v12441_v21, %v12278_v6  ;;  %v12490_v5 = vld [vmem:[%s10586_s19 + $0x158] ss:$28 sps:$4 sm:$0xff]  }
 0x2bf   : > { %v10176_v45 = vpop.eup %10175  ;;  %v12463_v50 = vmul.f32 %v10174_v63, %v4597_v49  ;;  %v4599_v4 = vpop.f32.mrb[42].mxu1  ;;  %v6484_v42 = vsel %vm12455_vm12, 100000.0, %v6244_v16  ;;  %10189 = vrcp.f32 %v6204_v29  ;;  %vm6370_vm15 = vmor %vm6278_vm11, %vm6342_vm13  ;;  %15199 = vst [vmem:[#allocation6_spill] sm:$0xff] %v12490_v5  ;;  %5020 = vmatmul.mubr.bf16.gmra.mrb[88].mxu0 %v12490_v5  ;;  %v12495_v31 = vrot.slane %v12302_v18, %v12257_v26  ;;  %v12511_v53 = vld [vmem:[%s10586_s19 + $0x194] ss:$28 sps:$4 sm:$0xff]  }
 0x2c0   : > { %v3839_v60 = vpop.f32.mrb[15].mxu0  ;;  %v10178_v46 = vpop.eup %10177  ;;  %vm6330_vm0 = vcmp.lt.f32.partialorder %v12448_v22, %v12312_v40  ;;  %vm6422_vm2 = vcmp.gt.f32.partialorder %v12448_v22, %v12316_v13  ;;  %v12478_v62 = vmin.f32 %v6483_v10, %v6484_v42  ;;  %vm12483_vm4 = vmor %vm6370_vm15, %vm6434_vm14  ;;  %vm6343_vm5 = vcmp.lt.f32.partialorder %v12450_v38, %v12293_v2  ;;  %15200 = vst [vmem:[#allocation7_spill] sm:$0xff] %v12511_v53  ;;  %v10104_v16 = vld [vmem:[%s15093_s0 + $0xa20] ss:$28 sps:$4 sm:$0xff]  }
 0x2c1   : > { %v4601_v49 = vpop.f32.mrb[43].mxu1  ;;  %v10180_v48 = vpop.eup %10179  ;;  %v6490_v63 = vsel %vm12483_vm4, 100000.0, %v12441_v21  ;;  %vm6358_vm6 = vmor %vm6266_vm3, %vm6330_vm0  ;;  %vm6435_vm7 = vcmp.gt.f32.partialorder %v12450_v38, %v12296_v41  ;;  %v12505_v10 = vmul.f32 %v10176_v45, %v3837_v17  ;;  %v12507_v29 = vmul.f32 %v10178_v46, %v4599_v4  ;;  %5029 = vmatprep.mubr.bf16.mxu0 %v12511_v53  ;;  %5145 = vmatpush1.bf16.msra.mxu0 %v10098_v59 }
 0x2c2   : > { %v10182_v35 = vpop.eup %10181  ;;  %5643 = vmatmul.mubr.bf16.gmra.mrb[148].mxu1 %v11895_v43  ;;  %vm6279_vm8 = vcmp.lt.f32.partialorder %v12275_v47, 1.0  ;;  %vm12518_vm9 = vmor %vm6358_vm6, %vm6422_vm2  ;;  %v12522_v42 = vmul.f32 %v10180_v48, %v3839_v60  ;;  %v12529_v43 = vrot.slane %v12299_v56, %v12281_v12  ;;  %v10101_v47 = vld [vmem:[%s15093_s0 + $0x9e8] ss:$28 sps:$4 sm:$0xff]   ;;  %v12548_v56 = vrot.slane %v12302_v18, %v12281_v12  ;;  %5146 = vmatprep.subr.bf16.mxu0 %v10103_v0 }
 0x2c3   : > { %v12524_v17 = vmul.f32 %v10182_v35, %v4601_v49  ;;  %5650 = vmatprep.mubr.bf16.mxu1 %v11902_v11  ;;  %vm6371_vm10 = vmor %vm6279_vm8, %vm6343_vm5  ;;  %vm6349_vm11 = vcmp.lt.f32.partialorder %v12505_v10, %v12267_v52  ;;  %vm6441_vm12 = vcmp.gt.f32.partialorder %v12505_v10, %v12278_v6  ;;  %v12544_v11 = vpop.f32.mrb[16].mxu0  ;;  %v10106_v60 = vld [vmem:[%s15093_s0 + $0xa24] ss:$28 sps:$4 sm:$0xff]   ;;  %vm6285_vm13 = vcmp.lt.f32.partialorder %v12290_v39, 1.0  ;;  %v10111_v6 = vld [vmem:[%s15093_s0 + $0xa5c] ss:$28 sps:$4 sm:$0xff]  }
 0x2c4   : > { %v10184_v45 = vpop.eup %10183  ;;  %vm6273_vm14 = vcmp.lt.f32.partialorder %v12309_v14, 1.0  ;;  %vm6286_vm15 = vcmp.lt.f32.partialorder %v12318_v3, 1.0  ;;  %vm6463_vm0 = vmor %vm6371_vm10, %vm6435_vm7  ;;  %vm6337_vm2 = vcmp.lt.f32.partialorder %v12507_v29, %v12312_v40  ;;  %v12561_v46 = vpop.f32.mrb[17].mxu0  ;;  %vm6429_vm4 = vcmp.gt.f32.partialorder %v12507_v29, %v12316_v13 }
 0x2c5   : > { %v10186_v59 = vpop.eup %10185  ;;  %v4605_v18 = vpop.f32.mrb[44].mxu1  ;;  %v6491_v49 = vsel %vm6463_vm0, 100000.0, %v12450_v38  ;;  %vm6377_vm3 = vmor %vm6285_vm13, %vm6349_vm11  ;;  %vm6350_vm5 = vcmp.lt.f32.partialorder %v12522_v42, %v12293_v2  ;;  %v8386_v39 = vadd.f32 -1.0, %v12544_v11  ;;  %vm6442_vm7 = vcmp.gt.f32.partialorder %v12522_v42, %v12296_v41  ;;  %5147 = vmatpush1.bf16.msra.mxu0 %v10101_v47 }
 0x2c6   : > { %v4607_v0 = vpop.f32.mrb[45].mxu1  ;;  %v12572_v48 = vpop.f32.mrb[18].mxu0  ;;  %v12577_v35 = vmin.f32 %v6490_v63, %v6491_v49  ;;  %vm12582_vm6 = vmor %vm6377_vm3, %vm6441_vm12  ;;  %v12588_v4 = vmul.f32 %v10184_v45, %v4605_v18  ;;  %v8387_v32 = vadd.f32 -1.0, %v12561_v46  ;;  %5148 = vmatprep.subr.bf16.mxu0 %v10106_v60  ;;  %vm6274_vm10 = vcmp.lt.f32.partialorder %v12325_v28, 1.0  ;;  %v10120_v28 = vld [vmem:[%s15093_s0 + $0x868] ss:$28 sps:$4 sm:$0xff]  }
 0x2c7   : > { %v10188_v38 = vpop.eup %10187  ;;  %v4609_v8 = vpop.f32.mrb[46].mxu1  ;;  %v6497_v63 = vsel %vm12582_vm6, 100000.0, %v12505_v10  ;;  %vm6365_vm8 = vmor %vm6273_vm14, %vm6337_vm2  ;;  %v6577_v45 = vmax.f32 %v8386_v39, 1e-10  ;;  %v12604_v18 = vmul.f32 %v10186_v59, %v4607_v0  ;;  %v8393_v49 = vadd.f32 -1.0, %v12572_v48 }
 0x2c8   : > { %v12591_v44 = vpop.f32.mrb[19].mxu0  ;;  %v4611_v47 = vpop.f32.mrb[47].mxu1  ;;  %vm6280_vm11 = vcmp.lt.f32.partialorder %v12358_v25, 1.0  ;;  %vm6457_vm12 = vmor %vm6365_vm8, %vm6429_vm4  ;;  %vm6338_vm13 = vcmp.lt.f32.partialorder %v12524_v17, %v12322_v37  ;;  %v6578_v14 = vmax.f32 %v8387_v32, 1e-10  ;;  %vm6430_vm0 = vcmp.gt.f32.partialorder %v12524_v17, %v12330_v23 }
 0x2c9   : > { %v12615_v10 = vld [vmem:[%s10586_s19 + $0x190] ss:$28 sps:$4 sm:$0xff]   ;;  %v10190_v59 = vpop.eup %10189  ;;  %v6485_v39 = vsel %vm6457_vm12, 100000.0, %v12507_v29  ;;  %vm6378_vm14 = vmor %vm6286_vm15, %vm6350_vm5  ;;  %10191 = vrcp.f32 %v6577_v45  ;;  %vm6344_vm2 = vcmp.lt.f32.partialorder %v12588_v4, %v12312_v40  ;;  %vm6281_vm3 = vcmp.lt.f32.partialorder %v12366_v1, 1.0  ;;  %5149 = vmatpush1.bf16.msra.mxu0 %v10104_v16 }
 0x2ca   : > { %15205 = vst [vmem:[#allocation8_spill] sm:$0xff] %v12615_v10  ;;  %5030 = vmatmul.mubr.bf16.gmra.mrb[92].mxu0 %v12615_v10  ;;  %5651 = vmatmul.mubr.bf16.gmra.mrb[152].mxu1 %v11953_v19  ;;  %v12630_v32 = vld [vmem:[%s10586_s19 + $0x1cc] ss:$28 sps:$4 sm:$0xff]   ;;  %v12635_v2 = vmin.f32 %v12478_v62, %v6485_v39  ;;  %vm12640_vm15 = vmor %vm6378_vm14, %vm6442_vm7  ;;  %vm6436_vm4 = vcmp.gt.f32.partialorder %v12588_v4, %v12316_v13  ;;  %v6584_v19 = vmax.f32 %v8393_v49, 1e-10  ;;  %10193 = vrcp.f32 %v6578_v14 }
 0x2cb   : > { %15206 = vst [vmem:[#allocation10_spill] sm:$0xff] %v12630_v32  ;;  %5039 = vmatprep.mubr.bf16.mxu0 %v12630_v32  ;;  %v6259_v29 = vmul.f32 %v10188_v38, %v4609_v8  ;;  %5658 = vmatprep.mubr.bf16.mxu1 %v11962_v34  ;;  %v10109_v62 = vld [vmem:[%s15093_s0 + $0xa58] ss:$28 sps:$4 sm:$0xff]   ;;  %v6498_v41 = vsel %vm12640_vm15, 100000.0, %v12522_v42  ;;  %vm6366_vm5 = vmor %vm6274_vm10, %vm6338_vm13  ;;  %v8394_v8 = vadd.f32 -1.0, %v12591_v44  ;;  %v12659_v60 = vmul.f32 %v10190_v59, %v4611_v47  ;;  %v12661_v34 = vpop.f32.mrb[20].mxu0 }
 0x2cc   : > { %5150 = vmatprep.subr.bf16.mxu0 %v10111_v6  ;;  %v10116_v0 = vld [vmem:[%s15093_s0 + $0xa94] ss:$28 sps:$4 sm:$0xff]   ;;  %vm6267_vm6 = vcmp.lt.f32.partialorder %v12288_v30, 1.0  ;;  %vm6287_vm7 = vcmp.lt.f32.partialorder %v12373_v20, 1.0  ;;  %v6531_v42 = vmin.f32 %v6497_v63, %v6498_v41  ;;  %vm12671_vm8 = vmor %vm6366_vm5, %vm6430_vm0  ;;  %10195 = vrcp.f32 %v6584_v19  ;;  %v12678_v38 = vpop.f32.mrb[21].mxu0 }
 0x2cd   : > { %vm6351_vm10 = vcmp.lt.f32.partialorder %v6259_v29, %v12312_v40  ;;  %v12676_v16 = vpop.f32.mrb[48].mxu1  ;;  %vm6288_vm12 = vcmp.lt.f32.partialorder %v12382_v61, 1.0  ;;  %vm6372_vm13 = vmor %vm6280_vm11, %vm6344_vm2  ;;  %vm6443_vm14 = vcmp.gt.f32.partialorder %v6259_v29, %v12316_v13  ;;  %v6585_v6 = vmax.f32 %v8394_v8, 1e-10  ;;  %v12692_v45 = vpop.f32.mrb[22].mxu0  ;;  %5151 = vmatpush1.bf16.msra.mxu0 %v10109_v62 }
 0x2ce   : > { %v12690_v63 = vpop.f32.mrb[49].mxu1  ;;  %vm6331_vm0 = vcmp.lt.f32.partialorder %v12463_v50, %v12322_v37  ;;  %vm12699_vm15 = vmor %vm6372_vm13, %vm6436_vm4  ;;  %vm6352_vm11 = vcmp.lt.f32.partialorder %v12659_v60, %v12322_v37  ;;  %v8400_v25 = vadd.f32 -1.0, %v12661_v34  ;;  %v8388_v47 = vadd.f32 -1.0, %v12676_v16  ;;  %v12709_v59 = vpop.f32.mrb[23].mxu0  ;;  %5313 = vmatprep.subr.bf16.mxu0 %v10116_v0  ;;  %v12729_v41 = vld [vmem:[%s10586_s19 + $0x1c8] ss:$28 sps:$4 sm:$0xff]  }
 0x2cf   : > { %v12707_v14 = vpop.f32.mrb[50].mxu1  ;;  %vm6379_vm2 = vmor %vm6287_vm7, %vm6351_vm10  ;;  %10197 = vrcp.f32 %v6585_v6  ;;  %vm6444_vm4 = vcmp.gt.f32.partialorder %v12659_v60, %v12330_v23  ;;  %v8401_v3 = vadd.f32 -1.0, %v12678_v38  ;;  %vm6345_vm5 = vcmp.lt.f32.partialorder %v12604_v18, %v12322_v37  ;;  %15213 = vst [vmem:[#allocation11_spill] sm:$0xff] %v12729_v41  ;;  %v12742_v6 = vld [vmem:[%s10586_s19 + $0x204] ss:$28 sps:$4 sm:$0xff]  }
 0x2d0   : > { %v12721_v19 = vpop.f32.mrb[51].mxu1  ;;  %vm6471_vm13 = vmor %vm6379_vm2, %vm6443_vm14  ;;  %v6591_v40 = vmax.f32 %v8400_v25, 1e-10  ;;  %v6579_v62 = vmax.f32 %v8388_v47, 1e-10  ;;  %v8389_v20 = vadd.f32 -1.0, %v12690_v63  ;;  %vm6437_vm7 = vcmp.gt.f32.partialorder %v12604_v18, %v12330_v23 }
 0x2d1   : > { %v6499_v8 = vsel %vm6471_vm13, 100000.0, %v6259_v29  ;;  %vm6380_vm10 = vmor %vm6288_vm12, %vm6352_vm11  ;;  %v6592_v13 = vmax.f32 %v8401_v3, 1e-10  ;;  %v8407_v0 = vadd.f32 -1.0, %v12692_v45  ;;  %15214 = vst [vmem:[#allocation17_spill] sm:$0xff] %v12742_v6  ;;  %v8395_v47 = vadd.f32 -1.0, %v12707_v14 }
 0x2d2   : > { %5040 = vmatmul.mubr.bf16.gmra.mrb[96].mxu0 %v12729_v41  ;;  %5659 = vmatmul.mubr.bf16.gmra.mrb[156].mxu1 %v12009_v15  ;;  %v12745_v25 = vmin.f32 %v6531_v42, %v6499_v8  ;;  %vm12750_vm14 = vmor %vm6380_vm10, %vm6444_vm4  ;;  %10199 = vrcp.f32 %v6591_v40  ;;  %v6580_v61 = vmax.f32 %v8389_v20, 1e-10  ;;  %vm6423_vm12 = vcmp.gt.f32.partialorder %v12463_v50, %v12330_v23  ;;  %v3863_v8 = vpop.f32.mrb[24].mxu0  ;;  %v10078_v39 = vld [vmem:[%s15093_s0 + $0x718] ss:$28 sps:$4 sm:$0xff]  }
 0x2d3   : > { %5049 = vmatprep.mubr.bf16.mxu0 %v12742_v6  ;;  %5699 = vmatprep.mubr.bf16.mxu1 %v12015_v57  ;;  %v10192_v15 = vpop.eup %10191  ;;  %10201 = vrcp.f32 %v6579_v62  ;;  %v6598_v3 = vmax.f32 %v8407_v0, 1e-10  ;;  %vm6373_vm11 = vmor %vm6281_vm3, %vm6345_vm5  ;;  %vm6661_vm2 = vcmp.lt.f32.partialorder %v12544_v11, 1.0  ;;  %v6586_v57 = vmax.f32 %v8395_v47, 1e-10  ;;  %v3865_v52 = vpop.f32.mrb[25].mxu0 }
 0x2d4   : > { %10203 = vrcp.f32 %v6592_v13  ;;  %v8408_v40 = vadd.f32 -1.0, %v12709_v59  ;;  %vm12773_vm4 = vmor %vm6373_vm11, %vm6437_vm7  ;;  %v10194_v0 = vpop.eup %10193  ;;  %vm6662_vm13 = vcmp.lt.f32.partialorder %v12561_v46, 1.0  ;;  %v8396_v1 = vadd.f32 -1.0, %v12721_v19  ;;  %v3867_v42 = vpop.f32.mrb[26].mxu0  ;;  %v10415_v49 = vld [vmem:[%s10586_s19 + $0x40] ss:$28 sps:$4 sm:$0xff]  }
 0x2d5   : > { %v12768_v20 = vpop.f32.mrb[52].mxu1  ;;  %10205 = vrcp.f32 %v6580_v61  ;;  %v12779_v13 = vmul.f32 %v10192_v15, %v3863_v8  ;;  %vm6359_vm3 = vmor %vm6267_vm6, %vm6331_vm0  ;;  %vm6668_vm5 = vcmp.lt.f32.partialorder %v12572_v48, 1.0  ;;  %v3869_v41 = vpop.f32.mrb[27].mxu0  ;;  %vm6663_vm1 = vcmp.lt.f32.partialorder %v12676_v16, 1.0 }
 0x2d6   : > { %v12781_v47 = vpop.f32.mrb[53].mxu1  ;;  %v10196_v6 = vpop.eup %10195  ;;  %10207 = vrcp.f32 %v6598_v3  ;;  %v6599_v61 = vmax.f32 %v8408_v40, 1e-10  ;;  %v8402_v15 = vadd.f32 -1.0, %v12768_v20  ;;  %vm12798_vm7 = vmor %vm6359_vm3, %vm6423_vm12  ;;  %v6587_v30 = vmax.f32 %v8396_v1, 1e-10 }
 0x2d7   : > { %v12793_v8 = vpop.f32.mrb[54].mxu1  ;;  %10209 = vrcp.f32 %v6586_v57  ;;  %vm6725_vm6 = vcmp.lt.f32.partialorder %v12779_v13, %v12336_v7  ;;  %vm6817_vm0 = vcmp.gt.f32.partialorder %v12779_v13, %v12340_v55  ;;  %v10085_v3 = vld [vmem:[%s15093_s0 + $0x910] ss:$28 sps:$4 sm:$0xff]   ;;  %v6634_v57 = vmul.f32 %v10194_v0, %v3865_v52  ;;  %v12815_v1 = vld [vmem:[%s10586_s19 + $0x200] ss:$28 sps:$4 sm:$0xff]  }
 0x2d8   : > { %v12806_v37 = vpop.f32.mrb[55].mxu1  ;;  %10211 = vrcp.f32 %v6599_v61  ;;  %vm6753_vm10 = vmor %vm6661_vm2, %vm6725_vm6  ;;  %v6593_v23 = vmax.f32 %v8402_v15, 1e-10  ;;  %v8403_v40 = vadd.f32 -1.0, %v12781_v47  ;;  %15221 = vst [vmem:[#allocation18_spill] sm:$0xff] %v12815_v1  ;;  %v12823_v61 = vmul.f32 %v10196_v6, %v3867_v42 }
 0x2d9   : > { %v10198_v10 = vpop.eup %10197  ;;  %10213 = vrcp.f32 %v6587_v30  ;;  %vm12819_vm11 = vmor %vm6753_vm10, %vm6817_vm0  ;;  %v8409_v11 = vadd.f32 -1.0, %v12793_v8  ;;  %v12828_v52 = vld [vmem:[%s10586_s19 + $0x23c] ss:$28 sps:$4 sm:$0xff]   ;;  %vm6726_vm2 = vcmp.lt.f32.partialorder %v6634_v57, %v12347_v24  ;;  %vm6818_vm3 = vcmp.gt.f32.partialorder %v6634_v57, %v12351_v58  ;;  %v10093_v6 = vld [vmem:[%s15093_s0 + $0x948] ss:$28 sps:$4 sm:$0xff]  }
 0x2da   : > { %5050 = vmatmul.mubr.bf16.gmra.mrb[100].mxu0 %v12815_v1  ;;  %5700 = vmatmul.mubr.bf16.vlgmr.msra.gmra.mrb[160].mxu1 %v12043_v27  ;;  %15224 = vst [vmem:[#allocation19_spill] sm:$0xff] %v12828_v52  ;;  %v6873_v0 = vsel %vm12819_vm11, 100000.0, %v12779_v13  ;;  %10215 = vrcp.f32 %v6593_v23  ;;  %v10086_v27 = vld [vmem:[%s15093_s0 + $0x750] ss:$28 sps:$4 sm:$0xff]   ;;  %vm6754_vm6 = vmor %vm6662_vm13, %vm6726_vm2  ;;  %v6594_v53 = vmax.f32 %v8403_v40, 1e-10  ;;  %vm6732_vm0 = vcmp.lt.f32.partialorder %v12823_v61, %v12336_v7 }
 0x2db   : > { %5059 = vmatprep.mubr.bf16.mxu0 %v12828_v52  ;;  %8714 = vmatpush3.bf16.msra.mxu1 %v10078_v39  ;;  %vm6824_vm10 = vcmp.gt.f32.partialorder %v12823_v61, %v12340_v55  ;;  %v6600_v39 = vmax.f32 %v8409_v11, 1e-10  ;;  %vm6675_vm11 = vcmp.lt.f32.partialorder %v12661_v34, 1.0  ;;  %vm6846_vm12 = vmor %vm6754_vm6, %vm6818_vm3  ;;  %v6641_v46 = vmul.f32 %v10198_v10, %v3869_v41  ;;  %v12894_v10 = vld [vmem:[%s10586_s19 + $0x238] ss:$28 sps:$4 sm:$0xff]  }
 0x2dc   : > { %5707 = vmatprep.mubr.bf16.mxu1 %v12051_v51  ;;  %v3873_v51 = vpop.f32.mrb[28].mxu0  ;;  %8715 = vmatprep.subr.bf16.mxu1 %v10085_v3  ;;  %v10200_v42 = vpop.eup %10199  ;;  %v8410_v13 = vadd.f32 -1.0, %v12806_v37  ;;  %v6874_v40 = vsel %vm6846_vm12, 100000.0, %v6634_v57  ;;  %10217 = vrcp.f32 %v6594_v53  ;;  %vm6760_vm13 = vmor %vm6668_vm5, %vm6732_vm0  ;;  %vm15227_vm3 = vcmp.lt.f32.partialorder %v12591_v44, 1.0 }
 0x2dd   : > { %v4635_v15 = vpop.f32.mrb[56].mxu1  ;;  %v3875_v30 = vpop.f32.mrb[29].mxu0  ;;  %v12859_v3 = vmul.f32 %v10200_v42, %v3873_v51  ;;  %v12864_v1 = vmin.f32 %v6873_v0, %v6874_v40  ;;  %vm12869_vm12 = vmor %vm6760_vm13, %vm6824_vm10  ;;  %10219 = vrcp.f32 %v6600_v39  ;;  %vm6733_vm5 = vcmp.lt.f32.partialorder %v6641_v46, %v12347_v24 }
 0x2de   : > { %v10202_v23 = vpop.eup %10201  ;;  %v4637_v11 = vpop.f32.mrb[57].mxu1  ;;  %vm6825_vm2 = vcmp.gt.f32.partialorder %v6641_v46, %v12351_v58  ;;  %v6880_v0 = vsel %vm12869_vm12, 100000.0, %v12823_v61  ;;  %vm6761_vm6 = vmor %vm15227_vm3, %vm6733_vm5  ;;  %v6601_v42 = vmax.f32 %v8410_v13, 1e-10  ;;  %v15230_v5 = vsel %vm12699_vm15, 100000.0, %v12588_v4 }
 0x2df   : > { %v3877_v52 = vpop.f32.mrb[30].mxu0  ;;  %v10204_v41 = vpop.eup %10203  ;;  %8716 = vmatpush3.bf16.msra.mxu1 %v10086_v27  ;;  %vm6739_vm0 = vcmp.lt.f32.partialorder %v12859_v3, %v12336_v7  ;;  %vm6831_vm10 = vcmp.gt.f32.partialorder %v12859_v3, %v12340_v55  ;;  %v10094_v27 = vld [vmem:[%s15093_s0 + $0x788] ss:$28 sps:$4 sm:$0xff]   ;;  %vm12887_vm13 = vmor %vm6761_vm6, %vm6825_vm2  ;;  %v6635_v44 = vmul.f32 %v10202_v23, %v4635_v15  ;;  %v12905_v9 = vmin.f32 %v12577_v35, %v15230_v5  ;;  %v12918_v4 = vld [vmem:[%s10586_s19 + $0x274] ss:$28 sps:$4 sm:$0xff]  }
 0x2e0   : > { %v4639_v48 = vpop.f32.mrb[58].mxu1  ;;  %v3879_v53 = vpop.f32.mrb[31].mxu0  ;;  %8717 = vmatprep.subr.bf16.mxu1 %v10093_v6  ;;  %v6648_v13 = vmul.f32 %v10204_v41, %v3875_v30  ;;  %v10107_v6 = vld [vmem:[%s15093_s0 + $0x980] ss:$28 sps:$4 sm:$0xff]   ;;  %v6881_v15 = vsel %vm12887_vm13, 100000.0, %v6641_v46  ;;  %10221 = vrcp.f32 %v6601_v42  ;;  %vm6767_vm12 = vmor %vm6675_vm11, %vm6739_vm0  ;;  %v6479_v5 = vsel %vm12798_vm7, 100000.0, %v12463_v50 }
 0x2e1   : > { %v10206_v51 = vpop.eup %10205  ;;  %v4641_v39 = vpop.f32.mrb[59].mxu1  ;;  %v12924_v46 = vmin.f32 %v6880_v0, %v6881_v15  ;;  %vm12929_vm15 = vmor %vm6767_vm12, %vm6831_vm10  ;;  %vm6727_vm11 = vcmp.lt.f32.partialorder %v6635_v44, %v12362_v33  ;;  %vm6819_vm5 = vcmp.gt.f32.partialorder %v6635_v44, %v12495_v31  ;;  %v10108_v41 = vld [vmem:[%s15093_s0 + $0x7c0] ss:$28 sps:$4 sm:$0xff]   ;;  %vm6676_vm0 = vcmp.lt.f32.partialorder %v12678_v38, 1.0 }
 0x2e2   : > { %v10208_v40 = vpop.eup %10207  ;;  %v12891_v57 = vmul.f32 %v10206_v51, %v4637_v11  ;;  %5060 = vmatmul.mubr.bf16.gmra.mrb[104].mxu0 %v12894_v10  ;;  %5708 = vmatmul.mubr.bf16.gmra.mrb[164].mxu1 %v10415_v49  ;;  %vm6740_vm2 = vcmp.lt.f32.partialorder %v6648_v13, %v12347_v24  ;;  %v6887_v11 = vsel %vm12929_vm15, 100000.0, %v12859_v3  ;;  %vm6755_vm3 = vmor %vm6663_vm1, %vm6727_vm11  ;;  %vm6832_vm6 = vcmp.gt.f32.partialorder %v6648_v13, %v12351_v58  ;;  %v12994_v49 = vld [vmem:[%s10586_s19 + $0x270] ss:$28 sps:$4 sm:$0xff]   ;;  %v10122_v50 = vld [vmem:[%s15093_s0 + $0x8a0] ss:$28 sps:$4 sm:$0xff]  }
 0x2e3   : > { %v10210_v54 = vpop.eup %10209  ;;  %v12914_v30 = vmul.f32 %v10208_v40, %v3877_v52  ;;  %5069 = vmatprep.mubr.bf16.mxu0 %v12918_v4  ;;  %v10417_v52 = vld [vmem:[%s10586_s19 + $0x7c] ss:$28 sps:$4 sm:$0xff]   ;;  %8718 = vmatpush3.bf16.msra.mxu1 %v10094_v27  ;;  %vm6847_vm10 = vmor %vm6755_vm3, %vm6819_vm5  ;;  %vm6664_vm15 = vcmp.lt.f32.partialorder %v12690_v63, 1.0  ;;  %vm6684_vm7 = vcmp.lt.f32.partialorder %v12793_v8, 1.0 }
 0x2e4   : > { %v10212_v35 = vpop.eup %10211  ;;  %5715 = vmatprep.mubr.bf16.mxu1 %v10417_v52  ;;  %vm6728_vm13 = vcmp.lt.f32.partialorder %v12891_v57, %v12529_v43  ;;  %v12949_v0 = vmul.f32 %v10210_v54, %v4639_v48  ;;  %8719 = vmatprep.subr.bf16.mxu1 %v10107_v6  ;;  %v6875_v42 = vsel %vm6847_vm10, 100000.0, %v6635_v44  ;;  %vm6768_vm1 = vmor %vm6676_vm0, %vm6740_vm2  ;;  %vm6820_vm12 = vcmp.gt.f32.partialorder %v12891_v57, %v12548_v56 }
 0x2e5   : > { %v10214_v23 = vpop.eup %10213  ;;  %v12951_v3 = vmul.f32 %v10212_v35, %v3879_v53  ;;  %v4645_v16 = vpop.f32.mrb[60].mxu1  ;;  %v6902_v54 = vmin.f32 %v12864_v1, %v6875_v42  ;;  %vm6860_vm11 = vmor %vm6768_vm1, %vm6832_vm6  ;;  %vm6746_vm5 = vcmp.lt.f32.partialorder %v12914_v30, %v12336_v7  ;;  %v10112_v53 = vld [vmem:[%s15093_s0 + $0x9b8] ss:$28 sps:$4 sm:$0xff]   ;;  %vm6682_vm2 = vcmp.lt.f32.partialorder %v12692_v45, 1.0  ;;  %v10117_v35 = vld [vmem:[%s15093_s0 + $0x9f0] ss:$28 sps:$4 sm:$0xff]  }
 0x2e6   : > { %v10216_v51 = vpop.eup %10215  ;;  %v12957_v27 = vmul.f32 %v10214_v23, %v4641_v39  ;;  %v4647_v40 = vpop.f32.mrb[61].mxu1  ;;  %v6888_v61 = vsel %vm6860_vm11, 100000.0, %v6648_v13  ;;  %vm6756_vm3 = vmor %vm6664_vm15, %vm6728_vm13  ;;  %vm6838_vm6 = vcmp.gt.f32.partialorder %v12914_v30, %v12340_v55  ;;  %v10113_v1 = vld [vmem:[%s15093_s0 + $0x7f8] ss:$28 sps:$4 sm:$0xff]   ;;  %vm6670_vm0 = vcmp.lt.f32.partialorder %v12707_v14, 1.0 }
 0x2e7   : > { %v12959_v38 = vmul.f32 %v10216_v51, %v4645_v16  ;;  %v4649_v48 = vpop.f32.mrb[62].mxu1  ;;  %v10218_v39 = vpop.eup %10217  ;;  %8720 = vmatpush3.bf16.msra.mxu1 %v10108_v41  ;;  %v12980_v6 = vmin.f32 %v6887_v11, %v6888_v61  ;;  %vm12985_vm10 = vmor %vm6756_vm3, %vm6820_vm12  ;;  %vm6734_vm13 = vcmp.lt.f32.partialorder %v12949_v0, %v12362_v33  ;;  %vm6683_vm1 = vcmp.lt.f32.partialorder %v12709_v59, 1.0  ;;  %v10419_v23 = vld [vmem:[%s10586_s19 + $0x78] ss:$28 sps:$4 sm:$0xff]   ;;  %v13015_v11 = vld [vmem:[%s10586_s19 + $0x2ac] ss:$28 sps:$4 sm:$0xff]  }
 0x2e8   : > { %v4651_v63 = vpop.f32.mrb[63].mxu1  ;;  %v10220_v44 = vpop.eup %10219  ;;  %v12991_v15 = vmul.f32 %v10218_v39, %v4647_v40  ;;  %v6876_v34 = vsel %vm12985_vm10, 100000.0, %v12891_v57  ;;  %vm6774_vm12 = vmor %vm6682_vm2, %vm6746_vm5  ;;  %vm6826_vm15 = vcmp.gt.f32.partialorder %v12949_v0, %v12495_v31  ;;  %vm6671_vm11 = vcmp.lt.f32.partialorder %v12721_v19, 1.0  ;;  %v10421_v45 = vld [vmem:[%s10586_s19 + $0xb4] ss:$28 sps:$4 sm:$0xff]   ;;  %8721 = vmatprep.subr.bf16.mxu1 %v10112_v53 }
 0x2e9   : > { %v13011_v52 = vmul.f32 %v10220_v44, %v4649_v48  ;;  %vm6677_vm3 = vcmp.lt.f32.partialorder %v12768_v20, 1.0  ;;  %vm13023_vm10 = vmor %vm6774_vm12, %vm6838_vm6  ;;  %vm6747_vm5 = vcmp.lt.f32.partialorder %v12951_v3, %v12347_v24  ;;  %v15237_v57 = vsel %vm12773_vm4, 100000.0, %v12604_v18  ;;  %v10119_v14 = vld [vmem:[%s15093_s0 + $0xa28] ss:$28 sps:$4 sm:$0xff]   ;;  %v10121_v39 = vld [vmem:[%s15093_s0 + $0xa60] ss:$28 sps:$4 sm:$0xff]  }
 0x2ea   : > { %5070 = vmatmul.mubr.bf16.gmra.mrb[108].mxu0 %v12994_v49  ;;  %5716 = vmatmul.mubr.bf16.gmra.mrb[168].mxu1 %v10419_v23  ;;  %v13035_v41 = vmin.f32 %v12905_v9, %v15237_v57  ;;  %v10222_v51 = vpop.eup %10221  ;;  %vm6678_vm2 = vcmp.lt.f32.partialorder %v12781_v47, 1.0  ;;  %v6894_v55 = vsel %vm13023_vm10, 100000.0, %v12914_v30  ;;  %vm6762_vm6 = vmor %vm6670_vm0, %vm6734_vm13  ;;  %vm6839_vm12 = vcmp.gt.f32.partialorder %v12951_v3, %v12351_v58  ;;  %v10118_v9 = vld [vmem:[%s15093_s0 + $0x830] ss:$28 sps:$4 sm:$0xff]   ;;  %v13149_v44 = vld [vmem:[%s10586_s19 + $0x2e4] ss:$28 sps:$4 sm:$0xff]  }
 0x2eb   : > { %5079 = vmatprep.mubr.bf16.mxu0 %v13015_v11  ;;  %5723 = vmatprep.mubr.bf16.mxu1 %v10421_v45  ;;  %vm6735_vm4 = vcmp.lt.f32.partialorder %v12957_v27, %v12529_v43  ;;  %vm6854_vm10 = vmor %vm6762_vm6, %vm6826_vm15  ;;  %v13056_v18 = vmul.f32 %v10222_v51, %v4651_v63  ;;  %v15238_v30 = vsel %vm12518_vm9, 100000.0, %v12448_v22  ;;  %v15239_v42 = vsel %vm12750_vm14, 100000.0, %v12659_v60  ;;  %v10425_v13 = vld [vmem:[%s10586_s19 + $0xec] ss:$28 sps:$4 sm:$0xff]  }
 0x2ec   : > { %8722 = vmatpush3.bf16.msra.mxu1 %v10113_v1  ;;  %v6505_v16 = vmin.f32 %v12432_v36, %v15238_v30  ;;  %v13073_v40 = vmin.f32 %v12745_v25, %v15239_v42  ;;  %v15240_v48 = vsel %vm12671_vm8, 100000.0, %v12524_v17  ;;  %v6882_v21 = vsel %vm6854_vm10, 100000.0, %v12949_v0  ;;  %vm6775_vm9 = vmor %vm6683_vm1, %vm6747_vm5  ;;  %v10423_v1 = vld [vmem:[%s10586_s19 + $0xb0] ss:$28 sps:$4 sm:$0xff]   ;;  %v13232_v30 = vld [vmem:[%s10586_s19 + $0x31c] ss:$28 sps:$4 sm:$0xff]  }
 0x2ed   : > { %v13058_v62 = vpop.f32.mrb[64].mxu1  ;;  %8723 = vmatprep.subr.bf16.mxu1 %v10117_v35  ;;  %v13080_v53 = vmin.f32 %v12635_v2, %v15240_v48  ;;  %vm6827_vm14 = vcmp.gt.f32.partialorder %v12957_v27, %v12548_v56  ;;  %v13093_v60 = vmin.f32 %v6902_v54, %v6876_v34  ;;  %v6911_v17 = vmin.f32 %v12924_v46, %v6882_v21  ;;  %vm6867_vm8 = vmor %vm6775_vm9, %vm6839_vm12  ;;  %v13131_v54 = vld [vmem:[%s10586_s19 + $0x2a8] ss:$28 sps:$4 sm:$0xff]  }
 0x2ee   : > { %v8422_v36 = vadd.f32 -1.0, %v13058_v62  ;;  %v13091_v22 = vpop.f32.mrb[65].mxu1  ;;  %vm6741_vm0 = vcmp.lt.f32.partialorder %v12959_v38, %v12362_v33  ;;  %vm6833_vm13 = vcmp.gt.f32.partialorder %v12959_v38, %v12495_v31  ;;  %v6895_v59 = vsel %vm6867_vm8, 100000.0, %v12951_v3  ;;  %vm6763_vm1 = vmor %vm6671_vm11, %vm6735_vm4  ;;  %v10429_v42 = vld [vmem:[%s10586_s19 + $0x124] ss:$28 sps:$4 sm:$0xff]  }
 0x2ef   : > { %v8423_v24 = vadd.f32 -1.0, %v13091_v22  ;;  %v13104_v2 = vpop.f32.mrb[66].mxu1  ;;  %vm6742_vm15 = vcmp.lt.f32.partialorder %v12991_v15, %v12529_v43  ;;  %v6928_v46 = vmin.f32 %v6894_v55, %v6895_v59  ;;  %vm13123_vm5 = vmor %vm6763_vm1, %vm6827_vm14  ;;  %vm6834_vm11 = vcmp.gt.f32.partialorder %v12991_v15, %v12548_v56  ;;  %v13223_v55 = vld [vmem:[%s10586_s19 + $0x2e0] ss:$28 sps:$4 sm:$0xff]  }
 0x2f0   : > { %v6976_v58 = vmax.f32 %v8422_v36, 1e-10  ;;  %v8429_v25 = vadd.f32 -1.0, %v13104_v2  ;;  %v13118_v29 = vpop.f32.mrb[67].mxu1  ;;  %8724 = vmatpush3.bf16.msra.mxu1 %v10118_v9  ;;  %v6883_v61 = vsel %vm13123_vm5, 100000.0, %v12957_v27  ;;  %vm6769_vm6 = vmor %vm6677_vm3, %vm6741_vm0  ;;  %vm6748_vm12 = vcmp.lt.f32.partialorder %v13011_v52, %v12362_v33 }
 0x2f1   : > { %v6977_v19 = vmax.f32 %v8423_v24, 1e-10  ;;  %v8430_v3 = vadd.f32 -1.0, %v13118_v29  ;;  %8725 = vmatprep.subr.bf16.mxu1 %v10119_v14  ;;  %vm6861_vm4 = vmor %vm6769_vm6, %vm6833_vm13  ;;  %v13160_v20 = vmin.f32 %v6505_v16, %v6479_v5  ;;  %v13162_v35 = vmin.f32 %v6911_v17, %v6883_v61  ;;  %v13187_v5 = vld [vmem:[%s15093_s0 + $0xa98] ss:$28 sps:$4 sm:$0xff]  }
 0x2f2   : > { %5080 = vmatmul.mubr.bf16.gmra.mrb[112].mxu0 %v13131_v54  ;;  %10223 = vrcp.f32 %v6976_v58  ;;  %v6983_v63 = vmax.f32 %v8429_v25, 1e-10  ;;  %5724 = vmatmul.mubr.bf16.gmra.mrb[172].mxu1 %v10423_v1  ;;  %v6889_v34 = vsel %vm6861_vm4, 100000.0, %v12959_v38  ;;  %vm6770_vm3 = vmor %vm6678_vm2, %vm6742_vm15  ;;  %vm6840_vm10 = vcmp.gt.f32.partialorder %v13011_v52, %v12495_v31  ;;  %v10427_v14 = vld [vmem:[%s10586_s19 + $0xe8] ss:$28 sps:$4 sm:$0xff]  }
 0x2f3   : > { %5089 = vmatprep.mubr.bf16.mxu0 %v13149_v44  ;;  %10225 = vrcp.f32 %v6977_v19  ;;  %v6984_v27 = vmax.f32 %v8430_v3, 1e-10  ;;  %5731 = vmatprep.mubr.bf16.mxu1 %v10425_v13  ;;  %v6920_v32 = vmin.f32 %v12980_v6, %v6889_v34  ;;  %vm6862_vm9 = vmor %vm6770_vm3, %vm6834_vm11  ;;  %vm6749_vm2 = vcmp.lt.f32.partialorder %v13056_v18, %v12529_v43  ;;  %v10430_v36 = vld [vmem:[%s11828_s11 + $0xe] sm:$0x7f] }
 0x2f4   : > { %10227 = vrcp.f32 %v6983_v63  ;;  %8726 = vmatpush3.bf16.msra.mxu1 %v10120_v28  ;;  %v6890_v8 = vsel %vm6862_vm9, 100000.0, %v12991_v15  ;;  %vm6776_vm14 = vmor %vm6684_vm7, %vm6748_vm12  ;;  %vm6841_vm8 = vcmp.gt.f32.partialorder %v13056_v18, %v12548_v56  ;;  %vm6685_vm0 = vcmp.lt.f32.partialorder %v12806_v37, 1.0  ;;  %v10431_v17 = vld [vmem:[%s11837_s14 + $0xe] sm:$0x7f] }
 0x2f5   : > { %10229 = vrcp.f32 %v6984_v27  ;;  %v13182_v47 = vpop.f32.mrb[68].mxu1  ;;  %8727 = vmatprep.subr.bf16.mxu1 %v10121_v39  ;;  %vm6868_vm13 = vmor %vm6776_vm14, %vm6840_vm10  ;;  %v13205_v33 = vmin.f32 %v6920_v32, %v6890_v8  ;;  %v13244_v24 = vrot.slane %v10431_v17, %v12257_v26  ;;  %v13247_v58 = vrot.slane %v10430_v36, %v12281_v12  ;;  %v13258_v13 = vld [vmem:[%s10586_s19 + $0x318] ss:$28 sps:$4 sm:$0xff]  }
 0x2f6   : > { %v8436_v38 = vadd.f32 -1.0, %v13182_v47  ;;  %v13196_v6 = vpop.f32.mrb[69].mxu1  ;;  %v6896_v7 = vsel %vm6868_vm13, 100000.0, %v13011_v52  ;;  %vm6777_vm1 = vmor %vm6685_vm0, %vm6749_vm2  ;;  %v13250_v25 = vrot.slane %v10431_v17, %v12281_v12  ;;  %vm7060_vm5 = vcmp.lt.f32.partialorder %v13058_v62, 1.0  ;;  %v10433_v62 = vld [vmem:[%s10586_s19 + $0x120] ss:$28 sps:$4 sm:$0xff]  }
 0x2f7   : > { %v8437_v15 = vadd.f32 -1.0, %v13196_v6  ;;  %v13203_v23 = vpop.f32.mrb[70].mxu1  ;;  %v6929_v31 = vmin.f32 %v6928_v46, %v6896_v7  ;;  %vm13217_vm15 = vmor %vm6777_vm1, %vm6841_vm8  ;;  %vm7061_vm10 = vcmp.lt.f32.partialorder %v13091_v22, 1.0  ;;  %v13265_v34 = vld [vmem:[%s10586_s19 + $0x354] ss:$28 sps:$4 sm:$0xff]   ;;  %vm7067_vm8 = vcmp.lt.f32.partialorder %v13104_v2, 1.0 }
 0x2f8   : > { %v6990_v45 = vmax.f32 %v8436_v38, 1e-10  ;;  %v8443_v37 = vadd.f32 -1.0, %v13203_v23  ;;  %v13212_v57 = vpop.f32.mrb[71].mxu1  ;;  %8728 = vmatpush3.bf16.msra.mxu1 %v10122_v50  ;;  %v6897_v9 = vsel %vm13217_vm15, 100000.0, %v13056_v18  ;;  %v13240_v18 = vrot.slane %v10430_v36, %v12257_v26  ;;  %v15246_v38 = vld [vmem:[#allocation12_spill] sm:$0xff] }
 0x2f9   : > { %v6991_v52 = vmax.f32 %v8437_v15, 1e-10  ;;  %v8444_v43 = vadd.f32 -1.0, %v13212_v57  ;;  %8843 = vmatprep.subr.bf16.mxu1 %v13187_v5  ;;  %v13236_v48 = vmin.f32 %v6929_v31, %v6897_v9  ;;  %v10435_v32 = vld [vmem:[%s10586_s19 + $0x15c] ss:$28 sps:$4 sm:$0xff]  }
 0x2fa   : > { %5090 = vmatmul.mubr.bf16.gmra.mrb[116].mxu0 %v13223_v55  ;;  %10231 = vrcp.f32 %v6990_v45  ;;  %v6997_v56 = vmax.f32 %v8443_v37, 1e-10  ;;  %5732 = vmatmul.mubr.bf16.gmra.mrb[176].mxu1 %v10427_v14  ;;  %v15248_v14 = vld [vmem:[#allocation13_spill] sm:$0xff]  ;;  %v13294_v36 = vld [vmem:[%s10586_s19 + $0x350] ss:$28 sps:$4 sm:$0xff]  }
 0x2fb   : > { %5099 = vmatprep.mubr.bf16.mxu0 %v13232_v30  ;;  %10233 = vrcp.f32 %v6991_v52  ;;  %v6998_v16 = vmax.f32 %v8444_v43, 1e-10  ;;  %5739 = vmatprep.mubr.bf16.mxu1 %v10429_v42  ;;  %15245 = vst [vmem:[#allocation20_spill] sm:$0xff] %v13236_v48  ;;  %v645_v17 = vld [vmem:[%s15093_s0 + $0xac8] sm:$0x11] }
 0x2fc   : > { %v10224_v21 = vpop.eup %10223  ;;  %10235 = vrcp.f32 %v6997_v56  ;;  %v13690_v48 = vld [vmem:[%s10586_s19 + $0x130] ss:$28 sps:$4 sm:$0xff]  }
 0x2fd   : > { %v10226_v28 = vpop.eup %10225  ;;  %10237 = vrcp.f32 %v6998_v16  ;;  %v4675_v59 = vpop.f32.mrb[72].mxu1 }
 0x2fe   : > { %v10228_v46 = vpop.eup %10227  ;;  %v7032_v0 = vmul.f32 %v10224_v21, %v4675_v59  ;;  %v4677_v19 = vpop.f32.mrb[73].mxu1  ;;  %v15250_v59 = vld [vmem:[#allocation6_spill] sm:$0xff] }
 0x2ff   : > { %v10230_v3 = vpop.eup %10229  ;;  %v7033_v39 = vmul.f32 %v10226_v28, %v4677_v19  ;;  %v4679_v61 = vpop.f32.mrb[74].mxu1  ;;  %v15251_v19 = vld [vmem:[#allocation7_spill] sm:$0xff] }
 0x300   : > { %vm7124_vm11 = vcmp.lt.f32.partialorder %v7032_v0, %v13240_v18  ;;  %vm7216_vm6 = vcmp.gt.f32.partialorder %v7032_v0, %v13244_v24  ;;  %v7039_v63 = vmul.f32 %v10228_v46, %v4679_v61  ;;  %v4681_v1 = vpop.f32.mrb[75].mxu1  ;;  %v13306_v46 = vld [vmem:[%s10586_s19 + $0x14] ss:$28 sps:$4 sm:$0xff]  }
 0x301   : > { %vm7152_vm12 = vmor %vm7060_vm5, %vm7124_vm11  ;;  %vm7125_vm4 = vcmp.lt.f32.partialorder %v7033_v39, %v13247_v58  ;;  %vm7217_vm3 = vcmp.gt.f32.partialorder %v7033_v39, %v13250_v25  ;;  %v7040_v27 = vmul.f32 %v10230_v3, %v4681_v1  ;;  %vm7068_vm5 = vcmp.lt.f32.partialorder %v13118_v29, 1.0 }
 0x302   : > { %5100 = vmatmul.mubr.bf16.gmra.mrb[120].mxu0 %v13258_v13  ;;  %vm7244_vm7 = vmor %vm7152_vm12, %vm7216_vm6  ;;  %vm7131_vm9 = vcmp.lt.f32.partialorder %v7039_v63, %v13240_v18  ;;  %5740 = vmatmul.mubr.bf16.gmra.mrb[180].mxu1 %v10433_v62  ;;  %vm7223_vm14 = vcmp.gt.f32.partialorder %v7039_v63, %v13244_v24  ;;  %vm7074_vm6 = vcmp.lt.f32.partialorder %v13182_v47, 1.0  ;;  %v8289_v62 = vcombine.low %v645_v17, %v645_v17 }
 0x303   : > { %5109 = vmatprep.mubr.bf16.mxu0 %v13265_v34  ;;  %v7272_v50 = vsel %vm7244_vm7, 100000.0, %v7032_v0  ;;  %vm7153_vm2 = vmor %vm7061_vm10, %vm7125_vm4  ;;  %5747 = vmatprep.mubr.bf16.mxu1 %v10435_v32  ;;  %vm7132_vm13 = vcmp.lt.f32.partialorder %v7040_v27, %v13247_v58  ;;  %vm7224_vm15 = vcmp.gt.f32.partialorder %v7040_v27, %v13250_v25 }
 0x304   : > { %v10232_v8 = vpop.eup %10231  ;;  %v7299_v22 = vmin.f32 %v15246_v38, %v7272_v50  ;;  %vm7245_vm0 = vmor %vm7153_vm2, %vm7217_vm3 }
 0x305   : > { %v10234_v15 = vpop.eup %10233  ;;  %v7273_v7 = vsel %vm7245_vm0, 100000.0, %v7033_v39  ;;  %vm7159_vm1 = vmor %vm7067_vm8, %vm7131_vm9  ;;  %v4685_v45 = vpop.f32.mrb[76].mxu1 }
 0x306   : > { %v10236_v37 = vpop.eup %10235  ;;  %v13279_v31 = vmin.f32 %v7299_v22, %v7273_v7  ;;  %vm7251_vm11 = vmor %vm7159_vm1, %vm7223_vm14  ;;  %v7046_v2 = vmul.f32 %v10232_v8, %v4685_v45  ;;  %v4687_v51 = vpop.f32.mrb[77].mxu1  ;;  %vm7075_vm14 = vcmp.lt.f32.partialorder %v13196_v6, 1.0  ;;  %v15252_v6 = vld [vmem:[#allocation14_spill] sm:$0xff] }
 0x307   : > { %v10238_v52 = vpop.eup %10237  ;;  %v7279_v43 = vsel %vm7251_vm11, 100000.0, %v7039_v63  ;;  %vm7160_vm12 = vmor %vm7068_vm5, %vm7132_vm13  ;;  %v7047_v9 = vmul.f32 %v10234_v15, %v4687_v51  ;;  %v4689_v56 = vpop.f32.mrb[78].mxu1  ;;  %v15255_v22 = vld [vmem:[#allocation2_spill] sm:$0xff] }
 0x308   : > { %15247 = vst [vmem:[#allocation12_spill] sm:$0xff] %v13279_v31  ;;  %v7308_v16 = vmin.f32 %v15248_v14, %v7279_v43  ;;  %vm7252_vm4 = vmor %vm7160_vm12, %vm7224_vm15  ;;  %vm7138_vm3 = vcmp.lt.f32.partialorder %v7046_v2, %v13240_v18  ;;  %vm7230_vm10 = vcmp.gt.f32.partialorder %v7046_v2, %v13244_v24  ;;  %v7053_v29 = vmul.f32 %v10236_v37, %v4689_v56  ;;  %v4691_v42 = vpop.f32.mrb[79].mxu1  ;;  %v15257_v43 = vld [vmem:[#allocation8_spill] sm:$0xff]  ;;  %v15258_v14 = vld [vmem:[#allocation10_spill] sm:$0xff] }
 0x309   : > { %v7280_v47 = vsel %vm7252_vm4, 100000.0, %v7040_v27  ;;  %vm7166_vm7 = vmor %vm7074_vm6, %vm7138_vm3  ;;  %vm7139_vm9 = vcmp.lt.f32.partialorder %v7047_v9, %v13247_v58  ;;  %vm7231_vm2 = vcmp.gt.f32.partialorder %v7047_v9, %v13250_v25  ;;  %v7054_v21 = vmul.f32 %v10238_v52, %v4691_v42  ;;  %v13676_v31 = vld [vmem:[%s10586_s19 + $0xf8] ss:$28 sps:$4 sm:$0xff]  }
 0x30a   : > { %5110 = vmatmul.mubr.bf16.gmra.mrb[124].mxu0 %v13294_v36  ;;  %v13301_v28 = vmin.f32 %v7308_v16, %v7280_v47  ;;  %vm7258_vm8 = vmor %vm7166_vm7, %vm7230_vm10  ;;  %vm7145_vm0 = vcmp.lt.f32.partialorder %v7053_v29, %v13240_v18  ;;  %5748 = vmatmul.mubr.bf16.gmra.mrb[184].mxu1 %v15250_v59  ;;  %vm7237_vm1 = vcmp.gt.f32.partialorder %v7053_v29, %v13244_v24  ;;  %vm7081_vm15 = vcmp.lt.f32.partialorder %v13203_v23, 1.0 }
 0x30b   : > { %5152 = vmatprep.mubr.bf16.mxu0 %v13306_v46  ;;  %v7286_v0 = vsel %vm7258_vm8, 100000.0, %v7046_v2  ;;  %vm7167_vm13 = vmor %vm7075_vm14, %vm7139_vm9  ;;  %5755 = vmatprep.mubr.bf16.mxu1 %v15251_v19  ;;  %vm7146_vm11 = vcmp.lt.f32.partialorder %v7054_v21, %v13247_v58  ;;  %v8290_v18 = vcombine.high %v645_v17, %v645_v17  ;;  %vm7238_vm12 = vcmp.gt.f32.partialorder %v7054_v21, %v13250_v25  ;;  %v10114_v25 = vld [vmem:[%s15093_s0 + $0xa90] ss:$28 sps:$4 sm:$0xff]  }
 0x30c   : > { %15249 = vst [vmem:[#allocation13_spill] sm:$0xff] %v13301_v28  ;;  %v7317_v3 = vmin.f32 %v15252_v6, %v7286_v0  ;;  %vm7259_vm5 = vmor %vm7167_vm13, %vm7231_vm2  ;;  %vm7082_vm4 = vcmp.lt.f32.partialorder %v13212_v57, 1.0  ;;  %v15254_v57 = vld [vmem:[#allocation15_spill] sm:$0xff]  ;;  %v3182_v16 = vand.u32 %v8289_v62, %v15255_v22 }
 0x30d   : > { %v7287_v39 = vsel %vm7259_vm5, 100000.0, %v7047_v9  ;;  %vm7173_vm6 = vmor %vm7081_vm15, %vm7145_vm0  ;;  %v13317_v61 = vpop.f32.mrb[80].mxu1  ;;  %v3185_v15 = vand.u32 %v8290_v18, %v15255_v22  ;;  %v13338_v2 = vld [vmem:[%s10586_s19 + $0x10] ss:$28 sps:$4 sm:$0xff]   ;;  %v13363_v18 = vld [vmem:[%s10586_s19 + $0x48] ss:$28 sps:$4 sm:$0xff]  }
 0x30e   : > { %v13320_v24 = vmin.f32 %v7317_v3, %v7287_v39  ;;  %vm7265_vm3 = vmor %vm7173_vm6, %vm7237_vm1  ;;  %v8456_v23 = vadd.f32 -1.0, %v13317_v61  ;;  %v13323_v63 = vpop.f32.mrb[81].mxu1  ;;  %v13345_v9 = vld [vmem:[%s10586_s19 + $0x4c] ss:$28 sps:$4 sm:$0xff]   ;;  %vm7457_vm9 = vcmp.lt.f32.partialorder %v13317_v61, 1.0  ;;  %v15261_v61 = vld [vmem:[#allocation18_spill] sm:$0xff] }
 0x30f   : > { %v7293_v1 = vsel %vm7265_vm3, 100000.0, %v7053_v29  ;;  %vm7174_vm10 = vmor %vm7082_vm4, %vm7146_vm11  ;;  %v8457_v58 = vadd.f32 -1.0, %v13323_v63  ;;  %v13326_v27 = vpop.f32.mrb[82].mxu1  ;;  %vm7458_vm1 = vcmp.lt.f32.partialorder %v13323_v63, 1.0 }
 0x310   : > { %15253 = vst [vmem:[#allocation6_spill] sm:$0xff] %v13320_v24  ;;  %v7326_v50 = vmin.f32 %v15254_v57, %v7293_v1  ;;  %vm7266_vm7 = vmor %vm7174_vm10, %vm7238_vm12  ;;  %v7373_v32 = vmax.f32 %v8456_v23, 1e-10  ;;  %v8463_v8 = vadd.f32 -1.0, %v13326_v27  ;;  %v13333_v38 = vpop.f32.mrb[83].mxu1  ;;  %v15259_v23 = vld [vmem:[#allocation11_spill] sm:$0xff] }
 0x311   : > { %v7294_v7 = vsel %vm7266_vm7, 100000.0, %v7054_v21  ;;  %v7374_v45 = vmax.f32 %v8457_v58, 1e-10  ;;  %v8464_v37 = vadd.f32 -1.0, %v13333_v38  ;;  %v13368_v1 = vld [vmem:[%s10586_s19 + $0x84] ss:$28 sps:$4 sm:$0xff]  }
 0x312   : > { %5153 = vmatmul.mubr.bf16.vlgmr.msra.gmra.mrb[64].mxu0 %v13338_v2  ;;  %v13341_v51 = vmin.f32 %v7326_v50, %v7294_v7  ;;  %10239 = vrcp.f32 %v7373_v32  ;;  %v7380_v52 = vmax.f32 %v8463_v8, 1e-10  ;;  %5756 = vmatmul.mubr.bf16.gmra.mrb[188].mxu1 %v15257_v43  ;;  %v10442_v57 = vld [vmem:[%s11828_s11 + $0x15] sm:$0x7f]  ;;  %vm7464_vm12 = vcmp.lt.f32.partialorder %v13326_v27, 1.0 }
 0x313   : > { %5162 = vmatprep.mubr.bf16.mxu0 %v13345_v9  ;;  %10241 = vrcp.f32 %v7374_v45  ;;  %v7381_v56 = vmax.f32 %v8464_v37, 1e-10  ;;  %5763 = vmatprep.mubr.bf16.mxu1 %v15258_v14  ;;  %v13374_v50 = vrot.slane %v10442_v57, %v12257_v26  ;;  %v10443_v32 = vld [vmem:[%s11837_s14 + $0x15] sm:$0x7f]  ;;  %v13381_v45 = vrot.slane %v10442_v57, %v12281_v12 }
 0x314   : > { %15256 = vst [vmem:[#allocation7_spill] sm:$0xff] %v13341_v51  ;;  %5314 = vmatpush1.bf16.msra.mxu0 %v10114_v25  ;;  %10243 = vrcp.f32 %v7380_v52  ;;  %v15260_v25 = vld [vmem:[#allocation17_spill] sm:$0xff]  ;;  %v13378_v8 = vrot.slane %v10443_v32, %v12257_v26  ;;  %v13384_v37 = vrot.slane %v10443_v32, %v12281_v12 }
 0x315   : > { %5315 = vmatprep.subr.bf16.mxu0 %v3185_v15  ;;  %10245 = vrcp.f32 %v7381_v56  ;;  %v13350_v29 = vpop.f32.mrb[84].mxu1 }
 0x316   : > { %v8470_v42 = vadd.f32 -1.0, %v13350_v29  ;;  %v13353_v47 = vpop.f32.mrb[85].mxu1 }
 0x317   : > { %v8471_v21 = vadd.f32 -1.0, %v13353_v47  ;;  %v13356_v17 = vpop.f32.mrb[86].mxu1 }
 0x318   : > { %5316 = vmatpush1.bf16.msra.mxu0 %v3182_v16  ;;  %v7387_v59 = vmax.f32 %v8470_v42, 1e-10  ;;  %v8477_v0 = vadd.f32 -1.0, %v13356_v17  ;;  %v13359_v19 = vpop.f32.mrb[87].mxu1 }
 0x319   : > { %v7388_v6 = vmax.f32 %v8471_v21, 1e-10  ;;  %v8478_v3 = vadd.f32 -1.0, %v13359_v19 }
 0x31a   : > { %5163 = vmatmul.mubr.bf16.gmra.mrb[68].mxu0 %v13363_v18  ;;  %10247 = vrcp.f32 %v7387_v59  ;;  %v7394_v39 = vmax.f32 %v8477_v0, 1e-10  ;;  %5764 = vmatmul.mubr.bf16.gmra.mrb[192].mxu1 %v15259_v23  ;;  %v13392_v59 = vld [vmem:[%s10586_s19 + $0x80] ss:$28 sps:$4 sm:$0xff]   ;;  %v15263_v23 = vld [vmem:[#allocation16_spill] sm:$0xff] }
 0x31b   : > { %5172 = vmatprep.mubr.bf16.mxu0 %v13368_v1  ;;  %10249 = vrcp.f32 %v7388_v6  ;;  %v7395_v58 = vmax.f32 %v8478_v3, 1e-10  ;;  %5771 = vmatprep.mubr.bf16.mxu1 %v15260_v25  ;;  %v13399_v0 = vld [vmem:[%s10586_s19 + $0xbc] ss:$28 sps:$4 sm:$0xff]   ;;  %v15262_v3 = vld [vmem:[#allocation19_spill] sm:$0xff] }
 0x31c   : > { %v10240_v62 = vpop.eup %10239  ;;  %10251 = vrcp.f32 %v7394_v39 }
 0x31d   : > { %v10242_v15 = vpop.eup %10241  ;;  %10253 = vrcp.f32 %v7395_v58  ;;  %v4715_v7 = vpop.f32.mrb[88].mxu1 }
 0x31e   : > { %v10244_v52 = vpop.eup %10243  ;;  %v7429_v43 = vmul.f32 %v10240_v62, %v4715_v7  ;;  %v4717_v56 = vpop.f32.mrb[89].mxu1 }
 0x31f   : > { %v10246_v14 = vpop.eup %10245  ;;  %v7430_v16 = vmul.f32 %v10242_v15, %v4717_v56  ;;  %v4719_v42 = vpop.f32.mrb[90].mxu1 }
 0x320   : > { %vm7521_vm2 = vcmp.lt.f32.partialorder %v7429_v43, %v13374_v50  ;;  %vm7613_vm14 = vcmp.gt.f32.partialorder %v7429_v43, %v13378_v8  ;;  %v7436_v26 = vmul.f32 %v10244_v52, %v4719_v42  ;;  %v4721_v21 = vpop.f32.mrb[91].mxu1 }
 0x321   : > { %vm7549_vm8 = vmor %vm7457_vm9, %vm7521_vm2  ;;  %vm7522_vm0 = vcmp.lt.f32.partialorder %v7430_v16, %v13381_v45  ;;  %vm7614_vm13 = vcmp.gt.f32.partialorder %v7430_v16, %v13384_v37  ;;  %v7437_v12 = vmul.f32 %v10246_v14, %v4721_v21  ;;  %vm7465_vm9 = vcmp.lt.f32.partialorder %v13333_v38, 1.0  ;;  %v15265_v14 = vld [vmem:[#allocation3_spill] sm:$0xff]  ;;  %v13428_v21 = vld [vmem:[%s10586_s19 + $0xb8] ss:$28 sps:$4 sm:$0xff]  }
 0x322   : > { %5173 = vmatmul.mubr.bf16.gmra.mrb[72].mxu0 %v13392_v59  ;;  %vm7641_vm15 = vmor %vm7549_vm8, %vm7613_vm14  ;;  %vm7528_vm5 = vcmp.lt.f32.partialorder %v7436_v26, %v13374_v50  ;;  %5772 = vmatmul.mubr.bf16.gmra.mrb[196].mxu1 %v15261_v61  ;;  %vm7620_vm6 = vcmp.gt.f32.partialorder %v7436_v26, %v13378_v8  ;;  %vm7471_vm14 = vcmp.lt.f32.partialorder %v13350_v29, 1.0 }
 0x323   : > { %5182 = vmatprep.mubr.bf16.mxu0 %v13399_v0  ;;  %v7669_v6 = vsel %vm7641_vm15, 100000.0, %v7429_v43  ;;  %vm7550_vm11 = vmor %vm7458_vm1, %vm7522_vm0  ;;  %5779 = vmatprep.mubr.bf16.mxu1 %v15262_v3  ;;  %vm7529_vm3 = vcmp.lt.f32.partialorder %v7437_v12, %v13381_v45  ;;  %vm7621_vm7 = vcmp.gt.f32.partialorder %v7437_v12, %v13384_v37 }
 0x324   : > { %v10248_v39 = vpop.eup %10247  ;;  %v7696_v63 = vmin.f32 %v15263_v23, %v7669_v6  ;;  %vm7642_vm4 = vmor %vm7550_vm11, %vm7614_vm13 }
 0x325   : > { %v10250_v58 = vpop.eup %10249  ;;  %v7670_v25 = vsel %vm7642_vm4, 100000.0, %v7430_v16  ;;  %vm7556_vm10 = vmor %vm7464_vm12, %vm7528_vm5  ;;  %v4725_v62 = vpop.f32.mrb[92].mxu1 }
 0x326   : > { %v10252_v57 = vpop.eup %10251  ;;  %v13413_v32 = vmin.f32 %v7696_v63, %v7670_v25  ;;  %vm7648_vm2 = vmor %vm7556_vm10, %vm7620_vm6  ;;  %v7443_v27 = vmul.f32 %v10248_v39, %v4725_v62  ;;  %v4727_v15 = vpop.f32.mrb[93].mxu1  ;;  %vm7472_vm6 = vcmp.lt.f32.partialorder %v13353_v47, 1.0  ;;  %v15267_v47 = vld [vmem:[#allocation4_spill] sm:$0xff]  ;;  %v15269_v63 = vld [vmem:[#allocation5_spill] sm:$0xff] }
 0x327   : > { %v10254_v7 = vpop.eup %10253  ;;  %v7676_v52 = vsel %vm7648_vm2, 100000.0, %v7436_v26  ;;  %vm7557_vm8 = vmor %vm7465_vm9, %vm7529_vm3  ;;  %v7444_v43 = vmul.f32 %v10250_v58, %v4727_v15  ;;  %v4729_v56 = vpop.f32.mrb[94].mxu1  ;;  %v13457_v62 = vld [vmem:[%s10586_s19 + $0xf0] ss:$28 sps:$4 sm:$0xff]  }
 0x328   : > { %15264 = vst [vmem:[#allocation14_spill] sm:$0xff] %v13413_v32  ;;  %v7705_v16 = vmin.f32 %v15265_v14, %v7676_v52  ;;  %vm7649_vm0 = vmor %vm7557_vm8, %vm7621_vm7  ;;  %vm7535_vm13 = vcmp.lt.f32.partialorder %v7443_v27, %v13374_v50  ;;  %vm7627_vm1 = vcmp.gt.f32.partialorder %v7443_v27, %v13378_v8  ;;  %v7450_v38 = vmul.f32 %v10252_v57, %v4729_v56  ;;  %v4731_v42 = vpop.f32.mrb[95].mxu1  ;;  %v13464_v57 = vld [vmem:[%s10586_s19 + $0x12c] ss:$28 sps:$4 sm:$0xff]  }
 0x329   : > { %v7677_v29 = vsel %vm7649_vm0, 100000.0, %v7437_v12  ;;  %vm7563_vm15 = vmor %vm7471_vm14, %vm7535_vm13  ;;  %vm7536_vm5 = vcmp.lt.f32.partialorder %v7444_v43, %v13381_v45  ;;  %vm7628_vm11 = vcmp.gt.f32.partialorder %v7444_v43, %v13384_v37  ;;  %v7451_v26 = vmul.f32 %v10254_v7, %v4731_v42  ;;  %v13437_v12 = vld [vmem:[%s10586_s19 + $0xf4] ss:$28 sps:$4 sm:$0xff]   ;;  %v13473_v14 = vld [vmem:[%s10586_s19 + $0x128] ss:$28 sps:$4 sm:$0xff]  }
 0x32a   : > { %5183 = vmatmul.mubr.bf16.gmra.mrb[76].mxu0 %v13428_v21  ;;  %v13432_v61 = vmin.f32 %v7705_v16, %v7677_v29  ;;  %vm7655_vm12 = vmor %vm7563_vm15, %vm7627_vm1  ;;  %vm7542_vm4 = vcmp.lt.f32.partialorder %v7450_v38, %v13374_v50  ;;  %5780 = vmatmul.mubr.bf16.gmra.mrb[200].mxu1 %v12894_v10  ;;  %vm7634_vm10 = vcmp.gt.f32.partialorder %v7450_v38, %v13378_v8  ;;  %vm7478_vm7 = vcmp.lt.f32.partialorder %v13356_v17, 1.0 }
 0x32b   : > { %5192 = vmatprep.mubr.bf16.mxu0 %v13437_v12  ;;  %v7683_v6 = vsel %vm7655_vm12, 100000.0, %v7443_v27  ;;  %vm7564_vm3 = vmor %vm7472_vm6, %vm7536_vm5  ;;  %5787 = vmatprep.mubr.bf16.mxu1 %v12918_v4  ;;  %vm7543_vm2 = vcmp.lt.f32.partialorder %v7451_v26, %v13381_v45  ;;  %vm7635_vm8 = vcmp.gt.f32.partialorder %v7451_v26, %v13384_v37  ;;  %vm7479_vm0 = vcmp.lt.f32.partialorder %v13359_v19, 1.0 }
 0x32c   : > { %15266 = vst [vmem:[#allocation15_spill] sm:$0xff] %v13432_v61  ;;  %v7714_v3 = vmin.f32 %v15267_v47, %v7683_v6  ;;  %vm7656_vm9 = vmor %vm7564_vm3, %vm7628_vm11  ;;  %v13487_v6 = vld [vmem:[%s10586_s19 + $0x160] ss:$28 sps:$4 sm:$0xff]   ;;  %vm15272_vm5 = vcmask 138240  }
 0x32d   : > { %v7684_v10 = vsel %vm7656_vm9, 100000.0, %v7444_v43  ;;  %vm7570_vm14 = vmor %vm7478_vm7, %vm7542_vm4  ;;  %v8505_v50 = vpop.f32.mrb[96].mxu1 }
 0x32e   : > { %v13449_v8 = vmin.f32 %v7714_v3, %v7684_v10  ;;  %vm7662_vm13 = vmor %vm7570_vm14, %vm7634_vm10  ;;  %v8506_v4 = vpop.f32.mrb[97].mxu1 }
 0x32f   : > { %v7690_v17 = vsel %vm7662_vm13, 100000.0, %v7450_v38  ;;  %vm7571_vm1 = vmor %vm7479_vm0, %vm7543_vm2  ;;  %v13451_v39 = vadd.f32 %v8506_v4, %v8505_v50  ;;  %v8508_v23 = vpop.f32.mrb[98].mxu1 }
 0x330   : > { %15268 = vst [vmem:[#allocation2_spill] sm:$0xff] %v13449_v8  ;;  %v7723_v45 = vmin.f32 %v15269_v63, %v7690_v17  ;;  %vm7663_vm15 = vmor %vm7571_vm1, %vm7635_vm8  ;;  %v8509_v58 = vpop.f32.mrb[99].mxu1  ;;  %v13501_v17 = vld [vmem:[%s10586_s19 + $0x198] ss:$28 sps:$4 sm:$0xff]  }
 0x331   : > { %v7691_v25 = vsel %vm7663_vm15, 100000.0, %v7451_v26  ;;  %v13454_v37 = vadd.f32 %v8509_v58, %v8508_v23  ;;  %vm15273_vm11 = vmmov %vm15272_vm5 }
 0x332   : > { %5193 = vmatmul.mubr.bf16.gmra.mrb[80].mxu0 %v13457_v62  ;;  %v13460_v19 = vmin.f32 %v7723_v45, %v7691_v25  ;;  %5788 = vmatmul.mubr.bf16.gmra.mrb[204].mxu1 %v12994_v49  ;;  %v13478_v49 = vld [vmem:[%s10586_s19 + $0x164] ss:$28 sps:$4 sm:$0xff]   ;;  %vm15274_vm6 = vmmov %vm15272_vm5 }
 0x333   : > { %5202 = vmatprep.mubr.bf16.mxu0 %v13464_v57  ;;  %5795 = vmatprep.mubr.bf16.mxu1 %v13015_v11  ;;  %vm15275_vm12 = vmmov %vm15272_vm5 }
 0x334   : > { %15270 = vst [vmem:[#allocation8_spill] sm:$0xff] %v13460_v19  ;;  %v13618_v19 = vld [vmem:[%s10586_s19 + $0x358] ss:$28 sps:$4 sm:$0xff]   ;;  %vm15276_vm4 = vmmov %vm15272_vm5 }
 0x335   : > { %v8511_v27 = vpop.f32.mrb[100].mxu1  ;;  %vm15277_vm3 = vmmov %vm15276_vm4 }
 0x336   : > { %v8512_v15 = vpop.f32.mrb[101].mxu1  ;;  %vm15278_vm10 = vmmov %vm15277_vm3 }
 0x337   : > { %v13468_v7 = vadd.f32 %v8512_v15, %v8511_v27  ;;  %v8514_v52 = vpop.f32.mrb[102].mxu1  ;;  %v13515_v27 = vld [vmem:[%s10586_s19 + $0x1d0] ss:$28 sps:$4 sm:$0xff]   ;;  %vm15279_vm7 = vmmov %vm15277_vm3 }
 0x338   : > { %v8515_v43 = vpop.f32.mrb[103].mxu1  ;;  %vm15280_vm9 = vmmov %vm15277_vm3 }
 0x339   : > { %v13470_v56 = vadd.f32 %v8515_v43, %v8514_v52  ;;  %vm15281_vm2 = vmmov %vm15277_vm3 }
 0x33a   : > { %5203 = vmatmul.mubr.bf16.gmra.mrb[84].mxu0 %v13473_v14  ;;  %5796 = vmatmul.mubr.bf16.gmra.mrb[208].mxu1 %v13131_v54  ;;  %v13492_v54 = vld [vmem:[%s10586_s19 + $0x19c] ss:$28 sps:$4 sm:$0xff]   ;;  %vm15282_vm14 = vmmov %vm15281_vm2 }
 0x33b   : > { %5212 = vmatprep.mubr.bf16.mxu0 %v13478_v49  ;;  %5803 = vmatprep.mubr.bf16.mxu1 %v13149_v44  ;;  %vm15283_vm8 = vmmov %vm15281_vm2 }
 0x33c   : > { %vm15284_vm0 = vmmov %vm15281_vm2 }
 0x33d   : > { %v8517_v11 = vpop.f32.mrb[104].mxu1  ;;  %vm15285_vm13 = vmmov %vm15284_vm0 }
 0x33e   : > { %v8518_v16 = vpop.f32.mrb[105].mxu1  ;;  %vm15286_vm1 = vmmov %vm15284_vm0 }
 0x33f   : > { %v13482_v38 = vadd.f32 %v8518_v16, %v8517_v11  ;;  %v8520_v42 = vpop.f32.mrb[106].mxu1  ;;  %vm15287_vm15 = vmmov %vm15284_vm0 }
 0x340   : > { %v8521_v29 = vpop.f32.mrb[107].mxu1 }
 0x341   : > { %v13484_v26 = vadd.f32 %v8521_v29, %v8520_v42 }
 0x342   : > { %5213 = vmatmul.mubr.bf16.gmra.mrb[88].mxu0 %v13487_v6  ;;  %5804 = vmatmul.mubr.bf16.gmra.mrb[212].mxu1 %v13223_v55  ;;  %v13506_v55 = vld [vmem:[%s10586_s19 + $0x1d4] ss:$28 sps:$4 sm:$0xff]  }
 0x343   : > { %5222 = vmatprep.mubr.bf16.mxu0 %v13492_v54  ;;  %5811 = vmatprep.mubr.bf16.mxu1 %v13232_v30 }
 0x345   : > { %v8523_v44 = vpop.f32.mrb[108].mxu1 }
 0x346   : > { %v8524_v47 = vpop.f32.mrb[109].mxu1 }
 0x347   : > { %v13496_v3 = vadd.f32 %v8524_v47, %v8523_v44  ;;  %v8526_v10 = vpop.f32.mrb[110].mxu1 }
 0x348   : > { %v8527_v50 = vpop.f32.mrb[111].mxu1 }
 0x349   : > { %v13498_v4 = vadd.f32 %v8527_v50, %v8526_v10 }
 0x34a   : > { %5223 = vmatmul.mubr.bf16.gmra.mrb[92].mxu0 %v13501_v17  ;;  %5812 = vmatmul.mubr.bf16.gmra.mrb[216].mxu1 %v13258_v13  ;;  %v13520_v13 = vld [vmem:[%s10586_s19 + $0x20c] ss:$28 sps:$4 sm:$0xff]  }
 0x34b   : > { %5232 = vmatprep.mubr.bf16.mxu0 %v13506_v55  ;;  %5819 = vmatprep.mubr.bf16.mxu1 %v13265_v34  ;;  %v10126_v34 = vld [vmem:[%s15093_s0 + $0xad0] ss:$0 sps:$4 sm:$0x11]  }
 0x34c   : > { %v3188_v42 = vand.u32 %v10126_v34, %v15255_v22 }
 0x34d   : > { %v8529_v30 = vpop.f32.mrb[112].mxu1 }
 0x34e   : > { %v8530_v23 = vpop.f32.mrb[113].mxu1 }
 0x34f   : > { %v13510_v63 = vadd.f32 %v8530_v23, %v8529_v30  ;;  %v8532_v45 = vpop.f32.mrb[114].mxu1 }
 0x350   : > { %v8533_v58 = vpop.f32.mrb[115].mxu1 }
 0x351   : > { %v13512_v25 = vadd.f32 %v8533_v58, %v8532_v45 }
 0x352   : > { %5233 = vmatmul.mubr.bf16.gmra.mrb[96].mxu0 %v13515_v27  ;;  %5820 = vmatmul.mubr.bf16.gmra.mrb[220].mxu1 %v13294_v36  ;;  %v13533_v36 = vld [vmem:[%s10586_s19 + $0x208] ss:$28 sps:$4 sm:$0xff]  }
 0x353   : > { %5242 = vmatprep.mubr.bf16.mxu0 %v13520_v13  ;;  %5860 = vmatprep.mubr.bf16.mxu1 %v13306_v46  ;;  %v13538_v46 = vld [vmem:[%s10586_s19 + $0x244] ss:$28 sps:$4 sm:$0xff]  }
 0x355   : > { %v8535_v15 = vpop.f32.mrb[116].mxu1 }
 0x356   : > { %v8536_v52 = vpop.f32.mrb[117].mxu1 }
 0x357   : > { %v13527_v43 = vadd.f32 %v8536_v52, %v8535_v15  ;;  %v8538_v11 = vpop.f32.mrb[118].mxu1  ;;  %v13562_v52 = vld [vmem:[%s10586_s19 + $0x278] ss:$28 sps:$4 sm:$0xff]  }
 0x358   : > { %v8539_v16 = vpop.f32.mrb[119].mxu1 }
 0x359   : > { %v13530_v29 = vadd.f32 %v8539_v16, %v8538_v11 }
 0x35a   : > { %5243 = vmatmul.mubr.bf16.gmra.mrb[100].mxu0 %v13533_v36  ;;  %5861 = vmatmul.mubr.bf16.vlgmr.msra.gmra.mrb[224].mxu1 %v13338_v2  ;;  %v13548_v2 = vld [vmem:[%s10586_s19 + $0x240] ss:$28 sps:$4 sm:$0xff]  }
 0x35b   : > { %5252 = vmatprep.mubr.bf16.mxu0 %v13538_v46  ;;  %8844 = vmatpush3.bf16.msra.mxu1 %v13187_v5  ;;  %v13553_v5 = vld [vmem:[%s10586_s19 + $0x27c] ss:$28 sps:$4 sm:$0xff]  }
 0x35c   : > { %5868 = vmatprep.mubr.bf16.mxu1 %v13345_v9  ;;  %8845 = vmatprep.subr.bf16.mxu1 %v3188_v42 }
 0x35d   : > { %v8541_v22 = vpop.f32.mrb[120].mxu1 }
 0x35e   : > { %v8542_v44 = vpop.f32.mrb[121].mxu1 }
 0x35f   : > { %v13543_v47 = vadd.f32 %v8542_v44, %v8541_v22  ;;  %v8544_v10 = vpop.f32.mrb[122].mxu1  ;;  %8846 = vmatpush3.bf16.msra.mxu1 %v3188_v42 }
 0x360   : > { %v8545_v50 = vpop.f32.mrb[123].mxu1 }
 0x361   : > { %v13545_v30 = vadd.f32 %v8545_v50, %v8544_v10  ;;  %v13576_v10 = vld [vmem:[%s10586_s19 + $0x2b0] ss:$28 sps:$4 sm:$0xff]  }
 0x362   : > { %5253 = vmatmul.mubr.bf16.gmra.mrb[104].mxu0 %v13548_v2  ;;  %5869 = vmatmul.mubr.bf16.gmra.mrb[228].mxu1 %v13363_v18  ;;  %v13567_v18 = vld [vmem:[%s10586_s19 + $0x2b4] ss:$28 sps:$4 sm:$0xff]  }
 0x363   : > { %5262 = vmatprep.mubr.bf16.mxu0 %v13553_v5  ;;  %5876 = vmatprep.mubr.bf16.mxu1 %v13368_v1 }
 0x365   : > { %v8547_v9 = vpop.f32.mrb[124].mxu1 }
 0x366   : > { %v8548_v23 = vpop.f32.mrb[125].mxu1 }
 0x367   : > { %v13557_v45 = vadd.f32 %v8548_v23, %v8547_v9  ;;  %v8550_v58 = vpop.f32.mrb[126].mxu1 }
 0x368   : > { %v8551_v34 = vpop.f32.mrb[127].mxu1 }
 0x369   : > { %v13559_v15 = vadd.f32 %v8551_v34, %v8550_v58 }
 0x36a   : > { %5263 = vmatmul.mubr.bf16.gmra.mrb[108].mxu0 %v13562_v52  ;;  %5877 = vmatmul.mubr.bf16.gmra.mrb[232].mxu1 %v13392_v59  ;;  %v13581_v59 = vld [vmem:[%s10586_s19 + $0x2ec] ss:$28 sps:$4 sm:$0xff]  }
 0x36b   : > { %5272 = vmatprep.mubr.bf16.mxu0 %v13567_v18  ;;  %5884 = vmatprep.mubr.bf16.mxu1 %v13399_v0 }
 0x36d   : > { %v8553_v1 = vpop.f32.mrb[128].mxu1 }
 0x36e   : > { %v8554_v11 = vpop.f32.mrb[129].mxu1 }
 0x36f   : > { %v13571_v16 = vadd.f32 %v8554_v11, %v8553_v1  ;;  %v8556_v42 = vpop.f32.mrb[130].mxu1  ;;  %v13590_v1 = vld [vmem:[%s10586_s19 + $0x2e8] ss:$28 sps:$4 sm:$0xff]  }
 0x370   : > { %v8557_v22 = vpop.f32.mrb[131].mxu1 }
 0x371   : > { %v13573_v44 = vadd.f32 %v8557_v22, %v8556_v42 }
 0x372   : > { %5273 = vmatmul.mubr.bf16.gmra.mrb[112].mxu0 %v13576_v10  ;;  %5885 = vmatmul.mubr.bf16.gmra.mrb[236].mxu1 %v13428_v21  ;;  %v13595_v21 = vld [vmem:[%s10586_s19 + $0x324] ss:$28 sps:$4 sm:$0xff]  }
 0x373   : > { %5282 = vmatprep.mubr.bf16.mxu0 %v13581_v59  ;;  %5892 = vmatprep.mubr.bf16.mxu1 %v13437_v12 }
 0x375   : > { %v8559_v0 = vpop.f32.mrb[132].mxu1 }
 0x376   : > { %v8560_v50 = vpop.f32.mrb[133].mxu1 }
 0x377   : > { %v13585_v9 = vadd.f32 %v8560_v50, %v8559_v0  ;;  %v8562_v23 = vpop.f32.mrb[134].mxu1 }
 0x378   : > { %v8563_v58 = vpop.f32.mrb[135].mxu1 }
 0x379   : > { %v13587_v34 = vadd.f32 %v8563_v58, %v8562_v23  ;;  %v13604_v23 = vld [vmem:[%s10586_s19 + $0x320] ss:$28 sps:$4 sm:$0xff]  }
 0x37a   : > { %5283 = vmatmul.mubr.bf16.gmra.mrb[116].mxu0 %v13590_v1  ;;  %5893 = vmatmul.mubr.bf16.gmra.mrb[240].mxu1 %v13457_v62  ;;  %v13609_v62 = vld [vmem:[%s10586_s19 + $0x35c] ss:$28 sps:$4 sm:$0xff]  }
 0x37b   : > { %5292 = vmatprep.mubr.bf16.mxu0 %v13595_v21  ;;  %5900 = vmatprep.mubr.bf16.mxu1 %v13464_v57 }
 0x37d   : > { %v8565_v12 = vpop.f32.mrb[136].mxu1 }
 0x37e   : > { %v8566_v11 = vpop.f32.mrb[137].mxu1 }
 0x37f   : > { %v13599_v42 = vadd.f32 %v8566_v11, %v8565_v12  ;;  %v8568_v22 = vpop.f32.mrb[138].mxu1 }
 0x380   : > { %v8569_v0 = vpop.f32.mrb[139].mxu1 }
 0x381   : > { %v13601_v50 = vadd.f32 %v8569_v0, %v8568_v22 }
 0x382   : > { %5293 = vmatmul.mubr.bf16.gmra.mrb[120].mxu0 %v13604_v23  ;;  %5901 = vmatmul.mubr.bf16.gmra.mrb[244].mxu1 %v13473_v14  ;;  %v15271_v14 = vmov 0  }
 0x383   : > { %5302 = vmatprep.mubr.bf16.mxu0 %v13609_v62  ;;  %5908 = vmatprep.mubr.bf16.mxu1 %v13478_v49 }
 0x385   : > { %v8571_v57 = vpop.f32.mrb[140].mxu1 }
 0x386   : > { %v8572_v58 = vpop.f32.mrb[141].mxu1 }
 0x387   : > { %v13613_v12 = vadd.f32 %v8572_v58, %v8571_v57  ;;  %v8574_v11 = vpop.f32.mrb[142].mxu1 }
 0x388   : > { %v8575_v22 = vpop.f32.mrb[143].mxu1 }
 0x389   : > { %v13615_v0 = vadd.f32 %v8575_v22, %v8574_v11  ;;  %v13629_v11 = vld [vmem:[%s10586_s19 + $0x18] ss:$28 sps:$4 sm:$0xff]  }
 0x38a   : > { %5303 = vmatmul.mubr.bf16.gmra.mrb[124].mxu0 %v13618_v19  ;;  %5909 = vmatmul.mubr.bf16.gmra.mrb[248].mxu1 %v13487_v6 }
 0x38b   : > { %5345 = vmatprep.mubr.bf16.mxu0 %v15271_v14  ;;  %5916 = vmatprep.mubr.bf16.mxu1 %v13492_v54 }
 0x38d   : > { %v8577_v49 = vpop.f32.mrb[144].mxu1 }
 0x38e   : > { %v8578_v8 = vpop.f32.mrb[145].mxu1 }
 0x38f   : > { %v13624_v61 = vadd.f32 %v8578_v8, %v8577_v49  ;;  %v8580_v57 = vpop.f32.mrb[146].mxu1 }
 0x390   : > { %v8581_v58 = vpop.f32.mrb[147].mxu1 }
 0x391   : > { %v13626_v32 = vadd.f32 %v8581_v58, %v8580_v57  ;;  %v13641_v58 = vld [vmem:[%s10586_s19 + $0x50] ss:$28 sps:$4 sm:$0xff]  }
 0x392   : > { %8324 = vmatmul.mubr.msk.bf16.vlgmr.msra.gmra.mrb[64].mxu0 %vm15272_vm5, %v13629_v11  ;;  %5917 = vmatmul.mubr.bf16.gmra.mrb[252].mxu1 %v13501_v17  ;;  %vm15288_vm5 = vmmov %vm15284_vm0 }
 0x393   : > { %5355 = vmatprep.mubr.bf16.mxu0 %v15271_v14  ;;  %5924 = vmatprep.mubr.bf16.mxu1 %v13506_v55 }
 0x395   : > { %v8583_v6 = vpop.f32.mrb[148].mxu1 }
 0x396   : > { %v8584_v54 = vpop.f32.mrb[149].mxu1 }
 0x397   : > { %v13636_v8 = vadd.f32 %v8584_v54, %v8583_v6  ;;  %v8586_v22 = vpop.f32.mrb[150].mxu1 }
 0x398   : > { %v8587_v49 = vpop.f32.mrb[151].mxu1 }
 0x399   : > { %v13638_v57 = vadd.f32 %v8587_v49, %v8586_v22  ;;  %v13653_v49 = vld [vmem:[%s10586_s19 + $0x88] ss:$28 sps:$4 sm:$0xff]  }
 0x39a   : > { %8325 = vmatmul.mubr.msk.bf16.gmra.mrb[68].mxu0 %vm15273_vm11, %v13641_v58  ;;  %5925 = vmatmul.mubr.bf16.gmra.mrb[0].mxu1 %v13515_v27  ;;  %vm15289_vm11 = vmmov %vm15284_vm0 }
 0x39b   : > { %5365 = vmatprep.mubr.bf16.mxu0 %v15271_v14  ;;  %5932 = vmatprep.mubr.bf16.mxu1 %v13520_v13 }
 0x39d   : > { %v8589_v17 = vpop.f32.mrb[152].mxu1 }
 0x39e   : > { %v8590_v55 = vpop.f32.mrb[153].mxu1 }
 0x39f   : > { %v13648_v6 = vadd.f32 %v8590_v55, %v8589_v17  ;;  %v8592_v54 = vpop.f32.mrb[154].mxu1 }
 0x3a0   : > { %v8593_v51 = vpop.f32.mrb[155].mxu1 }
 0x3a1   : > { %v13650_v22 = vadd.f32 %v8593_v51, %v8592_v54  ;;  %v13665_v54 = vld [vmem:[%s10586_s19 + $0xc0] ss:$28 sps:$4 sm:$0xff]  }
 0x3a2   : > { %8326 = vmatmul.mubr.msk.bf16.gmra.mrb[72].mxu0 %vm15274_vm6, %v13653_v49  ;;  %5933 = vmatmul.mubr.bf16.gmra.mrb[4].mxu1 %v13533_v36  ;;  %vm15290_vm6 = vmmov %vm15284_vm0 }
 0x3a3   : > { %5375 = vmatprep.mubr.bf16.mxu0 %v15271_v14  ;;  %5940 = vmatprep.mubr.bf16.mxu1 %v13538_v46 }
 0x3a5   : > { %v8595_v27 = vpop.f32.mrb[156].mxu1 }
 0x3a6   : > { %v8596_v13 = vpop.f32.mrb[157].mxu1 }
 0x3a7   : > { %v13660_v24 = vadd.f32 %v8596_v13, %v8595_v27  ;;  %v8598_v17 = vpop.f32.mrb[158].mxu1 }
 0x3a8   : > { %v8599_v55 = vpop.f32.mrb[159].mxu1 }
 0x3a9   : > { %v13662_v51 = vadd.f32 %v8599_v55, %v8598_v17 }
 0x3aa   : > { %8327 = vmatmul.mubr.msk.bf16.gmra.mrb[76].mxu0 %vm15275_vm12, %v13665_v54  ;;  %5941 = vmatmul.mubr.bf16.gmra.mrb[8].mxu1 %v13548_v2  ;;  %vm15291_vm12 = vmmov %vm15284_vm0 }
 0x3ab   : > { %5385 = vmatprep.mubr.bf16.mxu0 %v15271_v14  ;;  %5948 = vmatprep.mubr.bf16.mxu1 %v13553_v5 }
 0x3ad   : > { %v8617_v36 = vpop.f32.mrb[160].mxu1 }
 0x3ae   : > { %v8618_v46 = vpop.f32.mrb[161].mxu1 }
 0x3af   : > { %v8619_v27 = vadd.f32 %v8618_v46, %v8617_v36  ;;  %v8620_v13 = vpop.f32.mrb[162].mxu1 }
 0x3b0   : > { %v8621_v28 = vpop.f32.mrb[163].mxu1 }
 0x3b1   : > { %v13673_v17 = vadd.f32 %v8619_v27, %v13451_v39  ;;  %v8622_v55 = vadd.f32 %v8621_v28, %v8620_v13 }
 0x3b2   : > { %8328 = vmatmul.mubr.msk.bf16.gmra.mrb[80].mxu0 %vm15276_vm4, %v13676_v31  ;;  %5949 = vmatmul.mubr.bf16.gmra.mrb[12].mxu1 %v13562_v52  ;;  %vm15292_vm4 = vmmov %vm15284_vm0 }
 0x3b3   : > { %5395 = vmatprep.mubr.bf16.mxu0 %v15271_v14  ;;  %v13683_v2 = vadd.f32 %v8622_v55, %v13454_v37  ;;  %5956 = vmatprep.mubr.bf16.mxu1 %v13567_v18 }
 0x3b5   : > { %v8623_v5 = vpop.f32.mrb[164].mxu1 }
 0x3b6   : > { %v8624_v36 = vpop.f32.mrb[165].mxu1 }
 0x3b7   : > { %v8625_v46 = vadd.f32 %v8624_v36, %v8623_v5  ;;  %v8626_v39 = vpop.f32.mrb[166].mxu1 }
 0x3b8   : > { %v8627_v27 = vpop.f32.mrb[167].mxu1 }
 0x3b9   : > { %v13687_v28 = vadd.f32 %v8625_v46, %v13468_v7  ;;  %v8628_v13 = vadd.f32 %v8627_v27, %v8626_v39  ;;  %v13704_v39 = vld [vmem:[%s10586_s19 + $0x168] ss:$28 sps:$4 sm:$0xff]  }
 0x3ba   : > { %8329 = vmatmul.mubr.msk.bf16.gmra.mrb[84].mxu0 %vm15277_vm3, %v13690_v48  ;;  %5957 = vmatmul.mubr.bf16.gmra.mrb[16].mxu1 %v13576_v10  ;;  %vm15293_vm3 = vmmov %vm15284_vm0 }
 0x3bb   : > { %5405 = vmatprep.mubr.bf16.mxu0 %v15271_v14  ;;  %v13697_v37 = vadd.f32 %v8628_v13, %v13470_v56  ;;  %5964 = vmatprep.mubr.bf16.mxu1 %v13581_v59 }
 0x3bd   : > { %v8629_v52 = vpop.f32.mrb[168].mxu1 }
 0x3be   : > { %v8630_v18 = vpop.f32.mrb[169].mxu1 }
 0x3bf   : > { %v8631_v55 = vadd.f32 %v8630_v18, %v8629_v52  ;;  %v8632_v7 = vpop.f32.mrb[170].mxu1 }
 0x3c0   : > { %v8633_v5 = vpop.f32.mrb[171].mxu1 }
 0x3c1   : > { %v13701_v36 = vadd.f32 %v8631_v55, %v13482_v38  ;;  %v8634_v46 = vadd.f32 %v8633_v5, %v8632_v7  ;;  %v13718_v55 = vld [vmem:[%s10586_s19 + $0x1a0] ss:$28 sps:$4 sm:$0xff]  }
 0x3c2   : > { %8330 = vmatmul.mubr.msk.bf16.gmra.mrb[88].mxu0 %vm15278_vm10, %v13704_v39  ;;  %5965 = vmatmul.mubr.bf16.gmra.mrb[20].mxu1 %v13590_v1  ;;  %vm15294_vm10 = vmmov %vm15284_vm0 }
 0x3c3   : > { %5415 = vmatprep.mubr.bf16.mxu0 %v15271_v14  ;;  %v13711_v56 = vadd.f32 %v8634_v46, %v13484_v26  ;;  %5972 = vmatprep.mubr.bf16.mxu1 %v13595_v21 }
 0x3c5   : > { %v8635_v10 = vpop.f32.mrb[172].mxu1 }
 0x3c6   : > { %v8636_v59 = vpop.f32.mrb[173].mxu1 }
 0x3c7   : > { %v8637_v27 = vadd.f32 %v8636_v59, %v8635_v10  ;;  %v8638_v38 = vpop.f32.mrb[174].mxu1  ;;  %v10479_v59 = vld [vmem:[%s10586_s19 + $0x1d8] ss:$28 sps:$4 sm:$0xff]  }
 0x3c8   : > { %v8639_v13 = vpop.f32.mrb[175].mxu1 }
 0x3c9   : > { %v13715_v52 = vadd.f32 %v8637_v27, %v13496_v3  ;;  %v8640_v18 = vadd.f32 %v8639_v13, %v8638_v38 }
 0x3ca   : > { %8331 = vmatmul.mubr.msk.bf16.gmra.mrb[92].mxu0 %vm15279_vm7, %v13718_v55  ;;  %5973 = vmatmul.mubr.bf16.gmra.mrb[24].mxu1 %v13604_v23  ;;  %vm15295_vm7 = vmmov %vm15284_vm0 }
 0x3cb   : > { %5425 = vmatprep.mubr.bf16.mxu0 %v15271_v14  ;;  %v13725_v26 = vadd.f32 %v8640_v18, %v13498_v4  ;;  %5980 = vmatprep.mubr.bf16.mxu1 %v13609_v62 }
 0x3cd   : > { %v8641_v1 = vpop.f32.mrb[176].mxu1 }
 0x3ce   : > { %v8642_v21 = vpop.f32.mrb[177].mxu1 }
 0x3cf   : > { %v8643_v7 = vadd.f32 %v8642_v21, %v8641_v1  ;;  %v8644_v3 = vpop.f32.mrb[178].mxu1  ;;  %v10480_v1 = vld [vmem:[%s10586_s19 + $0x210] ss:$28 sps:$4 sm:$0xff]  }
 0x3d0   : > { %v8645_v5 = vpop.f32.mrb[179].mxu1 }
 0x3d1   : > { %v13729_v46 = vadd.f32 %v8643_v7, %v13510_v63  ;;  %v8646_v10 = vadd.f32 %v8645_v5, %v8644_v3 }
 0x3d2   : > { %8332 = vmatmul.mubr.msk.bf16.gmra.mrb[96].mxu0 %vm15280_vm9, %v10479_v59  ;;  %5981 = vmatmul.mubr.bf16.gmra.mrb[28].mxu1 %v13618_v19  ;;  %vm15296_vm9 = vmmov %vm15284_vm0 }
 0x3d3   : > { %5435 = vmatprep.mubr.bf16.mxu0 %v15271_v14  ;;  %v13736_v4 = vadd.f32 %v8646_v10, %v13512_v25  ;;  %8847 = vmatprep.mubr.msk.bf16.mxu1 %vm15281_vm2, %v13629_v11  ;;  %v10481_v10 = vld [vmem:[%s10586_s19 + $0x248] ss:$28 sps:$4 sm:$0xff]   ;;  %vm15297_vm2 = vmmov %vm15284_vm0 }
 0x3d5   : > { %v8647_v23 = vpop.f32.mrb[180].mxu1 }
 0x3d6   : > { %v8648_v62 = vpop.f32.mrb[181].mxu1 }
 0x3d7   : > { %v8649_v27 = vadd.f32 %v8648_v62, %v8647_v23  ;;  %v8650_v38 = vpop.f32.mrb[182].mxu1 }
 0x3d8   : > { %v8651_v63 = vpop.f32.mrb[183].mxu1 }
 0x3d9   : > { %v13741_v13 = vadd.f32 %v8649_v27, %v13527_v43  ;;  %v8652_v18 = vadd.f32 %v8651_v63, %v8650_v38  ;;  %v10482_v63 = vld [vmem:[%s10586_s19 + $0x280] ss:$28 sps:$4 sm:$0xff]  }
 0x3da   : > { %8333 = vmatmul.mubr.msk.bf16.gmra.mrb[100].mxu0 %vm15282_vm14, %v10480_v1  ;;  %8848 = vmatmul.mubr.msk.bf16.vlgmr.msra.gmra.mrb[32].mxu1 %vm15283_vm8, %v13641_v58  ;;  %vm15298_vm14 = vmmov %vm15284_vm0 }
 0x3db   : > { %5445 = vmatprep.mubr.bf16.mxu0 %v15271_v14  ;;  %v13749_v19 = vadd.f32 %v8652_v18, %v13530_v29  ;;  %8851 = vmatprep.mubr.msk.bf16.mxu1 %vm15284_vm0, %v13653_v49  ;;  %vm15299_vm8 = vmmov %vm15284_vm0 }
 0x3dd   : > { %v8653_v25 = vpop.f32.mrb[184].mxu1 }
 0x3de   : > { %v8654_v11 = vpop.f32.mrb[185].mxu1 }
 0x3df   : > { %v8655_v21 = vadd.f32 %v8654_v11, %v8653_v25  ;;  %v8656_v43 = vpop.f32.mrb[186].mxu1 }
 0x3e0   : > { %v8657_v7 = vpop.f32.mrb[187].mxu1 }
 0x3e1   : > { %v13754_v3 = vadd.f32 %v8655_v21, %v13543_v47  ;;  %v8658_v5 = vadd.f32 %v8657_v7, %v8656_v43  ;;  %v10483_v43 = vld [vmem:[%s10586_s19 + $0x2b8] ss:$28 sps:$4 sm:$0xff]  }
 0x3e2   : > { %8334 = vmatmul.mubr.msk.bf16.gmra.mrb[104].mxu0 %vm15285_vm13, %v10481_v10  ;;  %8852 = vmatmul.mubr.msk.bf16.gmra.mrb[36].mxu1 %vm15286_vm1, %v13665_v54  ;;  %vm15300_vm13 = vmmov %vm15284_vm0 }
 0x3e3   : > { %5455 = vmatprep.mubr.bf16.mxu0 %v15271_v14  ;;  %v13762_v29 = vadd.f32 %v8658_v5, %v13545_v30  ;;  %8855 = vmatprep.mubr.msk.bf16.mxu1 %vm15287_vm15, %v13676_v31  ;;  %vm15301_vm1 = vmmov %vm15284_vm0 }
 0x3e4   : > { %vm15302_vm15 = vmmov %vm15284_vm0 }
 0x3e5   : > { %v8659_v58 = vpop.f32.mrb[188].mxu1 }
 0x3e6   : > { %v8660_v49 = vpop.f32.mrb[189].mxu1 }
 0x3e7   : > { %v8661_v23 = vadd.f32 %v8660_v49, %v8659_v58  ;;  %v8662_v47 = vpop.f32.mrb[190].mxu1 }
 0x3e8   : > { %v8663_v62 = vpop.f32.mrb[191].mxu1 }
 0x3e9   : > { %v13767_v27 = vadd.f32 %v8661_v23, %v13557_v45  ;;  %v8664_v38 = vadd.f32 %v8663_v62, %v8662_v47  ;;  %v10484_v23 = vld [vmem:[%s10586_s19 + $0x2f0] ss:$28 sps:$4 sm:$0xff]  }
 0x3ea   : > { %8335 = vmatmul.mubr.msk.bf16.gmra.mrb[108].mxu0 %vm15288_vm5, %v10482_v63  ;;  %8856 = vmatmul.mubr.msk.bf16.gmra.mrb[40].mxu1 %vm15289_vm11, %v13690_v48 }
 0x3eb   : > { %5465 = vmatprep.mubr.bf16.mxu0 %v15271_v14  ;;  %v13775_v31 = vadd.f32 %v8664_v38, %v13559_v15  ;;  %8859 = vmatprep.mubr.msk.bf16.mxu1 %vm15290_vm6, %v13704_v39 }
 0x3ed   : > { %v8665_v30 = vpop.f32.mrb[192].mxu1 }
 0x3ee   : > { %v8666_v54 = vpop.f32.mrb[193].mxu1 }
 0x3ef   : > { %v8667_v18 = vadd.f32 %v8666_v54, %v8665_v30  ;;  %v8668_v45 = vpop.f32.mrb[194].mxu1  ;;  %v10485_v54 = vld [vmem:[%s10586_s19 + $0x328] ss:$28 sps:$4 sm:$0xff]  }
 0x3f0   : > { %v8669_v25 = vpop.f32.mrb[195].mxu1 }
 0x3f1   : > { %v13780_v11 = vadd.f32 %v8667_v18, %v13571_v16  ;;  %v8670_v21 = vadd.f32 %v8669_v25, %v8668_v45 }
 0x3f2   : > { %8336 = vmatmul.mubr.msk.bf16.gmra.mrb[112].mxu0 %vm15291_vm12, %v10483_v43  ;;  %8860 = vmatmul.mubr.msk.bf16.gmra.mrb[44].mxu1 %vm15292_vm4, %v13718_v55 }
 0x3f3   : > { %5475 = vmatprep.mubr.bf16.mxu0 %v15271_v14  ;;  %v13788_v48 = vadd.f32 %v8670_v21, %v13573_v44  ;;  %8863 = vmatprep.mubr.msk.bf16.mxu1 %vm15293_vm3, %v10479_v59 }
 0x3f5   : > { %v8671_v15 = vpop.f32.mrb[196].mxu1 }
 0x3f6   : > { %v8672_v39 = vpop.f32.mrb[197].mxu1 }
 0x3f7   : > { %v8673_v7 = vadd.f32 %v8672_v39, %v8671_v15  ;;  %v8674_v5 = vpop.f32.mrb[198].mxu1  ;;  %v10486_v15 = vld [vmem:[%s10586_s19 + $0x360] ss:$28 sps:$4 sm:$0xff]   ;;  %s8488_s19 = sshll.u32 %s15490_s17, 5 }
 0x3f8   : > { %v8675_v16 = vpop.f32.mrb[199].mxu1  ;;  %s15056_s23 = scalar_lea.vmem %s15097_s4, %s8488_s19 }
 0x3f9   : > { %v13792_v58 = vadd.f32 %v8673_v7, %v13585_v9  ;;  %v8676_v49 = vadd.f32 %v8675_v16, %v8674_v5 }
 0x3fa   : > { %8337 = vmatmul.mubr.msk.bf16.gmra.mrb[116].mxu0 %vm15294_vm10, %v10484_v23  ;;  %8864 = vmatmul.mubr.msk.bf16.gmra.mrb[48].mxu1 %vm15295_vm7, %v10480_v1 }
 0x3fb   : > { %5485 = vmatprep.mubr.bf16.mxu0 %v15271_v14  ;;  %v13799_v44 = vadd.f32 %v8676_v49, %v13587_v34  ;;  %8867 = vmatprep.mubr.msk.bf16.mxu1 %vm15296_vm9, %v10481_v10 }
 0x3fd   : > { %v8677_v55 = vpop.f32.mrb[200].mxu1 }
 0x3fe   : > { %v8678_v59 = vpop.f32.mrb[201].mxu1 }
 0x3ff   : > { %v8679_v47 = vadd.f32 %v8678_v59, %v8677_v55  ;;  %v8680_v62 = vpop.f32.mrb[202].mxu1 }
 0x400   : > { %v8681_v38 = vpop.f32.mrb[203].mxu1 }
 0x401   : > { %v13803_v9 = vadd.f32 %v8679_v47, %v13599_v42  ;;  %v8682_v30 = vadd.f32 %v8681_v38, %v8680_v62 }
 0x402   : > { %8338 = vmatmul.mubr.msk.bf16.gmra.mrb[120].mxu0 %vm15297_vm2, %v10485_v54  ;;  %8868 = vmatmul.mubr.msk.bf16.gmra.mrb[52].mxu1 %vm15298_vm14, %v10482_v63 }
 0x403   : > { %5495 = vmatprep.mubr.bf16.mxu0 %v15271_v14  ;;  %v13810_v34 = vadd.f32 %v8682_v30, %v13601_v50  ;;  %8871 = vmatprep.mubr.msk.bf16.mxu1 %vm15299_vm8, %v10483_v43 }
 0x405   : > { %v8683_v1 = vpop.f32.mrb[204].mxu1 }
 0x406   : > { %v8684_v10 = vpop.f32.mrb[205].mxu1 }
 0x407   : > { %v8685_v18 = vadd.f32 %v8684_v10, %v8683_v1  ;;  %v8686_v45 = vpop.f32.mrb[206].mxu1 }
 0x408   : > { %v8687_v25 = vpop.f32.mrb[207].mxu1 }
 0x409   : > { %v13814_v42 = vadd.f32 %v8685_v18, %v13613_v12  ;;  %v8688_v21 = vadd.f32 %v8687_v25, %v8686_v45 }
 0x40a   : > { %8339 = vmatmul.mubr.msk.bf16.gmra.mrb[124].mxu0 %vm15284_vm0, %v10486_v15  ;;  %8872 = vmatmul.mubr.msk.bf16.gmra.mrb[56].mxu1 %vm15300_vm13, %v10484_v23 }
 0x40b   : > { %v13820_v14 = vadd.f32 %v8688_v21, %v13615_v0  ;;  %8875 = vmatprep.mubr.msk.bf16.mxu1 %vm15301_vm1, %v10485_v54 }
 0x40d   : > { %v8689_v50 = vpop.f32.mrb[208].mxu1 }
 0x40e   : > { %v8690_v63 = vpop.f32.mrb[209].mxu1 }
 0x40f   : > { %v8691_v43 = vadd.f32 %v8690_v63, %v8689_v50  ;;  %v8692_v39 = vpop.f32.mrb[210].mxu1 }
 0x410   : > { %v8693_v7 = vpop.f32.mrb[211].mxu1 }
 0x411   : > { %v13824_v5 = vadd.f32 %v8691_v43, %v13624_v61  ;;  %v8694_v12 = vadd.f32 %v8693_v7, %v8692_v39 }
 0x412   : > { %8876 = vmatmul.mubr.msk.bf16.gmra.mrb[60].mxu1 %vm15302_vm15, %v10486_v15 }
 0x413   : > { %v13828_v16 = vadd.f32 %v8694_v12, %v13626_v32 }
 0x415   : > { %v8695_v49 = vpop.f32.mrb[212].mxu1 }
 0x416   : > { %v8696_v23 = vpop.f32.mrb[213].mxu1 }
 0x417   : > { %v8697_v0 = vadd.f32 %v8696_v23, %v8695_v49  ;;  %v8698_v55 = vpop.f32.mrb[214].mxu1 }
 0x418   : > { %v8699_v59 = vpop.f32.mrb[215].mxu1 }
 0x419   : > { %v13831_v47 = vadd.f32 %v8697_v0, %v13636_v8  ;;  %v8700_v62 = vadd.f32 %v8699_v59, %v8698_v55 }
 0x41b   : > { %v13834_v38 = vadd.f32 %v8700_v62, %v13638_v57 }
 0x41d   : > { %v8701_v61 = vpop.f32.mrb[216].mxu1 }
 0x41e   : > { %v8702_v30 = vpop.f32.mrb[217].mxu1 }
 0x41f   : > { %v8703_v54 = vadd.f32 %v8702_v30, %v8701_v61  ;;  %v8704_v1 = vpop.f32.mrb[218].mxu1 }
 0x420   : > { %v8705_v10 = vpop.f32.mrb[219].mxu1 }
 0x421   : > { %v13837_v32 = vadd.f32 %v8703_v54, %v13648_v6  ;;  %v8706_v18 = vadd.f32 %v8705_v10, %v8704_v1 }
 0x423   : > { %v13840_v45 = vadd.f32 %v8706_v18, %v13650_v22 }
 0x425   : > { %v8707_v25 = vpop.f32.mrb[220].mxu1 }
 0x426   : > { %v8708_v21 = vpop.f32.mrb[221].mxu1 }
 0x427   : > { %v8709_v8 = vadd.f32 %v8708_v21, %v8707_v25  ;;  %v8710_v15 = vpop.f32.mrb[222].mxu1 }
 0x428   : > { %v8711_v50 = vpop.f32.mrb[223].mxu1 }
 0x429   : > { %v13843_v57 = vadd.f32 %v8709_v8, %v13660_v24  ;;  %v8712_v63 = vadd.f32 %v8711_v50, %v8710_v15 }
 0x42b   : > { %v13846_v43 = vadd.f32 %v8712_v63, %v13662_v51 }
 0x42d   : > { %v8729_v39 = vpop.f32.mrb[224].mxu1 }
 0x42e   : > { %v8730_v7 = vpop.f32.mrb[225].mxu1 }
 0x42f   : > { %v8731_v6 = vadd.f32 %v8730_v7, %v8729_v39  ;;  %v8732_v12 = vpop.f32.mrb[226].mxu1 }
 0x430   : > { %v8733_v49 = vpop.f32.mrb[227].mxu1 }
 0x431   : > { %v8734_v23 = vadd.f32 %v8733_v49, %v8732_v12  ;;  %v13849_v22 = vadd.f32 %v8731_v6, %v13673_v17 }
 0x433   : > { %v13852_v0 = vadd.f32 %v8734_v23, %v13683_v2 }
 0x435   : > { %v8735_v55 = vpop.f32.mrb[228].mxu1 }
 0x436   : > { %v8736_v59 = vpop.f32.mrb[229].mxu1 }
 0x437   : > { %v8737_v24 = vadd.f32 %v8736_v59, %v8735_v55  ;;  %v8738_v62 = vpop.f32.mrb[230].mxu1 }
 0x438   : > { %v8739_v61 = vpop.f32.mrb[231].mxu1 }
 0x439   : > { %v8740_v30 = vadd.f32 %v8739_v61, %v8738_v62  ;;  %v13855_v51 = vadd.f32 %v8737_v24, %v13687_v28 }
 0x43b   : > { %v13858_v54 = vadd.f32 %v8740_v30, %v13697_v37 }
 0x43d   : > { %v8741_v1 = vpop.f32.mrb[232].mxu1 }
 0x43e   : > { %v8742_v10 = vpop.f32.mrb[233].mxu1 }
 0x43f   : > { %v8743_v18 = vadd.f32 %v8742_v10, %v8741_v1  ;;  %v8744_v17 = vpop.f32.mrb[234].mxu1 }
 0x440   : > { %v8745_v25 = vpop.f32.mrb[235].mxu1 }
 0x441   : > { %v8746_v21 = vadd.f32 %v8745_v25, %v8744_v17  ;;  %v13861_v2 = vadd.f32 %v8743_v18, %v13701_v36 }
 0x443   : > { %v13864_v8 = vadd.f32 %v8746_v21, %v13711_v56 }
 0x445   : > { %v8747_v15 = vpop.f32.mrb[236].mxu1 }
 0x446   : > { %v8748_v50 = vpop.f32.mrb[237].mxu1 }
 0x447   : > { %v8749_v63 = vadd.f32 %v8748_v50, %v8747_v15  ;;  %v8750_v28 = vpop.f32.mrb[238].mxu1 }
 0x448   : > { %v8751_v39 = vpop.f32.mrb[239].mxu1 }
 0x449   : > { %v8752_v7 = vadd.f32 %v8751_v39, %v8750_v28  ;;  %v13867_v37 = vadd.f32 %v8749_v63, %v13715_v52 }
 0x44b   : > { %v13870_v6 = vadd.f32 %v8752_v7, %v13725_v26 }
 0x44d   : > { %v8753_v12 = vpop.f32.mrb[240].mxu1 }
 0x44e   : > { %v8754_v49 = vpop.f32.mrb[241].mxu1 }
 0x44f   : > { %v8755_v23 = vadd.f32 %v8754_v49, %v8753_v12  ;;  %v8756_v36 = vpop.f32.mrb[242].mxu1 }
 0x450   : > { %v8757_v55 = vpop.f32.mrb[243].mxu1 }
 0x451   : > { %v8758_v59 = vadd.f32 %v8757_v55, %v8756_v36  ;;  %v13873_v56 = vadd.f32 %v8755_v23, %v13729_v46 }
 0x453   : > { %v13876_v24 = vadd.f32 %v8758_v59, %v13736_v4 }
 0x455   : > { %v8759_v62 = vpop.f32.mrb[244].mxu1 }
 0x456   : > { %v8760_v61 = vpop.f32.mrb[245].mxu1 }
 0x457   : > { %v8761_v30 = vadd.f32 %v8760_v61, %v8759_v62  ;;  %v8762_v52 = vpop.f32.mrb[246].mxu1 }
 0x458   : > { %v8763_v1 = vpop.f32.mrb[247].mxu1 }
 0x459   : > { %v8764_v10 = vadd.f32 %v8763_v1, %v8762_v52  ;;  %v13879_v26 = vadd.f32 %v8761_v30, %v13741_v13 }
 0x45b   : > { %v13882_v18 = vadd.f32 %v8764_v10, %v13749_v19 }
 0x45d   : > { %v8765_v17 = vpop.f32.mrb[248].mxu1 }
 0x45e   : > { %v8766_v25 = vpop.f32.mrb[249].mxu1 }
 0x45f   : > { %v8767_v21 = vadd.f32 %v8766_v25, %v8765_v17  ;;  %v8768_v46 = vpop.f32.mrb[250].mxu1 }
 0x460   : > { %v8769_v15 = vpop.f32.mrb[251].mxu1 }
 0x461   : > { %v8770_v50 = vadd.f32 %v8769_v15, %v8768_v46  ;;  %v13885_v4 = vadd.f32 %v8767_v21, %v13754_v3 }
 0x463   : > { %15303 = vst [vmem:[#allocation10_spill] sm:$0xff] %v13885_v4  ;;  %v13888_v63 = vadd.f32 %v8770_v50, %v13762_v29 }
 0x465   : > { %15304 = vst [vmem:[#allocation11_spill] sm:$0xff] %v13888_v63  ;;  %v13890_v28 = vpop.f32.mrb[64].mxu0  ;;  %v8771_v39 = vpop.f32.mrb[252].mxu1 }
 0x466   : > { %v8360_v13 = vadd.f32 -1.0, %v13890_v28  ;;  %v13893_v7 = vpop.f32.mrb[65].mxu0  ;;  %v8772_v12 = vpop.f32.mrb[253].mxu1  ;;  %vm6268_vm5 = vcmp.lt.f32.partialorder %v13890_v28, 1.0 }
 0x467   : > { %v8361_v19 = vadd.f32 -1.0, %v13893_v7  ;;  %v13896_v49 = vpop.f32.mrb[66].mxu0  ;;  %v8773_v36 = vadd.f32 %v8772_v12, %v8771_v39  ;;  %v8774_v55 = vpop.f32.mrb[254].mxu1  ;;  %vm6269_vm6 = vcmp.lt.f32.partialorder %v13893_v7, 1.0 }
 0x468   : > { %v6184_v23 = vmax.f32 %v8360_v13, 1e-10  ;;  %v8367_v3 = vadd.f32 -1.0, %v13896_v49  ;;  %v13899_v59 = vpop.f32.mrb[67].mxu0  ;;  %v8775_v61 = vpop.f32.mrb[255].mxu1  ;;  %vm6275_vm12 = vcmp.lt.f32.partialorder %v13896_v49, 1.0 }
 0x469   : > { %v6185_v29 = vmax.f32 %v8361_v19, 1e-10  ;;  %v8368_v62 = vadd.f32 -1.0, %v13899_v59  ;;  %v8776_v52 = vadd.f32 %v8775_v61, %v8774_v55  ;;  %v13903_v1 = vadd.f32 %v8773_v36, %v13767_v27  ;;  %v15306_v36 = vld [vmem:[#allocation9_spill] sm:$0xff] }
 0x46a   : > { %10255 = vrcp.f32 %v6184_v23  ;;  %v6191_v30 = vmax.f32 %v8367_v3, 1e-10  ;;  %v13920_v3 = vsub.s32 4, %v15306_v36  ;;  %v13924_v61 = vsub.s32 5, %v15306_v36 }
 0x46b   : > { %10257 = vrcp.f32 %v6185_v29  ;;  %v6192_v10 = vmax.f32 %v8368_v62, 1e-10  ;;  %v13906_v17 = vadd.f32 %v8776_v52, %v13775_v31  ;;  %vm6276_vm0 = vcmp.lt.f32.partialorder %v13899_v59, 1.0 }
 0x46c   : > { %10259 = vrcp.f32 %v6191_v30 }
 0x46d   : > { %15305 = vst [vmem:[#allocation17_spill] sm:$0xff] %v13906_v17  ;;  %10261 = vrcp.f32 %v6192_v10  ;;  %v13908_v25 = vpop.f32.mrb[68].mxu0  ;;  %v8777_v46 = vpop.f32.mrb[0].mxu1 }
 0x46e   : > { %v8374_v21 = vadd.f32 -1.0, %v13908_v25  ;;  %v13911_v15 = vpop.f32.mrb[69].mxu0  ;;  %v8778_v13 = vpop.f32.mrb[1].mxu1 }
 0x46f   : > { %v8375_v50 = vadd.f32 -1.0, %v13911_v15  ;;  %v13914_v39 = vpop.f32.mrb[70].mxu0  ;;  %v8779_v19 = vadd.f32 %v8778_v13, %v8777_v46  ;;  %v8780_v31 = vpop.f32.mrb[2].mxu1  ;;  %v13930_v13 = vld [vmem:[%s11828_s11] sm:$0x7f] }
 0x470   : > { %v6198_v27 = vmax.f32 %v8374_v21, 1e-10  ;;  %v8381_v12 = vadd.f32 -1.0, %v13914_v39  ;;  %v13917_v23 = vpop.f32.mrb[71].mxu0  ;;  %v8781_v62 = vpop.f32.mrb[3].mxu1 }
 0x471   : > { %v6199_v55 = vmax.f32 %v8375_v50, 1e-10  ;;  %v8382_v29 = vadd.f32 -1.0, %v13917_v23  ;;  %v8782_v52 = vadd.f32 %v8781_v62, %v8780_v31  ;;  %v13927_v10 = vadd.f32 %v8779_v19, %v13780_v11 }
 0x472   : > { %10263 = vrcp.f32 %v6198_v27  ;;  %v6205_v30 = vmax.f32 %v8381_v12, 1e-10  ;;  %v13934_v50 = vrot.slane %v13930_v13, %v13920_v3  ;;  %v13941_v11 = vrot.slane %v13930_v13, %v13924_v61 }
 0x473   : > { %15307 = vst [vmem:[#allocation18_spill] sm:$0xff] %v13927_v10  ;;  %10265 = vrcp.f32 %v6199_v55  ;;  %v6206_v21 = vmax.f32 %v8382_v29, 1e-10  ;;  %v13937_v63 = vadd.f32 %v8782_v52, %v13788_v48 }
 0x474   : > { %v10256_v46 = vpop.eup %10255  ;;  %10267 = vrcp.f32 %v6205_v30  ;;  %v13946_v30 = vld [vmem:[%s11837_s14] sm:$0x7f] }
 0x475   : > { %15308 = vst [vmem:[#allocation19_spill] sm:$0xff] %v13937_v63  ;;  %v10258_v27 = vpop.eup %10257  ;;  %10269 = vrcp.f32 %v6206_v21  ;;  %v5367_v12 = vpop.f32.mrb[72].mxu0  ;;  %v13950_v10 = vrot.slane %v13946_v30, %v13920_v3  ;;  %v13956_v63 = vrot.slane %v13946_v30, %v13924_v61 }
 0x476   : > { %v10260_v19 = vpop.eup %10259  ;;  %v13943_v31 = vmul.f32 %v10256_v46, %v5367_v12  ;;  %v8783_v55 = vpop.f32.mrb[4].mxu1 }
 0x477   : > { %v5369_v29 = vpop.f32.mrb[73].mxu0  ;;  %v10262_v62 = vpop.eup %10261 }
 0x478   : > { %v13952_v48 = vmul.f32 %v10258_v27, %v5369_v29  ;;  %v8784_v52 = vpop.f32.mrb[5].mxu1  ;;  %v5371_v21 = vpop.f32.mrb[74].mxu0  ;;  %vm6332_vm11 = vcmp.lt.f32.partialorder %v13943_v31, %v13934_v50  ;;  %vm6424_vm2 = vcmp.gt.f32.partialorder %v13943_v31, %v13950_v10 }
 0x479   : > { %v8785_v46 = vadd.f32 %v8784_v52, %v8783_v55  ;;  %v6247_v12 = vmul.f32 %v10260_v19, %v5371_v21  ;;  %v8786_v17 = vpop.f32.mrb[6].mxu1  ;;  %v5373_v4 = vpop.f32.mrb[75].mxu0  ;;  %vm13963_vm4 = vmor %vm6268_vm5, %vm6332_vm11 }
 0x47a   : > { %vm6333_vm3 = vcmp.lt.f32.partialorder %v13952_v48, %v13941_v11  ;;  %v6248_v29 = vmul.f32 %v10262_v62, %v5373_v4  ;;  %v8787_v28 = vpop.f32.mrb[7].mxu1  ;;  %vm6425_vm1 = vcmp.gt.f32.partialorder %v13952_v48, %v13956_v63  ;;  %vm13999_vm11 = vmor %vm13963_vm4, %vm6424_vm2 }
 0x47b   : > { %vm6339_vm10 = vcmp.lt.f32.partialorder %v6247_v12, %v13934_v50  ;;  %vm6431_vm7 = vcmp.gt.f32.partialorder %v6247_v12, %v13950_v10  ;;  %v8788_v19 = vadd.f32 %v8787_v28, %v8786_v17  ;;  %vm13971_vm9 = vmor %vm6269_vm6, %vm6333_vm3  ;;  %v13976_v7 = vadd.f32 %v8785_v46, %v13792_v58 }
 0x47c   : > { %vm6367_vm14 = vmor %vm6275_vm12, %vm6339_vm10  ;;  %vm6340_vm8 = vcmp.lt.f32.partialorder %v6248_v29, %v13941_v11  ;;  %v10264_v4 = vpop.eup %10263  ;;  %vm6432_vm5 = vcmp.gt.f32.partialorder %v6248_v29, %v13956_v63  ;;  %vm6282_vm6 = vcmp.lt.f32.partialorder %v13908_v25, 1.0  ;;  %vm6283_vm12 = vcmp.lt.f32.partialorder %v13911_v15, 1.0 }
 0x47d   : > { %15313 = vst [vmem:[#allocation16_spill] sm:$0xff] %v13976_v7  ;;  %vm6459_vm13 = vmor %vm6367_vm14, %vm6431_vm7  ;;  %v13985_v49 = vadd.f32 %v8788_v19, %v13799_v44  ;;  %v10266_v17 = vpop.eup %10265  ;;  %v5377_v52 = vpop.f32.mrb[76].mxu0  ;;  %vm6289_vm3 = vcmp.lt.f32.partialorder %v13914_v39, 1.0 }
 0x47e   : > { %v6487_v62 = vsel %vm6459_vm13, 100000.0, %v6247_v12  ;;  %vm13987_vm15 = vmor %vm6276_vm0, %vm6340_vm8  ;;  %v10268_v21 = vpop.eup %10267  ;;  %v13992_v46 = vmul.f32 %v10264_v4, %v5377_v52  ;;  %v8789_v59 = vpop.f32.mrb[8].mxu1 }
 0x47f   : > { %15314 = vst [vmem:[#allocation3_spill] sm:$0xff] %v13985_v49  ;;  %v5379_v28 = vpop.f32.mrb[77].mxu0  ;;  %v6516_v12 = vmin.f32 %v13080_v53, %v6487_v62  ;;  %v10270_v19 = vpop.eup %10269  ;;  %vm14013_vm4 = vmor %vm13971_vm9, %vm6425_vm1  ;;  %v6480_v53 = vsel %vm13999_vm11, 100000.0, %v13943_v31  ;;  %vm6290_vm9 = vcmp.lt.f32.partialorder %v13917_v23, 1.0 }
 0x480   : > { %v14006_v4 = vmul.f32 %v10266_v17, %v5379_v28  ;;  %v8790_v52 = vpop.f32.mrb[9].mxu1  ;;  %v5381_v49 = vpop.f32.mrb[78].mxu0  ;;  %vm6346_vm10 = vcmp.lt.f32.partialorder %v13992_v46, %v13934_v50  ;;  %vm14027_vm7 = vmor %vm13987_vm15, %vm6432_vm5  ;;  %v6481_v58 = vsel %vm14013_vm4, 100000.0, %v13952_v48  ;;  %v6507_v44 = vmin.f32 %v13160_v20, %v6480_v53 }
 0x481   : > { %v8791_v17 = vadd.f32 %v8790_v52, %v8789_v59  ;;  %v6261_v62 = vmul.f32 %v10268_v21, %v5381_v49  ;;  %v8792_v28 = vpop.f32.mrb[10].mxu1  ;;  %v5383_v7 = vpop.f32.mrb[79].mxu0  ;;  %vm14034_vm2 = vmor %vm6282_vm6, %vm6346_vm10  ;;  %vm6438_vm1 = vcmp.gt.f32.partialorder %v13992_v46, %v13950_v10 }
 0x482   : > { %vm6347_vm14 = vcmp.lt.f32.partialorder %v14006_v4, %v13941_v11  ;;  %v6262_v49 = vmul.f32 %v10270_v19, %v5383_v7  ;;  %v8793_v21 = vpop.f32.mrb[11].mxu1  ;;  %vm6439_vm6 = vcmp.gt.f32.partialorder %v14006_v4, %v13956_v63  ;;  %v14064_v15 = vmin.f32 %v6507_v44, %v6481_v58 }
 0x483   : > { %vm6353_vm8 = vcmp.lt.f32.partialorder %v6261_v62, %v13934_v50  ;;  %vm6445_vm0 = vcmp.gt.f32.partialorder %v6261_v62, %v13950_v10  ;;  %v8794_v59 = vadd.f32 %v8793_v21, %v8792_v28  ;;  %vm14047_vm13 = vmor %vm6283_vm12, %vm6347_vm14  ;;  %v6488_v50 = vsel %vm14027_vm7, 100000.0, %v6248_v29 }
 0x484   : > { %vm6381_vm15 = vmor %vm6289_vm3, %vm6353_vm8  ;;  %vm6354_vm5 = vcmp.lt.f32.partialorder %v6262_v49, %v13941_v11  ;;  %v14060_v48 = vadd.f32 %v8791_v17, %v13803_v9  ;;  %v14066_v20 = vmin.f32 %v6516_v12, %v6488_v50  ;;  %vm6446_vm4 = vcmp.gt.f32.partialorder %v6262_v49, %v13956_v63 }
 0x485   : > { %vm6473_vm11 = vmor %vm6381_vm15, %vm6445_vm0  ;;  %v14069_v7 = vadd.f32 %v8794_v59, %v13810_v34  ;;  %v14078_v9 = vpop.f32.mrb[80].mxu0  ;;  %v8795_v19 = vpop.f32.mrb[12].mxu1 }
 0x486   : > { %v6501_v39 = vsel %vm6473_vm11, 100000.0, %v6261_v62  ;;  %vm14073_vm12 = vmor %vm6290_vm9, %vm6354_vm5  ;;  %v8390_v29 = vadd.f32 -1.0, %v14078_v9  ;;  %v14081_v52 = vpop.f32.mrb[81].mxu0  ;;  %v8796_v27 = vpop.f32.mrb[13].mxu1  ;;  %vm6665_vm9 = vcmp.lt.f32.partialorder %v14078_v9, 1.0 }
 0x487   : > { %vm14088_vm3 = vmor %vm14034_vm2, %vm6438_vm1  ;;  %v6534_v23 = vmin.f32 %v13073_v40, %v6501_v39  ;;  %v8391_v12 = vadd.f32 -1.0, %v14081_v52  ;;  %v14094_v53 = vpop.f32.mrb[82].mxu0  ;;  %v8797_v40 = vadd.f32 %v8796_v27, %v8795_v19  ;;  %v8798_v55 = vpop.f32.mrb[14].mxu1  ;;  %vm6666_vm8 = vcmp.lt.f32.partialorder %v14081_v52, 1.0 }
 0x488   : > { %vm14101_vm10 = vmor %vm14047_vm13, %vm6439_vm6  ;;  %v6494_v17 = vsel %vm14088_vm3, 100000.0, %v13992_v46  ;;  %v6581_v62 = vmax.f32 %v8390_v29, 1e-10  ;;  %v8397_v28 = vadd.f32 -1.0, %v14094_v53  ;;  %v14109_v31 = vpop.f32.mrb[83].mxu0  ;;  %v8799_v59 = vpop.f32.mrb[15].mxu1 }
 0x489   : > { %vm6474_vm7 = vmor %vm14073_vm12, %vm6446_vm4  ;;  %v6582_v21 = vmax.f32 %v8391_v12, 1e-10  ;;  %v8398_v58 = vadd.f32 -1.0, %v14109_v31  ;;  %v6495_v46 = vsel %vm14101_vm10, 100000.0, %v14006_v4  ;;  %v8800_v44 = vadd.f32 %v8799_v59, %v8798_v55 }
 0x48a   : > { %10271 = vrcp.f32 %v6581_v62  ;;  %v6588_v25 = vmax.f32 %v8397_v28, 1e-10  ;;  %v6525_v50 = vmin.f32 %v13035_v41, %v6494_v17  ;;  %v6502_v29 = vsel %vm6474_vm7, 100000.0, %v6262_v49 }
 0x48b   : > { %10273 = vrcp.f32 %v6582_v21  ;;  %v6589_v39 = vmax.f32 %v8398_v58, 1e-10  ;;  %v14121_v63 = vadd.f32 %v8797_v40, %v13814_v42  ;;  %v14125_v19 = vmin.f32 %v6534_v23, %v6502_v29  ;;  %v14153_v29 = vld [vmem:[%s11837_s14 + $0x7] sm:$0x7f] }
 0x48c   : > { %10275 = vrcp.f32 %v6588_v25  ;;  %v14123_v11 = vmin.f32 %v6525_v50, %v6495_v46  ;;  %v14128_v34 = vadd.f32 %v8800_v44, %v13820_v14  ;;  %v14146_v50 = vld [vmem:[%s11828_s11 + $0x7] sm:$0x7f]  ;;  %vm6672_vm11 = vcmp.lt.f32.partialorder %v14094_v53, 1.0 }
 0x48d   : > { %10277 = vrcp.f32 %v6589_v39  ;;  %v14130_v4 = vpop.f32.mrb[84].mxu0  ;;  %v8801_v41 = vpop.f32.mrb[16].mxu1  ;;  %v14150_v39 = vrot.slane %v14146_v50, %v13920_v3  ;;  %vm6673_vm10 = vcmp.lt.f32.partialorder %v14109_v31, 1.0 }
 0x48e   : > { %v8404_v12 = vadd.f32 -1.0, %v14130_v4  ;;  %v14133_v27 = vpop.f32.mrb[85].mxu0  ;;  %v8802_v42 = vpop.f32.mrb[17].mxu1 }
 0x48f   : > { %v8405_v49 = vadd.f32 -1.0, %v14133_v27  ;;  %v14136_v10 = vpop.f32.mrb[86].mxu0  ;;  %v8803_v23 = vadd.f32 %v8802_v42, %v8801_v41  ;;  %v8804_v14 = vpop.f32.mrb[18].mxu1  ;;  %v14164_v42 = vrot.slane %v14146_v50, %v13924_v61 }
 0x490   : > { %v6595_v17 = vmax.f32 %v8404_v12, 1e-10  ;;  %v8411_v62 = vadd.f32 -1.0, %v14136_v10  ;;  %v14139_v40 = vpop.f32.mrb[87].mxu0  ;;  %v8805_v21 = vpop.f32.mrb[19].mxu1  ;;  %v14157_v12 = vrot.slane %v14153_v29, %v13920_v3 }
 0x491   : > { %v6596_v28 = vmax.f32 %v8405_v49, 1e-10  ;;  %v8412_v55 = vadd.f32 -1.0, %v14139_v40  ;;  %v8806_v59 = vadd.f32 %v8805_v21, %v8804_v14  ;;  %v14143_v46 = vadd.f32 %v8803_v23, %v13824_v5 }
 0x492   : > { %10279 = vrcp.f32 %v6595_v17  ;;  %v6602_v58 = vmax.f32 %v8411_v62, 1e-10 }
 0x493   : > { %10281 = vrcp.f32 %v6596_v28  ;;  %v6603_v25 = vmax.f32 %v8412_v55, 1e-10  ;;  %v14160_v41 = vadd.f32 %v8806_v59, %v13828_v16  ;;  %v14171_v16 = vrot.slane %v14153_v29, %v13924_v61 }
 0x494   : > { %v10272_v44 = vpop.eup %10271  ;;  %10283 = vrcp.f32 %v6602_v58 }
 0x495   : > { %15333 = vst [vmem:[#allocation4_spill] sm:$0xff] %v14160_v41  ;;  %v10274_v5 = vpop.eup %10273  ;;  %10285 = vrcp.f32 %v6603_v25  ;;  %v5407_v49 = vpop.f32.mrb[88].mxu0 }
 0x496   : > { %v10276_v17 = vpop.eup %10275  ;;  %v6637_v23 = vmul.f32 %v10272_v44, %v5407_v49  ;;  %v8807_v62 = vpop.f32.mrb[20].mxu1 }
 0x497   : > { %v5409_v14 = vpop.f32.mrb[89].mxu0  ;;  %v10278_v28 = vpop.eup %10277 }
 0x498   : > { %v14167_v55 = vmul.f32 %v10274_v5, %v5409_v14  ;;  %v8808_v21 = vpop.f32.mrb[21].mxu1  ;;  %v5411_v58 = vpop.f32.mrb[90].mxu0  ;;  %vm6729_vm2 = vcmp.lt.f32.partialorder %v6637_v23, %v14150_v39  ;;  %vm6821_vm14 = vcmp.gt.f32.partialorder %v6637_v23, %v14157_v12 }
 0x499   : > { %v8809_v59 = vadd.f32 %v8808_v21, %v8807_v62  ;;  %v6644_v25 = vmul.f32 %v10276_v17, %v5411_v58  ;;  %v8810_v44 = vpop.f32.mrb[22].mxu1  ;;  %v5413_v49 = vpop.f32.mrb[91].mxu0  ;;  %vm6757_vm0 = vmor %vm6665_vm9, %vm6729_vm2 }
 0x49a   : > { %vm6730_vm13 = vcmp.lt.f32.partialorder %v14167_v55, %v14164_v42  ;;  %v6645_v9 = vmul.f32 %v10278_v28, %v5413_v49  ;;  %v8811_v5 = vpop.f32.mrb[23].mxu1  ;;  %vm6849_vm1 = vmor %vm6757_vm0, %vm6821_vm14  ;;  %vm6822_vm4 = vcmp.gt.f32.partialorder %v14167_v55, %v14171_v16  ;;  %vm6679_vm14 = vcmp.lt.f32.partialorder %v14130_v4, 1.0 }
 0x49b   : > { %vm6736_vm15 = vcmp.lt.f32.partialorder %v6644_v25, %v14150_v39  ;;  %vm6828_vm5 = vcmp.gt.f32.partialorder %v6644_v25, %v14157_v12  ;;  %v8812_v14 = vadd.f32 %v8811_v5, %v8810_v44  ;;  %v14181_v41 = vadd.f32 %v8809_v59, %v13831_v47  ;;  %vm14184_vm6 = vmor %vm6666_vm8, %vm6730_vm13 }
 0x49c   : > { %v6877_v17 = vsel %vm6849_vm1, 100000.0, %v6637_v23  ;;  %vm6737_vm12 = vcmp.lt.f32.partialorder %v6645_v9, %v14164_v42  ;;  %v10280_v62 = vpop.eup %10279  ;;  %vm6764_vm3 = vmor %vm6672_vm11, %vm6736_vm15  ;;  %vm6829_vm9 = vcmp.gt.f32.partialorder %v6645_v9, %v14171_v16  ;;  %vm6680_vm8 = vcmp.lt.f32.partialorder %v14133_v27, 1.0 }
 0x49d   : > { %v6904_v28 = vmin.f32 %v13093_v60, %v6877_v17  ;;  %v14193_v21 = vadd.f32 %v8812_v14, %v13834_v38  ;;  %v10282_v47 = vpop.eup %10281  ;;  %vm14196_vm7 = vmor %vm6764_vm3, %vm6828_vm5  ;;  %v5417_v23 = vpop.f32.mrb[92].mxu0  ;;  %vm6686_vm5 = vcmp.lt.f32.partialorder %v14136_v10, 1.0 }
 0x49e   : > { %v10284_v58 = vpop.eup %10283  ;;  %v6884_v59 = vsel %vm14196_vm7, 100000.0, %v6644_v25  ;;  %vm14203_vm2 = vmor %vm6673_vm10, %vm6737_vm12  ;;  %v6651_v60 = vmul.f32 %v10280_v62, %v5417_v23  ;;  %v8813_v38 = vpop.f32.mrb[24].mxu1 }
 0x49f   : > { %15336 = vst [vmem:[#allocation5_spill] sm:$0xff] %v14193_v21  ;;  %v5419_v49 = vpop.f32.mrb[93].mxu0  ;;  %v10286_v5 = vpop.eup %10285  ;;  %vm14214_vm0 = vmor %vm14184_vm6, %vm6822_vm4  ;;  %v6913_v62 = vmin.f32 %v13162_v35, %v6884_v59 }
 0x4a0   : > { %v6652_v31 = vmul.f32 %v10282_v47, %v5419_v49  ;;  %v8814_v14 = vpop.f32.mrb[25].mxu1  ;;  %v5421_v17 = vpop.f32.mrb[94].mxu0  ;;  %vm6743_vm13 = vcmp.lt.f32.partialorder %v6651_v60, %v14150_v39  ;;  %vm6835_vm1 = vcmp.gt.f32.partialorder %v6651_v60, %v14157_v12  ;;  %vm14225_vm15 = vmor %vm14203_vm2, %vm6829_vm9 }
 0x4a1   : > { %v8815_v53 = vadd.f32 %v8814_v14, %v8813_v38  ;;  %v6658_v23 = vmul.f32 %v10284_v58, %v5421_v17  ;;  %v8816_v47 = vpop.f32.mrb[26].mxu1  ;;  %v5423_v49 = vpop.f32.mrb[95].mxu0  ;;  %vm6771_vm11 = vmor %vm6679_vm14, %vm6743_vm13  ;;  %v6878_v58 = vsel %vm14214_vm0, 100000.0, %v14167_v55  ;;  %v6885_v55 = vsel %vm14225_vm15, 100000.0, %v6645_v9 }
 0x4a2   : > { %vm6744_vm6 = vcmp.lt.f32.partialorder %v6652_v31, %v14164_v42  ;;  %v6659_v35 = vmul.f32 %v10286_v5, %v5423_v49  ;;  %v8817_v59 = vpop.f32.mrb[27].mxu1  ;;  %vm6863_vm12 = vmor %vm6771_vm11, %vm6835_vm1  ;;  %v14238_v38 = vmin.f32 %v6904_v28, %v6878_v58  ;;  %vm6836_vm7 = vcmp.gt.f32.partialorder %v6652_v31, %v14171_v16 }
 0x4a3   : > { %vm6750_vm4 = vcmp.lt.f32.partialorder %v6658_v23, %v14150_v39  ;;  %vm6842_vm3 = vcmp.gt.f32.partialorder %v6658_v23, %v14157_v12  ;;  %v8818_v44 = vadd.f32 %v8817_v59, %v8816_v47  ;;  %v6891_v14 = vsel %vm6863_vm12, 100000.0, %v6651_v60  ;;  %vm14242_vm10 = vmor %vm6680_vm8, %vm6744_vm6 }
 0x4a4   : > { %15345 = vst [vmem:[#allocation9_spill] sm:$0xff] %v14238_v38  ;;  %vm6751_vm9 = vcmp.lt.f32.partialorder %v6659_v35, %v14164_v42  ;;  %vm6778_vm2 = vmor %vm6686_vm5, %vm6750_vm4  ;;  %v6922_v39 = vmin.f32 %v13205_v33, %v6891_v14  ;;  %v14253_v12 = vmin.f32 %v6913_v62, %v6885_v55  ;;  %v14256_v27 = vadd.f32 %v8815_v53, %v13837_v32 }
 0x4a5   : > { %v14259_v28 = vadd.f32 %v8818_v44, %v13840_v45  ;;  %vm6687_vm14 = vcmp.lt.f32.partialorder %v14139_v40, 1.0  ;;  %vm6870_vm8 = vmor %vm6778_vm2, %vm6842_vm3  ;;  %vm6843_vm0 = vcmp.gt.f32.partialorder %v6659_v35, %v14171_v16  ;;  %v14263_v42 = vpop.f32.mrb[96].mxu0  ;;  %v8819_v33 = vpop.f32.mrb[28].mxu1  ;;  %v15351_v45 = vld [vmem:[#allocation20_spill] sm:$0xff] }
 0x4a6   : > { %15348 = vst [vmem:[#allocation21_spill] sm:$0xff] %v14253_v12  ;;  %15349 = vst [vmem:[#allocation22_spill] sm:$0xff] %v14256_v27  ;;  %v6898_v9 = vsel %vm6870_vm8, 100000.0, %v6658_v23  ;;  %v8424_v10 = vadd.f32 -1.0, %v14263_v42  ;;  %v14266_v60 = vpop.f32.mrb[97].mxu0  ;;  %v8820_v5 = vpop.f32.mrb[29].mxu1 }
 0x4a7   : > { %15350 = vst [vmem:[#allocation23_spill] sm:$0xff] %v14259_v28  ;;  %vm6779_vm13 = vmor %vm6687_vm14, %vm6751_vm9  ;;  %v8425_v32 = vadd.f32 -1.0, %v14266_v60  ;;  %v14269_v17 = vpop.f32.mrb[98].mxu0  ;;  %v6931_v40 = vmin.f32 %v15351_v45, %v6898_v9  ;;  %v8821_v62 = vadd.f32 %v8820_v5, %v8819_v33  ;;  %v8822_v23 = vpop.f32.mrb[30].mxu1  ;;  %v14342_v12 = vsub.s32 6, %v15306_v36 }
 0x4a8   : > { %vm6864_vm1 = vmor %vm14242_vm10, %vm6836_vm7  ;;  %v6978_v25 = vmax.f32 %v8424_v10, 1e-10  ;;  %v8431_v53 = vadd.f32 -1.0, %v14269_v17  ;;  %v14277_v47 = vpop.f32.mrb[99].mxu0  ;;  %v8823_v59 = vpop.f32.mrb[31].mxu1  ;;  %vm7062_vm5 = vcmp.lt.f32.partialorder %v14263_v42, 1.0 }
 0x4a9   : > { %vm6871_vm15 = vmor %vm6779_vm13, %vm6843_vm0  ;;  %v6979_v49 = vmax.f32 %v8425_v32, 1e-10  ;;  %v8432_v52 = vadd.f32 -1.0, %v14277_v47  ;;  %v6892_v58 = vsel %vm6864_vm1, 100000.0, %v6652_v31  ;;  %v8824_v14 = vadd.f32 %v8823_v59, %v8822_v23 }
 0x4aa   : > { %10287 = vrcp.f32 %v6978_v25  ;;  %v6985_v44 = vmax.f32 %v8431_v53, 1e-10  ;;  %v14282_v4 = vmin.f32 %v6922_v39, %v6892_v58  ;;  %v6899_v9 = vsel %vm6871_vm15, 100000.0, %v6659_v35  ;;  %v14314_v58 = vld [vmem:[%s11828_s11 + $0xe] sm:$0x7f] }
 0x4ab   : > { %10289 = vrcp.f32 %v6979_v49  ;;  %v6986_v55 = vmax.f32 %v8432_v52, 1e-10  ;;  %v14285_v10 = vadd.f32 %v8821_v62, %v13843_v57  ;;  %v14287_v33 = vmin.f32 %v6931_v40, %v6899_v9 }
 0x4ac   : > { %10291 = vrcp.f32 %v6985_v44  ;;  %v14290_v16 = vadd.f32 %v8824_v14, %v13846_v43  ;;  %v14318_v44 = vrot.slane %v14314_v58, %v13920_v3  ;;  %vm7063_vm11 = vcmp.lt.f32.partialorder %v14266_v60, 1.0 }
 0x4ad   : > { %15352 = vst [vmem:[#allocation20_spill] sm:$0xff] %v14285_v10  ;;  %15353 = vst [vmem:[#allocation24_spill] sm:$0xff] %v14287_v33  ;;  %10293 = vrcp.f32 %v6986_v55  ;;  %v14292_v32 = vpop.f32.mrb[100].mxu0  ;;  %v8849_v39 = vpop.f32.mrb[32].mxu1  ;;  %v14322_v55 = vld [vmem:[%s11837_s14 + $0xe] sm:$0x7f] }
 0x4ae   : > { %15354 = vst [vmem:[#allocation25_spill] sm:$0xff] %v14290_v16  ;;  %v8438_v31 = vadd.f32 -1.0, %v14292_v32  ;;  %v14295_v5 = vpop.f32.mrb[101].mxu0  ;;  %v14298_v35 = vadd.f32 %v8849_v39, %v13855_v51  ;;  %v6023_v45 = vpop.f32.mrb[33].mxu1  ;;  %v14326_v9 = vrot.slane %v14322_v55, %v13920_v3  ;;  %v14331_v39 = vrot.slane %v14314_v58, %v13924_v61 }
 0x4af   : > { %v8439_v57 = vadd.f32 -1.0, %v14295_v5  ;;  %v14301_v40 = vpop.f32.mrb[102].mxu0  ;;  %v14304_v25 = vadd.f32 %v6023_v45, %v13849_v22  ;;  %v8850_v53 = vpop.f32.mrb[34].mxu1  ;;  %vm7069_vm3 = vcmp.lt.f32.partialorder %v14269_v17, 1.0  ;;  %vm7070_vm1 = vcmp.lt.f32.partialorder %v14277_v47, 1.0 }
 0x4b0   : > { %v6992_v43 = vmax.f32 %v8438_v31, 1e-10  ;;  %v8445_v62 = vadd.f32 -1.0, %v14301_v40  ;;  %v14307_v23 = vpop.f32.mrb[103].mxu0  ;;  %v8376_v49 = vadd.f32 -1.0, %v14298_v35  ;;  %v14311_v51 = vadd.f32 %v8850_v53, %v13858_v54  ;;  %v6026_v59 = vpop.f32.mrb[35].mxu1 }
 0x4b1   : > { %v6993_v52 = vmax.f32 %v8439_v57, 1e-10  ;;  %v8362_v22 = vadd.f32 -1.0, %v14304_v25 }
 0x4b2   : > { %10295 = vrcp.f32 %v6992_v43  ;;  %v6999_v14 = vmax.f32 %v8445_v62, 1e-10  ;;  %v6200_v31 = vmax.f32 %v8376_v49, 1e-10  ;;  %v8383_v54 = vadd.f32 -1.0, %v14311_v51 }
 0x4b3   : > { %10297 = vrcp.f32 %v6993_v52  ;;  %v6186_v45 = vmax.f32 %v8362_v22, 1e-10  ;;  %v8446_v43 = vadd.f32 -1.0, %v14307_v23  ;;  %v14336_v62 = vrot.slane %v14322_v55, %v13924_v61 }
 0x4b4   : > { %v10288_v57 = vpop.eup %10287  ;;  %10299 = vrcp.f32 %v6999_v14  ;;  %v6207_v28 = vmax.f32 %v8383_v54, 1e-10  ;;  %v14339_v49 = vadd.f32 %v6026_v59, %v13852_v0 }
 0x4b5   : > { %v10290_v53 = vpop.eup %10289  ;;  %10301 = vrcp.f32 %v6200_v31  ;;  %v5447_v52 = vpop.f32.mrb[104].mxu0  ;;  %v7000_v22 = vmax.f32 %v8446_v43, 1e-10 }
 0x4b6   : > { %v10292_v16 = vpop.eup %10291  ;;  %10303 = vrcp.f32 %v6186_v45  ;;  %v7034_v14 = vmul.f32 %v10288_v57, %v5447_v52  ;;  %v8853_v27 = vpop.f32.mrb[36].mxu1  ;;  %v8369_v31 = vadd.f32 -1.0, %v14339_v49 }
 0x4b7   : > { %v5449_v10 = vpop.f32.mrb[105].mxu0  ;;  %v10294_v21 = vpop.eup %10293  ;;  %10305 = vrcp.f32 %v6207_v28  ;;  %v6048_v0 = vadd.f32 %v8853_v27, %v13867_v37 }
 0x4b8   : > { %v6039_v59 = vpop.f32.mrb[37].mxu1  ;;  %v5451_v54 = vpop.f32.mrb[106].mxu0  ;;  %10307 = vrcp.f32 %v7000_v22  ;;  %vm7126_vm6 = vcmp.lt.f32.partialorder %v7034_v14, %v14318_v44  ;;  %vm7218_vm12 = vcmp.gt.f32.partialorder %v7034_v14, %v14326_v9  ;;  %v14350_v36 = vmul.f32 %v10290_v53, %v5449_v10 }
 0x4b9   : > { %v8854_v57 = vpop.f32.mrb[38].mxu1  ;;  %v5453_v45 = vpop.f32.mrb[107].mxu0  ;;  %v6193_v43 = vmax.f32 %v8369_v31, 1e-10  ;;  %vm7154_vm4 = vmor %vm7062_vm5, %vm7126_vm6  ;;  %v6040_v28 = vadd.f32 %v6039_v59, %v13861_v2  ;;  %v7041_v52 = vmul.f32 %v10292_v16, %v5451_v54 }
 0x4ba   : > { %15355 = vst [vmem:[#allocation26_spill] sm:$0xff] %v14350_v36  ;;  %v6051_v37 = vadd.f32 %v8854_v57, %v13870_v6  ;;  %v6042_v27 = vpop.f32.mrb[39].mxu1  ;;  %vm7246_vm10 = vmor %vm7154_vm4, %vm7218_vm12  ;;  %vm7127_vm7 = vcmp.lt.f32.partialorder %v14350_v36, %v14331_v39  ;;  %v14359_v10 = vmul.f32 %v10294_v21, %v5453_v45  ;;  %vm7219_vm8 = vcmp.gt.f32.partialorder %v14350_v36, %v14336_v62  ;;  %v15359_v21 = vld [vmem:[#allocation12_spill] sm:$0xff] }
 0x4bb   : > { %v14362_v53 = vadd.f32 %v6042_v27, %v13864_v8  ;;  %10309 = vrcp.f32 %v6193_v43  ;;  %v7274_v42 = vsel %vm7246_vm10, 100000.0, %v7034_v14  ;;  %vm14366_vm9 = vmor %vm7063_vm11, %vm7127_vm7  ;;  %vm7133_vm2 = vcmp.lt.f32.partialorder %v7041_v52, %v14318_v44  ;;  %v14411_v43 = vld [vmem:[%s11837_s14 + $0x15] sm:$0x7f] }
 0x4bc   : > { %15356 = vst [vmem:[#allocation27_spill] sm:$0xff] %v14359_v10  ;;  %vm7225_vm14 = vcmp.gt.f32.partialorder %v7041_v52, %v14326_v9  ;;  %v10296_v6 = vpop.eup %10295  ;;  %vm7161_vm0 = vmor %vm7069_vm3, %vm7133_vm2  ;;  %vm7134_vm13 = vcmp.lt.f32.partialorder %v14359_v10, %v14331_v39  ;;  %v14378_v8 = vrot.slane %v13930_v13, %v14342_v12  ;;  %v14381_v60 = vmin.f32 %v15359_v21, %v7274_v42  ;;  %v14395_v13 = vld [vmem:[%s11828_s11 + $0x15] sm:$0x7f] }
 0x4bd   : > { %v10298_v17 = vpop.eup %10297  ;;  %vm14384_vm15 = vmor %vm7161_vm0, %vm7225_vm14  ;;  %vm7226_vm5 = vcmp.gt.f32.partialorder %v14359_v10, %v14336_v62  ;;  %v5457_v22 = vpop.f32.mrb[108].mxu0  ;;  %v14392_v14 = vrot.slane %v13946_v30, %v14342_v12  ;;  %v14399_v31 = vrot.slane %v14395_v13, %v13920_v3  ;;  %vm7076_vm11 = vcmp.lt.f32.partialorder %v14292_v32, 1.0  ;;  %v15388_v10 = vld [vmem:[#allocation10_spill] sm:$0xff] }
 0x4be   : > { %15360 = vst [vmem:[#allocation12_spill] sm:$0xff] %v14381_v60  ;;  %v10300_v59 = vpop.eup %10299  ;;  %v7281_v47 = vsel %vm14384_vm15, 100000.0, %v7041_v52  ;;  %vm14404_vm6 = vmor %vm7070_vm1, %vm7134_vm13  ;;  %v14408_v57 = vmul.f32 %v10296_v6, %v5457_v22  ;;  %v8857_v30 = vpop.f32.mrb[40].mxu1  ;;  %v14415_v27 = vrot.slane %v14411_v43, %v13920_v3  ;;  %vm7077_vm12 = vcmp.lt.f32.partialorder %v14295_v5, 1.0  ;;  %v15369_v3 = vld [vmem:[#allocation13_spill] sm:$0xff] }
 0x4bf   : > { %v5459_v45 = vpop.f32.mrb[109].mxu0  ;;  %v10302_v42 = vpop.eup %10301  ;;  %v14419_v21 = vadd.f32 %v8857_v30, %v13879_v26  ;;  %vm14428_vm4 = vmor %vm14366_vm9, %vm7219_vm8  ;;  %v15366_v6 = vmov 0  ;;  %v14433_v22 = vmin.f32 %v15369_v3, %v7281_v47  ;;  %v15371_v47 = vmov 0 }
 0x4c0   : > { %15365 = vst [vmem:[#allocation28_spill] sm:$0xff] %v14408_v57  ;;  %v14421_v52 = vmul.f32 %v10298_v17, %v5459_v45  ;;  %v6055_v16 = vpop.f32.mrb[41].mxu1  ;;  %v5461_v60 = vpop.f32.mrb[110].mxu0  ;;  %v15367_v6 = vsel %vm14428_vm4, 4294967295, %v15366_v6  ;;  %v14435_v33 = vmul.f32 %v10302_v42, %v6048_v0  ;;  %vm7140_vm3 = vcmp.lt.f32.partialorder %v14408_v57, %v14318_v44  ;;  %vm14449_vm7 = vmor %vm14404_vm6, %vm7226_vm5 }
 0x4c1   : > { %15368 = vst [vmem:[#allocation29_spill] sm:$0xff] %v15367_v6  ;;  %15370 = vst [vmem:[#allocation13_spill] sm:$0xff] %v14433_v22  ;;  %v10304_v38 = vpop.eup %10303  ;;  %vm7232_vm10 = vcmp.gt.f32.partialorder %v14408_v57, %v14326_v9  ;;  %v14442_v26 = vadd.f32 %v6055_v16, %v13873_v56  ;;  %v8858_v2 = vpop.f32.mrb[42].mxu1  ;;  %v15372_v47 = vsel %vm14449_vm7, 4294967295, %v15371_v47  ;;  %vm7083_vm9 = vcmp.lt.f32.partialorder %v14301_v40, 1.0 }
 0x4c2   : > { %v5463_v17 = vpop.f32.mrb[111].mxu0  ;;  %15373 = vst [vmem:[#allocation30_spill] sm:$0xff] %v15372_v47  ;;  %v10306_v0 = vpop.eup %10305  ;;  %v14454_v30 = vmul.f32 %v10304_v38, %v6040_v28  ;;  %vm7168_vm2 = vmor %vm7076_vm11, %vm7140_vm3  ;;  %v8406_v56 = vadd.f32 -1.0, %v14419_v21  ;;  %vm7141_vm14 = vcmp.lt.f32.partialorder %v14421_v52, %v14331_v39  ;;  %vm6284_vm8 = vcmp.lt.f32.partialorder %v14298_v35, 1.0 }
 0x4c3   : > { %v6058_v45 = vpop.f32.mrb[43].mxu1  ;;  %v10308_v42 = vpop.eup %10307  ;;  %v14462_v54 = vmul.f32 %v10306_v0, %v6051_v37  ;;  %vm14467_vm0 = vmor %vm7168_vm2, %vm7232_vm10  ;;  %vm7233_vm13 = vcmp.gt.f32.partialorder %v14421_v52, %v14336_v62  ;;  %v8392_v32 = vadd.f32 -1.0, %v14442_v26  ;;  %v14479_v37 = vmul.f32 %v10300_v59, %v5461_v60 }
 0x4c4   : > { %v6597_v16 = vmax.f32 %v8406_v56, 1e-10  ;;  %vm7169_vm1 = vmor %vm7077_vm12, %vm7141_vm14  ;;  %v14482_v3 = vadd.f32 %v8858_v2, %v13882_v18  ;;  %v14484_v22 = vmul.f32 %v10308_v42, %v5463_v17  ;;  %v14487_v47 = vadd.f32 %v6058_v45, %v13876_v24 }
 0x4c5   : > { %15376 = vst [vmem:[#allocation31_spill] sm:$0xff] %v14479_v37  ;;  %v6583_v0 = vmax.f32 %v8392_v32, 1e-10  ;;  %vm6348_vm15 = vcmp.lt.f32.partialorder %v14435_v33, %v14378_v8  ;;  %vm14491_vm5 = vmor %vm7169_vm1, %vm7233_vm13  ;;  %v10310_v5 = vpop.eup %10309  ;;  %vm7147_vm11 = vcmp.lt.f32.partialorder %v14479_v37, %v14318_v44  ;;  %vm7239_vm6 = vcmp.gt.f32.partialorder %v14479_v37, %v14326_v9  ;;  %v14500_v60 = vpop.f32.mrb[112].mxu0  ;;  %v15390_v37 = vld [vmem:[#allocation11_spill] sm:$0xff] }
 0x4c6   : > { %15377 = vst [vmem:[#allocation32_spill] sm:$0xff] %v14484_v22  ;;  %10311 = vrcp.f32 %v6597_v16  ;;  %v8413_v18 = vadd.f32 -1.0, %v14482_v3  ;;  %vm14504_vm12 = vmor %vm6284_vm8, %vm6348_vm15  ;;  %v14509_v59 = vmul.f32 %v10310_v5, %v14362_v53  ;;  %vm7148_vm10 = vcmp.lt.f32.partialorder %v14484_v22, %v14331_v39  ;;  %v8861_v44 = vpop.f32.mrb[44].mxu1  ;;  %v14515_v9 = vpop.f32.mrb[113].mxu0 }
 0x4c7   : > { %10313 = vrcp.f32 %v6583_v0  ;;  %vm7175_vm3 = vmor %vm7083_vm9, %vm7147_vm11  ;;  %v14519_v35 = vrot.slane %v14395_v13, %v13924_v61  ;;  %vm7084_vm2 = vcmp.lt.f32.partialorder %v14307_v23, 1.0  ;;  %v15382_v2 = vmov 0  ;;  %v6071_v39 = vpop.f32.mrb[45].mxu1  ;;  %v14529_v17 = vpop.f32.mrb[114].mxu0 }
 0x4c8   : > { %vm14522_vm14 = vmor %vm7175_vm3, %vm7239_vm6  ;;  %v6604_v53 = vmax.f32 %v8413_v18, 1e-10  ;;  %vm7240_vm9 = vcmp.gt.f32.partialorder %v14484_v22, %v14336_v62  ;;  %v8399_v40 = vadd.f32 -1.0, %v14487_v47  ;;  %v8458_v23 = vadd.f32 -1.0, %v14500_v60  ;;  %v8862_v42 = vpop.f32.mrb[46].mxu1  ;;  %v14536_v32 = vpop.f32.mrb[115].mxu0 }
 0x4c9   : > { %v15383_v2 = vsel %vm14522_vm14, 4294967295, %v15382_v2  ;;  %vm7176_vm8 = vmor %vm7084_vm2, %vm7148_vm10  ;;  %v6080_v45 = vadd.f32 %v8861_v44, %v13903_v1  ;;  %v14540_v16 = vrot.slane %v14411_v43, %v13924_v61  ;;  %v8459_v5 = vadd.f32 -1.0, %v14515_v9  ;;  %v6074_v18 = vpop.f32.mrb[47].mxu1 }
 0x4ca   : > { %15384 = vst [vmem:[#allocation33_spill] sm:$0xff] %v15383_v2  ;;  %10315 = vrcp.f32 %v6604_v53  ;;  %v6590_v0 = vmax.f32 %v8399_v40, 1e-10  ;;  %v14545_v56 = vrot.slane %v14146_v50, %v14342_v12  ;;  %vm14550_vm13 = vmor %vm7176_vm8, %vm7240_vm9  ;;  %v15385_v1 = vmov 0  ;;  %v15389_v50 = vld [vmem:[#allocation17_spill] sm:$0xff] }
 0x4cb   : > { %v15386_v1 = vsel %vm14550_vm13, 4294967295, %v15385_v1  ;;  %v7375_v44 = vmax.f32 %v8458_v23, 1e-10  ;;  %v6072_v61 = vadd.f32 %v6071_v39, %v15388_v10  ;;  %v8465_v53 = vadd.f32 -1.0, %v14529_v17 }
 0x4cc   : > { %15387 = vst [vmem:[#allocation34_spill] sm:$0xff] %v15386_v1  ;;  %v14558_v40 = vrot.slane %v14153_v29, %v14342_v12  ;;  %10317 = vrcp.f32 %v6590_v0  ;;  %v7376_v6 = vmax.f32 %v8459_v5, 1e-10  ;;  %v6083_v36 = vadd.f32 %v8862_v42, %v15389_v50  ;;  %v15457_v38 = vld [vmem:[#allocation31_spill] sm:$0xff] }
 0x4cd   : > { %v14562_v2 = vadd.f32 %v6074_v18, %v15390_v37  ;;  %vm6270_vm1 = vcmp.lt.f32.partialorder %v14304_v25, 1.0  ;;  %v7382_v62 = vmax.f32 %v8465_v53, 1e-10  ;;  %vm6440_vm15 = vcmp.gt.f32.partialorder %v14435_v33, %v14392_v14  ;;  %v14575_v29 = vpop.f32.mrb[116].mxu0  ;;  %v8865_v39 = vpop.f32.mrb[48].mxu1 }
 0x4ce   : > { %v8466_v10 = vadd.f32 -1.0, %v14536_v32  ;;  %vm6291_vm11 = vcmp.lt.f32.partialorder %v14311_v51, 1.0  ;;  %10319 = vrcp.f32 %v7375_v44  ;;  %vm6468_vm6 = vmor %vm14504_vm12, %vm6440_vm15  ;;  %vm6334_vm3 = vcmp.lt.f32.partialorder %v14454_v30, %v14378_v8  ;;  %v14580_v23 = vpop.f32.mrb[117].mxu0  ;;  %v6087_v5 = vpop.f32.mrb[49].mxu1 }
 0x4cf   : > { %vm6426_vm10 = vcmp.gt.f32.partialorder %v14454_v30, %v14392_v14  ;;  %10321 = vrcp.f32 %v7376_v6  ;;  %v6496_v25 = vsel %vm6468_vm6, 100000.0, %v14435_v33  ;;  %vm6362_vm2 = vmor %vm6270_vm1, %vm6334_vm3  ;;  %vm6355_vm9 = vcmp.lt.f32.partialorder %v14462_v54, %v14378_v8  ;;  %v15394_v6 = vld [vmem:[#allocation16_spill] sm:$0xff]  ;;  %v14594_v18 = vpop.f32.mrb[118].mxu0 }
 0x4d0   : > { %v7383_v37 = vmax.f32 %v8466_v10, 1e-10  ;;  %v10312_v24 = vpop.eup %10311  ;;  %vm15391_vm12 = vcmask 138240   ;;  %vm14583_vm8 = vmor %vm6362_vm2, %vm6426_vm10  ;;  %vm6447_vm15 = vcmp.gt.f32.partialorder %v14462_v54, %v14392_v14  ;;  %v14590_v33 = vadd.f32 %v8865_v39, %v15394_v6  ;;  %v14607_v39 = vpop.f32.mrb[119].mxu0 }
 0x4d1   : > { %v6527_v42 = vsel %vm15391_vm12, %v6496_v25, inf  ;;  %vm6341_vm1 = vcmp.lt.f32.partialorder %v14509_v59, %v14378_v8  ;;  %v10314_v44 = vpop.eup %10313  ;;  %v14596_v53 = vmul.f32 %v10312_v24, %v6080_v45  ;;  %10323 = vrcp.f32 %v7382_v62  ;;  %vm6383_vm6 = vmor %vm6291_vm11, %vm6355_vm9  ;;  %v8866_v25 = vpop.f32.mrb[50].mxu1 }
 0x4d2   : > { %v6528_v50 = vmin.f32 %v14123_v11, %v6527_v42  ;;  %v6482_v10 = vsel %vm14583_vm8, 100000.0, %v14454_v30  ;;  %vm6277_vm3 = vcmp.lt.f32.partialorder %v14339_v49, 1.0  ;;  %v14610_v45 = vmul.f32 %v10314_v44, %v6072_v61  ;;  %vm15395_vm10 = vmmov %vm15391_vm12  ;;  %v6090_v30 = vpop.f32.mrb[51].mxu1 }
 0x4d3   : > { %v6509_v62 = vsel %vm15395_vm10, %v6482_v10, inf  ;;  %vm6475_vm2 = vmor %vm6383_vm6, %vm6447_vm15  ;;  %v8440_v11 = vadd.f32 -1.0, %v14590_v33  ;;  %vm6433_vm9 = vcmp.gt.f32.partialorder %v14509_v59, %v14392_v14  ;;  %v8472_v49 = vadd.f32 -1.0, %v14575_v29 }
 0x4d4   : > { %6529 = vmin.xlane.f32.xlu1 %v6528_v50  ;;  %v6510_v51 = vmin.f32 %v14064_v15, %v6509_v62  ;;  %v6503_v24 = vsel %vm6475_vm2, 100000.0, %v14462_v54  ;;  %vm6369_vm11 = vmor %vm6277_vm3, %vm6341_vm1  ;;  %v10316_v61 = vpop.eup %10315  ;;  %10325 = vrcp.f32 %v7383_v37  ;;  %v8473_v6 = vadd.f32 -1.0, %v14580_v23 }
 0x4d5   : > { %vm15396_vm12 = vmmov %vm15395_vm10  ;;  %v6994_v0 = vmax.f32 %v8440_v11, 1e-10  ;;  %v14627_v15 = vmul.f32 %v10316_v61, %v6083_v36  ;;  %v7389_v44 = vmax.f32 %v8472_v49, 1e-10  ;;  %v5487_v37 = vpop.f32.mrb[120].mxu0  ;;  %v14634_v62 = vrot.slane %v14314_v58, %v14342_v12 }
 0x4d6   : > { %v6536_v42 = vsel %vm15396_vm12, %v6503_v24, inf  ;;  %vm6461_vm8 = vmor %vm6369_vm11, %vm6433_vm9  ;;  %6511 = vmin.xlane.f32.xlu0 %v6510_v51  ;;  %v10318_v50 = vpop.eup %10317  ;;  %v7390_v10 = vmax.f32 %v8473_v6, 1e-10  ;;  %v8869_v51 = vpop.f32.mrb[52].mxu1  ;;  %v8479_v61 = vadd.f32 -1.0, %v14594_v18  ;;  %vm7459_vm1 = vcmp.lt.f32.partialorder %v14500_v60, 1.0 }
 0x4d7   : > { %v6537_v54 = vmin.f32 %v14125_v19, %v6536_v42  ;;  %v6489_v8 = vsel %vm6461_vm8, 100000.0, %v14509_v59  ;;  %10327 = vrcp.f32 %v6994_v0  ;;  %vm15397_vm15 = vmmov %vm15395_vm10  ;;  %v14637_v11 = vmul.f32 %v10318_v50, %v14562_v2  ;;  %v15398_v19 = vld [vmem:[#allocation18_spill] sm:$0xff]  ;;  %v5489_v24 = vpop.f32.mrb[121].mxu0  ;;  %v15399_v42 = vld [vmem:[#allocation3_spill] sm:$0xff]  ;;  %v6103_v58 = vpop.f32.mrb[53].mxu1 }
 0x4d8   : > { %v6518_v14 = vsel %vm15397_vm15, %v6489_v8, inf  ;;  %10329 = vrcp.f32 %v7389_v44  ;;  %v14641_v59 = vadd.f32 %v6087_v5, %v15398_v19  ;;  %v10320_v49 = vpop.eup %10319  ;;  %v14645_v0 = vadd.f32 %v8866_v25, %v15399_v42  ;;  %v5491_v6 = vpop.f32.mrb[122].mxu0 }
 0x4d9   : > { %6538 = vmin.xlane.f32.xlu1 %v6537_v54  ;;  %v6519_v36 = vmin.f32 %v14066_v20, %v6518_v14  ;;  %v14649_v2 = vrot.slane %v14322_v55, %v14342_v12  ;;  %v14653_v20 = vrot.slane %v14395_v13, %v14342_v12  ;;  %v10322_v5 = vpop.eup %10321  ;;  %v8480_v8 = vadd.f32 -1.0, %v14607_v39  ;;  %v8870_v25 = vpop.f32.mrb[54].mxu1  ;;  %v15401_v14 = vld [vmem:[#allocation19_spill] sm:$0xff] }
 0x4da   : > { %v8426_v54 = vadd.f32 -1.0, %v14641_v59  ;;  %v5493_v44 = vpop.f32.mrb[123].mxu0  ;;  %v14660_v50 = vrot.slane %v14411_v43, %v14342_v12  ;;  %10331 = vrcp.f32 %v7390_v10  ;;  %v7396_v55 = vmax.f32 %v8479_v61, 1e-10 }
 0x4db   : > { %15400 = vst [vmem:[#allocation10_spill] sm:$0xff] %v14653_v20  ;;  %6520 = vmin.xlane.f32.xlu0 %v6519_v36  ;;  %v8447_v13 = vadd.f32 -1.0, %v14645_v0  ;;  %v14665_v19 = vadd.f32 %v6090_v30, %v15401_v14  ;;  %v6106_v36 = vpop.f32.mrb[55].mxu1  ;;  %v10324_v42 = vpop.eup %10323  ;;  %v7397_v1 = vmax.f32 %v8480_v8, 1e-10  ;;  %v14667_v22 = vmul.f32 %v10320_v49, %v5487_v37 }
 0x4dc   : > { %v6980_v20 = vmax.f32 %v8426_v54, 1e-10  ;;  %v6112_v57 = vadd.f32 %v8869_v51, %v14121_v63  ;;  %vm7460_vm3 = vcmp.lt.f32.partialorder %v14515_v9, 1.0  ;;  %10333 = vrcp.f32 %v7396_v55 }
 0x4dd   : > { %v7001_v12 = vmax.f32 %v8447_v13, 1e-10  ;;  %v8433_v43 = vadd.f32 -1.0, %v14665_v19  ;;  %vm7523_vm10 = vcmp.lt.f32.partialorder %v14667_v22, %v14399_v31  ;;  %vm7615_vm2 = vcmp.gt.f32.partialorder %v14667_v22, %v14415_v27  ;;  %v5497_v49 = vpop.f32.mrb[124].mxu0  ;;  %v8873_v60 = vpop.f32.mrb[56].mxu1 }
 0x4de   : > { %10335 = vrcp.f32 %v6980_v20  ;;  %v14676_v30 = vmul.f32 %v10322_v5, %v5489_v24  ;;  %v10326_v10 = vpop.eup %10325  ;;  %vm7551_vm11 = vmor %vm7459_vm1, %vm7523_vm10  ;;  %v14681_v63 = vadd.f32 %v6103_v58, %v14060_v48  ;;  %v14683_v51 = vmul.f32 %v10324_v42, %v5491_v6  ;;  %v5499_v20 = vpop.f32.mrb[125].mxu0 }
 0x4df   : > { %10337 = vrcp.f32 %v7001_v12  ;;  %v6987_v37 = vmax.f32 %v8433_v43, 1e-10  ;;  %vm7466_vm9 = vcmp.lt.f32.partialorder %v14529_v17, 1.0  ;;  %vm14686_vm12 = vmor %vm7551_vm11, %vm7615_vm2  ;;  %v14693_v24 = vadd.f32 %v8870_v25, %v14128_v34  ;;  %v6119_v34 = vpop.f32.mrb[57].mxu1  ;;  %v5501_v6 = vpop.f32.mrb[126].mxu0 }
 0x4e0   : > { %10339 = vrcp.f32 %v7397_v1  ;;  %vm7524_vm8 = vcmp.lt.f32.partialorder %v14676_v30, %v14519_v35  ;;  %v7671_v58 = vsel %vm14686_vm12, 100000.0, %v14667_v22  ;;  %v15404_v1 = vmov 0  ;;  %v14719_v8 = vpop.f32.mrb[58].mxu1  ;;  %v14721_v25 = vpop.f32.mrb[127].mxu0  ;;  %v15476_v22 = vld [vmem:[#allocation2_spill] sm:$0xff] }
 0x4e1   : > { %v10328_v48 = vpop.eup %10327  ;;  %10341 = vrcp.f32 %v6987_v37  ;;  %vm14700_vm15 = vmor %vm7460_vm3, %vm7524_vm8  ;;  %vm7530_vm1 = vcmp.lt.f32.partialorder %v14683_v51, %v14399_v31  ;;  %vm7622_vm10 = vcmp.gt.f32.partialorder %v14683_v51, %v14415_v27  ;;  %v14713_v9 = vadd.f32 %v6106_v36, %v14069_v7  ;;  %v14732_v17 = vpop.f32.mrb[59].mxu1 }
 0x4e2   : > { %v15405_v1 = vsel %vm14700_vm15, 4294967295, %v15404_v1  ;;  %v10330_v5 = vpop.eup %10329  ;;  %v14708_v54 = vmul.f32 %v10328_v48, %v6112_v57  ;;  %vm7558_vm2 = vmor %vm7466_vm9, %vm7530_vm1  ;;  %vm6745_vm3 = vcmp.lt.f32.partialorder %v14596_v53, %v14545_v56  ;;  %v14730_v7 = vmul.f32 %v10326_v10, %v5493_v44 }
 0x4e3   : > { %vm14726_vm9 = vmor %vm7558_vm2, %vm7622_vm10  ;;  %vm15408_vm8 = vcmp.lt.f32.partialorder %v14419_v21, 1.0  ;;  %v14742_v13 = vmul.f32 %v10330_v5, %v5497_v49  ;;  %v14745_v14 = vadd.f32 %v8873_v60, %v14181_v41  ;;  %vm15409_vm2 = vcmp.gt.f32.partialorder %v14596_v53, %v14558_v40 }
 0x4e4   : > { %v7678_v55 = vsel %vm14726_vm9, 100000.0, %v14683_v51  ;;  %vm6773_vm11 = vmor %vm15408_vm8, %vm6745_vm3  ;;  %v10332_v44 = vpop.eup %10331  ;;  %vm7531_vm15 = vcmp.lt.f32.partialorder %v14730_v7, %v14519_v35  ;;  %v14756_v21 = vadd.f32 %v6119_v34, %v14143_v46  ;;  %vm15410_vm6 = vcmp.lt.f32.partialorder %v14536_v32, 1.0 }
 0x4e5   : > { %vm6865_vm1 = vmor %vm6773_vm11, %vm15409_vm2  ;;  %v15411_v36 = vmov 0  ;;  %vm6731_vm11 = vcmp.lt.f32.partialorder %v14610_v45, %v14545_v56  ;;  %v8474_v42 = vadd.f32 -1.0, %v14745_v14  ;;  %vm15413_vm8 = vcmask 138240   ;;  %v8877_v49 = vpop.f32.mrb[60].mxu1 }
 0x4e6   : > { %v6893_v41 = vsel %vm6865_vm1, 100000.0, %v14596_v53  ;;  %vm14762_vm10 = vmor %vm15410_vm6, %vm7531_vm15  ;;  %v10334_v46 = vpop.eup %10333  ;;  %vm15414_vm1 = vcmp.lt.f32.partialorder %v14627_v15, %v14545_v56  ;;  %vm15415_vm6 = vcmp.lt.f32.partialorder %v14482_v3, 1.0  ;;  %v8460_v32 = vadd.f32 -1.0, %v14756_v21 }
 0x4e7   : > { %v15412_v36 = vsel %vm14762_vm10, 4294967295, %v15411_v36  ;;  %v6924_v12 = vsel %vm15413_vm8, %v6893_v41, inf  ;;  %vm6780_vm15 = vmor %vm15415_vm6, %vm15414_vm1  ;;  %vm7537_vm10 = vcmp.lt.f32.partialorder %v14742_v13, %v14399_v31  ;;  %vm15416_vm8 = vcmp.gt.f32.partialorder %v14627_v15, %v14558_v40 }
 0x4e8   : > { %v10336_v53 = vpop.eup %10335  ;;  %v6925_v43 = vmin.f32 %v14282_v4, %v6924_v12  ;;  %vm14787_vm3 = vmor %vm6780_vm15, %vm15416_vm8  ;;  %v7391_v3 = vmax.f32 %v8474_v42, 1e-10  ;;  %v14793_v37 = vmul.f32 %v10332_v44, %v5499_v20  ;;  %vm15419_vm6 = vcmp.lt.f32.partialorder %v14442_v26, 1.0  ;;  %v6135_v20 = vpop.f32.mrb[61].mxu1 }
 0x4e9   : > { %v10338_v60 = vpop.eup %10337  ;;  %v14796_v48 = vmul.f32 %v10336_v53, %v14681_v63  ;;  %v6900_v4 = vsel %vm14787_vm3, 100000.0, %v14627_v15  ;;  %vm6759_vm15 = vmor %vm15419_vm6, %vm6731_vm11  ;;  %v7377_v34 = vmax.f32 %v8460_v32, 1e-10  ;;  %v14806_v5 = vmul.f32 %v10334_v46, %v5501_v6  ;;  %v8878_v26 = vpop.f32.mrb[62].mxu1  ;;  %v15422_v6 = vld [vmem:[#allocation24_spill] sm:$0xff] }
 0x4ea   : > { %v10340_v44 = vpop.eup %10339  ;;  %v14810_v63 = vmul.f32 %v10338_v60, %v14693_v24  ;;  %6926 = vmin.xlane.f32.xlu0 %v6925_v43  ;;  %vm15420_vm2 = vcmask 138240   ;;  %vm15421_vm3 = vcmp.gt.f32.partialorder %v14610_v45, %v14558_v40  ;;  %10343 = vrcp.f32 %v7391_v3  ;;  %v6138_v24 = vpop.f32.mrb[63].mxu1  ;;  %v15431_v43 = vld [vmem:[#allocation5_spill] sm:$0xff]  ;;  %v15432_v60 = vld [vmem:[#allocation4_spill] sm:$0xff] }
 0x4eb   : > { %v6933_v41 = vsel %vm15420_vm2, %v6900_v4, inf  ;;  %vm6851_vm1 = vmor %vm6759_vm15, %vm15421_vm3  ;;  %vm6830_vm11 = vcmp.gt.f32.partialorder %v14637_v11, %v14558_v40  ;;  %v10342_v15 = vpop.eup %10341  ;;  %vm15423_vm6 = vcmp.lt.f32.partialorder %v14575_v29, 1.0  ;;  %10345 = vrcp.f32 %v7377_v34  ;;  %v15428_v29 = vld [vmem:[#allocation9_spill] sm:$0xff]  ;;  %v15434_v34 = vld [vmem:[#allocation22_spill] sm:$0xff] }
 0x4ec   : > { %v6934_v42 = vmin.f32 %v15422_v6, %v6933_v41  ;;  %v6879_v46 = vsel %vm6851_vm1, 100000.0, %v14610_v45  ;;  %vm7565_vm2 = vmor %vm15423_vm6, %vm7537_vm10  ;;  %vm7538_vm15 = vcmp.lt.f32.partialorder %v14793_v37, %v14519_v35  ;;  %v14828_v12 = vmul.f32 %v10342_v15, %v14713_v9  ;;  %v15435_v15 = vld [vmem:[#allocation25_spill] sm:$0xff] }
 0x4ed   : > { %vm15424_vm3 = vcmask 138240   ;;  %vm15425_vm8 = vcmp.gt.f32.partialorder %v14742_v13, %v14415_v27  ;;  %v14853_v10 = vadd.f32 %v14719_v8, %v15431_v43  ;;  %v14856_v3 = vmul.f32 %v10340_v44, %v14721_v25  ;;  %v15459_v43 = vld [vmem:[#allocation7_spill] sm:$0xff] }
 0x4ee   : > { %v6906_v32 = vsel %vm15424_vm3, %v6879_v46, inf  ;;  %vm14834_vm1 = vmor %vm7565_vm2, %vm15425_vm8  ;;  %6935 = vmin.xlane.f32.xlu1 %v6934_v42  ;;  %vm15429_vm3 = vcmp.lt.f32.partialorder %v14637_v11, %v14545_v56  ;;  %vm15430_vm8 = vcmp.lt.f32.partialorder %v14487_v47, 1.0  ;;  %v14864_v4 = vadd.f32 %v14732_v17, %v15432_v60  ;;  %v15433_v56 = vld [vmem:[#allocation20_spill] sm:$0xff]  ;;  %v15453_v46 = vld [vmem:[#allocation6_spill] sm:$0xff] }
 0x4ef   : > { %v6907_v53 = vmin.f32 %v15428_v29, %v6906_v32  ;;  %v7685_v9 = vsel %vm14834_vm1, 100000.0, %v14742_v13  ;;  %vm6766_vm2 = vmor %vm15430_vm8, %vm15429_vm3  ;;  %v6144_v47 = vadd.f32 %v8877_v49, %v15433_v56  ;;  %v6136_v41 = vadd.f32 %v6135_v20, %v15434_v34  ;;  %v15442_v49 = vld [vmem:[#allocation21_spill] sm:$0xff] }
 0x4f0   : > { %vm6858_vm10 = vmor %vm6766_vm2, %vm6830_vm11  ;;  %v14869_v8 = vadd.f32 %v8878_v26, %v15435_v15  ;;  %vm15436_vm11 = vcmp.lt.f32.partialorder %v14580_v23, 1.0  ;;  %v15437_v40 = vmov 0  ;;  %v8481_v17 = vadd.f32 -1.0, %v14853_v10  ;;  %v15446_v26 = vld [vmem:[#allocation23_spill] sm:$0xff] }
 0x4f1   : > { %6908 = vmin.xlane.f32.xlu0 %v6907_v53  ;;  %v6886_v25 = vsel %vm6858_vm10, 100000.0, %v14637_v11  ;;  %vm14878_vm8 = vmor %vm15436_vm11, %vm7538_vm15  ;;  %vm7545_vm2 = vcmp.lt.f32.partialorder %v14856_v3, %v14519_v35  ;;  %vm7071_vm3 = vcmp.lt.f32.partialorder %v14665_v19, 1.0  ;;  %vm15439_vm1 = vcmask 138240  }
 0x4f2   : > { %v15438_v40 = vsel %vm14878_vm8, 4294967295, %v15437_v40  ;;  %v6915_v11 = vsel %vm15439_vm1, %v6886_v25, inf  ;;  %vm15440_vm10 = vcmp.lt.f32.partialorder %v14806_v5, %v14399_v31  ;;  %vm15441_vm9 = vcmp.lt.f32.partialorder %v14594_v18, 1.0 }
 0x4f3   : > { %vm7572_vm15 = vmor %vm15441_vm9, %vm15440_vm10  ;;  %v8467_v23 = vadd.f32 -1.0, %v14864_v4  ;;  %v6916_v20 = vmin.f32 %v15442_v49, %v6915_v11  ;;  %vm15443_vm6 = vcmp.gt.f32.partialorder %v14806_v5, %v14415_v27  ;;  %v7398_v44 = vmax.f32 %v8481_v17, 1e-10  ;;  %v15462_v49 = vld [vmem:[#allocation26_spill] sm:$0xff] }
 0x4f4   : > { %vm14900_vm8 = vmor %vm7572_vm15, %vm15443_vm6  ;;  %v14905_v31 = vadd.f32 %v6138_v24, %v15446_v26  ;;  %vm7142_vm9 = vcmp.lt.f32.partialorder %v14708_v54, %v14634_v62  ;;  %vm15447_vm1 = vcmp.lt.f32.partialorder %v14607_v39, 1.0  ;;  %vm7234_vm6 = vcmp.gt.f32.partialorder %v14708_v54, %v14649_v2  ;;  %v15451_v39 = vld [vmem:[#allocation28_spill] sm:$0xff]  ;;  %v10344_v32 = vpop.eup %10343  ;;  %v15467_v26 = vld [vmem:[#allocation27_spill] sm:$0xff] }
 0x4f5   : > { %v7692_v18 = vsel %vm14900_vm8, 100000.0, %v14806_v5  ;;  %vm14914_vm10 = vmor %vm15447_vm1, %vm7545_vm2  ;;  %v7384_v27 = vmax.f32 %v8467_v23, 1e-10  ;;  %v7289_v42 = vsel %vm14491_vm5, 100000.0, %v14421_v52  ;;  %6917 = vmin.xlane.f32.xlu1 %v6916_v20  ;;  %10347 = vrcp.f32 %v7398_v44  ;;  %v15454_v52 = vld [vmem:[#allocation32_spill] sm:$0xff]  ;;  %v10346_v56 = vpop.eup %10345 }
 0x4f6   : > { %vm15450_vm15 = vcmp.lt.f32.partialorder %v14590_v33, 1.0  ;;  %v15452_v5 = vsel %vm14467_vm0, 100000.0, %v15451_v39  ;;  %vm7149_vm8 = vcmp.lt.f32.partialorder %v14810_v63, %v14634_v62  ;;  %vm7241_vm2 = vcmp.gt.f32.partialorder %v14810_v63, %v14649_v2  ;;  %v15469_v39 = vld [vmem:[#allocation10_spill] sm:$0xff] }
 0x4f7   : > { %vm7170_vm11 = vmor %vm15450_vm15, %vm7142_vm9  ;;  %v7319_v24 = vmin.f32 %v15453_v46, %v15452_v5  ;;  %10349 = vrcp.f32 %v7384_v27  ;;  %v7296_v33 = vsel %vm14550_vm13, 100000.0, %v15454_v52  ;;  %v15458_v53 = vsel %vm14522_vm14, 100000.0, %v15457_v38 }
 0x4f8   : > { %vm7262_vm5 = vmor %vm7170_vm11, %vm7234_vm6  ;;  %v7328_v60 = vmin.f32 %v15459_v43, %v15458_v53  ;;  %vm7128_vm0 = vcmp.lt.f32.partialorder %v14796_v48, %v14634_v62  ;;  %v14944_v34 = vmul.f32 %v10344_v32, %v6144_v47  ;;  %vm15460_vm11 = vcmp.lt.f32.partialorder %v14645_v0, 1.0  ;;  %v15465_v0 = vld [vmem:[#allocation12_spill] sm:$0xff] }
 0x4f9   : > { %v7290_v15 = vsel %vm7262_vm5, 100000.0, %v14708_v54  ;;  %v7320_v25 = vmin.f32 %v7319_v24, %v7289_v42  ;;  %vm7177_vm9 = vmor %vm15460_vm11, %vm7149_vm8  ;;  %vm7220_vm13 = vcmp.gt.f32.partialorder %v14796_v48, %v14649_v2  ;;  %v7433_v17 = vmul.f32 %v10346_v56, %v6136_v41 }
 0x4fa   : > { %vm15461_vm1 = vcmask 138240   ;;  %vm7269_vm14 = vmor %vm7177_vm9, %vm7241_vm2  ;;  %v7329_v23 = vmin.f32 %v7328_v60, %v7296_v33  ;;  %v7275_v20 = vsel %vm14428_vm4, 100000.0, %v15462_v49  ;;  %vm15464_vm6 = vcmp.lt.f32.partialorder %v14641_v59, 1.0 }
 0x4fb   : > { %v7321_v11 = vsel %vm15461_vm1, %v7290_v15, inf  ;;  %v7297_v35 = vsel %vm7269_vm14, 100000.0, %v14810_v63  ;;  %vm7156_vm15 = vmor %vm15464_vm6, %vm7128_vm0  ;;  %v7302_v44 = vmin.f32 %v15465_v0, %v7275_v20  ;;  %vm7135_vm8 = vcmp.lt.f32.partialorder %v14828_v12, %v14634_v62  ;;  %v15470_v62 = vld [vmem:[#allocation13_spill] sm:$0xff] }
 0x4fc   : > { %v7322_v54 = vmin.f32 %v7320_v25, %v7321_v11  ;;  %vm15466_vm5 = vmmov %vm15461_vm1  ;;  %vm7227_vm2 = vcmp.gt.f32.partialorder %v14828_v12, %v14649_v2  ;;  %v7282_v42 = vsel %vm14449_vm7, 100000.0, %v15467_v26  ;;  %vm7525_vm4 = vcmp.lt.f32.partialorder %v7433_v17, %v15469_v39  ;;  %v15472_v2 = vld [vmem:[#allocation14_spill] sm:$0xff] }
 0x4fd   : > { %v7330_v41 = vsel %vm15466_vm5, %v7297_v35, inf  ;;  %vm7248_vm11 = vmor %vm7156_vm15, %vm7220_vm13  ;;  %vm7461_vm9 = vcmp.lt.f32.partialorder %v14756_v21, 1.0  ;;  %v7311_v5 = vmin.f32 %v15470_v62, %v7282_v42  ;;  %vm7617_vm14 = vcmp.gt.f32.partialorder %v7433_v17, %v14660_v50 }
 0x4fe   : > { %7323 = vmin.xlane.f32.xlu0 %v7322_v54  ;;  %v7331_v59 = vmin.f32 %v7329_v23, %v7330_v41  ;;  %v7276_v63 = vsel %vm7248_vm11, 100000.0, %v14796_v48  ;;  %vm7163_vm0 = vmor %vm7071_vm3, %vm7135_vm8  ;;  %v7698_v24 = vmin.f32 %v15472_v2, %v7671_v58  ;;  %v15474_v48 = vld [vmem:[#allocation15_spill] sm:$0xff]  ;;  %vm7623_vm3 = vcmp.gt.f32.partialorder %v14730_v7, %v14540_v16  ;;  %v15480_v58 = vld [vmem:[#allocation8_spill] sm:$0xff] }
 0x4ff   : > { %vm15471_vm13 = vmmov %vm15461_vm1  ;;  %v7707_v19 = vmin.f32 %v15474_v48, %v7678_v55  ;;  %v7716_v51 = vmin.f32 %v15476_v22, %v7685_v9  ;;  %vm15478_vm8 = vcmp.gt.f32.partialorder %v14676_v30, %v14540_v16  ;;  %v7725_v57 = vmin.f32 %v15480_v58, %v7692_v18  ;;  %v10348_v55 = vpop.eup %10347 }
 0x500   : > { %v7303_v46 = vsel %vm15471_vm13, %v7276_v63, inf  ;;  %vm7255_vm1 = vmor %vm7163_vm0, %vm7227_vm2  ;;  %7332 = vmin.xlane.f32.xlu1 %v7331_v59  ;;  %vm7539_vm2 = vcmp.lt.f32.partialorder %v14944_v34, %v15469_v39  ;;  %vm15481_vm13 = vnez %v15412_v36  ;;  %vm7631_vm7 = vcmp.gt.f32.partialorder %v14944_v34, %v14660_v50 }
 0x501   : > { %v7304_v32 = vmin.f32 %v7302_v44, %v7303_v46  ;;  %v7283_v52 = vsel %vm7255_vm1, 100000.0, %v14828_v12  ;;  %vm7553_vm12 = vmor %vm7461_vm9, %vm7525_vm4  ;;  %vm7475_vm4 = vcmp.lt.f32.partialorder %v14745_v14, 1.0  ;;  %vm7630_vm9 = vcmp.gt.f32.partialorder %v14793_v37, %v14540_v16 }
 0x502   : > { %vm15477_vm15 = vmmov %vm15466_vm5  ;;  %vm15479_vm5 = vnez %v15405_v1  ;;  %v10350_v1 = vpop.eup %10349  ;;  %v7454_v12 = vmul.f32 %v10348_v55, %v14869_v8  ;;  %vm7468_vm6 = vcmp.lt.f32.partialorder %v14864_v4, 1.0 }
 0x503   : > { %v7312_v61 = vsel %vm15477_vm15, %v7283_v52, inf  ;;  %vm7644_vm11 = vmor %vm15479_vm5, %vm15478_vm8  ;;  %7305 = vmin.xlane.f32.xlu0 %v7304_v32  ;;  %v7440_v18 = vmul.f32 %v10350_v1, %v14905_v31 }
 0x504   : > { %v7313_v13 = vmin.f32 %v7311_v5, %v7312_v61  ;;  %vm7645_vm0 = vmor %vm7553_vm12, %vm7617_vm14  ;;  %v7672_v21 = vsel %vm7644_vm11, 100000.0, %v14676_v30 }
 0x505   : > { %v7673_v45 = vsel %vm7645_vm0, 100000.0, %v7433_v17  ;;  %v7699_v9 = vmin.f32 %v7698_v24, %v7672_v21  ;;  %vm7651_vm1 = vmor %vm15481_vm13, %vm7623_vm3  ;;  %vm15483_vm3 = vnez %v15438_v40  ;;  %vm7532_vm8 = vcmp.lt.f32.partialorder %v7440_v18, %v15469_v39 }
 0x506   : > { %7314 = vmin.xlane.f32.xlu1 %v7313_v13  ;;  %vm15482_vm14 = vmmov %vm15477_vm15  ;;  %v7679_v30 = vsel %vm7651_vm1, 100000.0, %v14730_v7  ;;  %vm7624_vm5 = vcmp.gt.f32.partialorder %v7440_v18, %v14660_v50  ;;  %vm7546_vm0 = vcmp.lt.f32.partialorder %v7454_v12, %v15469_v39  ;;  %vm7482_vm13 = vcmp.lt.f32.partialorder %v14853_v10, 1.0 }
 0x507   : > { %v7700_v28 = vsel %vm15482_vm14, %v7673_v45, inf  ;;  %vm7567_vm12 = vmor %vm7475_vm4, %vm7539_vm2  ;;  %v7708_v8 = vmin.f32 %v7707_v19, %v7679_v30  ;;  %vm7637_vm2 = vcmp.gt.f32.partialorder %v14856_v3, %v14540_v16 }
 0x508   : > { %v7701_v36 = vmin.f32 %v7699_v9, %v7700_v28  ;;  %vm7658_vm15 = vmor %vm15483_vm3, %vm7630_vm9 }
 0x509   : > { %vm7659_vm11 = vmor %vm7567_vm12, %vm7631_vm7  ;;  %v7686_v7 = vsel %vm7658_vm15, 100000.0, %v14793_v37 }
 0x50a   : > { %7702 = vmin.xlane.f32.xlu0 %v7701_v36  ;;  %vm7560_vm4 = vmor %vm7468_vm6, %vm7532_vm8  ;;  %v7687_v14 = vsel %vm7659_vm11, 100000.0, %v14944_v34  ;;  %v7717_v4 = vmin.f32 %v7716_v51, %v7686_v7 }
 0x50b   : > { %vm7652_vm9 = vmor %vm7560_vm4, %vm7624_vm5 }
 0x50c   : > { %vm15484_vm1 = vmmov %vm15482_vm14  ;;  %vm7638_vm14 = vcmp.gt.f32.partialorder %v7454_v12, %v14660_v50  ;;  %v7680_v31 = vsel %vm7652_vm9, 100000.0, %v7440_v18 }
 0x50d   : > { %v7718_v40 = vsel %vm15484_vm1, %v7687_v14, inf  ;;  %vm7574_vm7 = vmor %vm7482_vm13, %vm7546_vm0 }
 0x50e   : > { %v7719_v37 = vmin.f32 %v7717_v4, %v7718_v40  ;;  %vm15485_vm12 = vmmov %vm15484_vm1 }
 0x50f   : > { %v7709_v33 = vsel %vm15485_vm12, %v7680_v31, inf  ;;  %vm7665_vm3 = vmor %vm14914_vm10, %vm7637_vm2  ;;  %vm6540_vm10 = vcmask 7168  }
 0x510   : > { %v7710_v16 = vmin.f32 %v7708_v8, %v7709_v33  ;;  %7720 = vmin.xlane.f32.xlu0 %v7719_v37  ;;  %vm7666_vm6 = vmor %vm7574_vm7, %vm7638_vm14  ;;  %v7693_v29 = vsel %vm7665_vm3, 100000.0, %v14856_v3 }
 0x511   : > { %v7694_v10 = vsel %vm7666_vm6, 100000.0, %v7454_v12  ;;  %v7726_v38 = vmin.f32 %v7725_v57, %v7693_v29  ;;  %vm15486_vm15 = vmmov %vm15484_vm1 }
 0x512   : > { %7711 = vmin.xlane.f32.xlu1 %v7710_v16  ;;  %v7727_v53 = vsel %vm15486_vm15, %v7694_v10, inf }
 0x513   : > { %v7728_v50 = vmin.f32 %v7726_v38, %v7727_v53 }
 0x516   : > { %7729 = vmin.xlane.f32.xlu1 %v7728_v50 }
 0x561   : > { %v6530_v3 = vpop.xlane.xlu1 %6529 }
 0x562   : > { %6543 = vst.msk [vmem:[%s15056_s23 + $0x10] sm:$0xff] %vm6540_vm10, %v6530_v3 }
 0x563   : > { %v6512_v6 = vpop.xlane.xlu0 %6511 }
 0x564   : > { %6541 = vst.msk [vmem:[%s15056_s23] sm:$0xff] %vm6540_vm10, %v6512_v6 }
 0x566   : > { %v6539_v43 = vpop.xlane.xlu1 %6538 }
 0x567   : > { %6544 = vst.msk [vmem:[%s15056_s23 + $0x18] sm:$0xff] %vm6540_vm10, %v6539_v43 }
 0x568   : > { %v6521_v60 = vpop.xlane.xlu0 %6520 }
 0x569   : > { %6542 = vst.msk [vmem:[%s15056_s23 + $0x8] sm:$0xff] %vm6540_vm10, %v6521_v60 }
 0x577   : > { %v6927_v56 = vpop.xlane.xlu0 %6926 }
 0x578   : > { %8416 = vst.msk [vmem:[%s15056_s23 + $0x30] sm:$0xff] %vm6540_vm10, %v6927_v56 }
 0x57b   : > { %v6936_v34 = vpop.xlane.xlu1 %6935 }
 0x57c   : > { %8417 = vst.msk [vmem:[%s15056_s23 + $0x38] sm:$0xff] %vm6540_vm10, %v6936_v34 }
 0x57e   : > { %v6909_v15 = vpop.xlane.xlu0 %6908 }
 0x57f   : > { %8414 = vst.msk [vmem:[%s15056_s23 + $0x20] sm:$0xff] %vm6540_vm10, %v6909_v15 }
 0x582   : > { %v6918_v25 = vpop.xlane.xlu1 %6917 }
 0x583   : > { %8415 = vst.msk [vmem:[%s15056_s23 + $0x28] sm:$0xff] %vm6540_vm10, %v6918_v25 }
 0x58b   : > { %v7324_v17 = vpop.xlane.xlu0 %7323 }
 0x58c   : > { %8450 = vst.msk [vmem:[%s15056_s23 + $0x50] sm:$0xff] %vm6540_vm10, %v7324_v17 }
 0x58d   : > { %v7333_v11 = vpop.xlane.xlu1 %7332 }
 0x58e   : > { %8451 = vst.msk [vmem:[%s15056_s23 + $0x58] sm:$0xff] %vm6540_vm10, %v7333_v11 }
 0x590   : > { %v7306_v23 = vpop.xlane.xlu0 %7305 }
 0x591   : > { %8448 = vst.msk [vmem:[%s15056_s23 + $0x40] sm:$0xff] %vm6540_vm10, %v7306_v23 }
 0x593   : > { %v7315_v49 = vpop.xlane.xlu1 %7314 }
 0x594   : > { %8449 = vst.msk [vmem:[%s15056_s23 + $0x48] sm:$0xff] %vm6540_vm10, %v7315_v49 }
 0x597   : > { %v7703_v47 = vpop.xlane.xlu0 %7702 }
 0x598   : > { %8482 = vst.msk [vmem:[%s15056_s23 + $0x60] sm:$0xff] %vm6540_vm10, %v7703_v47 }
 0x59d   : > { %v7721_v20 = vpop.xlane.xlu0 %7720 }
 0x59e   : > { %8484 = vst.msk [vmem:[%s15056_s23 + $0x70] sm:$0xff] %vm6540_vm10, %v7721_v20 }
 0x59f   : > { %v7712_v54 = vpop.xlane.xlu1 %7711 }
 0x5a0   : > { %8483 = vst.msk [vmem:[%s15056_s23 + $0x68] sm:$0xff] %vm6540_vm10, %v7712_v54 }
 0x5a3   : > { %v7730_v35 = vpop.xlane.xlu1 %7729 }
 0x5a4   : > { %8485 = vst.msk [vmem:[%s15056_s23 + $0x78] sm:$0xff] %vm6540_vm10, %v7730_v35 }
 0x5a5 PF: > { %s14_s15 = sadd.s32 1, %s10501_s15  }
 0x5a6   : > { %p11_p5 = scmp.ge.s32.totalorder %s14_s15, 4  }
 0x5a8   :  { %13 = sbr.rel (!%p11_p5) target bundleno = 1 (0x1), region = 81 }

// kernel: simple_cnn_forward.4
= control target key start
LH: loop header
LB: loop body
LE: loop exit
PB: predicated region body
PF: predicated region fallthrough
CT: control target
= control target key end

     0   :  { %s932_s15 = smov 0   ;;  %s1174_s0 = inlined_call_operand.vmem [shape: bf16[33,33], index: 0, kind: input, shape index: {}]   ;;  %s1175_s1 = inlined_call_operand.vmem [shape: bf16[160,33], index: 1, kind: input, shape index: {}]   ;;  %s1176_s2 = inlined_call_operand.vmem [shape: f32[8,1,33], index: 2, kind: input, shape index: {}]   ;;  %s1177_s3 = inlined_call_operand.vmem [shape: f32[8,1,33], index: 3, kind: input, shape index: {}]   ;;  %s1178_s4 = inlined_call_operand.vmem [shape: f32[8,10,1], index: 4, kind: output, shape index: {}]  }
   0x1 LB: > { %s766_s16 = sadd.s32 4294967295, %s902_s15   ;;  %p770_p0 = scmp.ge.s32.totalorder %s902_s15, 1  ;;  %s902_s15 = sphi %s932_s15, %s14_s15  }
   0x2   : > { %p183_p1 = scmp.lt.s32.totalorder %s902_s15, 3 }
   0x4   : > { %p184_p2 = pnand %p770_p0, %p183_p1 }
   0x5   : > { %v872_v0 = vld [vmem:[%s1174_s0] sm:$0xff] (!%p184_p2)   ;;  %v904_v1 = vmov (!%p184_p2), 0.0   ;;  %v873_v2 = vld [vmem:[%s1174_s0 + $0x8] sm:$0xff] (!%p184_p2)   ;;  %vm313_vm0 = vcmask (!%p184_p2), 1040384   ;;  %v905_v4 = vmov (!%p184_p2), 0   ;;  %s218_s23 = smul.u32 (!%p184_p2), 10, %s766_s16 }
   0x6   : > { %187 = sbr.rel (%p184_p2) target bundleno = 429 (0x1ad), region = 36  ;;  %829 = vmatprep.subr.bf16.mxu0 (!%p184_p2), %v904_v1  ;;  %855 = vmatprep.subr.bf16.mxu1 (!%p184_p2), %v904_v1  ;;  %v874_v3 = vld [vmem:[%s1174_s0 + $0x10] ss:$0 sps:$4 sm:$0x11] (!%p184_p2)   ;;  %v315_v5 = vsel (!%p184_p2), %vm313_vm0, 65535, %v905_v4  ;;  %vm906_vm1 = vmmov (!%p184_p2), 0  }
   0x7   : > { %830 = vmatpush3.bf16.msra.mxu0 (!%p184_p2), %v872_v0  ;;  %858 = vmatpush3.bf16.msra.mxu1 (!%p184_p2), %v872_v0  ;;  %p219_p3 = scmp.lt.s32.totalorder (!%p184_p2), %s218_s23, 19  ;;  %v317_v6 = vand.u32 (!%p184_p2), %v874_v3, %v315_v5  ;;  %vm1179_vm2 = vcmask (!%p184_p2), 269312   ;;  %s772_s28 = sshll.u32 (!%p184_p2), %s766_s16, 2  ;;  %vm1180_vm3 = vcmask (!%p184_p2), 1041408   ;;  %vm422_vm4 = vcmask (!%p184_p2), 1045504  }
   0x8   : > { %831 = vmatprep.subr.bf16.mxu0 (!%p184_p2), %v904_v1  ;;  %856 = vmatprep.subr.bf16.mxu1 (!%p184_p2), %v904_v1  ;;  %p225_p4 = scmp.lt.s32.totalorder (!%p184_p2), %s772_s28, 7  ;;  %vm1181_vm8 = vcmask (!%p184_p2), 263168  }
   0x9   : > { %835 = vmatprep.mubr.msk.bf16.mxu0 (!%p184_p2), %vm906_vm1, %v904_v1  ;;  %847 = vmatprep.mubr.msk.bf16.mxu1 (!%p184_p2), %vm906_vm1, %v904_v1 }
   0xb   : > { %832 = vmatpush3.bf16.msra.mxu0 (!%p184_p2), %v873_v2  ;;  %859 = vmatpush3.bf16.msra.mxu1 (!%p184_p2), %v873_v2 }
   0xc   : > { %833 = vmatprep.subr.bf16.mxu0 (!%p184_p2), %v904_v1  ;;  %857 = vmatprep.subr.bf16.mxu1 (!%p184_p2), %v904_v1 }
   0xd   : > { %s1202_s23 = smov (!%p219_p3, %s218_s23), 19  ;;  %s1204_s28 = smov (!%p225_p4, %s772_s28), 7 }
   0xe   : > { %s771_s24 = sshll.u32 %s1202_s23, 2  ;;  %s996_s5 = scalar_lea.vmem %s1176_s2, %s1204_s28 }
   0xf   : > { %834 = vmatpush3.bf16.msra.mxu0 %v317_v6  ;;  %860 = vmatpush3.bf16.msra.mxu1 %v317_v6  ;;  %s222_s27 = scalar_lea.vmem %s1175_s1, %s771_s24  ;;  %s1002_s8 = scalar_lea.vmem %s1177_s3, %s1204_s28  ;;  %v792_v46 = vld [vmem:[%s996_s5] ss:$0 sm:$0xff]  ;;  %v814_v58 = vld [vmem:[%s996_s5 + $0x3] ss:$0 sm:$0xff] }
  0x10   : > { %v875_v7 = vld [vmem:[%s222_s27] sm:$0xff]   ;;  %v876_v8 = vld [vmem:[%s222_s27 + $0x18] sm:$0xff]   ;;  %v877_v9 = vld [vmem:[%s222_s27 + $0x8] sm:$0xff]   ;;  %s820_s9 = sshll.u32 %s1204_s28, 4 }
  0x11   : > { %v878_v10 = vld [vmem:[%s222_s27 + $0x20] sm:$0xff]   ;;  %v879_v11 = vld [vmem:[%s222_s27 + $0x10] sm:$0xff]   ;;  %s239_s12 = scalar_lea.vmem %s1178_s4, %s820_s9 }
  0x12   : > { %836 = vmatmul.mubr.msk.bf16.vlgmr.msra.gmra.mrb[0].mxu0 %vm1179_vm2, %v875_v7  ;;  %848 = vmatmul.mubr.msk.bf16.vlgmr.msra.gmra.mrb[0].mxu1 %vm1179_vm2, %v876_v8  ;;  %v793_v48 = vld [vmem:[%s1002_s8] ss:$0 sm:$0xff]  ;;  %v1019_v59 = vld [vmem:[%s1002_s8 + $0x3] ss:$0 sm:$0xff]  ;;  %v798_v8 = vld [vmem:[%s996_s5 + $0x1] ss:$0 sm:$0xff] }
  0x13   : > { %839 = vmatprep.mubr.msk.bf16.mxu0 %vm906_vm1, %v904_v1  ;;  %851 = vmatprep.mubr.msk.bf16.mxu1 %vm906_vm1, %v904_v1 }
  0x1a   : > { %840 = vmatmul.mubr.msk.bf16.gmra.mrb[4].mxu0 %vm1179_vm2, %v877_v9  ;;  %852 = vmatmul.mubr.msk.bf16.gmra.mrb[4].mxu1 %vm1179_vm2, %v878_v10 }
  0x1b   : > { %843 = vmatprep.mubr.msk.bf16.mxu0 %vm906_vm1, %v904_v1 }
  0x22   : > { %844 = vmatmul.mubr.msk.bf16.gmra.mrb[8].mxu0 %vm1179_vm2, %v879_v11 }
  0xe5   : > { %v965_v12 = vpop.f32.mrb[0].mxu0  ;;  %v968_v15 = vpop.f32.mrb[0].mxu1 }
  0xe6   : > { %v790_v13 = vadd.f32 -1.0, %v965_v12  ;;  %v837_v14 = vpop.f32.mrb[1].mxu0  ;;  %v805_v17 = vadd.f32 -1.0, %v968_v15  ;;  %v849_v18 = vpop.f32.mrb[1].mxu1  ;;  %vm410_vm9 = vcmp.lt.f32.partialorder %v965_v12, 1.0 }
  0xe7   : > { %v970_v16 = vpop.f32.mrb[2].mxu0  ;;  %v976_v22 = vpop.f32.mrb[2].mxu1  ;;  %v799_v14 = vld [vmem:[%s1002_s8 + $0x1] ss:$0 sm:$0xff] }
  0xe8   : > { %v396_v19 = vmax.f32 %v790_v13, 1e-10  ;;  %v791_v20 = vadd.f32 -1.0, %v970_v16  ;;  %v838_v21 = vpop.f32.mrb[3].mxu0  ;;  %v812_v23 = vadd.f32 -1.0, %v976_v22  ;;  %v850_v24 = vpop.f32.mrb[3].mxu1 }
  0xe9   : > { %v551_v26 = vmax.f32 %v805_v17, 1e-10  ;;  %vm411_vm5 = vcmp.lt.f32.partialorder %v970_v16, 1.0 }
  0xea   : > { %880 = vrcp.f32 %v396_v19  ;;  %v397_v25 = vmax.f32 %v791_v20, 1e-10  ;;  %v623_v27 = vmax.f32 %v812_v23, 1e-10 }
  0xec   : > { %882 = vrcp.f32 %v397_v25 }
  0xed   : > { %884 = vrcp.f32 %v623_v27  ;;  %v979_v28 = vpop.f32.mrb[4].mxu0  ;;  %v982_v30 = vpop.f32.mrb[4].mxu1 }
  0xee   : > { %886 = vrcp.f32 %v551_v26  ;;  %v796_v29 = vadd.f32 -1.0, %v979_v28  ;;  %v841_v31 = vpop.f32.mrb[5].mxu0  ;;  %v813_v32 = vadd.f32 -1.0, %v982_v30  ;;  %v853_v34 = vpop.f32.mrb[5].mxu1 }
  0xef   : > { %v987_v33 = vpop.f32.mrb[6].mxu0  ;;  %v990_v38 = vpop.f32.mrb[6].mxu1 }
  0xf0   : > { %v473_v35 = vmax.f32 %v796_v29, 1e-10  ;;  %v797_v36 = vadd.f32 -1.0, %v987_v33  ;;  %v842_v37 = vpop.f32.mrb[7].mxu0  ;;  %v624_v39 = vmax.f32 %v813_v32, 1e-10 }
  0xf1   : > { %v854_v40 = vpop.f32.mrb[7].mxu1 }
  0xf2   : > { %888 = vrcp.f32 %v473_v35  ;;  %v474_v41 = vmax.f32 %v797_v36, 1e-10 }
  0xf3   : > { %890 = vrcp.f32 %v624_v39 }
  0xf4   : > { %v881_v42 = vpop.eup %880  ;;  %892 = vrcp.f32 %v474_v41 }
  0xf5   : > { %v403_v43 = vrot.slane %v881_v42, 6  ;;  %v369_v44 = vpop.f32.mrb[8].mxu0 }
  0xf6   : > { %v883_v45 = vpop.eup %882  ;;  %v845_v47 = vpop.f32.mrb[9].mxu0 }
  0xf7   : > { %v885_v49 = vpop.eup %884  ;;  %v404_v50 = vrot.slane %v883_v45, 6  ;;  %v1007_v51 = vmul.f32 %v403_v43, %v970_v16  ;;  %v1009_v52 = vpop.f32.mrb[10].mxu0 }
  0xf8   : > { %v1011_v53 = vpop.eup %886  ;;  %v629_v54 = vrot.slane %v885_v49, 6  ;;  %v804_v55 = vadd.f32 -1.0, %v1009_v52  ;;  %v846_v56 = vpop.f32.mrb[11].mxu0 }
  0xf9   : > { %vm418_vm6 = vcmp.lt.f32.partialorder %v1007_v51, %v792_v46  ;;  %v405_v57 = vsel %vm1180_vm3, %v403_v43, %v404_v50  ;;  %vm436_vm7 = vcmp.gt.f32.partialorder %v1007_v51, %v793_v48  ;;  %v557_v0 = vrot.slane %v1011_v53, 6 }
  0xfa   : > { %v420_v60 = vsel %vm418_vm6, 1, %v905_v4  ;;  %v409_v61 = vmul.f32 %v405_v57, %v979_v28  ;;  %v1025_v62 = vmul.f32 %v629_v54, %v982_v30  ;;  %v550_v63 = vmax.f32 %v804_v55, 1e-10 }
  0xfb   : > { %v423_v1 = vrot.slane %v420_v60, 2  ;;  %v1030_v2 = vsel %vm436_vm7, 1, %v905_v4  ;;  %v449_v3 = vrot.slane %v1007_v51, 2  ;;  %v806_v51 = vld [vmem:[%s996_s5 + $0x2] ss:$0 sm:$0xff] }
  0xfc   : > { %v889_v5 = vpop.eup %888  ;;  %894 = vrcp.f32 %v550_v63  ;;  %vm644_vm10 = vcmp.lt.f32.partialorder %v1025_v62, %v814_v58  ;;  %vm661_vm11 = vcmp.gt.f32.partialorder %v1025_v62, %v1019_v59  ;;  %vm419_vm12 = vcmp.lt.f32.partialorder %v409_v61, %v792_v46 }
  0xfd   : > { %v891_v6 = vpop.eup %890  ;;  %v479_v7 = vrot.slane %v889_v5, 6  ;;  %v1038_v9 = vsel %vm644_vm10, 1, %v905_v4  ;;  %v1041_v10 = vsel %vm661_vm11, 1, %v905_v4  ;;  %v421_v11 = vsel %vm419_vm12, 1, %v905_v4 }
  0xfe   : > { %v893_v13 = vpop.eup %892  ;;  %v630_v17 = vrot.slane %v891_v6, 6  ;;  %v648_v18 = vrot.slane %v1038_v9, 2  ;;  %v424_v19 = vrot.slane %v421_v11, 2  ;;  %vm437_vm13 = vcmp.gt.f32.partialorder %v409_v61, %v793_v48 }
  0xff   : > { %v1047_v20 = vmul.f32 %v479_v7, %v987_v33  ;;  %v480_v21 = vrot.slane %v893_v13, 6  ;;  %v439_v23 = vsel %vm437_vm13, 1, %v905_v4  ;;  %v450_v24 = vrot.slane %v409_v61, 2 }
 0x100   : > { %v631_v25 = vsel %vm1180_vm3, %v629_v54, %v630_v17  ;;  %vm427_vm14 = vcmp.ne.s32.totalorder %v424_v19, 0  ;;  %v441_v26 = vrot.slane %v439_v23, 2  ;;  %v425_v27 = vsel %vm422_vm4, %v423_v1, %v424_v19 }
 0x101   : > { %v481_v29 = vsel %vm1180_vm3, %v479_v7, %v480_v21  ;;  %vm494_vm0 = vcmp.lt.f32.partialorder %v1047_v20, %v798_v8  ;;  %vm511_vm1 = vcmp.gt.f32.partialorder %v1047_v20, %v799_v14  ;;  %v1057_v31 = vmul.f32 %v631_v25, %v990_v38  ;;  %vm429_vm6 = vmor %vm411_vm5, %vm427_vm14 }
 0x102   : > { %v485_v32 = vmul.f32 %v481_v29, %v369_v44  ;;  %v496_v34 = vsel %vm494_vm0, 1, %v905_v4  ;;  %v513_v35 = vsel %vm511_vm1, 1, %v905_v4  ;;  %vm444_vm7 = vcmp.ne.s32.totalorder %v441_v26, 0 }
 0x103   : > { %vm486_vm10 = vcmp.lt.f32.partialorder %v979_v28, 1.0  ;;  %v498_v36 = vrot.slane %v496_v34, 2  ;;  %vm645_vm11 = vcmp.lt.f32.partialorder %v1057_v31, %v814_v58  ;;  %vm662_vm12 = vcmp.gt.f32.partialorder %v1057_v31, %v1019_v59  ;;  %vm446_vm13 = vmor %vm429_vm6, %vm444_vm7 }
 0x104   : > { %vm426_vm2 = vcmp.ne.s32.totalorder %v425_v27, 0  ;;  %vm495_vm15 = vcmp.lt.f32.partialorder %v485_v32, %v798_v8  ;;  %vm512_vm3 = vcmp.gt.f32.partialorder %v485_v32, %v799_v14  ;;  %v1068_v16 = vsel %vm645_vm11, 1, %v905_v4 }
 0x105   : > { %v455_v37 = vsel %vm446_vm13, 100000.0, %v450_v24  ;;  %vm1072_vm5 = vmor %vm410_vm9, %vm426_vm2  ;;  %vm535_vm14 = vcmask 267264   ;;  %vm637_vm0 = vcmp.lt.f32.partialorder %v982_v30, 1.0  ;;  %v649_v39 = vrot.slane %v1068_v16, 2 }
 0x106   : > { %v460_v40 = vsel %vm1181_vm8, %v455_v37, inf  ;;  %v440_v41 = vrot.slane %v1030_v2, 2  ;;  %v451_v42 = vsel %vm422_vm4, %v449_v3, %v450_v24  ;;  %v895_v43 = vpop.eup %894  ;;  %v497_v12 = vsel %vm495_vm15, 1, %v905_v4 }
 0x107   : > { %461 = vmin.xlane.f32.xlu0 %v460_v40  ;;  %v514_v44 = vsel %vm512_vm3, 1, %v905_v4  ;;  %v525_v45 = vrot.slane %v485_v32, 2  ;;  %v515_v46 = vrot.slane %v513_v35, 2  ;;  %v556_v47 = vrot.slane %v895_v43, 6 }
 0x108   : > { %v442_v48 = vsel %vm422_vm4, %v440_v41, %v441_v26  ;;  %v499_v49 = vrot.slane %v497_v12, 2  ;;  %v516_v50 = vrot.slane %v514_v44, 2  ;;  %v524_v54 = vrot.slane %v1047_v20, 2 }
 0x109   : > { %vm443_vm1 = vcmp.ne.s32.totalorder %v442_v48, 0  ;;  %vm1089_vm15 = vcmp.ne.s32.totalorder %v649_v39, 0  ;;  %v1097_v56 = vsel %vm662_vm12, 1, %v905_v4  ;;  %vm1186_vm3 = vcmask 1041408  }
 0x10a   : > { %v558_v57 = vsel %vm1186_vm3, %v556_v47, %v557_v0  ;;  %v561_v58 = vmul.f32 %v556_v47, %v968_v15  ;;  %vm445_vm7 = vmor %vm1072_vm5, %vm443_vm1  ;;  %vm502_vm11 = vcmp.ne.s32.totalorder %v499_v49, 0  ;;  %vm1106_vm13 = vcmp.ne.s32.totalorder %v516_v50, 0  ;;  %v807_v0 = vld [vmem:[%s1002_s8 + $0x2] ss:$0 sm:$0xff] }
 0x10b   : > { %v562_v59 = vmul.f32 %v558_v57, %v976_v22  ;;  %v454_v61 = vsel %vm445_vm7, 100000.0, %v451_v42  ;;  %vm1189_vm12 = vcmp.lt.f32.partialorder %v987_v33, 1.0  ;;  %v500_v53 = vsel %vm422_vm4, %v498_v36, %v499_v49 }
 0x10c   : > { %vm504_vm8 = vmor %vm1189_vm12, %vm502_vm11  ;;  %v517_v63 = vsel %vm422_vm4, %v515_v46, %v516_v50  ;;  %vm571_vm3 = vcmp.lt.f32.partialorder %v561_v58, %v806_v51  ;;  %vm1190_vm6 = vcmask 269312   ;;  %vm501_vm1 = vcmp.ne.s32.totalorder %v500_v53, 0 }
 0x10d   : > { %v456_v1 = vsel %vm1190_vm6, %v454_v61, inf  ;;  %vm521_vm5 = vmor %vm504_vm8, %vm1106_vm13  ;;  %vm518_vm9 = vcmp.ne.s32.totalorder %v517_v63, 0  ;;  %vm572_vm2 = vcmp.lt.f32.partialorder %v562_v59, %v806_v51  ;;  %v573_v2 = vsel %vm571_vm3, 1, %v905_v4 }
 0x10e   : > { %457 = vmin.xlane.f32.xlu0 %v456_v1  ;;  %v530_v3 = vsel %vm521_vm5, 100000.0, %v525_v45  ;;  %vm503_vm7 = vmor %vm486_vm10, %vm501_vm1  ;;  %v526_v33 = vsel %vm422_vm4, %v524_v54, %v525_v45  ;;  %v574_v5 = vsel %vm572_vm2, 1, %v905_v4  ;;  %v575_v6 = vrot.slane %v573_v2, 2 }
 0x10f   : > { %v536_v7 = vsel %vm535_vm14, %v530_v3, inf  ;;  %vm520_vm6 = vmor %vm503_vm7, %vm518_vm9  ;;  %vm588_vm11 = vcmp.gt.f32.partialorder %v561_v58, %v807_v0  ;;  %v576_v8 = vrot.slane %v574_v5, 2  ;;  %vm589_vm8 = vcmp.gt.f32.partialorder %v562_v59, %v807_v0 }
 0x110   : > { %537 = vmin.xlane.f32.xlu1 %v536_v7  ;;  %v529_v11 = vsel %vm520_vm6, 100000.0, %v526_v33  ;;  %v602_v13 = vrot.slane %v562_v59, 2  ;;  %vm1129_vm13 = vmor %vm637_vm0, %vm1089_vm15  ;;  %vm1193_vm10 = vcmask 269316   ;;  %v591_v17 = vsel %vm589_vm8, 1, %v905_v4 }
 0x111   : > { %v532_v14 = vsel %vm1193_vm10, %v529_v11, inf  ;;  %v590_v19 = vsel %vm588_vm11, 1, %v905_v4  ;;  %v601_v20 = vrot.slane %v561_v58, 2  ;;  %v577_v21 = vsel %vm422_vm4, %v575_v6, %v576_v8 }
 0x112   : > { %vm579_vm2 = vcmp.ne.s32.totalorder %v576_v8, 0  ;;  %v593_v23 = vrot.slane %v591_v17, 2  ;;  %v592_v24 = vrot.slane %v590_v19, 2  ;;  %vm578_vm9 = vcmp.ne.s32.totalorder %v577_v21, 0 }
 0x113   : > { %vm1194_vm12 = vcmp.lt.f32.partialorder %v968_v15, 1.0  ;;  %v603_v25 = vsel %vm422_vm4, %v601_v20, %v602_v13  ;;  %v666_v26 = vrot.slane %v1097_v56, 2  ;;  %v675_v27 = vrot.slane %v1057_v31, 2 }
 0x114   : > { %vm1139_vm3 = vmor %vm1194_vm12, %vm579_vm2  ;;  %vm1197_vm0 = vcmp.lt.f32.partialorder %v1009_v52, 1.0  ;;  %533 = vmin.xlane.f32.xlu1 %v532_v14  ;;  %vm596_vm5 = vcmp.ne.s32.totalorder %v593_v23, 0  ;;  %v594_v4 = vsel %vm422_vm4, %v592_v24, %v593_v23  ;;  %v650_v15 = vsel %vm422_vm4, %v648_v18, %v649_v39 }
 0x115   : > { %vm580_vm15 = vmor %vm1197_vm0, %vm578_vm9  ;;  %v665_v29 = vrot.slane %v1041_v10, 2  ;;  %vm595_vm7 = vcmp.ne.s32.totalorder %v594_v4, 0  ;;  %vm669_vm6 = vcmp.ne.s32.totalorder %v666_v26, 0  ;;  %vm651_vm11 = vcmp.ne.s32.totalorder %v650_v15, 0 }
 0x116   : > { %vm598_vm1 = vmor %vm1139_vm3, %vm596_vm5  ;;  %v674_v52 = vrot.slane %v1025_v62, 2  ;;  %vm636_vm8 = vcmp.lt.f32.partialorder %v976_v22, 1.0  ;;  %vm1198_vm2 = vcmask 263168   ;;  %vm1199_vm3 = vcmask 269312  }
 0x117   : > { %v607_v31 = vsel %vm598_vm1, 100000.0, %v602_v13  ;;  %vm597_vm10 = vmor %vm580_vm15, %vm595_vm7  ;;  %v667_v32 = vsel %vm422_vm4, %v665_v29, %v666_v26  ;;  %vm1200_vm15 = vcmask 269316   ;;  %vm542_vm1 = vcmask 5120  }
 0x118   : > { %v611_v9 = vsel %vm1198_vm2, %v607_v31, inf  ;;  %v606_v18 = vsel %vm597_vm10, 100000.0, %v603_v25  ;;  %vm671_vm9 = vmor %vm1129_vm13, %vm669_vm6  ;;  %vm668_vm12 = vcmp.ne.s32.totalorder %v667_v32, 0  ;;  %v676_v10 = vsel %vm422_vm4, %v674_v52, %v675_v27 }
 0x119   : > { %612 = vmin.xlane.f32.xlu1 %v611_v9  ;;  %v608_v34 = vsel %vm1199_vm3, %v606_v18, inf  ;;  %v680_v62 = vsel %vm671_vm9, 100000.0, %v675_v27  ;;  %vm653_vm0 = vmor %vm636_vm8, %vm651_vm11  ;;  %vm465_vm4 = vcmask 1024   ;;  %vm463_vm13 = vcmask 7168  }
 0x11a   : > { %609 = vmin.xlane.f32.xlu0 %v608_v34  ;;  %vm670_vm5 = vmor %vm653_vm0, %vm668_vm12  ;;  %v684_v35 = vsel %vm535_vm14, %v680_v62, inf  ;;  %vm540_vm7 = vcmask 7172  }
 0x11b   : > { %v679_v22 = vsel %vm670_vm5, 100000.0, %v676_v10 }
 0x11c   : > { %v681_v36 = vsel %vm1200_vm15, %v679_v22, inf }
 0x11d   : > { %685 = vmin.xlane.f32.xlu1 %v684_v35 }
 0x11e   : > { %682 = vmin.xlane.f32.xlu0 %v681_v36 }
 0x194   : > { %v462_v16 = vpop.xlane.xlu0 %461 }
 0x195   : > { %466 = vst.msk [vmem:[%s239_s12 + $0x8] sm:$0x3] %vm465_vm4, %v462_v16 }
 0x19b   : > { %v458_v37 = vpop.xlane.xlu0 %457 }
 0x19c   : > { %464 = vst.msk [vmem:[%s239_s12] sm:$0xff] %vm463_vm13, %v458_v37 }
 0x19d   : > { %v538_v38 = vpop.xlane.xlu1 %537 }
 0x19e   : > { %801 = vst.msk [vmem:[%s239_s12 + $0x14] sm:$0x3f] %vm542_vm1, %v538_v38 }
 0x1a1   : > { %v534_v39 = vpop.xlane.xlu1 %533 }
 0x1a2   : > { %800 = vst.msk [vmem:[%s239_s12 + $0xc] sm:$0xf0] %vm540_vm7, %v534_v39 }
 0x1a6   : > { %v613_v40 = vpop.xlane.xlu1 %612 }
 0x1a7   : > { %809 = vst.msk [vmem:[%s239_s12 + $0x28] sm:$0x3] %vm465_vm4, %v613_v40  ;;  %v610_v41 = vpop.xlane.xlu0 %609 }
 0x1a8   : > { %808 = vst.msk [vmem:[%s239_s12 + $0x20] sm:$0xff] %vm463_vm13, %v610_v41 }
 0x1aa   : > { %v686_v42 = vpop.xlane.xlu1 %685 }
 0x1ab   : > { %817 = vst.msk [vmem:[%s239_s12 + $0x34] sm:$0x3f] %vm542_vm1, %v686_v42  ;;  %v683_v43 = vpop.xlane.xlu0 %682 }
 0x1ac   : > { %816 = vst.msk [vmem:[%s239_s12 + $0x2c] sm:$0xf0] %vm540_vm7, %v683_v43 }
 0x1ad PF: > { %s14_s15 = sadd.s32 1, %s902_s15  }
 0x1ae   : > { %p11_p5 = scmp.ge.s32.totalorder %s14_s15, 4  }
 0x1b0   :  { %13 = sbr.rel (!%p11_p5) target bundleno = 1 (0x1), region = 81 }

// kernel: simple_cnn_forward.5
= control target key start
LH: loop header
LB: loop body
LE: loop exit
PB: predicated region body
PF: predicated region fallthrough
CT: control target
= control target key end

     0   :  { %9 = vsyncpa [#allocation3], 0  ;;  %vm17_vm0 = vcmask 80896   ;;  %s224_s0 = inlined_call_operand.vmem [shape: f32[8,10], index: 0, kind: input, shape index: {}]   ;;  %s225_s1 = inlined_call_operand.vmem [shape: f32[8,10], index: 1, kind: input, shape index: {}]   ;;  %s226_s2 = inlined_call_operand.hbm [shape: f32[1,1], index: 2, kind: output, shape index: {0}]   ;;  %s227_s3 = inlined_call_operand.hbm [shape: f32[1,1], index: 3, kind: output, shape index: {1}]  }
   0x1   :  { %v15_v0 = vld [vmem:[%s224_s0] sm:$0xff] }
   0x2   :  { %v16_v1 = vld [vmem:[%s225_s1] sm:$0xff] }
   0x3   :  { %10 = vsyncpa [#allocation5], 0  ;;  %v18_v2 = vsel %vm17_vm0, %v15_v0, inf  ;;  %v21_v3 = vmul.f32 %v16_v1, %v15_v0  ;;  %v53_v5 = vlaneseq  ;;  %v164_v25 = vmov 0.0   ;;  %s165_s0 = smov [#allocation4]  }
   0x4   :  { %19 = vmin.xlane.f32.xlu0 %v18_v2  ;;  %s92_s1 = sshll.u32 %s165_s0, 4  ;;  %vm51_vm3 = vcmask 0   ;;  %s93_s1 = int_to_ptr.vmem [resolvable:$true] %s92_s1 }
   0x5   :  { %v22_v4 = vsel %vm17_vm0, %v21_v3, 0.0  ;;  %v54_v6 = vand.u32 127, %v53_v5  ;;  %s116_s16 = scalar_lea.vmem %s93_s1, 16  ;;  %s120_s17 = scalar_lea.vmem %s93_s1, 32 }
   0x6   :  { %p117_p0 = scmp.ne.s32.totalorder %s93_s1, %s116_s16  ;;  %p121_p1 = scmp.lt.s32.totalorder %s93_s1, %s93_s1 }
   0x7   :  { %v55_v7 = vcvt.s32.f32 %v54_v6  ;;  %p122_p2 = scmp.lt.s32.totalorder %s120_s17, %s116_s16 }
   0x8   :  { %23 = vadd.xlane.f32.xlu0 %v22_v4 }
   0x9   :  { %v61_v8 = vmul.f32 %v55_v7, %v16_v1  ;;  %p123_p3 = por %p122_p2, %p121_p1 }
   0xb   :  { %v62_v9 = vsel %vm17_vm0, %v61_v8, 0.0  ;;  %p124_p4 = pnand %p123_p3, %p117_p0 }
   0xc   :  { %63 = vadd.xlane.f32.xlu0 %v62_v9 }
  0x91   :  { %v20_v10 = vpop.xlane.xlu0 %19 }
  0x92   :  { %v29_v11 = vsub.f32 %v15_v0, %v20_v10  ;;  %vm56_vm1 = vcmp.eq.f32.partialorder %v15_v0, %v20_v10 }
  0x93   :  { %v57_v16 = vsel %vm56_vm1, %v55_v7, 10.0 }
  0x94   :  { %v30_v12 = vsub.f32 0.0, %v29_v11  ;;  %v58_v17 = vsel %vm17_vm0, %v57_v16, inf }
  0x95   :  { %v24_v18 = vpop.xlane.xlu0 %23 }
  0x96   :  { %v31_v13 = vmul.f32 1.442695, %v30_v12  ;;  %v25_v19 = vsub.f32 %v24_v18, %v20_v10 }
  0x98   :  { %108 = vpow2.f32 %v31_v13  ;;  %v26_v20 = vsub.f32 0.0, %v25_v19 }
  0x99   :  { %v64_v23 = vpop.xlane.xlu0 %63 }
  0x9a   :  { %v27_v21 = vmul.f32 1.442695, %v26_v20 }
  0x9c   :  { %110 = vpow2.f32 %v27_v21 }
  0xa2   :  { %v109_v14 = vpop.eup %108 }
  0xa3   :  { %v33_v15 = vsel %vm17_vm0, %v109_v14, 0.0 }
  0xa4   :  { %34 = vadd.xlane.f32.xlu1 %v33_v15 }
  0xa6   :  { %v111_v29 = vpop.eup %110 }
  0xa8   :  { %59 = vmin.xlane.f32.xlu1 %v58_v17 }
 0x131   :  { %v35_v22 = vpop.xlane.xlu1 %34 }
 0x132   :  { %112 = vrcp.f32 %v35_v22 }
 0x135   :  { %v60_v24 = vpop.xlane.xlu1 %59 }
 0x136   :  { %vm65_vm2 = vcmp.eq.f32.partialorder %v60_v24, %v64_v23 }
 0x137   :  { %v104_v26 = vsel %vm65_vm2, 1.0, %v164_v25 }
 0x138   :  { %v68_v27 = vrot.slane %v104_v26, 4 }
 0x13a   :  { %v69_v28 = vadd.f32 %v104_v26, %v68_v27 }
 0x13c   :  { %v113_v30 = vpop.eup %112  ;;  %v70_v31 = vrot.slane %v69_v28, 2 }
 0x13d   :  { %v37_v32 = vmul.f32 %v113_v30, %v111_v29 }
 0x13e   :  { %v71_v33 = vadd.f32 %v70_v31, %v69_v28 }
 0x13f   :  { %v38_v34 = vmax.f32 %v37_v32, 1e-10 }
 0x140   :  { %v72_v35 = vrot.slane %v71_v33, 1 }
 0x141   :  { %v39_v36 = vmin.f32 %v38_v34, 1.0 }
 0x142   :  { %v73_v37 = vadd.f32 %v72_v35, %v71_v33 }
 0x143   :  { %114 = vlog2.f32 %v39_v36 }
 0x144   :  { %v74_v38 = vmul.f32 0.125, %v73_v37 }
 0x146   :  { %75 = vst.msk [vmem:[#allocation4] sm:$0x1] %vm51_vm3, %v74_v38 }
 0x147   :  { %127 = shalt.err (!%p124_p4)
}
 0x148   :  { %s128_s20 = scalar_lea.hbm %s227_s3, 16 }
 0x149   :  { %p129_p5 = scmp.ne.s32.totalorder %s227_s3, %s128_s20  ;;  %p132_p6 = scmp.lt.u32.totalorder %s128_s20, %s227_s3 }
 0x14b   :  { %p134_p7 = pnand %p132_p6, %p129_p5 }
 0x14d   :  { %137 = shalt.err (!%p134_p7)
}
 0x14e   :  { %95 = dma.vmem_to_hbm [thread:$0]  %s93_s1, 16, %s227_s3, [#allocation5]   ;;  %v115_v39 = vpop.eup %114 }
 0x14f   :  { %v41_v40 = vmul.f32 0.6931472, %v115_v39  ;;  %s166_s27 = smov [#allocation2]  }
 0x150   :  { %s82_s28 = sshll.u32 %s166_s27, 4  ;;  %s83_s28 = int_to_ptr.vmem [resolvable:$true] %s82_s28 }
 0x151   :  { %v42_v41 = vsub.f32 0.0, %v41_v40  ;;  %s138_s29 = scalar_lea.vmem %s83_s28, 16  ;;  %s142_s30 = scalar_lea.vmem %s83_s28, 32 }
 0x152   :  { %p139_p8 = scmp.ne.s32.totalorder %s83_s28, %s138_s29  ;;  %p143_p9 = scmp.lt.s32.totalorder %s83_s28, %s83_s28 }
 0x153   :  { %v43_v42 = vrot.slane %v42_v41, 4  ;;  %p144_p10 = scmp.lt.s32.totalorder %s142_s30, %s138_s29 }
 0x155   :  { %v44_v43 = vadd.f32 %v43_v42, %v42_v41  ;;  %p145_p11 = por %p144_p10, %p143_p9 }
 0x157   :  { %v45_v44 = vrot.slane %v44_v43, 2  ;;  %p146_p12 = pnand %p145_p11, %p139_p8 }
 0x159   :  { %v46_v45 = vadd.f32 %v45_v44, %v44_v43 }
 0x15b   :  { %v47_v46 = vrot.slane %v46_v45, 1 }
 0x15d   :  { %v48_v47 = vadd.f32 %v47_v46, %v46_v45 }
 0x15f   :  { %v50_v48 = vmul.f32 0.125, %v48_v47 }
 0x161   :  { %52 = vst.msk [vmem:[#allocation2] sm:$0x1] %vm51_vm3, %v50_v48 }
 0x162   :  { %149 = shalt.err (!%p146_p12)
}
 0x163   :  { %s150_s5 = scalar_lea.hbm %s226_s2, 16 }
 0x164   :  { %p151_p13 = scmp.ne.s32.totalorder %s226_s2, %s150_s5  ;;  %p154_p0 = scmp.lt.u32.totalorder %s150_s5, %s226_s2 }
 0x166   :  { %p156_p1 = pnand %p154_p0, %p151_p13 }
 0x168   :  { %159 = shalt.err (!%p156_p1)
}
 0x169   :  { %85 = dma.vmem_to_hbm [thread:$0]  %s83_s28, 16, %s226_s2, [#allocation3]  }
 0x16a   :  { %160 = dma.done.wait [#allocation3], 16  }
 0x16b   :  { %161 = vsyncadd [#allocation3], 4294967280 }
 0x16c   :  { %162 = dma.done.wait [#allocation5], 16  }
 0x16d   :  { %163 = vsyncadd [#allocation5], 4294967280 }
 0x16e   :  { %102 = vsyncpa [#allocation3], 1 }
 0x16f   :  { %103 = vsyncpa [#allocation5], 1 }

</bundles_post_ra>
